<compile_context>
chip_gen: v5e
topology: v5e:2x2
jax: 0.10.0
libtpu: 0.0.40
codegen_flags: <defaults>
</compile_context>

<pallas_src>
import jax
import jax.numpy as jnp
from jax.experimental import pallas as pl
from jax.experimental.pallas import tpu as pltpu

_BN_EPS = 1e-5
_LEAKY = 0.2


# ----------------------------------------------------------------------------
# Tile selection: match real dims, no padding (all dims in this net are
# multiples of 8, so the full-dim fallback is always layout-legal).
# ----------------------------------------------------------------------------
def _pick_tile(dim, candidates):
    for c in candidates:
        if dim % c == 0:
            return c
    return dim


def _matmul_tiles(M, K, N):
    tm = _pick_tile(M, (256, 128, 64, 32, 16, 8))
    tk = _pick_tile(K, (512, 256, 128, 64, 32, 16, 8))
    tn = _pick_tile(N, (256, 128, 64, 32, 16, 8))
    # Keep >=2 blocks on at least one "parallel" axis for megacore (v7x).
    if M // tm == 1 and N // tn == 1 and tn >= 256:
        tn //= 2
    return tm, tk, tn


# ----------------------------------------------------------------------------
# Pallas matmul kernels (bf16 operands, f32 accumulation, fused epilogues)
# ----------------------------------------------------------------------------
def _matmul_leaky_kernel(a_ref, b_ref, o_ref, acc_ref):
    @pl.when(pl.program_id(2) == 0)
    def _():
        acc_ref[...] = jnp.zeros_like(acc_ref)

    acc_ref[...] += jnp.dot(a_ref[...], b_ref[...],
                            preferred_element_type=jnp.float32)

    @pl.when(pl.program_id(2) == pl.num_programs(2) - 1)
    def _():
        y = acc_ref[...]
        o_ref[...] = jnp.where(y >= 0, y, _LEAKY * y).astype(o_ref.dtype)


def _matmul_stats_kernel(a_ref, b_ref, o_ref, sum_ref, sq_ref, acc_ref):
    @pl.when(pl.program_id(2) == 0)
    def _():
        acc_ref[...] = jnp.zeros_like(acc_ref)

    acc_ref[...] += jnp.dot(a_ref[...], b_ref[...],
                            preferred_element_type=jnp.float32)

    @pl.when(pl.program_id(2) == pl.num_programs(2) - 1)
    def _():
        y = acc_ref[...]
        o_ref[...] = y.astype(o_ref.dtype)
        col_sum = jnp.sum(y, axis=0, keepdims=True)       # (1, tn)
        col_sq = jnp.sum(y * y, axis=0, keepdims=True)    # (1, tn)
        sum_ref[...] = jnp.broadcast_to(col_sum, sum_ref.shape)
        sq_ref[...] = jnp.broadcast_to(col_sq, sq_ref.shape)


def pallas_matmul_leaky(a, b):
    """a: [M, K] bf16, b: [K, N] bf16 -> LeakyReLU(a @ b) as bf16 [M, N]."""
    M, K = a.shape
    K2, N = b.shape
    assert K == K2
    tm, tk, tn = _matmul_tiles(M, K, N)
    return pl.pallas_call(
        _matmul_leaky_kernel,
        out_shape=jax.ShapeDtypeStruct((M, N), jnp.bfloat16),
        grid_spec=pltpu.PrefetchScalarGridSpec(
            num_scalar_prefetch=0,
            grid=(M // tm, N // tn, K // tk),
            in_specs=[pl.BlockSpec((tm, tk), lambda i, j, k: (i, k)),
                      pl.BlockSpec((tk, tn), lambda i, j, k: (k, j))],
            out_specs=pl.BlockSpec((tm, tn), lambda i, j, k: (i, j)),
            scratch_shapes=[pltpu.VMEM((tm, tn), jnp.float32)]),
        compiler_params=pltpu.CompilerParams(
            dimension_semantics=("parallel", "parallel", "arbitrary")),
    )(a, b)


def pallas_matmul_bn_stats(a, b):
    """a: [M, K] bf16, b: [K, N] bf16.

    Returns (y, ch_sum, ch_sq):
      y      : [M, N] bf16  raw conv output
      ch_sum : [N]  f32     per-channel sum of y (from the f32 accumulator)
      ch_sq  : [N]  f32     per-channel sum of y*y
    """
    M, K = a.shape
    K2, N = b.shape
    assert K == K2
    tm, tk, tn = _matmul_tiles(M, K, N)
    gm, gn, gk = M // tm, N // tn, K // tk
    y, s, q = pl.pallas_call(
        _matmul_stats_kernel,
        out_shape=(jax.ShapeDtypeStruct((M, N), jnp.bfloat16),
                   jax.ShapeDtypeStruct((gm * 8, N), jnp.float32),
                   jax.ShapeDtypeStruct((gm * 8, N), jnp.float32)),
        grid_spec=pltpu.PrefetchScalarGridSpec(
            num_scalar_prefetch=0,
            grid=(gm, gn, gk),
            in_specs=[pl.BlockSpec((tm, tk), lambda i, j, k: (i, k)),
                      pl.BlockSpec((tk, tn), lambda i, j, k: (k, j))],
            out_specs=[pl.BlockSpec((tm, tn), lambda i, j, k: (i, j)),
                       pl.BlockSpec((8, tn), lambda i, j, k: (i, j)),
                       pl.BlockSpec((8, tn), lambda i, j, k: (i, j))],
            scratch_shapes=[pltpu.VMEM((tm, tn), jnp.float32)]),
        compiler_params=pltpu.CompilerParams(
            dimension_semantics=("parallel", "parallel", "arbitrary")),
    )(a, b)
    # Each 8-row block carries the same per-M-tile partial sums; reduce over tiles.
    ch_sum = jnp.sum(s.reshape(gm, 8, N)[:, 0, :], axis=0)
    ch_sq = jnp.sum(q.reshape(gm, 8, N)[:, 0, :], axis=0)
    return y, ch_sum, ch_sq


# ----------------------------------------------------------------------------
# Blocked, lane-dense BN-affine + LeakyReLU kernel (conv2-4 epilogue)
# ----------------------------------------------------------------------------
def _affine_leaky_kernel(x_ref, s_ref, t_ref, o_ref):
    y = x_ref[...].astype(jnp.float32) * s_ref[...] + t_ref[...]
    o_ref[...] = jnp.where(y >= 0, y, _LEAKY * y).astype(o_ref.dtype)


def pallas_affine_leaky(x, scale, shift):
    """x: [M, C] bf16; scale/shift: [C] f32 -> bf16 [M, C]. C is 128-multiple."""
    M, C = x.shape
    bm = _pick_tile(M, (512, 256, 128, 64, 32, 16, 8))
    return pl.pallas_call(
        _affine_leaky_kernel,
        out_shape=jax.ShapeDtypeStruct((M, C), jnp.bfloat16),
        grid_spec=pltpu.PrefetchScalarGridSpec(
            num_scalar_prefetch=0,
            grid=(M // bm,),
            in_specs=[pl.BlockSpec((bm, C), lambda i: (i, 0)),
                      pl.BlockSpec((1, C), lambda i: (0, 0)),
                      pl.BlockSpec((1, C), lambda i: (0, 0))],
            out_specs=pl.BlockSpec((bm, C), lambda i: (i, 0))),
        compiler_params=pltpu.CompilerParams(
            dimension_semantics=("parallel",)),
    )(x, scale.reshape(1, C).astype(jnp.float32),
      shift.reshape(1, C).astype(jnp.float32))


# ----------------------------------------------------------------------------
# Final 1-output conv head: fused VPU dot-reduction + sigmoid
# ----------------------------------------------------------------------------
def _head_sigmoid_kernel(x_ref, w_ref, o_ref):
    y = jnp.sum(x_ref[...].astype(jnp.float32) * w_ref[...],
                axis=-1, keepdims=True)
    o_ref[...] = 1.0 / (1.0 + jnp.exp(-y))


def pallas_head_sigmoid(x_flat, w_row):
    """x_flat: [B, K] bf16, w_row: [1, K] f32 -> sigmoid(x @ w^T) as [B, 1] f32."""
    B, K = x_flat.shape
    return pl.pallas_call(
        _head_sigmoid_kernel,
        out_shape=jax.ShapeDtypeStruct((B, 1), jnp.float32),
    )(x_flat, w_row.astype(jnp.float32))


# ----------------------------------------------------------------------------
# im2col + weight layout glue (plain JAX, bf16)
# ----------------------------------------------------------------------------
def _im2col(x_nhwc, kh, kw, stride, pad):
    N, H, W, C = x_nhwc.shape
    x_pad = jnp.pad(x_nhwc, ((0, 0), (pad, pad), (pad, pad), (0, 0)))
    OH = (H + 2 * pad - kh) // stride + 1
    OW = (W + 2 * pad - kw) // stride + 1
    cols = []
    for ky in range(kh):
        for kx in range(kw):
            cols.append(x_pad[:, ky:ky + stride * OH:stride,
                              kx:kx + stride * OW:stride, :])
    # feature ordering: (ky, kx, cin) -- matches the weight reshape below.
    patches = jnp.stack(cols, axis=3).reshape(N, OH, OW, kh * kw * C)
    return patches.reshape(N * OH * OW, kh * kw * C), OH, OW


def _w_to_mat(w_oihw):
    """[Cout, Cin, KH, KW] -> bf16 [KH*KW*Cin, Cout] matching im2col ordering."""
    Cout, Cin, KH, KW = w_oihw.shape
    return jnp.transpose(w_oihw, (2, 3, 1, 0)).reshape(
        KH * KW * Cin, Cout).astype(jnp.bfloat16)


# ----------------------------------------------------------------------------
# Discriminator forward
# ----------------------------------------------------------------------------
def discriminator_forward(x_nchw, params):
    # NCHW (PyTorch) -> NHWC; activations / patches travel in bf16.
    x = jnp.transpose(x_nchw, (0, 2, 3, 1)).astype(jnp.bfloat16)
    batch = x.shape[0]

    # Conv(1 -> 64, k4 s2 p1) + LeakyReLU(0.2), fused into the matmul epilogue.
    p, OH, OW = _im2col(x, 4, 4, 2, 1)
    y = pallas_matmul_leaky(p, _w_to_mat(params["w1"]))
    x = y.reshape(batch, OH, OW, y.shape[-1])

    # [Conv + BatchNorm(train-mode batch stats) + LeakyReLU] x 3.
    for w_name, g_name, b_name in (("w2", "g2", "b2"),
                                   ("w3", "g3", "b3"),
                                   ("w4", "g4", "b4")):
        p, OH, OW = _im2col(x, 4, 4, 2, 1)
        y, ch_sum, ch_sq = pallas_matmul_bn_stats(p, _w_to_mat(params[w_name]))
        m = p.shape[0]  # static: batch * OH * OW
        mean = ch_sum / m
        var = jnp.maximum(ch_sq / m - mean * mean, 0.0)  # biased var, torch train mode
        scale = params[g_name] / jnp.sqrt(var + _BN_EPS)
        shift = params[b_name] - mean * scale
        y = pallas_affine_leaky(y, scale, shift)
        x = y.reshape(batch, OH, OW, y.shape[-1])

    # Conv(512 -> 1, k4 s1 p0) + Sigmoid: a 4x4 valid conv over the 4x4 map is
    # a plain per-sample dot product -> fused VPU reduction + sigmoid.
    w5 = jnp.transpose(params["w5"], (2, 3, 1, 0)).reshape(1, -1)  # (1, KH*KW*Cin)
    out = pallas_head_sigmoid(x.reshape(batch, -1), w5)

    # output.view(-1, 1).squeeze(1) -> shape (batch,)
    return out.reshape(-1)


# ----------------------------------------------------------------------------
# Deterministic parameter construction + smoke test
# ----------------------------------------------------------------------------
def make_params(key, nf=64, nc=1):
    k = jax.random.split(key, 5)
    std = 0.02  # DCGAN-style normal init; deterministic, synthetic weights
    return {
        "w1": std * jax.random.normal(k[0], (nf, nc, 4, 4), jnp.float32),
        "w2": std * jax.random.normal(k[1], (nf * 2, nf, 4, 4), jnp.float32),
        "g2": jnp.ones((nf * 2,), jnp.float32),
        "b2": jnp.zeros((nf * 2,), jnp.float32),
        "w3": std * jax.random.normal(k[2], (nf * 4, nf * 2, 4, 4), jnp.float32),
        "g3": jnp.ones((nf * 4,), jnp.float32),
        "b3": jnp.zeros((nf * 4,), jnp.float32),
        "w4": std * jax.random.normal(k[3], (nf * 8, nf * 4, 4, 4), jnp.float32),
        "g4": jnp.ones((nf * 8,), jnp.float32),
        "b4": jnp.zeros((nf * 8,), jnp.float32),
        "w5": std * jax.random.normal(k[4], (1, nf * 8, 4, 4), jnp.float32),
    }


if __name__ == "__main__":
    key = jax.random.PRNGKey(0)
    pkey, xkey = jax.random.split(key)
    params = make_params(pkey)

    # DCGAN discriminator requires 64x64 inputs (architecture is fixed).
    batch = 2
    x = jax.random.normal(xkey, (batch, 1, 64, 64), jnp.float32)

    fwd = jax.jit(discriminator_forward)
    out = fwd(x, params)
    out = jax.block_until_ready(out)

    assert out.shape == (batch,), out.shape
    assert bool(jnp.all(jnp.isfinite(out)))
    assert bool(jnp.all((out >= 0.0) & (out <= 1.0)))  # sigmoid range
    print("KERNEL_OK")
</pallas_src>

<mosaic_0001>
module attributes {stable_mosaic.version = 11 : i64} {
  func.func @_matmul_leaky_kernel(%arg0: i32, %arg1: i32, %arg2: i32, %arg3: memref<256x16xbf16, #tpu.memory_space<vmem>>, %arg4: memref<16x64xbf16, #tpu.memory_space<vmem>>, %arg5: memref<256x64xbf16, #tpu.memory_space<vmem>>, %arg6: memref<256x64xf32, #tpu.memory_space<vmem>>) attributes {dimension_semantics = [#tpu.dimension_semantics<parallel>, #tpu.dimension_semantics<parallel>, #tpu.dimension_semantics<arbitrary>], iteration_bounds = array<i64: 8, 1, 1>, scalar_prefetch = 0 : i64, scratch_operands = 1 : i64, tpu.core_type = #tpu.core_type<tc>, window_params = [{transform_indices = @transform_0, window_bounds = array<i64: 256, 16>}, {transform_indices = @transform_1, window_bounds = array<i64: 16, 64>}, {transform_indices = @transform_2, window_bounds = array<i64: 256, 64>}]} {
    %c0_i32 = arith.constant 0 : i32
    %0 = arith.cmpi eq, %arg2, %c0_i32 : i32
    %1 = arith.extui %0 : i1 to i32
    %c0_i32_0 = arith.constant 0 : i32
    %2 = arith.cmpi ne, %1, %c0_i32_0 : i32
    scf.if %2 {
      %cst_10 = arith.constant 0.000000e+00 : f32
      %12 = vector.broadcast %cst_10 : f32 to vector<256x64xf32>
      %c0_11 = arith.constant 0 : index
      %c0_12 = arith.constant 0 : index
      %13 = vector.load %arg6[%c0_11, %c0_12] : memref<256x64xf32, #tpu.memory_space<vmem>>, vector<256x64xf32>
      tpu.vector_store %arg6[%c0_11, %c0_12], %12 {strides = array<i32>} : memref<256x64xf32, #tpu.memory_space<vmem>>, vector<256x64xf32>,
    } else {
    }
    %c0 = arith.constant 0 : index
    %c0_1 = arith.constant 0 : index
    %3 = vector.load %arg6[%c0, %c0_1] : memref<256x64xf32, #tpu.memory_space<vmem>>, vector<256x64xf32>
    %c0_2 = arith.constant 0 : index
    %c0_3 = arith.constant 0 : index
    %4 = vector.load %arg3[%c0_2, %c0_3] : memref<256x16xbf16, #tpu.memory_space<vmem>>, vector<256x16xbf16>
    %c0_4 = arith.constant 0 : index
    %c0_5 = arith.constant 0 : index
    %5 = vector.load %arg4[%c0_4, %c0_5] : memref<16x64xbf16, #tpu.memory_space<vmem>>, vector<16x64xbf16>
    %cst = arith.constant dense<0.000000e+00> : vector<256x64xf32>
    %6 = tpu.matmul %4, %5, %cst {dimension_numbers = #tpu.dot_dimension_numbers<[1], [0], [0], [1], [0, 0, 1, 1], [], []>} : vector<256x16xbf16>, vector<16x64xbf16>, vector<256x64xf32> -> vector<256x64xf32>
    %7 = arith.addf %3, %6 : vector<256x64xf32>
    %c0_6 = arith.constant 0 : index
    %c0_7 = arith.constant 0 : index
    %8 = vector.load %arg6[%c0_6, %c0_7] : memref<256x64xf32, #tpu.memory_space<vmem>>, vector<256x64xf32>
    tpu.vector_store %arg6[%c0_6, %c0_7], %7 {strides = array<i32>} : memref<256x64xf32, #tpu.memory_space<vmem>>, vector<256x64xf32>,
    %c0_i32_8 = arith.constant 0 : i32
    %9 = arith.cmpi eq, %arg2, %c0_i32_8 : i32
    %10 = arith.extui %9 : i1 to i32
    %c0_i32_9 = arith.constant 0 : i32
    %11 = arith.cmpi ne, %10, %c0_i32_9 : i32
    scf.if %11 {
      %c0_10 = arith.constant 0 : index
      %c0_11 = arith.constant 0 : index
      %12 = vector.load %arg6[%c0_10, %c0_11] : memref<256x64xf32, #tpu.memory_space<vmem>>, vector<256x64xf32>
      %cst_12 = arith.constant 0.000000e+00 : f32
      %13 = vector.broadcast %cst_12 : f32 to vector<256x64xf32>
      %14 = arith.cmpf oge, %12, %13 : vector<256x64xf32>
      %cst_13 = arith.constant 2.000000e-01 : f32
      %15 = vector.broadcast %cst_13 : f32 to vector<256x64xf32>
      %16 = arith.mulf %15, %12 : vector<256x64xf32>
      %17 = arith.select %14, %12, %16 : vector<256x64xi1>, vector<256x64xf32>
      %18 = arith.truncf %17 : vector<256x64xf32> to vector<256x64xbf16>
      %c0_14 = arith.constant 0 : index
      %c0_15 = arith.constant 0 : index
      %19 = vector.load %arg5[%c0_14, %c0_15] : memref<256x64xbf16, #tpu.memory_space<vmem>>, vector<256x64xbf16>
      tpu.vector_store %arg5[%c0_14, %c0_15], %18 {strides = array<i32>} : memref<256x64xbf16, #tpu.memory_space<vmem>>, vector<256x64xbf16>,
    } else {
    }
    return
  }
  func.func @transform_0(%arg0: i32, %arg1: i32, %arg2: i32) -> (i32, i32) {
    %c0_i32 = arith.constant 0 : i32
    return %arg0, %arg2 : i32, i32
  }
  func.func @transform_1(%arg0: i32, %arg1: i32, %arg2: i32) -> (i32, i32) {
    %c0_i32 = arith.constant 0 : i32
    return %arg2, %arg1 : i32, i32
  }
  func.func @transform_2(%arg0: i32, %arg1: i32, %arg2: i32) -> (i32, i32) {
    %c0_i32 = arith.constant 0 : i32
    return %arg0, %arg1 : i32, i32
  }
}

module attributes {stable_mosaic.version = 11 : i64} {
  func.func @_affine_leaky_kernel(%arg0: i32, %arg1: memref<512x128xbf16, #tpu.memory_space<vmem>>, %arg2: memref<1x128xf32, #tpu.memory_space<vmem>>, %arg3: memref<1x128xf32, #tpu.memory_space<vmem>>, %arg4: memref<512x128xbf16, #tpu.memory_space<vmem>>) attributes {dimension_semantics = [#tpu.dimension_semantics<parallel>], iteration_bounds = array<i64: 1>, scalar_prefetch = 0 : i64, scratch_operands = 0 : i64, tpu.core_type = #tpu.core_type<tc>, window_params = [{transform_indices = @transform_0, window_bounds = array<i64: 512, 128>}, {pipeline_mode = #tpu.pipeline_mode<synchronous>, transform_indices = @transform_1, window_bounds = array<i64: 1, 128>}, {pipeline_mode = #tpu.pipeline_mode<synchronous>, transform_indices = @transform_2, window_bounds = array<i64: 1, 128>}, {transform_indices = @transform_3, window_bounds = array<i64: 512, 128>}]} {
    %c0 = arith.constant 0 : index
    %c0_0 = arith.constant 0 : index
    %0 = vector.load %arg1[%c0, %c0_0] : memref<512x128xbf16, #tpu.memory_space<vmem>>, vector<512x128xbf16>
    %1 = arith.extf %0 : vector<512x128xbf16> to vector<512x128xf32>
    %c0_1 = arith.constant 0 : index
    %c0_2 = arith.constant 0 : index
    %2 = vector.load %arg2[%c0_1, %c0_2] : memref<1x128xf32, #tpu.memory_space<vmem>>, vector<1x128xf32>
    %3 = vector.broadcast %2 : vector<1x128xf32> to vector<512x128xf32>
    %4 = arith.mulf %1, %3 : vector<512x128xf32>
    %c0_3 = arith.constant 0 : index
    %c0_4 = arith.constant 0 : index
    %5 = vector.load %arg3[%c0_3, %c0_4] : memref<1x128xf32, #tpu.memory_space<vmem>>, vector<1x128xf32>
    %6 = vector.broadcast %5 : vector<1x128xf32> to vector<512x128xf32>
    %7 = arith.addf %4, %6 : vector<512x128xf32>
    %cst = arith.constant 0.000000e+00 : f32
    %8 = vector.broadcast %cst : f32 to vector<512x128xf32>
    %9 = arith.cmpf oge, %7, %8 : vector<512x128xf32>
    %cst_5 = arith.constant 2.000000e-01 : f32
    %10 = vector.broadcast %cst_5 : f32 to vector<512x128xf32>
    %11 = arith.mulf %10, %7 : vector<512x128xf32>
    %12 = arith.select %9, %7, %11 : vector<512x128xi1>, vector<512x128xf32>
    %13 = arith.truncf %12 : vector<512x128xf32> to vector<512x128xbf16>
    %c0_6 = arith.constant 0 : index
    %c0_7 = arith.constant 0 : index
    %14 = vector.load %arg4[%c0_6, %c0_7] : memref<512x128xbf16, #tpu.memory_space<vmem>>, vector<512x128xbf16>
    tpu.vector_store %arg4[%c0_6, %c0_7], %13 {strides = array<i32>} : memref<512x128xbf16, #tpu.memory_space<vmem>>, vector<512x128xbf16>,
    return
  }
  func.func @transform_0(%arg0: i32) -> (i32, i32) {
    %c0_i32 = arith.constant 0 : i32
    %c0_i32_0 = arith.constant 0 : i32
    return %arg0, %c0_i32 : i32, i32
  }
  func.func @transform_1(%arg0: i32) -> (i32, i32) {
    %c0_i32 = arith.constant 0 : i32
    %c0_i32_0 = arith.constant 0 : i32
    %c0_i32_1 = arith.constant 0 : i32
    return %c0_i32, %c0_i32_0 : i32, i32
  }
  func.func @transform_2(%arg0: i32) -> (i32, i32) {
    %c0_i32 = arith.constant 0 : i32
    %c0_i32_0 = arith.constant 0 : i32
    %c0_i32_1 = arith.constant 0 : i32
    return %c0_i32, %c0_i32_0 : i32, i32
  }
  func.func @transform_3(%arg0: i32) -> (i32, i32) {
    %c0_i32 = arith.constant 0 : i32
    %c0_i32_0 = arith.constant 0 : i32
    return %arg0, %c0_i32 : i32, i32
  }
}

module attributes {stable_mosaic.version = 11 : i64} {
  func.func @_matmul_stats_kernel(%arg0: i32, %arg1: i32, %arg2: i32, %arg3: memref<256x512xbf16, #tpu.memory_space<vmem>>, %arg4: memref<512x128xbf16, #tpu.memory_space<vmem>>, %arg5: memref<256x128xbf16, #tpu.memory_space<vmem>>, %arg6: memref<8x128xf32, #tpu.memory_space<vmem>>, %arg7: memref<8x128xf32, #tpu.memory_space<vmem>>, %arg8: memref<256x128xf32, #tpu.memory_space<vmem>>) attributes {dimension_semantics = [#tpu.dimension_semantics<parallel>, #tpu.dimension_semantics<parallel>, #tpu.dimension_semantics<arbitrary>], iteration_bounds = array<i64: 2, 1, 2>, scalar_prefetch = 0 : i64, scratch_operands = 1 : i64, tpu.core_type = #tpu.core_type<tc>, window_params = [{transform_indices = @transform_0, window_bounds = array<i64: 256, 512>}, {transform_indices = @transform_1, window_bounds = array<i64: 512, 128>}, {transform_indices = @transform_2, window_bounds = array<i64: 256, 128>}, {transform_indices = @transform_3, window_bounds = array<i64: 8, 128>}, {transform_indices = @transform_4, window_bounds = array<i64: 8, 128>}]} {
    %c0_i32 = arith.constant 0 : i32
    %0 = arith.cmpi eq, %arg2, %c0_i32 : i32
    %1 = arith.extui %0 : i1 to i32
    %c0_i32_0 = arith.constant 0 : i32
    %2 = arith.cmpi ne, %1, %c0_i32_0 : i32
    scf.if %2 {
      %cst_9 = arith.constant 0.000000e+00 : f32
      %12 = vector.broadcast %cst_9 : f32 to vector<256x128xf32>
      %c0_10 = arith.constant 0 : index
      %c0_11 = arith.constant 0 : index
      %13 = vector.load %arg8[%c0_10, %c0_11] : memref<256x128xf32, #tpu.memory_space<vmem>>, vector<256x128xf32>
      tpu.vector_store %arg8[%c0_10, %c0_11], %12 {strides = array<i32>} : memref<256x128xf32, #tpu.memory_space<vmem>>, vector<256x128xf32>,
    } else {
    }
    %c0 = arith.constant 0 : index
    %c0_1 = arith.constant 0 : index
    %3 = vector.load %arg8[%c0, %c0_1] : memref<256x128xf32, #tpu.memory_space<vmem>>, vector<256x128xf32>
    %c0_2 = arith.constant 0 : index
    %c0_3 = arith.constant 0 : index
    %4 = vector.load %arg3[%c0_2, %c0_3] : memref<256x512xbf16, #tpu.memory_space<vmem>>, vector<256x512xbf16>
    %c0_4 = arith.constant 0 : index
    %c0_5 = arith.constant 0 : index
    %5 = vector.load %arg4[%c0_4, %c0_5] : memref<512x128xbf16, #tpu.memory_space<vmem>>, vector<512x128xbf16>
    %cst = arith.constant dense<0.000000e+00> : vector<256x128xf32>
    %6 = tpu.matmul %4, %5, %cst {dimension_numbers = #tpu.dot_dimension_numbers<[1], [0], [0], [1], [0, 0, 1, 1], [], []>} : vector<256x512xbf16>, vector<512x128xbf16>, vector<256x128xf32> -> vector<256x128xf32>
    %7 = arith.addf %3, %6 : vector<256x128xf32>
    %c0_6 = arith.constant 0 : index
    %c0_7 = arith.constant 0 : index
    %8 = vector.load %arg8[%c0_6, %c0_7] : memref<256x128xf32, #tpu.memory_space<vmem>>, vector<256x128xf32>
    tpu.vector_store %arg8[%c0_6, %c0_7], %7 {strides = array<i32>} : memref<256x128xf32, #tpu.memory_space<vmem>>, vector<256x128xf32>,
    %c1_i32 = arith.constant 1 : i32
    %9 = arith.cmpi eq, %arg2, %c1_i32 : i32
    %10 = arith.extui %9 : i1 to i32
    %c0_i32_8 = arith.constant 0 : i32
    %11 = arith.cmpi ne, %10, %c0_i32_8 : i32
    scf.if %11 {
      %c0_9 = arith.constant 0 : index
      %c0_10 = arith.constant 0 : index
      %12 = vector.load %arg8[%c0_9, %c0_10] : memref<256x128xf32, #tpu.memory_space<vmem>>, vector<256x128xf32>
      %13 = arith.truncf %12 : vector<256x128xf32> to vector<256x128xbf16>
      %c0_11 = arith.constant 0 : index
      %c0_12 = arith.constant 0 : index
      %14 = vector.load %arg5[%c0_11, %c0_12] : memref<256x128xbf16, #tpu.memory_space<vmem>>, vector<256x128xbf16>
      tpu.vector_store %arg5[%c0_11, %c0_12], %13 {strides = array<i32>} : memref<256x128xbf16, #tpu.memory_space<vmem>>, vector<256x128xbf16>,
      %cst_13 = arith.constant dense<0.000000e+00> : vector<128xf32>
      %15 = vector.multi_reduction <add>, %12, %cst_13 [0] : vector<256x128xf32> to vector<128xf32>
      %16 = vector.shape_cast %15 : vector<128xf32> to vector<1x128xf32>
      %17 = arith.mulf %12, %12 : vector<256x128xf32>
      %cst_14 = arith.constant dense<0.000000e+00> : vector<128xf32>
      %18 = vector.multi_reduction <add>, %17, %cst_14 [0] : vector<256x128xf32> to vector<128xf32>
      %19 = vector.shape_cast %18 : vector<128xf32> to vector<1x128xf32>
      %20 = vector.shape_cast %16 : vector<1x128xf32> to vector<1x128xf32>
      %21 = vector.broadcast %20 : vector<1x128xf32> to vector<8x128xf32>
      %c0_15 = arith.constant 0 : index
      %c0_16 = arith.constant 0 : index
      %22 = vector.load %arg6[%c0_15, %c0_16] : memref<8x128xf32, #tpu.memory_space<vmem>>, vector<8x128xf32>
      tpu.vector_store %arg6[%c0_15, %c0_16], %21 {strides = array<i32>} : memref<8x128xf32, #tpu.memory_space<vmem>>, vector<8x128xf32>,
      %23 = vector.shape_cast %19 : vector<1x128xf32> to vector<1x128xf32>
      %24 = vector.broadcast %23 : vector<1x128xf32> to vector<8x128xf32>
      %c0_17 = arith.constant 0 : index
      %c0_18 = arith.constant 0 : index
      %25 = vector.load %arg7[%c0_17, %c0_18] : memref<8x128xf32, #tpu.memory_space<vmem>>, vector<8x128xf32>
      tpu.vector_store %arg7[%c0_17, %c0_18], %24 {strides = array<i32>} : memref<8x128xf32, #tpu.memory_space<vmem>>, vector<8x128xf32>,
    } else {
    }
    return
  }
  func.func @transform_0(%arg0: i32, %arg1: i32, %arg2: i32) -> (i32, i32) {
    %c0_i32 = arith.constant 0 : i32
    return %arg0, %arg2 : i32, i32
  }
  func.func @transform_1(%arg0: i32, %arg1: i32, %arg2: i32) -> (i32, i32) {
    %c0_i32 = arith.constant 0 : i32
    return %arg2, %arg1 : i32, i32
  }
  func.func @transform_2(%arg0: i32, %arg1: i32, %arg2: i32) -> (i32, i32) {
    %c0_i32 = arith.constant 0 : i32
    return %arg0, %arg1 : i32, i32
  }
  func.func @transform_3(%arg0: i32, %arg1: i32, %arg2: i32) -> (i32, i32) {
    %c0_i32 = arith.constant 0 : i32
    return %arg0, %arg1 : i32, i32
  }
  func.func @transform_4(%arg0: i32, %arg1: i32, %arg2: i32) -> (i32, i32) {
    %c0_i32 = arith.constant 0 : i32
    return %arg0, %arg1 : i32, i32
  }
}

module attributes {stable_mosaic.version = 11 : i64} {
  func.func @_matmul_stats_kernel(%arg0: i32, %arg1: i32, %arg2: i32, %arg3: memref<128x512xbf16, #tpu.memory_space<vmem>>, %arg4: memref<512x128xbf16, #tpu.memory_space<vmem>>, %arg5: memref<128x128xbf16, #tpu.memory_space<vmem>>, %arg6: memref<8x128xf32, #tpu.memory_space<vmem>>, %arg7: memref<8x128xf32, #tpu.memory_space<vmem>>, %arg8: memref<128x128xf32, #tpu.memory_space<vmem>>) attributes {dimension_semantics = [#tpu.dimension_semantics<parallel>, #tpu.dimension_semantics<parallel>, #tpu.dimension_semantics<arbitrary>], iteration_bounds = array<i64: 1, 2, 4>, scalar_prefetch = 0 : i64, scratch_operands = 1 : i64, tpu.core_type = #tpu.core_type<tc>, window_params = [{transform_indices = @transform_0, window_bounds = array<i64: 128, 512>}, {transform_indices = @transform_1, window_bounds = array<i64: 512, 128>}, {transform_indices = @transform_2, window_bounds = array<i64: 128, 128>}, {transform_indices = @transform_3, window_bounds = array<i64: 8, 128>}, {transform_indices = @transform_4, window_bounds = array<i64: 8, 128>}]} {
    %c0_i32 = arith.constant 0 : i32
    %0 = arith.cmpi eq, %arg2, %c0_i32 : i32
    %1 = arith.extui %0 : i1 to i32
    %c0_i32_0 = arith.constant 0 : i32
    %2 = arith.cmpi ne, %1, %c0_i32_0 : i32
    scf.if %2 {
      %cst_9 = arith.constant 0.000000e+00 : f32
      %12 = vector.broadcast %cst_9 : f32 to vector<128x128xf32>
      %c0_10 = arith.constant 0 : index
      %c0_11 = arith.constant 0 : index
      %13 = vector.load %arg8[%c0_10, %c0_11] : memref<128x128xf32, #tpu.memory_space<vmem>>, vector<128x128xf32>
      tpu.vector_store %arg8[%c0_10, %c0_11], %12 {strides = array<i32>} : memref<128x128xf32, #tpu.memory_space<vmem>>, vector<128x128xf32>,
    } else {
    }
    %c0 = arith.constant 0 : index
    %c0_1 = arith.constant 0 : index
    %3 = vector.load %arg8[%c0, %c0_1] : memref<128x128xf32, #tpu.memory_space<vmem>>, vector<128x128xf32>
    %c0_2 = arith.constant 0 : index
    %c0_3 = arith.constant 0 : index
    %4 = vector.load %arg3[%c0_2, %c0_3] : memref<128x512xbf16, #tpu.memory_space<vmem>>, vector<128x512xbf16>
    %c0_4 = arith.constant 0 : index
    %c0_5 = arith.constant 0 : index
    %5 = vector.load %arg4[%c0_4, %c0_5] : memref<512x128xbf16, #tpu.memory_space<vmem>>, vector<512x128xbf16>
    %cst = arith.constant dense<0.000000e+00> : vector<128x128xf32>
    %6 = tpu.matmul %4, %5, %cst {dimension_numbers = #tpu.dot_dimension_numbers<[1], [0], [0], [1], [0, 0, 1, 1], [], []>} : vector<128x512xbf16>, vector<512x128xbf16>, vector<128x128xf32> -> vector<128x128xf32>
    %7 = arith.addf %3, %6 : vector<128x128xf32>
    %c0_6 = arith.constant 0 : index
    %c0_7 = arith.constant 0 : index
    %8 = vector.load %arg8[%c0_6, %c0_7] : memref<128x128xf32, #tpu.memory_space<vmem>>, vector<128x128xf32>
    tpu.vector_store %arg8[%c0_6, %c0_7], %7 {strides = array<i32>} : memref<128x128xf32, #tpu.memory_space<vmem>>, vector<128x128xf32>,
    %c3_i32 = arith.constant 3 : i32
    %9 = arith.cmpi eq, %arg2, %c3_i32 : i32
    %10 = arith.extui %9 : i1 to i32
    %c0_i32_8 = arith.constant 0 : i32
    %11 = arith.cmpi ne, %10, %c0_i32_8 : i32
    scf.if %11 {
      %c0_9 = arith.constant 0 : index
      %c0_10 = arith.constant 0 : index
      %12 = vector.load %arg8[%c0_9, %c0_10] : memref<128x128xf32, #tpu.memory_space<vmem>>, vector<128x128xf32>
      %13 = arith.truncf %12 : vector<128x128xf32> to vector<128x128xbf16>
      %c0_11 = arith.constant 0 : index
      %c0_12 = arith.constant 0 : index
      %14 = vector.load %arg5[%c0_11, %c0_12] : memref<128x128xbf16, #tpu.memory_space<vmem>>, vector<128x128xbf16>
      tpu.vector_store %arg5[%c0_11, %c0_12], %13 {strides = array<i32>} : memref<128x128xbf16, #tpu.memory_space<vmem>>, vector<128x128xbf16>,
      %cst_13 = arith.constant dense<0.000000e+00> : vector<128xf32>
      %15 = vector.multi_reduction <add>, %12, %cst_13 [0] : vector<128x128xf32> to vector<128xf32>
      %16 = vector.shape_cast %15 : vector<128xf32> to vector<1x128xf32>
      %17 = arith.mulf %12, %12 : vector<128x128xf32>
      %cst_14 = arith.constant dense<0.000000e+00> : vector<128xf32>
      %18 = vector.multi_reduction <add>, %17, %cst_14 [0] : vector<128x128xf32> to vector<128xf32>
      %19 = vector.shape_cast %18 : vector<128xf32> to vector<1x128xf32>
      %20 = vector.shape_cast %16 : vector<1x128xf32> to vector<1x128xf32>
      %21 = vector.broadcast %20 : vector<1x128xf32> to vector<8x128xf32>
      %c0_15 = arith.constant 0 : index
      %c0_16 = arith.constant 0 : index
      %22 = vector.load %arg6[%c0_15, %c0_16] : memref<8x128xf32, #tpu.memory_space<vmem>>, vector<8x128xf32>
      tpu.vector_store %arg6[%c0_15, %c0_16], %21 {strides = array<i32>} : memref<8x128xf32, #tpu.memory_space<vmem>>, vector<8x128xf32>,
      %23 = vector.shape_cast %19 : vector<1x128xf32> to vector<1x128xf32>
      %24 = vector.broadcast %23 : vector<1x128xf32> to vector<8x128xf32>
      %c0_17 = arith.constant 0 : index
      %c0_18 = arith.constant 0 : index
      %25 = vector.load %arg7[%c0_17, %c0_18] : memref<8x128xf32, #tpu.memory_space<vmem>>, vector<8x128xf32>
      tpu.vector_store %arg7[%c0_17, %c0_18], %24 {strides = array<i32>} : memref<8x128xf32, #tpu.memory_space<vmem>>, vector<8x128xf32>,
    } else {
    }
    return
  }
  func.func @transform_0(%arg0: i32, %arg1: i32, %arg2: i32) -> (i32, i32) {
    %c0_i32 = arith.constant 0 : i32
    return %arg0, %arg2 : i32, i32
  }
  func.func @transform_1(%arg0: i32, %arg1: i32, %arg2: i32) -> (i32, i32) {
    %c0_i32 = arith.constant 0 : i32
    return %arg2, %arg1 : i32, i32
  }
  func.func @transform_2(%arg0: i32, %arg1: i32, %arg2: i32) -> (i32, i32) {
    %c0_i32 = arith.constant 0 : i32
    return %arg0, %arg1 : i32, i32
  }
  func.func @transform_3(%arg0: i32, %arg1: i32, %arg2: i32) -> (i32, i32) {
    %c0_i32 = arith.constant 0 : i32
    return %arg0, %arg1 : i32, i32
  }
  func.func @transform_4(%arg0: i32, %arg1: i32, %arg2: i32) -> (i32, i32) {
    %c0_i32 = arith.constant 0 : i32
    return %arg0, %arg1 : i32, i32
  }
}

module attributes {stable_mosaic.version = 11 : i64} {
  func.func @_affine_leaky_kernel(%arg0: i32, %arg1: memref<128x256xbf16, #tpu.memory_space<vmem>>, %arg2: memref<1x256xf32, #tpu.memory_space<vmem>>, %arg3: memref<1x256xf32, #tpu.memory_space<vmem>>, %arg4: memref<128x256xbf16, #tpu.memory_space<vmem>>) attributes {dimension_semantics = [#tpu.dimension_semantics<parallel>], iteration_bounds = array<i64: 1>, scalar_prefetch = 0 : i64, scratch_operands = 0 : i64, tpu.core_type = #tpu.core_type<tc>, window_params = [{transform_indices = @transform_0, window_bounds = array<i64: 128, 256>}, {pipeline_mode = #tpu.pipeline_mode<synchronous>, transform_indices = @transform_1, window_bounds = array<i64: 1, 256>}, {pipeline_mode = #tpu.pipeline_mode<synchronous>, transform_indices = @transform_2, window_bounds = array<i64: 1, 256>}, {transform_indices = @transform_3, window_bounds = array<i64: 128, 256>}]} {
    %c0 = arith.constant 0 : index
    %c0_0 = arith.constant 0 : index
    %0 = vector.load %arg1[%c0, %c0_0] : memref<128x256xbf16, #tpu.memory_space<vmem>>, vector<128x256xbf16>
    %1 = arith.extf %0 : vector<128x256xbf16> to vector<128x256xf32>
    %c0_1 = arith.constant 0 : index
    %c0_2 = arith.constant 0 : index
    %2 = vector.load %arg2[%c0_1, %c0_2] : memref<1x256xf32, #tpu.memory_space<vmem>>, vector<1x256xf32>
    %3 = vector.broadcast %2 : vector<1x256xf32> to vector<128x256xf32>
    %4 = arith.mulf %1, %3 : vector<128x256xf32>
    %c0_3 = arith.constant 0 : index
    %c0_4 = arith.constant 0 : index
    %5 = vector.load %arg3[%c0_3, %c0_4] : memref<1x256xf32, #tpu.memory_space<vmem>>, vector<1x256xf32>
    %6 = vector.broadcast %5 : vector<1x256xf32> to vector<128x256xf32>
    %7 = arith.addf %4, %6 : vector<128x256xf32>
    %cst = arith.constant 0.000000e+00 : f32
    %8 = vector.broadcast %cst : f32 to vector<128x256xf32>
    %9 = arith.cmpf oge, %7, %8 : vector<128x256xf32>
    %cst_5 = arith.constant 2.000000e-01 : f32
    %10 = vector.broadcast %cst_5 : f32 to vector<128x256xf32>
    %11 = arith.mulf %10, %7 : vector<128x256xf32>
    %12 = arith.select %9, %7, %11 : vector<128x256xi1>, vector<128x256xf32>
    %13 = arith.truncf %12 : vector<128x256xf32> to vector<128x256xbf16>
    %c0_6 = arith.constant 0 : index
    %c0_7 = arith.constant 0 : index
    %14 = vector.load %arg4[%c0_6, %c0_7] : memref<128x256xbf16, #tpu.memory_space<vmem>>, vector<128x256xbf16>
    tpu.vector_store %arg4[%c0_6, %c0_7], %13 {strides = array<i32>} : memref<128x256xbf16, #tpu.memory_space<vmem>>, vector<128x256xbf16>,
    return
  }
  func.func @transform_0(%arg0: i32) -> (i32, i32) {
    %c0_i32 = arith.constant 0 : i32
    %c0_i32_0 = arith.constant 0 : i32
    return %arg0, %c0_i32 : i32, i32
  }
  func.func @transform_1(%arg0: i32) -> (i32, i32) {
    %c0_i32 = arith.constant 0 : i32
    %c0_i32_0 = arith.constant 0 : i32
    %c0_i32_1 = arith.constant 0 : i32
    return %c0_i32, %c0_i32_0 : i32, i32
  }
  func.func @transform_2(%arg0: i32) -> (i32, i32) {
    %c0_i32 = arith.constant 0 : i32
    %c0_i32_0 = arith.constant 0 : i32
    %c0_i32_1 = arith.constant 0 : i32
    return %c0_i32, %c0_i32_0 : i32, i32
  }
  func.func @transform_3(%arg0: i32) -> (i32, i32) {
    %c0_i32 = arith.constant 0 : i32
    %c0_i32_0 = arith.constant 0 : i32
    return %arg0, %c0_i32 : i32, i32
  }
}

module attributes {stable_mosaic.version = 11 : i64} {
  func.func @_matmul_stats_kernel(%arg0: i32, %arg1: i32, %arg2: i32, %arg3: memref<32x512xbf16, #tpu.memory_space<vmem>>, %arg4: memref<512x256xbf16, #tpu.memory_space<vmem>>, %arg5: memref<32x256xbf16, #tpu.memory_space<vmem>>, %arg6: memref<8x256xf32, #tpu.memory_space<vmem>>, %arg7: memref<8x256xf32, #tpu.memory_space<vmem>>, %arg8: memref<32x256xf32, #tpu.memory_space<vmem>>) attributes {dimension_semantics = [#tpu.dimension_semantics<parallel>, #tpu.dimension_semantics<parallel>, #tpu.dimension_semantics<arbitrary>], iteration_bounds = array<i64: 1, 2, 8>, scalar_prefetch = 0 : i64, scratch_operands = 1 : i64, tpu.core_type = #tpu.core_type<tc>, window_params = [{transform_indices = @transform_0, window_bounds = array<i64: 32, 512>}, {transform_indices = @transform_1, window_bounds = array<i64: 512, 256>}, {transform_indices = @transform_2, window_bounds = array<i64: 32, 256>}, {transform_indices = @transform_3, window_bounds = array<i64: 8, 256>}, {transform_indices = @transform_4, window_bounds = array<i64: 8, 256>}]} {
    %c0_i32 = arith.constant 0 : i32
    %0 = arith.cmpi eq, %arg2, %c0_i32 : i32
    %1 = arith.extui %0 : i1 to i32
    %c0_i32_0 = arith.constant 0 : i32
    %2 = arith.cmpi ne, %1, %c0_i32_0 : i32
    scf.if %2 {
      %cst_9 = arith.constant 0.000000e+00 : f32
      %12 = vector.broadcast %cst_9 : f32 to vector<32x256xf32>
      %c0_10 = arith.constant 0 : index
      %c0_11 = arith.constant 0 : index
      %13 = vector.load %arg8[%c0_10, %c0_11] : memref<32x256xf32, #tpu.memory_space<vmem>>, vector<32x256xf32>
      tpu.vector_store %arg8[%c0_10, %c0_11], %12 {strides = array<i32>} : memref<32x256xf32, #tpu.memory_space<vmem>>, vector<32x256xf32>,
    } else {
    }
    %c0 = arith.constant 0 : index
    %c0_1 = arith.constant 0 : index
    %3 = vector.load %arg8[%c0, %c0_1] : memref<32x256xf32, #tpu.memory_space<vmem>>, vector<32x256xf32>
    %c0_2 = arith.constant 0 : index
    %c0_3 = arith.constant 0 : index
    %4 = vector.load %arg3[%c0_2, %c0_3] : memref<32x512xbf16, #tpu.memory_space<vmem>>, vector<32x512xbf16>
    %c0_4 = arith.constant 0 : index
    %c0_5 = arith.constant 0 : index
    %5 = vector.load %arg4[%c0_4, %c0_5] : memref<512x256xbf16, #tpu.memory_space<vmem>>, vector<512x256xbf16>
    %cst = arith.constant dense<0.000000e+00> : vector<32x256xf32>
    %6 = tpu.matmul %4, %5, %cst {dimension_numbers = #tpu.dot_dimension_numbers<[1], [0], [0], [1], [0, 0, 1, 1], [], []>} : vector<32x512xbf16>, vector<512x256xbf16>, vector<32x256xf32> -> vector<32x256xf32>
    %7 = arith.addf %3, %6 : vector<32x256xf32>
    %c0_6 = arith.constant 0 : index
    %c0_7 = arith.constant 0 : index
    %8 = vector.load %arg8[%c0_6, %c0_7] : memref<32x256xf32, #tpu.memory_space<vmem>>, vector<32x256xf32>
    tpu.vector_store %arg8[%c0_6, %c0_7], %7 {strides = array<i32>} : memref<32x256xf32, #tpu.memory_space<vmem>>, vector<32x256xf32>,
    %c7_i32 = arith.constant 7 : i32
    %9 = arith.cmpi eq, %arg2, %c7_i32 : i32
    %10 = arith.extui %9 : i1 to i32
    %c0_i32_8 = arith.constant 0 : i32
    %11 = arith.cmpi ne, %10, %c0_i32_8 : i32
    scf.if %11 {
      %c0_9 = arith.constant 0 : index
      %c0_10 = arith.constant 0 : index
      %12 = vector.load %arg8[%c0_9, %c0_10] : memref<32x256xf32, #tpu.memory_space<vmem>>, vector<32x256xf32>
      %13 = arith.truncf %12 : vector<32x256xf32> to vector<32x256xbf16>
      %c0_11 = arith.constant 0 : index
      %c0_12 = arith.constant 0 : index
      %14 = vector.load %arg5[%c0_11, %c0_12] : memref<32x256xbf16, #tpu.memory_space<vmem>>, vector<32x256xbf16>
      tpu.vector_store %arg5[%c0_11, %c0_12], %13 {strides = array<i32>} : memref<32x256xbf16, #tpu.memory_space<vmem>>, vector<32x256xbf16>,
      %cst_13 = arith.constant dense<0.000000e+00> : vector<256xf32>
      %15 = vector.multi_reduction <add>, %12, %cst_13 [0] : vector<32x256xf32> to vector<256xf32>
      %16 = vector.shape_cast %15 : vector<256xf32> to vector<1x256xf32>
      %17 = arith.mulf %12, %12 : vector<32x256xf32>
      %cst_14 = arith.constant dense<0.000000e+00> : vector<256xf32>
      %18 = vector.multi_reduction <add>, %17, %cst_14 [0] : vector<32x256xf32> to vector<256xf32>
      %19 = vector.shape_cast %18 : vector<256xf32> to vector<1x256xf32>
      %20 = vector.shape_cast %16 : vector<1x256xf32> to vector<1x256xf32>
      %21 = vector.broadcast %20 : vector<1x256xf32> to vector<8x256xf32>
      %c0_15 = arith.constant 0 : index
      %c0_16 = arith.constant 0 : index
      %22 = vector.load %arg6[%c0_15, %c0_16] : memref<8x256xf32, #tpu.memory_space<vmem>>, vector<8x256xf32>
      tpu.vector_store %arg6[%c0_15, %c0_16], %21 {strides = array<i32>} : memref<8x256xf32, #tpu.memory_space<vmem>>, vector<8x256xf32>,
      %23 = vector.shape_cast %19 : vector<1x256xf32> to vector<1x256xf32>
      %24 = vector.broadcast %23 : vector<1x256xf32> to vector<8x256xf32>
      %c0_17 = arith.constant 0 : index
      %c0_18 = arith.constant 0 : index
      %25 = vector.load %arg7[%c0_17, %c0_18] : memref<8x256xf32, #tpu.memory_space<vmem>>, vector<8x256xf32>
      tpu.vector_store %arg7[%c0_17, %c0_18], %24 {strides = array<i32>} : memref<8x256xf32, #tpu.memory_space<vmem>>, vector<8x256xf32>,
    } else {
    }
    return
  }
  func.func @transform_0(%arg0: i32, %arg1: i32, %arg2: i32) -> (i32, i32) {
    %c0_i32 = arith.constant 0 : i32
    return %arg0, %arg2 : i32, i32
  }
  func.func @transform_1(%arg0: i32, %arg1: i32, %arg2: i32) -> (i32, i32) {
    %c0_i32 = arith.constant 0 : i32
    return %arg2, %arg1 : i32, i32
  }
  func.func @transform_2(%arg0: i32, %arg1: i32, %arg2: i32) -> (i32, i32) {
    %c0_i32 = arith.constant 0 : i32
    return %arg0, %arg1 : i32, i32
  }
  func.func @transform_3(%arg0: i32, %arg1: i32, %arg2: i32) -> (i32, i32) {
    %c0_i32 = arith.constant 0 : i32
    return %arg0, %arg1 : i32, i32
  }
  func.func @transform_4(%arg0: i32, %arg1: i32, %arg2: i32) -> (i32, i32) {
    %c0_i32 = arith.constant 0 : i32
    return %arg0, %arg1 : i32, i32
  }
}

module attributes {stable_mosaic.version = 11 : i64} {
  func.func @_affine_leaky_kernel(%arg0: i32, %arg1: memref<32x512xbf16, #tpu.memory_space<vmem>>, %arg2: memref<1x512xf32, #tpu.memory_space<vmem>>, %arg3: memref<1x512xf32, #tpu.memory_space<vmem>>, %arg4: memref<32x512xbf16, #tpu.memory_space<vmem>>) attributes {dimension_semantics = [#tpu.dimension_semantics<parallel>], iteration_bounds = array<i64: 1>, scalar_prefetch = 0 : i64, scratch_operands = 0 : i64, tpu.core_type = #tpu.core_type<tc>, window_params = [{transform_indices = @transform_0, window_bounds = array<i64: 32, 512>}, {pipeline_mode = #tpu.pipeline_mode<synchronous>, transform_indices = @transform_1, window_bounds = array<i64: 1, 512>}, {pipeline_mode = #tpu.pipeline_mode<synchronous>, transform_indices = @transform_2, window_bounds = array<i64: 1, 512>}, {transform_indices = @transform_3, window_bounds = array<i64: 32, 512>}]} {
    %c0 = arith.constant 0 : index
    %c0_0 = arith.constant 0 : index
    %0 = vector.load %arg1[%c0, %c0_0] : memref<32x512xbf16, #tpu.memory_space<vmem>>, vector<32x512xbf16>
    %1 = arith.extf %0 : vector<32x512xbf16> to vector<32x512xf32>
    %c0_1 = arith.constant 0 : index
    %c0_2 = arith.constant 0 : index
    %2 = vector.load %arg2[%c0_1, %c0_2] : memref<1x512xf32, #tpu.memory_space<vmem>>, vector<1x512xf32>
    %3 = vector.broadcast %2 : vector<1x512xf32> to vector<32x512xf32>
    %4 = arith.mulf %1, %3 : vector<32x512xf32>
    %c0_3 = arith.constant 0 : index
    %c0_4 = arith.constant 0 : index
    %5 = vector.load %arg3[%c0_3, %c0_4] : memref<1x512xf32, #tpu.memory_space<vmem>>, vector<1x512xf32>
    %6 = vector.broadcast %5 : vector<1x512xf32> to vector<32x512xf32>
    %7 = arith.addf %4, %6 : vector<32x512xf32>
    %cst = arith.constant 0.000000e+00 : f32
    %8 = vector.broadcast %cst : f32 to vector<32x512xf32>
    %9 = arith.cmpf oge, %7, %8 : vector<32x512xf32>
    %cst_5 = arith.constant 2.000000e-01 : f32
    %10 = vector.broadcast %cst_5 : f32 to vector<32x512xf32>
    %11 = arith.mulf %10, %7 : vector<32x512xf32>
    %12 = arith.select %9, %7, %11 : vector<32x512xi1>, vector<32x512xf32>
    %13 = arith.truncf %12 : vector<32x512xf32> to vector<32x512xbf16>
    %c0_6 = arith.constant 0 : index
    %c0_7 = arith.constant 0 : index
    %14 = vector.load %arg4[%c0_6, %c0_7] : memref<32x512xbf16, #tpu.memory_space<vmem>>, vector<32x512xbf16>
    tpu.vector_store %arg4[%c0_6, %c0_7], %13 {strides = array<i32>} : memref<32x512xbf16, #tpu.memory_space<vmem>>, vector<32x512xbf16>,
    return
  }
  func.func @transform_0(%arg0: i32) -> (i32, i32) {
    %c0_i32 = arith.constant 0 : i32
    %c0_i32_0 = arith.constant 0 : i32
    return %arg0, %c0_i32 : i32, i32
  }
  func.func @transform_1(%arg0: i32) -> (i32, i32) {
    %c0_i32 = arith.constant 0 : i32
    %c0_i32_0 = arith.constant 0 : i32
    %c0_i32_1 = arith.constant 0 : i32
    return %c0_i32, %c0_i32_0 : i32, i32
  }
  func.func @transform_2(%arg0: i32) -> (i32, i32) {
    %c0_i32 = arith.constant 0 : i32
    %c0_i32_0 = arith.constant 0 : i32
    %c0_i32_1 = arith.constant 0 : i32
    return %c0_i32, %c0_i32_0 : i32, i32
  }
  func.func @transform_3(%arg0: i32) -> (i32, i32) {
    %c0_i32 = arith.constant 0 : i32
    %c0_i32_0 = arith.constant 0 : i32
    return %arg0, %c0_i32 : i32, i32
  }
}

module attributes {stable_mosaic.version = 11 : i64} {
  func.func @_head_sigmoid_kernel(%arg0: memref<2x8192xbf16, #tpu.memory_space<vmem>>, %arg1: memref<1x8192xf32, #tpu.memory_space<vmem>>, %arg2: memref<2x1xf32, #tpu.memory_space<vmem>>) attributes {dimension_semantics = [], scalar_prefetch = 0 : i64, scratch_operands = 0 : i64, tpu.core_type = #tpu.core_type<tc>} {
    %c0 = arith.constant 0 : index
    %c0_0 = arith.constant 0 : index
    %0 = vector.load %arg0[%c0, %c0_0] : memref<2x8192xbf16, #tpu.memory_space<vmem>>, vector<2x8192xbf16>
    %1 = arith.extf %0 : vector<2x8192xbf16> to vector<2x8192xf32>
    %c0_1 = arith.constant 0 : index
    %c0_2 = arith.constant 0 : index
    %2 = vector.load %arg1[%c0_1, %c0_2] : memref<1x8192xf32, #tpu.memory_space<vmem>>, vector<1x8192xf32>
    %3 = vector.broadcast %2 : vector<1x8192xf32> to vector<2x8192xf32>
    %4 = arith.mulf %1, %3 : vector<2x8192xf32>
    %cst = arith.constant dense<0.000000e+00> : vector<2xf32>
    %5 = vector.multi_reduction <add>, %4, %cst [1] : vector<2x8192xf32> to vector<2xf32>
    %6 = vector.shape_cast %5 : vector<2xf32> to vector<2x1xf32>
    %cst_3 = arith.constant 0.000000e+00 : f32
    %7 = vector.broadcast %cst_3 : f32 to vector<2x1xf32>
    %8 = arith.subf %7, %6 : vector<2x1xf32>
    %9 = math.exp %8 : vector<2x1xf32>
    %cst_4 = arith.constant 1.000000e+00 : f32
    %10 = vector.broadcast %cst_4 : f32 to vector<2x1xf32>
    %11 = arith.addf %10, %9 : vector<2x1xf32>
    %cst_5 = arith.constant 1.000000e+00 : f32
    %12 = vector.broadcast %cst_5 : f32 to vector<2x1xf32>
    %13 = arith.divf %12, %11 : vector<2x1xf32>
    %c0_6 = arith.constant 0 : index
    %c0_7 = arith.constant 0 : index
    %14 = vector.load %arg2[%c0_6, %c0_7] : memref<2x1xf32, #tpu.memory_space<vmem>>, vector<2x1xf32>
    tpu.vector_store %arg2[%c0_6, %c0_7], %13 {strides = array<i32>} : memref<2x1xf32, #tpu.memory_space<vmem>>, vector<2x1xf32>,
    return
  }
}

</mosaic_0001>

<bundles_post_ra>
// kernel: discriminator_forward.8
= control target key start
LH: loop header
LB: loop body
LE: loop exit
PB: predicated region body
PF: predicated region fallthrough
CT: control target
= control target key end

     0   :  { %s1087_s9 = smov 0   ;;  %s1089_s10 = smov 0   ;;  %s1294_s0 = inlined_call_operand.vmem [shape: bf16[2048,16], index: 0, kind: input, shape index: {}]   ;;  %s1295_s1 = inlined_call_operand.vmem [shape: bf16[16,64], index: 1, kind: input, shape index: {}]   ;;  %s1296_s2 = inlined_call_operand.vmem [shape: bf16[2048,64], index: 2, kind: output, shape index: {}]  }
   0x1   :  { %s1091_s11 = smov 0  }
   0x2 LB: > { %s31_s12 = sadd.s32 1, %s1065_s10  ;;  %p911_p0 = scmp.ge.s32.totalorder %s1069_s11, 1  ;;  %s1069_s11 = sphi %s1091_s11, %s12_s11   ;;  %s1065_s10 = sphi %s1089_s10, %s1298_s10   ;;  %s1061_s9 = sphi %s1087_s9, %s1297_s9  }
   0x3   : > { %p33_p1 = scmp.ge.s32.totalorder %s31_s12, 8  ;;  %p155_p2 = scmp.lt.s32.totalorder %s1069_s11, 9 }
   0x5   : > { %s1300_s12 = smov (%p33_p1, %s31_s12), 0  ;;  %p156_p3 = pnand %p911_p0, %p155_p2 }
   0x6   : > { %s912_s15 = sshll.u32 (!%p156_p3), %s1061_s9, 5 }
   0x7   : > { %159 = sbr.rel (%p156_p3) target bundleno = 226 (0xe2), region = 28  ;;  %p192_p4 = scmp.lt.s32.totalorder (!%p156_p3), %s912_s15, 255 }
   0xc   : > { %v1018_v0 = vld [vmem:[%s1295_s1] sm:$0xff]  ;;  %s1302_s15 = smov (!%p192_p4, %s912_s15), 255  ;;  %vm408_vm0 = vcmask 130048   ;;  %vm223_vm1 = vcmask 523264   ;;  %v1071_v9 = vmov 0.0   ;;  %vm774_vm4 = vcmask 519168  }
   0xd   : > { %464 = vmatpush.bf16.msra.mxu0 %v1018_v0  ;;  %1019 = vmatpush.bf16.msra.mxu1 %v1018_v0  ;;  %s913_s16 = sshll.u32 %s1302_s15, 2  ;;  %224 = vst.msk [vmem:[#allocation2] sm:$0xff] %vm223_vm1, %v1071_v9 }
   0xe   : > { %1020 = vmatpush.bf16.msra.mxu2 %v1018_v0  ;;  %1021 = vmatpush.bf16.msra.mxu3 %v1018_v0  ;;  %s1116_s19 = scalar_lea.vmem %s1294_s0, %s913_s16  ;;  %225 = vst.msk [vmem:[#allocation2 + $0x8] sm:$0xff] %vm223_vm1, %v1071_v9  ;;  %s1192_s22 = scalar_lea.vmem %s1296_s2, %s913_s16 }
   0xf   : > { %v1002_v1 = vld [vmem:[%s1116_s19] sm:$0xff]  ;;  %v1003_v5 = vld [vmem:[%s1116_s19 + $0x8] sm:$0xff]  ;;  %226 = vst.msk [vmem:[#allocation2 + $0x10] sm:$0xff] %vm223_vm1, %v1071_v9  ;;  %v1004_v10 = vld [vmem:[%s1116_s19 + $0x10] sm:$0xff] }
  0x10   : > { %v1006_v2 = vld [vmem:[%s1116_s19 + $0x20] sm:$0xff]  ;;  %984 = vmatmul.msk.bf16.vlgmr.msra.gmra.mxu0 %vm408_vm0, %v1002_v1  ;;  %v1007_v6 = vld [vmem:[%s1116_s19 + $0x28] sm:$0xff]  ;;  %227 = vst.msk [vmem:[#allocation2 + $0x18] sm:$0xff] %vm223_vm1, %v1071_v9  ;;  %v1008_v11 = vld [vmem:[%s1116_s19 + $0x30] sm:$0xff] }
  0x11   : > { %v1010_v3 = vld [vmem:[%s1116_s19 + $0x40] sm:$0xff]  ;;  %988 = vmatmul.msk.bf16.vlgmr.msra.gmra.mxu1 %vm408_vm0, %v1006_v2  ;;  %v1011_v7 = vld [vmem:[%s1116_s19 + $0x48] sm:$0xff]  ;;  %228 = vst.msk [vmem:[#allocation2 + $0x20] sm:$0xff] %vm223_vm1, %v1071_v9  ;;  %v1012_v12 = vld [vmem:[%s1116_s19 + $0x50] sm:$0xff] }
  0x12   : > { %v1014_v4 = vld [vmem:[%s1116_s19 + $0x60] sm:$0xff]  ;;  %992 = vmatmul.msk.bf16.vlgmr.msra.gmra.mxu2 %vm408_vm0, %v1010_v3  ;;  %v1015_v8 = vld [vmem:[%s1116_s19 + $0x68] sm:$0xff]  ;;  %229 = vst.msk [vmem:[#allocation2 + $0x28] sm:$0xff] %vm223_vm1, %v1071_v9  ;;  %v1016_v13 = vld [vmem:[%s1116_s19 + $0x70] sm:$0xff] }
  0x13   : > { %996 = vmatmul.msk.bf16.vlgmr.msra.gmra.mxu3 %vm408_vm0, %v1014_v4  ;;  %230 = vst.msk [vmem:[#allocation2 + $0x30] sm:$0xff] %vm223_vm1, %v1071_v9  ;;  %v1005_v14 = vld [vmem:[%s1116_s19 + $0x18] sm:$0xff] }
  0x14   : > { %231 = vst.msk [vmem:[#allocation2 + $0x38] sm:$0xff] %vm223_vm1, %v1071_v9  ;;  %v1009_v15 = vld [vmem:[%s1116_s19 + $0x38] sm:$0xff]  ;;  %v256_v18 = vld [vmem:[#allocation2] sm:$0xff] }
  0x15   : > { %232 = vst.msk [vmem:[#allocation2 + $0x40] sm:$0xff] %vm223_vm1, %v1071_v9  ;;  %v1013_v16 = vld [vmem:[%s1116_s19 + $0x58] sm:$0xff]  ;;  %v257_v26 = vld [vmem:[#allocation2 + $0x8] sm:$0xff] }
  0x16   : > { %233 = vst.msk [vmem:[#allocation2 + $0x48] sm:$0xff] %vm223_vm1, %v1071_v9  ;;  %v1017_v17 = vld [vmem:[%s1116_s19 + $0x78] sm:$0xff]  ;;  %v258_v45 = vld [vmem:[#allocation2 + $0x10] sm:$0xff] }
  0x17   : > { %234 = vst.msk [vmem:[#allocation2 + $0x50] sm:$0xff] %vm223_vm1, %v1071_v9 }
  0x18   : > { %235 = vst.msk [vmem:[#allocation2 + $0x58] sm:$0xff] %vm223_vm1, %v1071_v9 }
  0x19   : > { %236 = vst.msk [vmem:[#allocation2 + $0x60] sm:$0xff] %vm223_vm1, %v1071_v9 }
  0x1a   : > { %237 = vst.msk [vmem:[#allocation2 + $0x68] sm:$0xff] %vm223_vm1, %v1071_v9 }
  0x1b   : > { %238 = vst.msk [vmem:[#allocation2 + $0x70] sm:$0xff] %vm223_vm1, %v1071_v9 }
  0x1c   : > { %239 = vst.msk [vmem:[#allocation2 + $0x78] sm:$0xff] %vm223_vm1, %v1071_v9  ;;  %v264_v19 = vld [vmem:[#allocation2 + $0x40] sm:$0xff] }
  0x1d   : > { %240 = vst.msk [vmem:[#allocation2 + $0x80] sm:$0xff] %vm223_vm1, %v1071_v9  ;;  %v265_v27 = vld [vmem:[#allocation2 + $0x48] sm:$0xff] }
  0x1e   : > { %241 = vst.msk [vmem:[#allocation2 + $0x88] sm:$0xff] %vm223_vm1, %v1071_v9  ;;  %v266_v46 = vld [vmem:[#allocation2 + $0x50] sm:$0xff] }
  0x1f   : > { %242 = vst.msk [vmem:[#allocation2 + $0x90] sm:$0xff] %vm223_vm1, %v1071_v9 }
  0x20   : > { %985 = vmatmul.msk.bf16.gmra.mxu0 %vm408_vm0, %v1003_v5  ;;  %243 = vst.msk [vmem:[#allocation2 + $0x98] sm:$0xff] %vm223_vm1, %v1071_v9 }
  0x21   : > { %989 = vmatmul.msk.bf16.gmra.mxu1 %vm408_vm0, %v1007_v6  ;;  %244 = vst.msk [vmem:[#allocation2 + $0xa0] sm:$0xff] %vm223_vm1, %v1071_v9 }
  0x22   : > { %993 = vmatmul.msk.bf16.gmra.mxu2 %vm408_vm0, %v1011_v7  ;;  %245 = vst.msk [vmem:[#allocation2 + $0xa8] sm:$0xff] %vm223_vm1, %v1071_v9  ;;  %v259_v7 = vld [vmem:[#allocation2 + $0x18] sm:$0xff] }
  0x23   : > { %997 = vmatmul.msk.bf16.gmra.mxu3 %vm408_vm0, %v1015_v8  ;;  %246 = vst.msk [vmem:[#allocation2 + $0xb0] sm:$0xff] %vm223_vm1, %v1071_v9 }
  0x24   : > { %247 = vst.msk [vmem:[#allocation2 + $0xb8] sm:$0xff] %vm223_vm1, %v1071_v9  ;;  %v272_v24 = vld [vmem:[#allocation2 + $0x80] sm:$0xff] }
  0x25   : > { %248 = vst.msk [vmem:[#allocation2 + $0xc0] sm:$0xff] %vm223_vm1, %v1071_v9  ;;  %v273_v41 = vld [vmem:[#allocation2 + $0x88] sm:$0xff] }
  0x26   : > { %249 = vst.msk [vmem:[#allocation2 + $0xc8] sm:$0xff] %vm223_vm1, %v1071_v9  ;;  %v274_v3 = vld [vmem:[#allocation2 + $0x90] sm:$0xff] }
  0x27   : > { %250 = vst.msk [vmem:[#allocation2 + $0xd0] sm:$0xff] %vm223_vm1, %v1071_v9 }
  0x28   : > { %251 = vst.msk [vmem:[#allocation2 + $0xd8] sm:$0xff] %vm223_vm1, %v1071_v9 }
  0x29   : > { %252 = vst.msk [vmem:[#allocation2 + $0xe0] sm:$0xff] %vm223_vm1, %v1071_v9 }
  0x2a   : > { %253 = vst.msk [vmem:[#allocation2 + $0xe8] sm:$0xff] %vm223_vm1, %v1071_v9 }
  0x2b   : > { %254 = vst.msk [vmem:[#allocation2 + $0xf0] sm:$0xff] %vm223_vm1, %v1071_v9 }
  0x2c   : > { %255 = vst.msk [vmem:[#allocation2 + $0xf8] sm:$0xff] %vm223_vm1, %v1071_v9  ;;  %v280_v25 = vld [vmem:[#allocation2 + $0xc0] sm:$0xff] }
  0x2d   : > { %v281_v42 = vld [vmem:[#allocation2 + $0xc8] sm:$0xff] }
  0x2e   : > { %v282_v4 = vld [vmem:[#allocation2 + $0xd0] sm:$0xff] }
  0x30   : > { %986 = vmatmul.msk.bf16.gmra.mxu0 %vm408_vm0, %v1004_v10 }
  0x31   : > { %990 = vmatmul.msk.bf16.gmra.mxu1 %vm408_vm0, %v1008_v11 }
  0x32   : > { %994 = vmatmul.msk.bf16.gmra.mxu2 %vm408_vm0, %v1012_v12  ;;  %v267_v12 = vld [vmem:[#allocation2 + $0x58] sm:$0xff] }
  0x33   : > { %998 = vmatmul.msk.bf16.gmra.mxu3 %vm408_vm0, %v1016_v13 }
  0x40   : > { %987 = vmatmul.msk.bf16.gmra.mxu0 %vm408_vm0, %v1005_v14 }
  0x41   : > { %991 = vmatmul.msk.bf16.gmra.mxu1 %vm408_vm0, %v1009_v15 }
  0x42   : > { %995 = vmatmul.msk.bf16.gmra.mxu2 %vm408_vm0, %v1013_v16 }
  0x43   : > { %999 = vmatmul.msk.bf16.gmra.mxu3 %vm408_vm0, %v1017_v17 }
  0x8d   : > { %v466_v20 = vpop.f32.mrf.mxu0 }
  0x8e   : > { %v486_v21 = vpop.f32.mrf.mxu1  ;;  %v546_v22 = vadd.f32 %v466_v20, %v256_v18 }
  0x8f   : > { %v554_v23 = vadd.f32 %v486_v21, %v264_v19 }
  0x90   : > { %579 = vst.msk [vmem:[#allocation2] sm:$0xff] %vm223_vm1, %v546_v22 }
  0x91   : > { %587 = vst.msk [vmem:[#allocation2 + $0x40] sm:$0xff] %vm223_vm1, %v554_v23 }
  0x95   : > { %v506_v28 = vpop.f32.mrf.mxu2  ;;  %v468_v32 = vpop.f32.mrf.mxu0 }
  0x96   : > { %v526_v29 = vpop.f32.mrf.mxu3  ;;  %v562_v30 = vadd.f32 %v506_v28, %v272_v24  ;;  %v488_v33 = vpop.f32.mrf.mxu1  ;;  %v547_v34 = vadd.f32 %v468_v32, %v257_v26  ;;  %v283_v32 = vld [vmem:[#allocation2 + $0xd8] sm:$0xff] }
  0x97   : > { %v570_v31 = vadd.f32 %v526_v29, %v280_v25  ;;  %v555_v35 = vadd.f32 %v488_v33, %v265_v27  ;;  %v614_v36 = vld [vmem:[#allocation2] sm:$0xff] }
  0x98   : > { %595 = vst.msk [vmem:[#allocation2 + $0x80] sm:$0xff] %vm223_vm1, %v562_v30  ;;  %vm646_vm2 = vcmp.ge.f32.partialorder %v614_v36, 0.0  ;;  %v678_v37 = vmul.f32 0.2, %v614_v36  ;;  %v622_v38 = vld [vmem:[#allocation2 + $0x40] sm:$0xff] }
  0x99   : > { %603 = vst.msk [vmem:[#allocation2 + $0xc0] sm:$0xff] %vm223_vm1, %v570_v31  ;;  %vm654_vm3 = vcmp.ge.f32.partialorder %v622_v38, 0.0  ;;  %v686_v39 = vmul.f32 0.2, %v622_v38  ;;  %v275_v31 = vld [vmem:[#allocation2 + $0x98] sm:$0xff] }
  0x9a   : > { %580 = vst.msk [vmem:[#allocation2 + $0x8] sm:$0xff] %vm223_vm1, %v547_v34  ;;  %v710_v40 = vsel %vm646_vm2, %v614_v36, %v678_v37 }
  0x9b   : > { %588 = vst.msk [vmem:[#allocation2 + $0x48] sm:$0xff] %vm223_vm1, %v555_v35  ;;  %v742_v43 = vpack.c.bf16 %v710_v40, %v710_v40  ;;  %v718_v44 = vsel %vm654_vm3, %v622_v38, %v686_v39  ;;  %v260_v35 = vld [vmem:[#allocation2 + $0x20] sm:$0xff] }
  0x9c   : > { %v750_v47 = vpack.c.bf16 %v718_v44, %v718_v44  ;;  %v268_v40 = vld [vmem:[#allocation2 + $0x60] sm:$0xff] }
  0x9d   : > { %v508_v48 = vpop.f32.mrf.mxu2  ;;  %775 = vst.msk [vmem:[%s1192_s22] sm:$0xf] %vm774_vm4, %v742_v43  ;;  %v471_v52 = vpop.f32.mrf.mxu0 }
  0x9e   : > { %v528_v49 = vpop.f32.mrf.mxu3  ;;  %v563_v50 = vadd.f32 %v508_v48, %v273_v41  ;;  %v491_v53 = vpop.f32.mrf.mxu1  ;;  %783 = vst.msk [vmem:[%s1192_s22 + $0x20] sm:$0xf] %vm774_vm4, %v750_v47  ;;  %v548_v55 = vadd.f32 %v471_v52, %v258_v45 }
  0x9f   : > { %v571_v51 = vadd.f32 %v528_v49, %v281_v42  ;;  %v630_v54 = vld [vmem:[#allocation2 + $0x80] sm:$0xff]  ;;  %v556_v56 = vadd.f32 %v491_v53, %v266_v46 }
  0xa0   : > { %vm662_vm5 = vcmp.ge.f32.partialorder %v630_v54, 0.0  ;;  %v694_v57 = vmul.f32 0.2, %v630_v54  ;;  %v638_v58 = vld [vmem:[#allocation2 + $0xc0] sm:$0xff]  ;;  %596 = vst.msk [vmem:[#allocation2 + $0x88] sm:$0xff] %vm223_vm1, %v563_v50 }
  0xa1   : > { %vm670_vm6 = vcmp.ge.f32.partialorder %v638_v58, 0.0  ;;  %v702_v59 = vmul.f32 0.2, %v638_v58  ;;  %v615_v60 = vld [vmem:[#allocation2 + $0x8] sm:$0xff]  ;;  %604 = vst.msk [vmem:[#allocation2 + $0xc8] sm:$0xff] %vm223_vm1, %v571_v51 }
  0xa2   : > { %v726_v61 = vsel %vm662_vm5, %v630_v54, %v694_v57  ;;  %vm647_vm7 = vcmp.ge.f32.partialorder %v615_v60, 0.0  ;;  %v679_v62 = vmul.f32 0.2, %v615_v60  ;;  %v623_v63 = vld [vmem:[#allocation2 + $0x48] sm:$0xff]  ;;  %581 = vst.msk [vmem:[#allocation2 + $0x10] sm:$0xff] %vm223_vm1, %v548_v55 }
  0xa3   : > { %v758_v0 = vpack.c.bf16 %v726_v61, %v726_v61  ;;  %v734_v1 = vsel %vm670_vm6, %v638_v58, %v702_v59  ;;  %vm655_vm8 = vcmp.ge.f32.partialorder %v623_v63, 0.0  ;;  %v687_v2 = vmul.f32 0.2, %v623_v63  ;;  %589 = vst.msk [vmem:[#allocation2 + $0x50] sm:$0xff] %vm223_vm1, %v556_v56  ;;  %v276_v56 = vld [vmem:[#allocation2 + $0xa0] sm:$0xff] }
  0xa4   : > { %v766_v5 = vpack.c.bf16 %v734_v1, %v734_v1  ;;  %v711_v6 = vsel %vm647_vm7, %v615_v60, %v679_v62  ;;  %v284_v60 = vld [vmem:[#allocation2 + $0xe0] sm:$0xff]  ;;  %v261_v1 = vld [vmem:[#allocation2 + $0x28] sm:$0xff] }
  0xa5   : > { %791 = vst.msk [vmem:[%s1192_s22 + $0x40] sm:$0xf] %vm774_vm4, %v758_v0  ;;  %v743_v8 = vpack.c.bf16 %v711_v6, %v711_v6  ;;  %v719_v9 = vsel %vm655_vm8, %v623_v63, %v687_v2  ;;  %v511_v10 = vpop.f32.mrf.mxu2  ;;  %v473_v16 = vpop.f32.mrf.mxu0  ;;  %v269_v6 = vld [vmem:[#allocation2 + $0x68] sm:$0xff] }
  0xa6   : > { %v531_v11 = vpop.f32.mrf.mxu3  ;;  %799 = vst.msk [vmem:[%s1192_s22 + $0x60] sm:$0xf] %vm774_vm4, %v766_v5  ;;  %v751_v13 = vpack.c.bf16 %v719_v9, %v719_v9  ;;  %v564_v14 = vadd.f32 %v511_v10, %v274_v3  ;;  %v493_v17 = vpop.f32.mrf.mxu1  ;;  %v549_v19 = vadd.f32 %v473_v16, %v259_v7 }
  0xa7   : > { %v572_v15 = vadd.f32 %v531_v11, %v282_v4  ;;  %776 = vst.msk [vmem:[%s1192_s22 + $0x4] sm:$0xf] %vm774_vm4, %v743_v8  ;;  %v631_v18 = vld [vmem:[#allocation2 + $0x88] sm:$0xff]  ;;  %v557_v22 = vadd.f32 %v493_v17, %v267_v12 }
  0xa8   : > { %784 = vst.msk [vmem:[%s1192_s22 + $0x24] sm:$0xf] %vm774_vm4, %v751_v13  ;;  %vm663_vm9 = vcmp.ge.f32.partialorder %v631_v18, 0.0  ;;  %v695_v20 = vmul.f32 0.2, %v631_v18  ;;  %v639_v21 = vld [vmem:[#allocation2 + $0xc8] sm:$0xff] }
  0xa9   : > { %vm671_vm10 = vcmp.ge.f32.partialorder %v639_v21, 0.0  ;;  %v703_v23 = vmul.f32 0.2, %v639_v21  ;;  %v616_v24 = vld [vmem:[#allocation2 + $0x10] sm:$0xff]  ;;  %597 = vst.msk [vmem:[#allocation2 + $0x90] sm:$0xff] %vm223_vm1, %v564_v14 }
  0xaa   : > { %v727_v25 = vsel %vm663_vm9, %v631_v18, %v695_v20  ;;  %vm648_vm11 = vcmp.ge.f32.partialorder %v616_v24, 0.0  ;;  %v680_v26 = vmul.f32 0.2, %v616_v24  ;;  %v624_v27 = vld [vmem:[#allocation2 + $0x50] sm:$0xff]  ;;  %605 = vst.msk [vmem:[#allocation2 + $0xd0] sm:$0xff] %vm223_vm1, %v572_v15  ;;  %v277_v20 = vld [vmem:[#allocation2 + $0xa8] sm:$0xff] }
  0xab   : > { %v759_v28 = vpack.c.bf16 %v727_v25, %v727_v25  ;;  %v735_v29 = vsel %vm671_vm10, %v639_v21, %v703_v23  ;;  %vm656_vm12 = vcmp.ge.f32.partialorder %v624_v27, 0.0  ;;  %v688_v30 = vmul.f32 0.2, %v624_v27  ;;  %582 = vst.msk [vmem:[#allocation2 + $0x18] sm:$0xff] %vm223_vm1, %v549_v19 }
  0xac   : > { %v767_v33 = vpack.c.bf16 %v735_v29, %v735_v29  ;;  %v712_v34 = vsel %vm648_vm11, %v616_v24, %v680_v26  ;;  %590 = vst.msk [vmem:[#allocation2 + $0x58] sm:$0xff] %vm223_vm1, %v557_v22  ;;  %v285_v24 = vld [vmem:[#allocation2 + $0xe8] sm:$0xff]  ;;  %v262_v29 = vld [vmem:[#allocation2 + $0x30] sm:$0xff] }
  0xad   : > { %792 = vst.msk [vmem:[%s1192_s22 + $0x44] sm:$0xf] %vm774_vm4, %v759_v28  ;;  %v744_v36 = vpack.c.bf16 %v712_v34, %v712_v34  ;;  %v720_v37 = vsel %vm656_vm12, %v624_v27, %v688_v30  ;;  %v513_v38 = vpop.f32.mrf.mxu2  ;;  %v476_v44 = vpop.f32.mrf.mxu0  ;;  %v270_v34 = vld [vmem:[#allocation2 + $0x70] sm:$0xff] }
  0xae   : > { %v533_v39 = vpop.f32.mrf.mxu3  ;;  %800 = vst.msk [vmem:[%s1192_s22 + $0x64] sm:$0xf] %vm774_vm4, %v767_v33  ;;  %v752_v41 = vpack.c.bf16 %v720_v37, %v720_v37  ;;  %v565_v42 = vadd.f32 %v513_v38, %v275_v31  ;;  %v496_v45 = vpop.f32.mrf.mxu1  ;;  %v550_v46 = vadd.f32 %v476_v44, %v260_v35 }
  0xaf   : > { %v573_v43 = vadd.f32 %v533_v39, %v283_v32  ;;  %777 = vst.msk [vmem:[%s1192_s22 + $0x8] sm:$0xf] %vm774_vm4, %v744_v36  ;;  %v558_v48 = vadd.f32 %v496_v45, %v268_v40 }
  0xb0   : > { %785 = vst.msk [vmem:[%s1192_s22 + $0x28] sm:$0xf] %vm774_vm4, %v752_v41  ;;  %v632_v47 = vld [vmem:[#allocation2 + $0x90] sm:$0xff] }
  0xb1   : > { %vm664_vm13 = vcmp.ge.f32.partialorder %v632_v47, 0.0  ;;  %v696_v49 = vmul.f32 0.2, %v632_v47  ;;  %v640_v50 = vld [vmem:[#allocation2 + $0xd0] sm:$0xff]  ;;  %598 = vst.msk [vmem:[#allocation2 + $0x98] sm:$0xff] %vm223_vm1, %v565_v42 }
  0xb2   : > { %vm672_vm14 = vcmp.ge.f32.partialorder %v640_v50, 0.0  ;;  %v704_v51 = vmul.f32 0.2, %v640_v50  ;;  %v617_v52 = vld [vmem:[#allocation2 + $0x18] sm:$0xff]  ;;  %606 = vst.msk [vmem:[#allocation2 + $0xd8] sm:$0xff] %vm223_vm1, %v573_v43 }
  0xb3   : > { %v728_v53 = vsel %vm664_vm13, %v632_v47, %v696_v49  ;;  %vm649_vm15 = vcmp.ge.f32.partialorder %v617_v52, 0.0  ;;  %v681_v54 = vmul.f32 0.2, %v617_v52  ;;  %v625_v55 = vld [vmem:[#allocation2 + $0x58] sm:$0xff]  ;;  %583 = vst.msk [vmem:[#allocation2 + $0x20] sm:$0xff] %vm223_vm1, %v550_v46 }
  0xb4   : > { %v760_v57 = vpack.c.bf16 %v728_v53, %v728_v53  ;;  %v736_v58 = vsel %vm672_vm14, %v640_v50, %v704_v51  ;;  %vm657_vm0 = vcmp.ge.f32.partialorder %v625_v55, 0.0  ;;  %v689_v59 = vmul.f32 0.2, %v625_v55  ;;  %591 = vst.msk [vmem:[#allocation2 + $0x60] sm:$0xff] %vm223_vm1, %v558_v48  ;;  %v278_v48 = vld [vmem:[#allocation2 + $0xb0] sm:$0xff] }
  0xb5   : > { %v768_v61 = vpack.c.bf16 %v736_v58, %v736_v58  ;;  %v713_v62 = vsel %vm649_vm15, %v617_v52, %v681_v54  ;;  %v516_v63 = vpop.f32.mrf.mxu2  ;;  %v478_v5 = vpop.f32.mrf.mxu0  ;;  %v286_v53 = vld [vmem:[#allocation2 + $0xf0] sm:$0xff] }
  0xb6   : > { %v536_v0 = vpop.f32.mrf.mxu3  ;;  %793 = vst.msk [vmem:[%s1192_s22 + $0x48] sm:$0xf] %vm774_vm4, %v760_v57  ;;  %v745_v2 = vpack.c.bf16 %v713_v62, %v713_v62  ;;  %v721_v3 = vsel %vm657_vm0, %v625_v55, %v689_v59  ;;  %v566_v4 = vadd.f32 %v516_v63, %v276_v56  ;;  %v498_v7 = vpop.f32.mrf.mxu1  ;;  %v551_v11 = vadd.f32 %v478_v5, %v261_v1  ;;  %v263_v57 = vld [vmem:[#allocation2 + $0x38] sm:$0xff] }
  0xb7   : > { %801 = vst.msk [vmem:[%s1192_s22 + $0x68] sm:$0xf] %vm774_vm4, %v768_v61  ;;  %v753_v8 = vpack.c.bf16 %v721_v3, %v721_v3  ;;  %v574_v9 = vadd.f32 %v536_v0, %v284_v60  ;;  %v559_v14 = vadd.f32 %v498_v7, %v269_v6  ;;  %v271_v62 = vld [vmem:[#allocation2 + $0x78] sm:$0xff] }
  0xb8   : > { %778 = vst.msk [vmem:[%s1192_s22 + $0xc] sm:$0xf] %vm774_vm4, %v745_v2  ;;  %v633_v10 = vld [vmem:[#allocation2 + $0x98] sm:$0xff] }
  0xb9   : > { %786 = vst.msk [vmem:[%s1192_s22 + $0x2c] sm:$0xf] %vm774_vm4, %v753_v8  ;;  %vm665_vm2 = vcmp.ge.f32.partialorder %v633_v10, 0.0  ;;  %v697_v12 = vmul.f32 0.2, %v633_v10  ;;  %v641_v13 = vld [vmem:[#allocation2 + $0xd8] sm:$0xff] }
  0xba   : > { %vm673_vm3 = vcmp.ge.f32.partialorder %v641_v13, 0.0  ;;  %v705_v15 = vmul.f32 0.2, %v641_v13  ;;  %v618_v16 = vld [vmem:[#allocation2 + $0x20] sm:$0xff]  ;;  %599 = vst.msk [vmem:[#allocation2 + $0xa0] sm:$0xff] %vm223_vm1, %v566_v4 }
  0xbb   : > { %v729_v17 = vsel %vm665_vm2, %v633_v10, %v697_v12  ;;  %vm650_vm5 = vcmp.ge.f32.partialorder %v618_v16, 0.0  ;;  %v682_v18 = vmul.f32 0.2, %v618_v16  ;;  %v626_v19 = vld [vmem:[#allocation2 + $0x60] sm:$0xff]  ;;  %607 = vst.msk [vmem:[#allocation2 + $0xe0] sm:$0xff] %vm223_vm1, %v574_v9  ;;  %v279_v12 = vld [vmem:[#allocation2 + $0xb8] sm:$0xff] }
  0xbc   : > { %v761_v21 = vpack.c.bf16 %v729_v17, %v729_v17  ;;  %v737_v22 = vsel %vm673_vm3, %v641_v13, %v705_v15  ;;  %vm658_vm6 = vcmp.ge.f32.partialorder %v626_v19, 0.0  ;;  %v690_v23 = vmul.f32 0.2, %v626_v19  ;;  %584 = vst.msk [vmem:[#allocation2 + $0x28] sm:$0xff] %vm223_vm1, %v551_v11  ;;  %v287_v17 = vld [vmem:[#allocation2 + $0xf8] sm:$0xff] }
  0xbd   : > { %v769_v25 = vpack.c.bf16 %v737_v22, %v737_v22  ;;  %v714_v26 = vsel %vm650_vm5, %v618_v16, %v682_v18  ;;  %592 = vst.msk [vmem:[#allocation2 + $0x68] sm:$0xff] %vm223_vm1, %v559_v14  ;;  %v518_v27 = vpop.f32.mrf.mxu2  ;;  %v481_v33 = vpop.f32.mrf.mxu0 }
  0xbe   : > { %v538_v28 = vpop.f32.mrf.mxu3  ;;  %794 = vst.msk [vmem:[%s1192_s22 + $0x4c] sm:$0xf] %vm774_vm4, %v761_v21  ;;  %v746_v30 = vpack.c.bf16 %v714_v26, %v714_v26  ;;  %v722_v31 = vsel %vm658_vm6, %v626_v19, %v690_v23  ;;  %v567_v32 = vadd.f32 %v518_v27, %v277_v20  ;;  %v501_v35 = vpop.f32.mrf.mxu1  ;;  %v552_v38 = vadd.f32 %v481_v33, %v262_v29 }
  0xbf   : > { %802 = vst.msk [vmem:[%s1192_s22 + $0x6c] sm:$0xf] %vm774_vm4, %v769_v25  ;;  %v754_v36 = vpack.c.bf16 %v722_v31, %v722_v31  ;;  %v575_v37 = vadd.f32 %v538_v28, %v285_v24  ;;  %v560_v40 = vadd.f32 %v501_v35, %v270_v34 }
  0xc0   : > { %779 = vst.msk [vmem:[%s1192_s22 + $0x10] sm:$0xf] %vm774_vm4, %v746_v30 }
  0xc1   : > { %787 = vst.msk [vmem:[%s1192_s22 + $0x30] sm:$0xf] %vm774_vm4, %v754_v36  ;;  %v634_v39 = vld [vmem:[#allocation2 + $0xa0] sm:$0xff] }
  0xc2   : > { %vm666_vm7 = vcmp.ge.f32.partialorder %v634_v39, 0.0  ;;  %v698_v41 = vmul.f32 0.2, %v634_v39  ;;  %v642_v42 = vld [vmem:[#allocation2 + $0xe0] sm:$0xff]  ;;  %600 = vst.msk [vmem:[#allocation2 + $0xa8] sm:$0xff] %vm223_vm1, %v567_v32 }
  0xc3   : > { %vm674_vm8 = vcmp.ge.f32.partialorder %v642_v42, 0.0  ;;  %v706_v43 = vmul.f32 0.2, %v642_v42  ;;  %v619_v44 = vld [vmem:[#allocation2 + $0x28] sm:$0xff]  ;;  %608 = vst.msk [vmem:[#allocation2 + $0xe8] sm:$0xff] %vm223_vm1, %v575_v37 }
  0xc4   : > { %v730_v45 = vsel %vm666_vm7, %v634_v39, %v698_v41  ;;  %vm651_vm9 = vcmp.ge.f32.partialorder %v619_v44, 0.0  ;;  %v683_v46 = vmul.f32 0.2, %v619_v44  ;;  %v627_v47 = vld [vmem:[#allocation2 + $0x68] sm:$0xff]  ;;  %585 = vst.msk [vmem:[#allocation2 + $0x30] sm:$0xff] %vm223_vm1, %v552_v38 }
  0xc5   : > { %v762_v49 = vpack.c.bf16 %v730_v45, %v730_v45  ;;  %v738_v50 = vsel %vm674_vm8, %v642_v42, %v706_v43  ;;  %vm659_vm10 = vcmp.ge.f32.partialorder %v627_v47, 0.0  ;;  %v691_v51 = vmul.f32 0.2, %v627_v47  ;;  %593 = vst.msk [vmem:[#allocation2 + $0x70] sm:$0xff] %vm223_vm1, %v560_v40  ;;  %v521_v52 = vpop.f32.mrf.mxu2  ;;  %v483_v58 = vpop.f32.mrf.mxu0 }
  0xc6   : > { %v541_v54 = vpop.f32.mrf.mxu3  ;;  %v770_v55 = vpack.c.bf16 %v738_v50, %v738_v50  ;;  %v715_v56 = vsel %vm651_vm9, %v619_v44, %v683_v46  ;;  %v568_v61 = vadd.f32 %v521_v52, %v278_v48  ;;  %v503_v63 = vpop.f32.mrf.mxu1  ;;  %v553_v3 = vadd.f32 %v483_v58, %v263_v57 }
  0xc7   : > { %795 = vst.msk [vmem:[%s1192_s22 + $0x50] sm:$0xf] %vm774_vm4, %v762_v49  ;;  %v747_v59 = vpack.c.bf16 %v715_v56, %v715_v56  ;;  %v723_v60 = vsel %vm659_vm10, %v627_v47, %v691_v51  ;;  %v576_v1 = vadd.f32 %v541_v54, %v286_v53  ;;  %v561_v6 = vadd.f32 %v503_v63, %v271_v62 }
  0xc8   : > { %803 = vst.msk [vmem:[%s1192_s22 + $0x70] sm:$0xf] %vm774_vm4, %v770_v55  ;;  %v755_v0 = vpack.c.bf16 %v723_v60, %v723_v60 }
  0xc9   : > { %780 = vst.msk [vmem:[%s1192_s22 + $0x14] sm:$0xf] %vm774_vm4, %v747_v59  ;;  %v635_v2 = vld [vmem:[#allocation2 + $0xa8] sm:$0xff] }
  0xca   : > { %788 = vst.msk [vmem:[%s1192_s22 + $0x34] sm:$0xf] %vm774_vm4, %v755_v0  ;;  %vm667_vm11 = vcmp.ge.f32.partialorder %v635_v2, 0.0  ;;  %v699_v4 = vmul.f32 0.2, %v635_v2  ;;  %v643_v5 = vld [vmem:[#allocation2 + $0xe8] sm:$0xff] }
  0xcb   : > { %vm675_vm12 = vcmp.ge.f32.partialorder %v643_v5, 0.0  ;;  %v707_v7 = vmul.f32 0.2, %v643_v5  ;;  %v620_v8 = vld [vmem:[#allocation2 + $0x30] sm:$0xff]  ;;  %601 = vst.msk [vmem:[#allocation2 + $0xb0] sm:$0xff] %vm223_vm1, %v568_v61 }
  0xcc   : > { %v731_v9 = vsel %vm667_vm11, %v635_v2, %v699_v4  ;;  %vm652_vm13 = vcmp.ge.f32.partialorder %v620_v8, 0.0  ;;  %v684_v10 = vmul.f32 0.2, %v620_v8  ;;  %v628_v11 = vld [vmem:[#allocation2 + $0x70] sm:$0xff]  ;;  %609 = vst.msk [vmem:[#allocation2 + $0xf0] sm:$0xff] %vm223_vm1, %v576_v1 }
  0xcd   : > { %v763_v13 = vpack.c.bf16 %v731_v9, %v731_v9  ;;  %v739_v14 = vsel %vm675_vm12, %v643_v5, %v707_v7  ;;  %vm660_vm14 = vcmp.ge.f32.partialorder %v628_v11, 0.0  ;;  %v692_v15 = vmul.f32 0.2, %v628_v11  ;;  %586 = vst.msk [vmem:[#allocation2 + $0x38] sm:$0xff] %vm223_vm1, %v553_v3  ;;  %v523_v16 = vpop.f32.mrf.mxu2 }
  0xce   : > { %v543_v18 = vpop.f32.mrf.mxu3  ;;  %v771_v19 = vpack.c.bf16 %v739_v14, %v739_v14  ;;  %v716_v20 = vsel %vm652_vm13, %v620_v8, %v684_v10  ;;  %594 = vst.msk [vmem:[#allocation2 + $0x78] sm:$0xff] %vm223_vm1, %v561_v6  ;;  %v569_v23 = vadd.f32 %v523_v16, %v279_v12 }
  0xcf   : > { %796 = vst.msk [vmem:[%s1192_s22 + $0x54] sm:$0xf] %vm774_vm4, %v763_v13  ;;  %v748_v21 = vpack.c.bf16 %v716_v20, %v716_v20  ;;  %v724_v22 = vsel %vm660_vm14, %v628_v11, %v692_v15  ;;  %v577_v25 = vadd.f32 %v543_v18, %v287_v17 }
  0xd0   : > { %804 = vst.msk [vmem:[%s1192_s22 + $0x74] sm:$0xf] %vm774_vm4, %v771_v19  ;;  %v756_v24 = vpack.c.bf16 %v724_v22, %v724_v22 }
  0xd1   : > { %781 = vst.msk [vmem:[%s1192_s22 + $0x18] sm:$0xf] %vm774_vm4, %v748_v21 }
  0xd2   : > { %789 = vst.msk [vmem:[%s1192_s22 + $0x38] sm:$0xf] %vm774_vm4, %v756_v24  ;;  %v636_v26 = vld [vmem:[#allocation2 + $0xb0] sm:$0xff] }
  0xd3   : > { %vm668_vm15 = vcmp.ge.f32.partialorder %v636_v26, 0.0  ;;  %v700_v27 = vmul.f32 0.2, %v636_v26  ;;  %v644_v28 = vld [vmem:[#allocation2 + $0xf0] sm:$0xff]  ;;  %602 = vst.msk [vmem:[#allocation2 + $0xb8] sm:$0xff] %vm223_vm1, %v569_v23 }
  0xd4   : > { %vm676_vm0 = vcmp.ge.f32.partialorder %v644_v28, 0.0  ;;  %v708_v29 = vmul.f32 0.2, %v644_v28  ;;  %v621_v30 = vld [vmem:[#allocation2 + $0x38] sm:$0xff]  ;;  %610 = vst.msk [vmem:[#allocation2 + $0xf8] sm:$0xff] %vm223_vm1, %v577_v25 }
  0xd5   : > { %v732_v31 = vsel %vm668_vm15, %v636_v26, %v700_v27  ;;  %vm653_vm2 = vcmp.ge.f32.partialorder %v621_v30, 0.0  ;;  %v685_v32 = vmul.f32 0.2, %v621_v30  ;;  %v629_v33 = vld [vmem:[#allocation2 + $0x78] sm:$0xff] }
  0xd6   : > { %v764_v34 = vpack.c.bf16 %v732_v31, %v732_v31  ;;  %v740_v35 = vsel %vm676_vm0, %v644_v28, %v708_v29  ;;  %vm661_vm3 = vcmp.ge.f32.partialorder %v629_v33, 0.0  ;;  %v693_v36 = vmul.f32 0.2, %v629_v33 }
  0xd7   : > { %v772_v37 = vpack.c.bf16 %v740_v35, %v740_v35  ;;  %v717_v38 = vsel %vm653_vm2, %v621_v30, %v685_v32 }
  0xd8   : > { %797 = vst.msk [vmem:[%s1192_s22 + $0x58] sm:$0xf] %vm774_vm4, %v764_v34  ;;  %v749_v39 = vpack.c.bf16 %v717_v38, %v717_v38  ;;  %v725_v40 = vsel %vm661_vm3, %v629_v33, %v693_v36 }
  0xd9   : > { %805 = vst.msk [vmem:[%s1192_s22 + $0x78] sm:$0xf] %vm774_vm4, %v772_v37  ;;  %v757_v41 = vpack.c.bf16 %v725_v40, %v725_v40 }
  0xda   : > { %782 = vst.msk [vmem:[%s1192_s22 + $0x1c] sm:$0xf] %vm774_vm4, %v749_v39  ;;  %v637_v42 = vld [vmem:[#allocation2 + $0xb8] sm:$0xff] }
  0xdb   : > { %790 = vst.msk [vmem:[%s1192_s22 + $0x3c] sm:$0xf] %vm774_vm4, %v757_v41  ;;  %vm669_vm1 = vcmp.ge.f32.partialorder %v637_v42, 0.0  ;;  %v701_v43 = vmul.f32 0.2, %v637_v42  ;;  %v645_v44 = vld [vmem:[#allocation2 + $0xf8] sm:$0xff] }
  0xdc   : > { %vm677_vm5 = vcmp.ge.f32.partialorder %v645_v44, 0.0  ;;  %v709_v45 = vmul.f32 0.2, %v645_v44 }
  0xdd   : > { %v733_v46 = vsel %vm669_vm1, %v637_v42, %v701_v43 }
  0xde   : > { %v765_v47 = vpack.c.bf16 %v733_v46, %v733_v46  ;;  %v741_v48 = vsel %vm677_vm5, %v645_v44, %v709_v45 }
  0xdf   : > { %v773_v49 = vpack.c.bf16 %v741_v48, %v741_v48 }
  0xe0   : > { %798 = vst.msk [vmem:[%s1192_s22 + $0x5c] sm:$0xf] %vm774_vm4, %v765_v47 }
  0xe1   : > { %806 = vst.msk [vmem:[%s1192_s22 + $0x7c] sm:$0xf] %vm774_vm4, %v773_v49 }
  0xe2 PF: > { %s12_s11 = sadd.s32 1, %s1069_s11   ;;  %s1297_s9 = smov %s1065_s10 }
  0xe3   : > { %p9_p5 = scmp.ge.s32.totalorder %s12_s11, 10   ;;  %s1298_s10 = smov %s1300_s12 }
  0xe5   :  { %11 = sbr.rel (!%p9_p5) target bundleno = 2 (0x2), region = 69 }

// kernel: discriminator_forward.10
= control target key start
LH: loop header
LB: loop body
LE: loop exit
PB: predicated region body
PF: predicated region fallthrough
CT: control target
= control target key end

     0   :  { %s1304_s0 = inlined_call_operand.vmem [shape: bf16[512,128], index: 0, kind: input, shape index: {}]   ;;  %s1305_s1 = inlined_call_operand.vmem [shape: f32[1,128], index: 1, kind: input, shape index: {}]   ;;  %s1306_s2 = inlined_call_operand.vmem [shape: f32[1,128], index: 2, kind: input, shape index: {}]   ;;  %s1307_s3 = inlined_call_operand.vmem [shape: bf16[512,128], index: 3, kind: output, shape index: {}]  }
   0x1   :  { %v603_v0 = vld [vmem:[%s1304_s0] sm:$0xff]   ;;  %v890_v5 = vld [vmem:[%s1304_s0 + $0x8] sm:$0xff]   ;;  %v891_v8 = vld [vmem:[%s1304_s0 + $0x10] sm:$0xff]  }
   0x2   :  { %v980_v1 = vld [vmem:[%s1305_s1] ss:$0 sm:$0xff]  ;;  %v604_v2 = vunpack.c.l.bf16 %v603_v0  ;;  %v605_v3 = vunpack.c.h.bf16 %v603_v0  ;;  %v608_v6 = vunpack.c.l.bf16 %v890_v5  ;;  %v609_v7 = vunpack.c.h.bf16 %v890_v5  ;;  %v892_v9 = vld [vmem:[%s1304_s0 + $0x18] sm:$0xff]   ;;  %v894_v39 = vld [vmem:[%s1304_s0 + $0x28] sm:$0xff]  }
   0x3   :  { %v985_v4 = vld [vmem:[%s1306_s2] ss:$0 sm:$0xff]  ;;  %v612_v12 = vunpack.c.l.bf16 %v891_v8  ;;  %v613_v13 = vunpack.c.h.bf16 %v891_v8  ;;  %v616_v16 = vunpack.c.l.bf16 %v892_v9  ;;  %v617_v17 = vunpack.c.h.bf16 %v892_v9  ;;  %v895_v49 = vld [vmem:[%s1304_s0 + $0x30] sm:$0xff]   ;;  %v896_v57 = vld [vmem:[%s1304_s0 + $0x38] sm:$0xff]  }
   0x4   :  { %v146_v10 = vmul.f32 %v980_v1, %v604_v2  ;;  %v147_v11 = vmul.f32 %v980_v1, %v605_v3  ;;  %v148_v14 = vmul.f32 %v980_v1, %v608_v6  ;;  %v149_v15 = vmul.f32 %v980_v1, %v609_v7  ;;  %v893_v38 = vld [vmem:[%s1304_s0 + $0x20] sm:$0xff]  }
   0x5   :  { %v150_v20 = vmul.f32 %v980_v1, %v612_v12  ;;  %v151_v21 = vmul.f32 %v980_v1, %v613_v13  ;;  %v152_v24 = vmul.f32 %v980_v1, %v616_v16  ;;  %v153_v25 = vmul.f32 %v980_v1, %v617_v17 }
   0x6   :  { %v214_v18 = vadd.f32 %v985_v4, %v146_v10  ;;  %v215_v19 = vadd.f32 %v985_v4, %v147_v11  ;;  %v216_v22 = vadd.f32 %v985_v4, %v148_v14  ;;  %v217_v23 = vadd.f32 %v985_v4, %v149_v15 }
   0x7   :  { %v218_v32 = vadd.f32 %v985_v4, %v150_v20  ;;  %v219_v33 = vadd.f32 %v985_v4, %v151_v21  ;;  %v220_v37 = vadd.f32 %v985_v4, %v152_v24  ;;  %v221_v43 = vadd.f32 %v985_v4, %v153_v25  ;;  %v898_v20 = vld [vmem:[%s1304_s0 + $0x48] sm:$0xff]  }
   0x8   :  { %vm278_vm0 = vcmp.ge.f32.partialorder %v214_v18, 0.0  ;;  %vm279_vm1 = vcmp.ge.f32.partialorder %v215_v19, 0.0  ;;  %v342_v26 = vmul.f32 0.2, %v214_v18  ;;  %v343_v27 = vmul.f32 0.2, %v215_v19 }
   0x9   :  { %vm280_vm2 = vcmp.ge.f32.partialorder %v216_v22, 0.0  ;;  %vm281_vm3 = vcmp.ge.f32.partialorder %v217_v23, 0.0  ;;  %v344_v28 = vmul.f32 0.2, %v216_v22  ;;  %v345_v29 = vmul.f32 0.2, %v217_v23 }
   0xa   :  { %v406_v30 = vsel %vm278_vm0, %v214_v18, %v342_v26  ;;  %v407_v31 = vsel %vm279_vm1, %v215_v19, %v343_v27  ;;  %vm282_vm4 = vcmp.ge.f32.partialorder %v218_v32, 0.0  ;;  %vm283_vm5 = vcmp.ge.f32.partialorder %v219_v33, 0.0  ;;  %v897_v19 = vld [vmem:[%s1304_s0 + $0x40] sm:$0xff]  }
   0xb   :  { %v733_v34 = vpack.c.bf16 %v407_v31, %v406_v30  ;;  %v408_v35 = vsel %vm280_vm2, %v216_v22, %v344_v28  ;;  %v409_v36 = vsel %vm281_vm3, %v217_v23, %v345_v29  ;;  %v346_v41 = vmul.f32 0.2, %v218_v32  ;;  %v899_v28 = vld [vmem:[%s1304_s0 + $0x50] sm:$0xff]  }
   0xc   :  { %v738_v40 = vpack.c.bf16 %v409_v36, %v408_v35  ;;  %v347_v42 = vmul.f32 0.2, %v219_v33  ;;  %vm284_vm6 = vcmp.ge.f32.partialorder %v220_v37, 0.0  ;;  %v348_v44 = vmul.f32 0.2, %v220_v37 }
   0xd   :  { %734 = vst [vmem:[%s1307_s3] sm:$0xff] %v733_v34   ;;  %v410_v45 = vsel %vm282_vm4, %v218_v32, %v346_v41  ;;  %v620_v46 = vunpack.c.l.bf16 %v893_v38  ;;  %v621_v47 = vunpack.c.h.bf16 %v893_v38  ;;  %v624_v48 = vunpack.c.l.bf16 %v894_v39 }
   0xe   :  { %921 = vst [vmem:[%s1307_s3 + $0x8] sm:$0xff] %v738_v40   ;;  %v411_v50 = vsel %vm283_vm5, %v219_v33, %v347_v42  ;;  %vm285_vm7 = vcmp.ge.f32.partialorder %v221_v43, 0.0  ;;  %v349_v51 = vmul.f32 0.2, %v221_v43  ;;  %v412_v52 = vsel %vm284_vm6, %v220_v37, %v348_v44 }
   0xf   :  { %v743_v53 = vpack.c.bf16 %v411_v50, %v410_v45  ;;  %v154_v54 = vmul.f32 %v980_v1, %v620_v46  ;;  %v155_v55 = vmul.f32 %v980_v1, %v621_v47  ;;  %v625_v56 = vunpack.c.h.bf16 %v894_v39 }
  0x10   :  { %v413_v58 = vsel %vm285_vm7, %v221_v43, %v349_v51  ;;  %v156_v59 = vmul.f32 %v980_v1, %v624_v48  ;;  %v628_v60 = vunpack.c.l.bf16 %v895_v49  ;;  %v629_v61 = vunpack.c.h.bf16 %v895_v49 }
  0x11   :  { %922 = vst [vmem:[%s1307_s3 + $0x10] sm:$0xff] %v743_v53   ;;  %v748_v62 = vpack.c.bf16 %v413_v58, %v412_v52  ;;  %v222_v63 = vadd.f32 %v985_v4, %v154_v54  ;;  %v223_v0 = vadd.f32 %v985_v4, %v155_v55  ;;  %v157_v2 = vmul.f32 %v980_v1, %v625_v56  ;;  %v900_v55 = vld [vmem:[%s1304_s0 + $0x58] sm:$0xff]   ;;  %v901_v56 = vld [vmem:[%s1304_s0 + $0x60] sm:$0xff]  }
  0x12   :  { %v224_v3 = vadd.f32 %v985_v4, %v156_v59  ;;  %v158_v5 = vmul.f32 %v980_v1, %v628_v60  ;;  %v159_v6 = vmul.f32 %v980_v1, %v629_v61  ;;  %v632_v7 = vunpack.c.l.bf16 %v896_v57 }
  0x13   :  { %923 = vst [vmem:[%s1307_s3 + $0x18] sm:$0xff] %v748_v62   ;;  %vm286_vm8 = vcmp.ge.f32.partialorder %v222_v63, 0.0  ;;  %vm287_vm9 = vcmp.ge.f32.partialorder %v223_v0, 0.0  ;;  %v350_v8 = vmul.f32 0.2, %v222_v63  ;;  %v225_v9 = vadd.f32 %v985_v4, %v157_v2  ;;  %v902_v2 = vld [vmem:[%s1304_s0 + $0x68] sm:$0xff]  }
  0x14   :  { %v351_v10 = vmul.f32 0.2, %v223_v0  ;;  %vm288_vm10 = vcmp.ge.f32.partialorder %v224_v3, 0.0  ;;  %v352_v11 = vmul.f32 0.2, %v224_v3  ;;  %v226_v12 = vadd.f32 %v985_v4, %v158_v5 }
  0x15   :  { %v414_v13 = vsel %vm286_vm8, %v222_v63, %v350_v8  ;;  %vm289_vm11 = vcmp.ge.f32.partialorder %v225_v9, 0.0  ;;  %v353_v14 = vmul.f32 0.2, %v225_v9  ;;  %v227_v15 = vadd.f32 %v985_v4, %v159_v6 }
  0x16   :  { %v415_v16 = vsel %vm287_vm9, %v223_v0, %v351_v10  ;;  %v416_v17 = vsel %vm288_vm10, %v224_v3, %v352_v11  ;;  %vm290_vm12 = vcmp.ge.f32.partialorder %v226_v12, 0.0  ;;  %v354_v18 = vmul.f32 0.2, %v226_v12 }
  0x17   :  { %v753_v21 = vpack.c.bf16 %v415_v16, %v414_v13  ;;  %v417_v22 = vsel %vm289_vm11, %v225_v9, %v353_v14  ;;  %vm291_vm13 = vcmp.ge.f32.partialorder %v227_v15, 0.0  ;;  %v355_v23 = vmul.f32 0.2, %v227_v15 }
  0x18   :  { %v758_v24 = vpack.c.bf16 %v417_v22, %v416_v17  ;;  %v418_v25 = vsel %vm290_vm12, %v226_v12, %v354_v18  ;;  %v633_v26 = vunpack.c.h.bf16 %v896_v57  ;;  %v160_v27 = vmul.f32 %v980_v1, %v632_v7 }
  0x19   :  { %924 = vst [vmem:[%s1307_s3 + $0x20] sm:$0xff] %v753_v21   ;;  %v419_v29 = vsel %vm291_vm13, %v227_v15, %v355_v23  ;;  %v636_v30 = vunpack.c.l.bf16 %v897_v19  ;;  %v637_v31 = vunpack.c.h.bf16 %v897_v19  ;;  %v640_v32 = vunpack.c.l.bf16 %v898_v20 }
  0x1a   :  { %925 = vst [vmem:[%s1307_s3 + $0x28] sm:$0xff] %v758_v24   ;;  %v763_v33 = vpack.c.bf16 %v419_v29, %v418_v25  ;;  %v161_v34 = vmul.f32 %v980_v1, %v633_v26  ;;  %v228_v35 = vadd.f32 %v985_v4, %v160_v27  ;;  %v641_v36 = vunpack.c.h.bf16 %v898_v20 }
  0x1b   :  { %v162_v37 = vmul.f32 %v980_v1, %v636_v30  ;;  %v163_v38 = vmul.f32 %v980_v1, %v637_v31  ;;  %v164_v39 = vmul.f32 %v980_v1, %v640_v32  ;;  %v644_v40 = vunpack.c.l.bf16 %v899_v28 }
  0x1c   :  { %926 = vst [vmem:[%s1307_s3 + $0x30] sm:$0xff] %v763_v33   ;;  %v229_v41 = vadd.f32 %v985_v4, %v161_v34  ;;  %vm292_vm14 = vcmp.ge.f32.partialorder %v228_v35, 0.0  ;;  %v356_v42 = vmul.f32 0.2, %v228_v35  ;;  %v165_v43 = vmul.f32 %v980_v1, %v641_v36 }
  0x1d   :  { %v230_v44 = vadd.f32 %v985_v4, %v162_v37  ;;  %v231_v45 = vadd.f32 %v985_v4, %v163_v38  ;;  %v232_v46 = vadd.f32 %v985_v4, %v164_v39  ;;  %v645_v47 = vunpack.c.h.bf16 %v899_v28  ;;  %v903_v28 = vld [vmem:[%s1304_s0 + $0x70] sm:$0xff]   ;;  %v904_v39 = vld [vmem:[%s1304_s0 + $0x78] sm:$0xff]  }
  0x1e   :  { %vm293_vm15 = vcmp.ge.f32.partialorder %v229_v41, 0.0  ;;  %v357_v48 = vmul.f32 0.2, %v229_v41  ;;  %v420_v49 = vsel %vm292_vm14, %v228_v35, %v356_v42  ;;  %v233_v50 = vadd.f32 %v985_v4, %v165_v43 }
  0x1f   :  { %vm294_vm0 = vcmp.ge.f32.partialorder %v230_v44, 0.0  ;;  %vm295_vm1 = vcmp.ge.f32.partialorder %v231_v45, 0.0  ;;  %v358_v51 = vmul.f32 0.2, %v230_v44  ;;  %v359_v52 = vmul.f32 0.2, %v231_v45 }
  0x20   :  { %v421_v53 = vsel %vm293_vm15, %v229_v41, %v357_v48  ;;  %vm296_vm2 = vcmp.ge.f32.partialorder %v232_v46, 0.0  ;;  %vm297_vm3 = vcmp.ge.f32.partialorder %v233_v50, 0.0  ;;  %v360_v54 = vmul.f32 0.2, %v232_v46 }
  0x21   :  { %v768_v57 = vpack.c.bf16 %v421_v53, %v420_v49  ;;  %v422_v58 = vsel %vm294_vm0, %v230_v44, %v358_v51  ;;  %v423_v59 = vsel %vm295_vm1, %v231_v45, %v359_v52  ;;  %v361_v60 = vmul.f32 0.2, %v233_v50  ;;  %v905_v44 = vld [vmem:[%s1304_s0 + $0x80] sm:$0xff]  }
  0x22   :  { %v773_v61 = vpack.c.bf16 %v423_v59, %v422_v58  ;;  %v424_v62 = vsel %vm296_vm2, %v232_v46, %v360_v54  ;;  %v166_v63 = vmul.f32 %v980_v1, %v644_v40  ;;  %v167_v0 = vmul.f32 %v980_v1, %v645_v47  ;;  %v906_v59 = vld [vmem:[%s1304_s0 + $0x88] sm:$0xff]  }
  0x23   :  { %927 = vst [vmem:[%s1307_s3 + $0x38] sm:$0xff] %v768_v57   ;;  %v425_v3 = vsel %vm297_vm3, %v233_v50, %v361_v60  ;;  %v648_v5 = vunpack.c.l.bf16 %v900_v55  ;;  %v649_v6 = vunpack.c.h.bf16 %v900_v55  ;;  %v652_v7 = vunpack.c.l.bf16 %v901_v56 }
  0x24   :  { %928 = vst [vmem:[%s1307_s3 + $0x40] sm:$0xff] %v773_v61   ;;  %v778_v8 = vpack.c.bf16 %v425_v3, %v424_v62  ;;  %v234_v9 = vadd.f32 %v985_v4, %v166_v63  ;;  %v235_v10 = vadd.f32 %v985_v4, %v167_v0  ;;  %v653_v11 = vunpack.c.h.bf16 %v901_v56 }
  0x25   :  { %v168_v12 = vmul.f32 %v980_v1, %v648_v5  ;;  %v169_v13 = vmul.f32 %v980_v1, %v649_v6  ;;  %v170_v14 = vmul.f32 %v980_v1, %v652_v7  ;;  %v656_v15 = vunpack.c.l.bf16 %v902_v2 }
  0x26   :  { %929 = vst [vmem:[%s1307_s3 + $0x48] sm:$0xff] %v778_v8   ;;  %vm298_vm4 = vcmp.ge.f32.partialorder %v234_v9, 0.0  ;;  %vm299_vm5 = vcmp.ge.f32.partialorder %v235_v10, 0.0  ;;  %v362_v16 = vmul.f32 0.2, %v234_v9  ;;  %v171_v17 = vmul.f32 %v980_v1, %v653_v11 }
  0x27   :  { %v363_v18 = vmul.f32 0.2, %v235_v10  ;;  %v236_v19 = vadd.f32 %v985_v4, %v168_v12  ;;  %v237_v20 = vadd.f32 %v985_v4, %v169_v13  ;;  %v238_v21 = vadd.f32 %v985_v4, %v170_v14  ;;  %v907_v14 = vld [vmem:[%s1304_s0 + $0x90] sm:$0xff]  }
  0x28   :  { %v426_v22 = vsel %vm298_vm4, %v234_v9, %v362_v16  ;;  %v239_v23 = vadd.f32 %v985_v4, %v171_v17  ;;  %v657_v24 = vunpack.c.h.bf16 %v902_v2  ;;  %v172_v25 = vmul.f32 %v980_v1, %v656_v15 }
  0x29   :  { %v427_v26 = vsel %vm299_vm5, %v235_v10, %v363_v18  ;;  %vm300_vm6 = vcmp.ge.f32.partialorder %v236_v19, 0.0  ;;  %vm301_vm7 = vcmp.ge.f32.partialorder %v237_v20, 0.0  ;;  %v364_v27 = vmul.f32 0.2, %v236_v19  ;;  %v908_v18 = vld [vmem:[%s1304_s0 + $0x98] sm:$0xff]  }
  0x2a   :  { %v783_v29 = vpack.c.bf16 %v427_v26, %v426_v22  ;;  %v365_v30 = vmul.f32 0.2, %v237_v20  ;;  %vm302_vm8 = vcmp.ge.f32.partialorder %v238_v21, 0.0  ;;  %vm303_vm9 = vcmp.ge.f32.partialorder %v239_v23, 0.0 }
  0x2b   :  { %v428_v31 = vsel %vm300_vm6, %v236_v19, %v364_v27  ;;  %v366_v32 = vmul.f32 0.2, %v238_v21  ;;  %v367_v33 = vmul.f32 0.2, %v239_v23  ;;  %v173_v34 = vmul.f32 %v980_v1, %v657_v24 }
  0x2c   :  { %930 = vst [vmem:[%s1307_s3 + $0x50] sm:$0xff] %v783_v29   ;;  %v429_v35 = vsel %vm301_vm7, %v237_v20, %v365_v30  ;;  %v240_v36 = vadd.f32 %v985_v4, %v172_v25  ;;  %v660_v37 = vunpack.c.l.bf16 %v903_v28  ;;  %v661_v38 = vunpack.c.h.bf16 %v903_v28 }
  0x2d   :  { %v788_v40 = vpack.c.bf16 %v429_v35, %v428_v31  ;;  %v430_v41 = vsel %vm302_vm8, %v238_v21, %v366_v32  ;;  %v431_v42 = vsel %vm303_vm9, %v239_v23, %v367_v33  ;;  %v241_v43 = vadd.f32 %v985_v4, %v173_v34  ;;  %v909_v34 = vld [vmem:[%s1304_s0 + $0xa0] sm:$0xff]  }
  0x2e   :  { %v793_v45 = vpack.c.bf16 %v431_v42, %v430_v41  ;;  %vm304_vm10 = vcmp.ge.f32.partialorder %v240_v36, 0.0  ;;  %v368_v46 = vmul.f32 0.2, %v240_v36  ;;  %v174_v47 = vmul.f32 %v980_v1, %v660_v37 }
  0x2f   :  { %931 = vst [vmem:[%s1307_s3 + $0x58] sm:$0xff] %v788_v40   ;;  %vm305_vm11 = vcmp.ge.f32.partialorder %v241_v43, 0.0  ;;  %v369_v48 = vmul.f32 0.2, %v241_v43  ;;  %v175_v49 = vmul.f32 %v980_v1, %v661_v38  ;;  %v664_v50 = vunpack.c.l.bf16 %v904_v39 }
  0x30   :  { %932 = vst [vmem:[%s1307_s3 + $0x60] sm:$0xff] %v793_v45   ;;  %v432_v51 = vsel %vm304_vm10, %v240_v36, %v368_v46  ;;  %v242_v52 = vadd.f32 %v985_v4, %v174_v47  ;;  %v665_v53 = vunpack.c.h.bf16 %v904_v39  ;;  %v668_v54 = vunpack.c.l.bf16 %v905_v44 }
  0x31   :  { %v433_v55 = vsel %vm305_vm11, %v241_v43, %v369_v48  ;;  %v243_v56 = vadd.f32 %v985_v4, %v175_v49  ;;  %v176_v57 = vmul.f32 %v980_v1, %v664_v50  ;;  %v669_v58 = vunpack.c.h.bf16 %v905_v44  ;;  %v910_v48 = vld [vmem:[%s1304_s0 + $0xa8] sm:$0xff]  }
  0x32   :  { %v798_v60 = vpack.c.bf16 %v433_v55, %v432_v51  ;;  %vm306_vm12 = vcmp.ge.f32.partialorder %v242_v52, 0.0  ;;  %v370_v61 = vmul.f32 0.2, %v242_v52  ;;  %v177_v62 = vmul.f32 %v980_v1, %v665_v53 }
  0x33   :  { %vm307_vm13 = vcmp.ge.f32.partialorder %v243_v56, 0.0  ;;  %v371_v63 = vmul.f32 0.2, %v243_v56  ;;  %v244_v0 = vadd.f32 %v985_v4, %v176_v57  ;;  %v178_v2 = vmul.f32 %v980_v1, %v668_v54 }
  0x34   :  { %933 = vst [vmem:[%s1307_s3 + $0x68] sm:$0xff] %v798_v60   ;;  %v434_v3 = vsel %vm306_vm12, %v242_v52, %v370_v61  ;;  %v245_v5 = vadd.f32 %v985_v4, %v177_v62  ;;  %v179_v6 = vmul.f32 %v980_v1, %v669_v58  ;;  %v672_v7 = vunpack.c.l.bf16 %v906_v59  ;;  %v911_v58 = vld [vmem:[%s1304_s0 + $0xb0] sm:$0xff]  }
  0x35   :  { %v435_v8 = vsel %vm307_vm13, %v243_v56, %v371_v63  ;;  %vm308_vm14 = vcmp.ge.f32.partialorder %v244_v0, 0.0  ;;  %v372_v9 = vmul.f32 0.2, %v244_v0  ;;  %v246_v10 = vadd.f32 %v985_v4, %v178_v2 }
  0x36   :  { %v803_v11 = vpack.c.bf16 %v435_v8, %v434_v3  ;;  %vm309_vm15 = vcmp.ge.f32.partialorder %v245_v5, 0.0  ;;  %v373_v12 = vmul.f32 0.2, %v245_v5  ;;  %v247_v13 = vadd.f32 %v985_v4, %v179_v6 }
  0x37   :  { %v436_v15 = vsel %vm308_vm14, %v244_v0, %v372_v9  ;;  %vm310_vm0 = vcmp.ge.f32.partialorder %v246_v10, 0.0  ;;  %v374_v16 = vmul.f32 0.2, %v246_v10  ;;  %v673_v17 = vunpack.c.h.bf16 %v906_v59  ;;  %v912_v59 = vld [vmem:[%s1304_s0 + $0xb8] sm:$0xff]  }
  0x38   :  { %934 = vst [vmem:[%s1307_s3 + $0x70] sm:$0xff] %v803_v11   ;;  %v437_v19 = vsel %vm309_vm15, %v245_v5, %v373_v12  ;;  %vm311_vm1 = vcmp.ge.f32.partialorder %v247_v13, 0.0  ;;  %v375_v20 = vmul.f32 0.2, %v247_v13  ;;  %v180_v21 = vmul.f32 %v980_v1, %v672_v7 }
  0x39   :  { %v808_v22 = vpack.c.bf16 %v437_v19, %v436_v15  ;;  %v438_v23 = vsel %vm310_vm0, %v246_v10, %v374_v16  ;;  %v181_v24 = vmul.f32 %v980_v1, %v673_v17  ;;  %v676_v25 = vunpack.c.l.bf16 %v907_v14 }
  0x3a   :  { %v439_v26 = vsel %vm311_vm1, %v247_v13, %v375_v20  ;;  %v248_v27 = vadd.f32 %v985_v4, %v180_v21  ;;  %v677_v28 = vunpack.c.h.bf16 %v907_v14  ;;  %v680_v29 = vunpack.c.l.bf16 %v908_v18 }
  0x3b   :  { %935 = vst [vmem:[%s1307_s3 + $0x78] sm:$0xff] %v808_v22   ;;  %v813_v30 = vpack.c.bf16 %v439_v26, %v438_v23  ;;  %v249_v31 = vadd.f32 %v985_v4, %v181_v24  ;;  %v182_v32 = vmul.f32 %v980_v1, %v676_v25  ;;  %v681_v33 = vunpack.c.h.bf16 %v908_v18  ;;  %v913_v26 = vld [vmem:[%s1304_s0 + $0xc0] sm:$0xff]  }
  0x3c   :  { %vm312_vm2 = vcmp.ge.f32.partialorder %v248_v27, 0.0  ;;  %v376_v35 = vmul.f32 0.2, %v248_v27  ;;  %v183_v36 = vmul.f32 %v980_v1, %v677_v28  ;;  %v184_v37 = vmul.f32 %v980_v1, %v680_v29 }
  0x3d   :  { %936 = vst [vmem:[%s1307_s3 + $0x80] sm:$0xff] %v813_v30   ;;  %vm313_vm3 = vcmp.ge.f32.partialorder %v249_v31, 0.0  ;;  %v377_v38 = vmul.f32 0.2, %v249_v31  ;;  %v250_v39 = vadd.f32 %v985_v4, %v182_v32  ;;  %v185_v40 = vmul.f32 %v980_v1, %v681_v33  ;;  %v914_v30 = vld [vmem:[%s1304_s0 + $0xc8] sm:$0xff]  }
  0x3e   :  { %v440_v41 = vsel %vm312_vm2, %v248_v27, %v376_v35  ;;  %v251_v42 = vadd.f32 %v985_v4, %v183_v36  ;;  %v252_v43 = vadd.f32 %v985_v4, %v184_v37  ;;  %v684_v44 = vunpack.c.l.bf16 %v909_v34 }
  0x3f   :  { %v441_v45 = vsel %vm313_vm3, %v249_v31, %v377_v38  ;;  %vm314_vm4 = vcmp.ge.f32.partialorder %v250_v39, 0.0  ;;  %v378_v46 = vmul.f32 0.2, %v250_v39  ;;  %v253_v47 = vadd.f32 %v985_v4, %v185_v40 }
  0x40   :  { %v818_v49 = vpack.c.bf16 %v441_v45, %v440_v41  ;;  %vm315_vm5 = vcmp.ge.f32.partialorder %v251_v42, 0.0  ;;  %v379_v50 = vmul.f32 0.2, %v251_v42  ;;  %vm316_vm6 = vcmp.ge.f32.partialorder %v252_v43, 0.0 }
  0x41   :  { %v442_v51 = vsel %vm314_vm4, %v250_v39, %v378_v46  ;;  %vm317_vm7 = vcmp.ge.f32.partialorder %v253_v47, 0.0  ;;  %v380_v52 = vmul.f32 0.2, %v252_v43  ;;  %v381_v53 = vmul.f32 0.2, %v253_v47 }
  0x42   :  { %937 = vst [vmem:[%s1307_s3 + $0x88] sm:$0xff] %v818_v49   ;;  %v443_v54 = vsel %vm315_vm5, %v251_v42, %v379_v50  ;;  %v685_v55 = vunpack.c.h.bf16 %v909_v34  ;;  %v186_v56 = vmul.f32 %v980_v1, %v684_v44  ;;  %v688_v57 = vunpack.c.l.bf16 %v910_v48  ;;  %v915_v42 = vld [vmem:[%s1304_s0 + $0xd0] sm:$0xff]  }
  0x43   :  { %v823_v60 = vpack.c.bf16 %v443_v54, %v442_v51  ;;  %v444_v61 = vsel %vm316_vm6, %v252_v43, %v380_v52  ;;  %v445_v62 = vsel %vm317_vm7, %v253_v47, %v381_v53  ;;  %v689_v63 = vunpack.c.h.bf16 %v910_v48 }
  0x44   :  { %v828_v0 = vpack.c.bf16 %v445_v62, %v444_v61  ;;  %v187_v2 = vmul.f32 %v980_v1, %v685_v55  ;;  %v254_v3 = vadd.f32 %v985_v4, %v186_v56  ;;  %v188_v5 = vmul.f32 %v980_v1, %v688_v57 }
  0x45   :  { %938 = vst [vmem:[%s1307_s3 + $0x90] sm:$0xff] %v823_v60   ;;  %v189_v6 = vmul.f32 %v980_v1, %v689_v63  ;;  %v692_v7 = vunpack.c.l.bf16 %v911_v58  ;;  %v693_v8 = vunpack.c.h.bf16 %v911_v58  ;;  %v696_v9 = vunpack.c.l.bf16 %v912_v59 }
  0x46   :  { %939 = vst [vmem:[%s1307_s3 + $0x98] sm:$0xff] %v828_v0   ;;  %v255_v10 = vadd.f32 %v985_v4, %v187_v2  ;;  %vm318_vm8 = vcmp.ge.f32.partialorder %v254_v3, 0.0  ;;  %v382_v11 = vmul.f32 0.2, %v254_v3  ;;  %v256_v12 = vadd.f32 %v985_v4, %v188_v5  ;;  %v916_v2 = vld [vmem:[%s1304_s0 + $0xd8] sm:$0xff]  }
  0x47   :  { %v257_v13 = vadd.f32 %v985_v4, %v189_v6  ;;  %v190_v14 = vmul.f32 %v980_v1, %v692_v7  ;;  %v191_v15 = vmul.f32 %v980_v1, %v693_v8  ;;  %v697_v16 = vunpack.c.h.bf16 %v912_v59  ;;  %v917_v8 = vld [vmem:[%s1304_s0 + $0xe0] sm:$0xff]  }
  0x48   :  { %vm319_vm9 = vcmp.ge.f32.partialorder %v255_v10, 0.0  ;;  %v383_v17 = vmul.f32 0.2, %v255_v10  ;;  %v446_v18 = vsel %vm318_vm8, %v254_v3, %v382_v11  ;;  %vm320_vm10 = vcmp.ge.f32.partialorder %v256_v12, 0.0 }
  0x49   :  { %vm321_vm11 = vcmp.ge.f32.partialorder %v257_v13, 0.0  ;;  %v384_v19 = vmul.f32 0.2, %v256_v12  ;;  %v385_v20 = vmul.f32 0.2, %v257_v13  ;;  %v258_v21 = vadd.f32 %v985_v4, %v190_v14 }
  0x4a   :  { %v447_v22 = vsel %vm319_vm9, %v255_v10, %v383_v17  ;;  %v259_v23 = vadd.f32 %v985_v4, %v191_v15  ;;  %v192_v24 = vmul.f32 %v980_v1, %v696_v9  ;;  %v193_v25 = vmul.f32 %v980_v1, %v697_v16 }
  0x4b   :  { %v833_v27 = vpack.c.bf16 %v447_v22, %v446_v18  ;;  %v448_v28 = vsel %vm320_vm10, %v256_v12, %v384_v19  ;;  %v449_v29 = vsel %vm321_vm11, %v257_v13, %v385_v20  ;;  %vm322_vm12 = vcmp.ge.f32.partialorder %v258_v21, 0.0  ;;  %v918_v12 = vld [vmem:[%s1304_s0 + $0xe8] sm:$0xff]   ;;  %v919_v20 = vld [vmem:[%s1304_s0 + $0xf0] sm:$0xff]  }
  0x4c   :  { %v838_v31 = vpack.c.bf16 %v449_v29, %v448_v28  ;;  %vm323_vm13 = vcmp.ge.f32.partialorder %v259_v23, 0.0  ;;  %v386_v32 = vmul.f32 0.2, %v258_v21  ;;  %v387_v33 = vmul.f32 0.2, %v259_v23 }
  0x4d   :  { %940 = vst [vmem:[%s1307_s3 + $0xa0] sm:$0xff] %v833_v27   ;;  %v260_v34 = vadd.f32 %v985_v4, %v192_v24  ;;  %v261_v35 = vadd.f32 %v985_v4, %v193_v25  ;;  %v700_v36 = vunpack.c.l.bf16 %v913_v26  ;;  %v701_v37 = vunpack.c.h.bf16 %v913_v26 }
  0x4e   :  { %941 = vst [vmem:[%s1307_s3 + $0xa8] sm:$0xff] %v838_v31   ;;  %v450_v38 = vsel %vm322_vm12, %v258_v21, %v386_v32  ;;  %v451_v39 = vsel %vm323_vm13, %v259_v23, %v387_v33  ;;  %v704_v40 = vunpack.c.l.bf16 %v914_v30  ;;  %v705_v41 = vunpack.c.h.bf16 %v914_v30 }
  0x4f   :  { %v843_v43 = vpack.c.bf16 %v451_v39, %v450_v38  ;;  %vm324_vm14 = vcmp.ge.f32.partialorder %v260_v34, 0.0  ;;  %vm325_vm15 = vcmp.ge.f32.partialorder %v261_v35, 0.0  ;;  %v388_v44 = vmul.f32 0.2, %v260_v34 }
  0x50   :  { %v389_v45 = vmul.f32 0.2, %v261_v35  ;;  %v194_v46 = vmul.f32 %v980_v1, %v700_v36  ;;  %v195_v47 = vmul.f32 %v980_v1, %v701_v37  ;;  %v196_v48 = vmul.f32 %v980_v1, %v704_v40 }
  0x51   :  { %942 = vst [vmem:[%s1307_s3 + $0xb0] sm:$0xff] %v843_v43   ;;  %v452_v49 = vsel %vm324_vm14, %v260_v34, %v388_v44  ;;  %v197_v50 = vmul.f32 %v980_v1, %v705_v41  ;;  %v708_v51 = vunpack.c.l.bf16 %v915_v42  ;;  %v709_v52 = vunpack.c.h.bf16 %v915_v42 }
  0x52   :  { %v453_v53 = vsel %vm325_vm15, %v261_v35, %v389_v45  ;;  %v262_v54 = vadd.f32 %v985_v4, %v194_v46  ;;  %v263_v55 = vadd.f32 %v985_v4, %v195_v47  ;;  %v264_v56 = vadd.f32 %v985_v4, %v196_v48  ;;  %v920_v48 = vld [vmem:[%s1304_s0 + $0xf8] sm:$0xff]  }
  0x53   :  { %v848_v57 = vpack.c.bf16 %v453_v53, %v452_v49  ;;  %v265_v58 = vadd.f32 %v985_v4, %v197_v50  ;;  %v198_v59 = vmul.f32 %v980_v1, %v708_v51  ;;  %v199_v60 = vmul.f32 %v980_v1, %v709_v52 }
  0x54   :  { %vm326_vm0 = vcmp.ge.f32.partialorder %v262_v54, 0.0  ;;  %vm327_vm1 = vcmp.ge.f32.partialorder %v263_v55, 0.0  ;;  %v390_v61 = vmul.f32 0.2, %v262_v54  ;;  %v391_v62 = vmul.f32 0.2, %v263_v55 }
  0x55   :  { %943 = vst [vmem:[%s1307_s3 + $0xb8] sm:$0xff] %v848_v57   ;;  %vm328_vm2 = vcmp.ge.f32.partialorder %v264_v56, 0.0  ;;  %vm329_vm3 = vcmp.ge.f32.partialorder %v265_v58, 0.0  ;;  %v392_v63 = vmul.f32 0.2, %v264_v56  ;;  %v266_v0 = vadd.f32 %v985_v4, %v198_v59 }
  0x56   :  { %v454_v3 = vsel %vm326_vm0, %v262_v54, %v390_v61  ;;  %v455_v5 = vsel %vm327_vm1, %v263_v55, %v391_v62  ;;  %v393_v6 = vmul.f32 0.2, %v265_v58  ;;  %v267_v7 = vadd.f32 %v985_v4, %v199_v60 }
  0x57   :  { %v853_v9 = vpack.c.bf16 %v455_v5, %v454_v3  ;;  %v456_v10 = vsel %vm328_vm2, %v264_v56, %v392_v63  ;;  %vm330_vm4 = vcmp.ge.f32.partialorder %v266_v0, 0.0  ;;  %v394_v11 = vmul.f32 0.2, %v266_v0 }
  0x58   :  { %v457_v13 = vsel %vm329_vm3, %v265_v58, %v393_v6  ;;  %vm331_vm5 = vcmp.ge.f32.partialorder %v267_v7, 0.0  ;;  %v395_v14 = vmul.f32 0.2, %v267_v7  ;;  %v712_v15 = vunpack.c.l.bf16 %v916_v2 }
  0x59   :  { %944 = vst [vmem:[%s1307_s3 + $0xc0] sm:$0xff] %v853_v9   ;;  %v858_v16 = vpack.c.bf16 %v457_v13, %v456_v10  ;;  %v458_v17 = vsel %vm330_vm4, %v266_v0, %v394_v11  ;;  %v713_v18 = vunpack.c.h.bf16 %v916_v2  ;;  %v716_v19 = vunpack.c.l.bf16 %v917_v8 }
  0x5a   :  { %v459_v21 = vsel %vm331_vm5, %v267_v7, %v395_v14  ;;  %v200_v22 = vmul.f32 %v980_v1, %v712_v15  ;;  %v717_v23 = vunpack.c.h.bf16 %v917_v8  ;;  %v720_v24 = vunpack.c.l.bf16 %v918_v12 }
  0x5b   :  { %945 = vst [vmem:[%s1307_s3 + $0xc8] sm:$0xff] %v858_v16   ;;  %v863_v25 = vpack.c.bf16 %v459_v21, %v458_v17  ;;  %v201_v26 = vmul.f32 %v980_v1, %v713_v18  ;;  %v202_v27 = vmul.f32 %v980_v1, %v716_v19  ;;  %v721_v28 = vunpack.c.h.bf16 %v918_v12 }
  0x5c   :  { %v268_v29 = vadd.f32 %v985_v4, %v200_v22  ;;  %v203_v30 = vmul.f32 %v980_v1, %v717_v23  ;;  %v204_v31 = vmul.f32 %v980_v1, %v720_v24  ;;  %v724_v32 = vunpack.c.l.bf16 %v919_v20 }
  0x5d   :  { %946 = vst [vmem:[%s1307_s3 + $0xd0] sm:$0xff] %v863_v25   ;;  %v269_v33 = vadd.f32 %v985_v4, %v201_v26  ;;  %v270_v34 = vadd.f32 %v985_v4, %v202_v27  ;;  %v205_v35 = vmul.f32 %v980_v1, %v721_v28  ;;  %v725_v36 = vunpack.c.h.bf16 %v919_v20 }
  0x5e   :  { %vm332_vm6 = vcmp.ge.f32.partialorder %v268_v29, 0.0  ;;  %v396_v37 = vmul.f32 0.2, %v268_v29  ;;  %v271_v38 = vadd.f32 %v985_v4, %v203_v30  ;;  %v272_v39 = vadd.f32 %v985_v4, %v204_v31 }
  0x5f   :  { %vm333_vm7 = vcmp.ge.f32.partialorder %v269_v33, 0.0  ;;  %v397_v40 = vmul.f32 0.2, %v269_v33  ;;  %vm334_vm8 = vcmp.ge.f32.partialorder %v270_v34, 0.0  ;;  %v398_v41 = vmul.f32 0.2, %v270_v34 }
  0x60   :  { %v460_v42 = vsel %vm332_vm6, %v268_v29, %v396_v37  ;;  %vm335_vm9 = vcmp.ge.f32.partialorder %v271_v38, 0.0  ;;  %v399_v43 = vmul.f32 0.2, %v271_v38  ;;  %v273_v44 = vadd.f32 %v985_v4, %v205_v35 }
  0x61   :  { %v461_v45 = vsel %vm333_vm7, %v269_v33, %v397_v40  ;;  %v462_v46 = vsel %vm334_vm8, %v270_v34, %v398_v41  ;;  %vm336_vm10 = vcmp.ge.f32.partialorder %v272_v39, 0.0  ;;  %v400_v47 = vmul.f32 0.2, %v272_v39 }
  0x62   :  { %v868_v49 = vpack.c.bf16 %v461_v45, %v460_v42  ;;  %v463_v50 = vsel %vm335_vm9, %v271_v38, %v399_v43  ;;  %vm337_vm11 = vcmp.ge.f32.partialorder %v273_v44, 0.0  ;;  %v401_v51 = vmul.f32 0.2, %v273_v44 }
  0x63   :  { %v873_v52 = vpack.c.bf16 %v463_v50, %v462_v46  ;;  %v464_v53 = vsel %vm336_vm10, %v272_v39, %v400_v47  ;;  %v206_v54 = vmul.f32 %v980_v1, %v724_v32  ;;  %v207_v55 = vmul.f32 %v980_v1, %v725_v36 }
  0x64   :  { %947 = vst [vmem:[%s1307_s3 + $0xd8] sm:$0xff] %v868_v49   ;;  %v465_v56 = vsel %vm337_vm11, %v273_v44, %v401_v51  ;;  %v728_v57 = vunpack.c.l.bf16 %v920_v48  ;;  %v729_v58 = vunpack.c.h.bf16 %v920_v48 }
  0x65   :  { %948 = vst [vmem:[%s1307_s3 + $0xe0] sm:$0xff] %v873_v52   ;;  %v878_v59 = vpack.c.bf16 %v465_v56, %v464_v53  ;;  %v274_v60 = vadd.f32 %v985_v4, %v206_v54  ;;  %v275_v61 = vadd.f32 %v985_v4, %v207_v55 }
  0x66   :  { %v208_v62 = vmul.f32 %v980_v1, %v728_v57  ;;  %v209_v63 = vmul.f32 %v980_v1, %v729_v58 }
  0x67   :  { %949 = vst [vmem:[%s1307_s3 + $0xe8] sm:$0xff] %v878_v59   ;;  %vm338_vm12 = vcmp.ge.f32.partialorder %v274_v60, 0.0  ;;  %vm339_vm13 = vcmp.ge.f32.partialorder %v275_v61, 0.0  ;;  %v402_v0 = vmul.f32 0.2, %v274_v60 }
  0x68   :  { %v403_v2 = vmul.f32 0.2, %v275_v61  ;;  %v276_v3 = vadd.f32 %v985_v4, %v208_v62  ;;  %v277_v5 = vadd.f32 %v985_v4, %v209_v63 }
  0x69   :  { %v466_v6 = vsel %vm338_vm12, %v274_v60, %v402_v0 }
  0x6a   :  { %v467_v7 = vsel %vm339_vm13, %v275_v61, %v403_v2  ;;  %vm340_vm14 = vcmp.ge.f32.partialorder %v276_v3, 0.0  ;;  %vm341_vm15 = vcmp.ge.f32.partialorder %v277_v5, 0.0  ;;  %v404_v8 = vmul.f32 0.2, %v276_v3 }
  0x6b   :  { %v883_v9 = vpack.c.bf16 %v467_v7, %v466_v6  ;;  %v405_v10 = vmul.f32 0.2, %v277_v5 }
  0x6c   :  { %v468_v1 = vsel %vm340_vm14, %v276_v3, %v404_v8 }
  0x6d   :  { %950 = vst [vmem:[%s1307_s3 + $0xf0] sm:$0xff] %v883_v9   ;;  %v469_v11 = vsel %vm341_vm15, %v277_v5, %v405_v10 }
  0x6e   :  { %v888_v12 = vpack.c.bf16 %v469_v11, %v468_v1 }
  0x70   :  { %951 = vst [vmem:[%s1307_s3 + $0xf8] sm:$0xff] %v888_v12  }

// kernel: discriminator_forward.9
= control target key start
LH: loop header
LB: loop body
LE: loop exit
PB: predicated region body
PF: predicated region fallthrough
CT: control target
= control target key end

     0   :  { %s2708_s15 = smov 0   ;;  %s2710_s16 = smov 0   ;;  %s3202_s0 = inlined_call_operand.vmem [shape: bf16[512,1024], index: 0, kind: input, shape index: {}]   ;;  %s3203_s1 = inlined_call_operand.vmem [shape: bf16[1024,128], index: 1, kind: input, shape index: {}]   ;;  %s3204_s2 = inlined_call_operand.vmem [shape: bf16[512,128], index: 2, kind: output, shape index: {0}]   ;;  %s3205_s3 = inlined_call_operand.vmem [shape: f32[16,128], index: 3, kind: output, shape index: {1}]   ;;  %s3206_s4 = inlined_call_operand.vmem [shape: f32[16,128], index: 4, kind: output, shape index: {2}]  }
   0x1   :  { %s2712_s17 = smov 0   ;;  %s2714_s18 = smov 0  }
   0x2   :  { %s2716_s19 = smov 0   ;;  %s2718_s20 = smov 0  }
   0x3   :  { %s2720_s21 = smov 0  }
   0x4 LB: > { %s27_s22 = sadd.s32 1, %s2672_s19  ;;  %s34_s23 = sadd.s32 1, %s2676_s20  ;;  %s2680_s21 = sphi %s2720_s21, %s15_s21   ;;  %s2676_s20 = sphi %s2718_s20, %s3212_s20   ;;  %s2672_s19 = sphi %s2716_s19, %s3211_s19   ;;  %s2668_s18 = sphi %s2714_s18, %s3210_s18   ;;  %s2664_s17 = sphi %s2712_s17, %s3209_s17   ;;  %s2660_s16 = sphi %s2710_s16, %s3208_s16   ;;  %s2656_s15 = sphi %s2708_s15, %s3207_s15  }
   0x5   : > { %p28_p0 = scmp.ge.s32.totalorder %s27_s22, 2  ;;  %p50_p1 = scmp.ne.s32.totalorder %s2660_s16, %s2656_s15 }
   0x6   : > { %p51_p2 = scmp.eq.s32.totalorder %s2680_s21, 0  ;;  %s43_s27 = sadd.s32 1, %s2660_s16 }
   0x7   : > { %s3214_s22 = smov (%p28_p0, %s27_s22), 0  ;;  %s3216_s23 = smov (!%p28_p0, %s34_s23), %s2676_s20 }
   0x8   : > { %p52_p3 = por %p51_p2, %p50_p1  ;;  %p36_p4 = scmp.ge.s32.totalorder %s3216_s23, 2 }
   0x9   : > { %s39_s24 = ssub.s32 %s2672_s19, %s3214_s22  ;;  %p1975_p6 = scmp.ge.s32.totalorder %s2680_s21, 4 }
   0xa   : > { %s3218_s23 = smov (%p36_p4, %s3216_s23), 0 }
   0xb   : > { %s38_s25 = ssub.s32 %s2676_s20, %s3218_s23  ;;  %188 = sbr.rel (%p1975_p6) target bundleno = 87 (0x57), region = 16 }
   0xc   : > { %s40_s26 = sor.u32 %s39_s24, %s38_s25 }
   0xd   : > { %p41_p5 = scmp.eq.s32.totalorder %s40_s26, 0 }
   0xf   : > { %s2759_s28 = scalar_select %p41_p5, %s2660_s16, %s43_s27  }
  0x10   : > { %191 = sbr.rel (!%p52_p3) target bundleno = 87 (0x57), region = 20  ;;  %s193_s29 = sand.u32 (%p52_p3), 1, %s2660_s16  }
  0x11   : > { %s1978_s30 = sshll.u32 (%p52_p3), %s2672_s19, 2  ;;  %s1976_s5 = sshll.u32 (%p52_p3), %s193_s29, 9 }
  0x12   : > { %s2377_s6 = sshll.u32 (%p52_p3), %s2676_s20, 8  ;;  %s2773_s12 = scalar_lea.vmem (%p52_p3), [#allocation3], %s1976_s5 }
  0x13   : > { %s199_s7 = sadd.s32 (%p52_p3), %s2377_s6, %s1978_s30 }
  0x14   : > { %s1980_s8 = sshll.u32 (%p52_p3), %s199_s7, 2 }
  0x15   : > { %s2768_s11 = scalar_lea.vmem %s3202_s0, %s1980_s8 }
  0x16   : > { %v214_v0 = vld [vmem:[%s2768_s11] sm:$0xff]  ;;  %v216_v1 = vld [vmem:[%s2768_s11 + $0x8] sm:$0xff] }
  0x17   : > { %v218_v2 = vld [vmem:[%s2768_s11 + $0x20] sm:$0xff]  ;;  %215 = vst [vmem:[%s2773_s12] sm:$0xff] %v214_v0  ;;  %v220_v3 = vld [vmem:[%s2768_s11 + $0x28] sm:$0xff] }
  0x18   : > { %217 = vst [vmem:[%s2773_s12 + $0x8] sm:$0xff] %v216_v1  ;;  %v222_v4 = vld [vmem:[%s2768_s11 + $0x40] sm:$0xff]  ;;  %v224_v5 = vld [vmem:[%s2768_s11 + $0x48] sm:$0xff] }
  0x19   : > { %219 = vst [vmem:[%s2773_s12 + $0x10] sm:$0xff] %v218_v2  ;;  %v226_v6 = vld [vmem:[%s2768_s11 + $0x60] sm:$0xff]  ;;  %v228_v7 = vld [vmem:[%s2768_s11 + $0x68] sm:$0xff] }
  0x1a   : > { %221 = vst [vmem:[%s2773_s12 + $0x18] sm:$0xff] %v220_v3  ;;  %v230_v8 = vld [vmem:[%s2768_s11 + $0x80] sm:$0xff]  ;;  %v232_v9 = vld [vmem:[%s2768_s11 + $0x88] sm:$0xff] }
  0x1b   : > { %223 = vst [vmem:[%s2773_s12 + $0x20] sm:$0xff] %v222_v4  ;;  %v234_v10 = vld [vmem:[%s2768_s11 + $0xa0] sm:$0xff]  ;;  %v236_v11 = vld [vmem:[%s2768_s11 + $0xa8] sm:$0xff] }
  0x1c   : > { %225 = vst [vmem:[%s2773_s12 + $0x28] sm:$0xff] %v224_v5  ;;  %v238_v12 = vld [vmem:[%s2768_s11 + $0xc0] sm:$0xff]  ;;  %v240_v13 = vld [vmem:[%s2768_s11 + $0xc8] sm:$0xff] }
  0x1d   : > { %227 = vst [vmem:[%s2773_s12 + $0x30] sm:$0xff] %v226_v6  ;;  %v242_v14 = vld [vmem:[%s2768_s11 + $0xe0] sm:$0xff]  ;;  %v244_v15 = vld [vmem:[%s2768_s11 + $0xe8] sm:$0xff] }
  0x1e   : > { %229 = vst [vmem:[%s2773_s12 + $0x38] sm:$0xff] %v228_v7  ;;  %v246_v16 = vld [vmem:[%s2768_s11 + $0x100] sm:$0xff]  ;;  %v248_v17 = vld [vmem:[%s2768_s11 + $0x108] sm:$0xff] }
  0x1f   : > { %231 = vst [vmem:[%s2773_s12 + $0x40] sm:$0xff] %v230_v8  ;;  %v250_v18 = vld [vmem:[%s2768_s11 + $0x120] sm:$0xff]  ;;  %v252_v19 = vld [vmem:[%s2768_s11 + $0x128] sm:$0xff] }
  0x20   : > { %233 = vst [vmem:[%s2773_s12 + $0x48] sm:$0xff] %v232_v9  ;;  %v254_v20 = vld [vmem:[%s2768_s11 + $0x140] sm:$0xff]  ;;  %v256_v21 = vld [vmem:[%s2768_s11 + $0x148] sm:$0xff] }
  0x21   : > { %235 = vst [vmem:[%s2773_s12 + $0x50] sm:$0xff] %v234_v10  ;;  %v258_v22 = vld [vmem:[%s2768_s11 + $0x160] sm:$0xff]  ;;  %v260_v23 = vld [vmem:[%s2768_s11 + $0x168] sm:$0xff] }
  0x22   : > { %237 = vst [vmem:[%s2773_s12 + $0x58] sm:$0xff] %v236_v11  ;;  %v262_v24 = vld [vmem:[%s2768_s11 + $0x180] sm:$0xff]  ;;  %v264_v25 = vld [vmem:[%s2768_s11 + $0x188] sm:$0xff] }
  0x23   : > { %239 = vst [vmem:[%s2773_s12 + $0x60] sm:$0xff] %v238_v12  ;;  %v266_v26 = vld [vmem:[%s2768_s11 + $0x1a0] sm:$0xff]  ;;  %v268_v27 = vld [vmem:[%s2768_s11 + $0x1a8] sm:$0xff] }
  0x24   : > { %241 = vst [vmem:[%s2773_s12 + $0x68] sm:$0xff] %v240_v13  ;;  %v270_v28 = vld [vmem:[%s2768_s11 + $0x1c0] sm:$0xff]  ;;  %v272_v29 = vld [vmem:[%s2768_s11 + $0x1c8] sm:$0xff] }
  0x25   : > { %243 = vst [vmem:[%s2773_s12 + $0x70] sm:$0xff] %v242_v14  ;;  %v274_v30 = vld [vmem:[%s2768_s11 + $0x1e0] sm:$0xff]  ;;  %v276_v31 = vld [vmem:[%s2768_s11 + $0x1e8] sm:$0xff] }
  0x26   : > { %245 = vst [vmem:[%s2773_s12 + $0x78] sm:$0xff] %v244_v15  ;;  %v278_v32 = vld [vmem:[%s2768_s11 + $0x200] sm:$0xff]  ;;  %v280_v33 = vld [vmem:[%s2768_s11 + $0x208] sm:$0xff] }
  0x27   : > { %247 = vst [vmem:[%s2773_s12 + $0x80] sm:$0xff] %v246_v16  ;;  %v282_v34 = vld [vmem:[%s2768_s11 + $0x220] sm:$0xff]  ;;  %v284_v35 = vld [vmem:[%s2768_s11 + $0x228] sm:$0xff] }
  0x28   : > { %249 = vst [vmem:[%s2773_s12 + $0x88] sm:$0xff] %v248_v17  ;;  %v286_v36 = vld [vmem:[%s2768_s11 + $0x240] sm:$0xff]  ;;  %v288_v37 = vld [vmem:[%s2768_s11 + $0x248] sm:$0xff] }
  0x29   : > { %251 = vst [vmem:[%s2773_s12 + $0x90] sm:$0xff] %v250_v18  ;;  %v290_v38 = vld [vmem:[%s2768_s11 + $0x260] sm:$0xff]  ;;  %v292_v39 = vld [vmem:[%s2768_s11 + $0x268] sm:$0xff] }
  0x2a   : > { %253 = vst [vmem:[%s2773_s12 + $0x98] sm:$0xff] %v252_v19  ;;  %v294_v40 = vld [vmem:[%s2768_s11 + $0x280] sm:$0xff]  ;;  %v296_v41 = vld [vmem:[%s2768_s11 + $0x288] sm:$0xff] }
  0x2b   : > { %255 = vst [vmem:[%s2773_s12 + $0xa0] sm:$0xff] %v254_v20  ;;  %v298_v42 = vld [vmem:[%s2768_s11 + $0x2a0] sm:$0xff]  ;;  %v300_v43 = vld [vmem:[%s2768_s11 + $0x2a8] sm:$0xff] }
  0x2c   : > { %257 = vst [vmem:[%s2773_s12 + $0xa8] sm:$0xff] %v256_v21  ;;  %v302_v44 = vld [vmem:[%s2768_s11 + $0x2c0] sm:$0xff]  ;;  %v304_v45 = vld [vmem:[%s2768_s11 + $0x2c8] sm:$0xff] }
  0x2d   : > { %259 = vst [vmem:[%s2773_s12 + $0xb0] sm:$0xff] %v258_v22  ;;  %v306_v46 = vld [vmem:[%s2768_s11 + $0x2e0] sm:$0xff]  ;;  %v308_v47 = vld [vmem:[%s2768_s11 + $0x2e8] sm:$0xff] }
  0x2e   : > { %261 = vst [vmem:[%s2773_s12 + $0xb8] sm:$0xff] %v260_v23  ;;  %v310_v48 = vld [vmem:[%s2768_s11 + $0x300] sm:$0xff]  ;;  %v312_v49 = vld [vmem:[%s2768_s11 + $0x308] sm:$0xff] }
  0x2f   : > { %263 = vst [vmem:[%s2773_s12 + $0xc0] sm:$0xff] %v262_v24  ;;  %v314_v50 = vld [vmem:[%s2768_s11 + $0x320] sm:$0xff]  ;;  %v316_v51 = vld [vmem:[%s2768_s11 + $0x328] sm:$0xff] }
  0x30   : > { %265 = vst [vmem:[%s2773_s12 + $0xc8] sm:$0xff] %v264_v25  ;;  %v318_v52 = vld [vmem:[%s2768_s11 + $0x340] sm:$0xff]  ;;  %v320_v53 = vld [vmem:[%s2768_s11 + $0x348] sm:$0xff] }
  0x31   : > { %267 = vst [vmem:[%s2773_s12 + $0xd0] sm:$0xff] %v266_v26  ;;  %v322_v54 = vld [vmem:[%s2768_s11 + $0x360] sm:$0xff]  ;;  %v324_v55 = vld [vmem:[%s2768_s11 + $0x368] sm:$0xff] }
  0x32   : > { %269 = vst [vmem:[%s2773_s12 + $0xd8] sm:$0xff] %v268_v27  ;;  %v326_v56 = vld [vmem:[%s2768_s11 + $0x380] sm:$0xff]  ;;  %v328_v57 = vld [vmem:[%s2768_s11 + $0x388] sm:$0xff] }
  0x33   : > { %271 = vst [vmem:[%s2773_s12 + $0xe0] sm:$0xff] %v270_v28  ;;  %v330_v58 = vld [vmem:[%s2768_s11 + $0x3a0] sm:$0xff]  ;;  %v332_v59 = vld [vmem:[%s2768_s11 + $0x3a8] sm:$0xff] }
  0x34   : > { %273 = vst [vmem:[%s2773_s12 + $0xe8] sm:$0xff] %v272_v29  ;;  %v334_v60 = vld [vmem:[%s2768_s11 + $0x3c0] sm:$0xff]  ;;  %v336_v61 = vld [vmem:[%s2768_s11 + $0x3c8] sm:$0xff] }
  0x35   : > { %275 = vst [vmem:[%s2773_s12 + $0xf0] sm:$0xff] %v274_v30  ;;  %v338_v62 = vld [vmem:[%s2768_s11 + $0x3e0] sm:$0xff]  ;;  %v340_v63 = vld [vmem:[%s2768_s11 + $0x3e8] sm:$0xff] }
  0x36   : > { %277 = vst [vmem:[%s2773_s12 + $0xf8] sm:$0xff] %v276_v31 }
  0x37   : > { %279 = vst [vmem:[%s2773_s12 + $0x100] sm:$0xff] %v278_v32 }
  0x38   : > { %281 = vst [vmem:[%s2773_s12 + $0x108] sm:$0xff] %v280_v33 }
  0x39   : > { %283 = vst [vmem:[%s2773_s12 + $0x110] sm:$0xff] %v282_v34 }
  0x3a   : > { %285 = vst [vmem:[%s2773_s12 + $0x118] sm:$0xff] %v284_v35 }
  0x3b   : > { %287 = vst [vmem:[%s2773_s12 + $0x120] sm:$0xff] %v286_v36 }
  0x3c   : > { %289 = vst [vmem:[%s2773_s12 + $0x128] sm:$0xff] %v288_v37 }
  0x3d   : > { %291 = vst [vmem:[%s2773_s12 + $0x130] sm:$0xff] %v290_v38 }
  0x3e   : > { %293 = vst [vmem:[%s2773_s12 + $0x138] sm:$0xff] %v292_v39 }
  0x3f   : > { %295 = vst [vmem:[%s2773_s12 + $0x140] sm:$0xff] %v294_v40 }
  0x40   : > { %297 = vst [vmem:[%s2773_s12 + $0x148] sm:$0xff] %v296_v41 }
  0x41   : > { %299 = vst [vmem:[%s2773_s12 + $0x150] sm:$0xff] %v298_v42 }
  0x42   : > { %301 = vst [vmem:[%s2773_s12 + $0x158] sm:$0xff] %v300_v43 }
  0x43   : > { %303 = vst [vmem:[%s2773_s12 + $0x160] sm:$0xff] %v302_v44 }
  0x44   : > { %305 = vst [vmem:[%s2773_s12 + $0x168] sm:$0xff] %v304_v45 }
  0x45   : > { %307 = vst [vmem:[%s2773_s12 + $0x170] sm:$0xff] %v306_v46 }
  0x46   : > { %309 = vst [vmem:[%s2773_s12 + $0x178] sm:$0xff] %v308_v47 }
  0x47   : > { %311 = vst [vmem:[%s2773_s12 + $0x180] sm:$0xff] %v310_v48 }
  0x48   : > { %313 = vst [vmem:[%s2773_s12 + $0x188] sm:$0xff] %v312_v49 }
  0x49   : > { %315 = vst [vmem:[%s2773_s12 + $0x190] sm:$0xff] %v314_v50 }
  0x4a   : > { %317 = vst [vmem:[%s2773_s12 + $0x198] sm:$0xff] %v316_v51 }
  0x4b   : > { %319 = vst [vmem:[%s2773_s12 + $0x1a0] sm:$0xff] %v318_v52 }
  0x4c   : > { %321 = vst [vmem:[%s2773_s12 + $0x1a8] sm:$0xff] %v320_v53 }
  0x4d   : > { %323 = vst [vmem:[%s2773_s12 + $0x1b0] sm:$0xff] %v322_v54 }
  0x4e   : > { %325 = vst [vmem:[%s2773_s12 + $0x1b8] sm:$0xff] %v324_v55 }
  0x4f   : > { %327 = vst [vmem:[%s2773_s12 + $0x1c0] sm:$0xff] %v326_v56 }
  0x50   : > { %329 = vst [vmem:[%s2773_s12 + $0x1c8] sm:$0xff] %v328_v57 }
  0x51   : > { %331 = vst [vmem:[%s2773_s12 + $0x1d0] sm:$0xff] %v330_v58 }
  0x52   : > { %333 = vst [vmem:[%s2773_s12 + $0x1d8] sm:$0xff] %v332_v59 }
  0x53   : > { %335 = vst [vmem:[%s2773_s12 + $0x1e0] sm:$0xff] %v334_v60 }
  0x54   : > { %337 = vst [vmem:[%s2773_s12 + $0x1e8] sm:$0xff] %v336_v61 }
  0x55   : > { %339 = vst [vmem:[%s2773_s12 + $0x1f0] sm:$0xff] %v338_v62 }
  0x56   : > { %341 = vst [vmem:[%s2773_s12 + $0x1f8] sm:$0xff] %v340_v63 }
  0x57 PF: > { %p1981_p7 = scmp.ge.s32.totalorder %s2680_s21, 1  ;;  %p358_p8 = scmp.lt.s32.totalorder %s2680_s21, 5 }
  0x59   : > { %p359_p9 = pnand %p1981_p7, %p358_p8 }
  0x5a   : > { %s365_s13 = sand.u32 (!%p359_p9), 1, %s2656_s15   ;;  %s1983_s14 = sshll.u32 (!%p359_p9), %s2664_s17, 6 }
  0x5b   : > { %362 = sbr.rel (%p359_p9) target bundleno = 638 (0x27e), region = 47  ;;  %s1982_s24 = sshll.u32 (!%p359_p9), %s365_s13, 9 }
  0x5c   : > { %p418_p10 = scmp.lt.s32.totalorder (!%p359_p9), %s1983_s14, 127  ;;  %s1985_s25 = sshll.u32 (!%p359_p9), %s2668_s18, 5 }
  0x5d   : > { %p427_p11 = scmp.lt.s32.totalorder (!%p359_p9), %s1985_s25, 63  ;;  %p435_p12 = scmp.lt.s32.totalorder (!%p359_p9), %s2668_s18, 1 }
  0x5e   : > { %p1989_p13 = scmp.ne.s32.totalorder (!%p359_p9), %s2664_s17, 0 }
  0x60   : > { %s3220_s14 = smov (!%p418_p10, %s1983_s14), 127  ;;  %s3222_s25 = smov (!%p427_p11, %s1985_s25), 63 }
  0x61   : > { %s1984_s26 = sshll.u32 %s3220_s14, 2  ;;  %s3224_s18 = smov (!%p435_p12, %s2668_s18), 1 }
  0x62   : > { %s2909_s30 = scalar_lea.vmem %s3203_s1, %s1984_s26  ;;  %s1986_s5 = sshll.u32 %s3222_s25, 2 }
  0x63   : > { %s2915_s15 = scalar_lea.vmem %s3204_s2, %s1986_s5  ;;  %s1987_s8 = sshll.u32 %s3224_s18, 3 }
  0x64   : > { %s2920_s11 = scalar_lea.vmem %s3205_s3, %s1987_s8  ;;  %s2925_s14 = scalar_lea.vmem %s3206_s4, %s1987_s8 }
  0x65   : > { %s2927_s26 = scalar_lea.vmem [#allocation3], %s1982_s24  ;;  %452 = sbr.rel (%p1989_p13) target bundleno = 139 (0x8b), region = 55 }
  0x6a   : > { %v2682_v0 = vmov 0.0  }
  0x6b   : > { %453 = vst [vmem:[#allocation2 + $0xb0] sm:$0xff] %v2682_v0 }
  0x6c   : > { %454 = vst [vmem:[#allocation2] sm:$0xff] %v2682_v0 }
  0x6d   : > { %455 = vst [vmem:[#allocation2 + $0xd8] sm:$0xff] %v2682_v0 }
  0x6e   : > { %456 = vst [vmem:[#allocation2 + $0x18] sm:$0xff] %v2682_v0 }
  0x6f   : > { %457 = vst [vmem:[#allocation2 + $0x50] sm:$0xff] %v2682_v0 }
  0x70   : > { %458 = vst [vmem:[#allocation2 + $0x68] sm:$0xff] %v2682_v0 }
  0x71   : > { %459 = vst [vmem:[#allocation2 + $0x30] sm:$0xff] %v2682_v0 }
  0x72   : > { %460 = vst [vmem:[#allocation2 + $0x48] sm:$0xff] %v2682_v0 }
  0x73   : > { %461 = vst [vmem:[#allocation2 + $0x80] sm:$0xff] %v2682_v0 }
  0x74   : > { %462 = vst [vmem:[#allocation2 + $0x88] sm:$0xff] %v2682_v0 }
  0x75   : > { %463 = vst [vmem:[#allocation2 + $0xe8] sm:$0xff] %v2682_v0 }
  0x76   : > { %464 = vst [vmem:[#allocation2 + $0xb8] sm:$0xff] %v2682_v0 }
  0x77   : > { %465 = vst [vmem:[#allocation2 + $0x60] sm:$0xff] %v2682_v0 }
  0x78   : > { %466 = vst [vmem:[#allocation2 + $0xf0] sm:$0xff] %v2682_v0 }
  0x79   : > { %467 = vst [vmem:[#allocation2 + $0x8] sm:$0xff] %v2682_v0 }
  0x7a   : > { %468 = vst [vmem:[#allocation2 + $0x78] sm:$0xff] %v2682_v0 }
  0x7b   : > { %469 = vst [vmem:[#allocation2 + $0x38] sm:$0xff] %v2682_v0 }
  0x7c   : > { %470 = vst [vmem:[#allocation2 + $0x58] sm:$0xff] %v2682_v0 }
  0x7d   : > { %471 = vst [vmem:[#allocation2 + $0x40] sm:$0xff] %v2682_v0 }
  0x7e   : > { %472 = vst [vmem:[#allocation2 + $0xc8] sm:$0xff] %v2682_v0 }
  0x7f   : > { %473 = vst [vmem:[#allocation2 + $0xe0] sm:$0xff] %v2682_v0 }
  0x80   : > { %474 = vst [vmem:[#allocation2 + $0x90] sm:$0xff] %v2682_v0 }
  0x81   : > { %475 = vst [vmem:[#allocation2 + $0x70] sm:$0xff] %v2682_v0 }
  0x82   : > { %476 = vst [vmem:[#allocation2 + $0xc0] sm:$0xff] %v2682_v0 }
  0x83   : > { %477 = vst [vmem:[#allocation2 + $0xa8] sm:$0xff] %v2682_v0 }
  0x84   : > { %478 = vst [vmem:[#allocation2 + $0xd0] sm:$0xff] %v2682_v0 }
  0x85   : > { %479 = vst [vmem:[#allocation2 + $0x10] sm:$0xff] %v2682_v0 }
  0x86   : > { %480 = vst [vmem:[#allocation2 + $0x28] sm:$0xff] %v2682_v0 }
  0x87   : > { %481 = vst [vmem:[#allocation2 + $0xa0] sm:$0xff] %v2682_v0 }
  0x88   : > { %482 = vst [vmem:[#allocation2 + $0xf8] sm:$0xff] %v2682_v0 }
  0x89   : > { %483 = vst [vmem:[#allocation2 + $0x20] sm:$0xff] %v2682_v0 }
  0x8a   : > { %484 = vst [vmem:[#allocation2 + $0x98] sm:$0xff] %v2682_v0 }
  0x8b PF: > { %v2449_v1 = vld [vmem:[%s2909_s30 + $0x38] sm:$0xff]  ;;  %v2448_v5 = vld [vmem:[%s2909_s30 + $0x30] sm:$0xff]  ;;  %v2447_v9 = vld [vmem:[%s2909_s30 + $0x28] sm:$0xff]  ;;  %p2374_p0 = scmp.ne.s32.totalorder %s2664_s17, 1 }
  0x8c   : > { %v2457_v2 = vld [vmem:[%s2909_s30 + $0x78] sm:$0xff]  ;;  %1157 = vmatpush.bf16.msra.mxu0 %v2449_v1  ;;  %v2456_v6 = vld [vmem:[%s2909_s30 + $0x70] sm:$0xff]  ;;  %v2455_v10 = vld [vmem:[%s2909_s30 + $0x68] sm:$0xff] }
  0x8d   : > { %v2465_v3 = vld [vmem:[%s2909_s30 + $0xb8] sm:$0xff]  ;;  %1246 = vmatpush.bf16.msra.mxu1 %v2457_v2  ;;  %v2464_v7 = vld [vmem:[%s2909_s30 + $0xb0] sm:$0xff]  ;;  %v2463_v11 = vld [vmem:[%s2909_s30 + $0xa8] sm:$0xff] }
  0x8e   : > { %v2473_v4 = vld [vmem:[%s2909_s30 + $0xf8] sm:$0xff]  ;;  %1335 = vmatpush.bf16.msra.mxu2 %v2465_v3  ;;  %v2472_v8 = vld [vmem:[%s2909_s30 + $0xf0] sm:$0xff]  ;;  %v2471_v12 = vld [vmem:[%s2909_s30 + $0xe8] sm:$0xff] }
  0x8f   : > { %1424 = vmatpush.bf16.msra.mxu3 %v2473_v4  ;;  %v2446_v13 = vld [vmem:[%s2909_s30 + $0x20] sm:$0xff]  ;;  %v2445_v17 = vld [vmem:[%s2909_s30 + $0x18] sm:$0xff]  ;;  %v2444_v21 = vld [vmem:[%s2909_s30 + $0x10] sm:$0xff] }
  0x90   : > { %1158 = vmatpush.bf16.msra.mxu0 %v2448_v5  ;;  %v2454_v14 = vld [vmem:[%s2909_s30 + $0x60] sm:$0xff]  ;;  %v2453_v18 = vld [vmem:[%s2909_s30 + $0x58] sm:$0xff]  ;;  %v2452_v22 = vld [vmem:[%s2909_s30 + $0x50] sm:$0xff] }
  0x91   : > { %1247 = vmatpush.bf16.msra.mxu1 %v2456_v6  ;;  %v2462_v15 = vld [vmem:[%s2909_s30 + $0xa0] sm:$0xff]  ;;  %v2461_v19 = vld [vmem:[%s2909_s30 + $0x98] sm:$0xff]  ;;  %v2460_v23 = vld [vmem:[%s2909_s30 + $0x90] sm:$0xff] }
  0x92   : > { %1336 = vmatpush.bf16.msra.mxu2 %v2464_v7  ;;  %v2470_v16 = vld [vmem:[%s2909_s30 + $0xe0] sm:$0xff]  ;;  %v2469_v20 = vld [vmem:[%s2909_s30 + $0xd8] sm:$0xff]  ;;  %v2468_v24 = vld [vmem:[%s2909_s30 + $0xd0] sm:$0xff] }
  0x93   : > { %1425 = vmatpush.bf16.msra.mxu3 %v2472_v8  ;;  %v2443_v25 = vld [vmem:[%s2909_s30 + $0x8] sm:$0xff]  ;;  %v2442_v29 = vld [vmem:[%s2909_s30] sm:$0xff]  ;;  %v2380_v34 = vld [vmem:[%s2927_s26 + $0xc] sm:$0xf0] }
  0x94   : > { %1159 = vmatpush.bf16.msra.mxu0 %v2447_v9  ;;  %v2451_v26 = vld [vmem:[%s2909_s30 + $0x48] sm:$0xff]  ;;  %v2450_v30 = vld [vmem:[%s2909_s30 + $0x40] sm:$0xff]  ;;  %v1994_v36 = vld [vmem:[%s2927_s26 + $0x10] sm:$0xf0] }
  0x95   : > { %1248 = vmatpush.bf16.msra.mxu1 %v2455_v10  ;;  %v2459_v27 = vld [vmem:[%s2909_s30 + $0x88] sm:$0xff]  ;;  %v2458_v31 = vld [vmem:[%s2909_s30 + $0x80] sm:$0xff]  ;;  %v2381_v38 = vld [vmem:[%s2927_s26 + $0x14] sm:$0xf0] }
  0x96   : > { %1337 = vmatpush.bf16.msra.mxu2 %v2463_v11  ;;  %v2467_v28 = vld [vmem:[%s2909_s30 + $0xc8] sm:$0xff]  ;;  %v2466_v32 = vld [vmem:[%s2909_s30 + $0xc0] sm:$0xff]  ;;  %v2002_v40 = vld [vmem:[%s2927_s26 + $0x18] sm:$0xf0] }
  0x97   : > { %1426 = vmatpush.bf16.msra.mxu3 %v2471_v12  ;;  %v1992_v33 = vld [vmem:[%s2927_s26] sm:$0xf]  ;;  %v2378_v35 = vld [vmem:[%s2927_s26 + $0x4] sm:$0xf]  ;;  %v2000_v37 = vld [vmem:[%s2927_s26 + $0x8] sm:$0xf] }
  0x98   : > { %1160 = vmatpush.bf16.msra.mxu0 %v2446_v13  ;;  %v2379_v39 = vld [vmem:[%s2927_s26 + $0xc] sm:$0xf]  ;;  %v1993_v41 = vor.u32 %v2380_v34, %v1992_v33  ;;  %v1997_v42 = vor.u32 %v2378_v35, %v1994_v36  ;;  %v2001_v43 = vor.u32 %v2381_v38, %v2000_v37  ;;  %v2008_v45 = vld [vmem:[%s2927_s26 + $0x20] sm:$0xf]  ;;  %v2384_v46 = vld [vmem:[%s2927_s26 + $0x2c] sm:$0xf0] }
  0x99   : > { %1249 = vmatpush.bf16.msra.mxu1 %v2454_v14  ;;  %v2005_v44 = vor.u32 %v2379_v39, %v2002_v40  ;;  %v2382_v47 = vld [vmem:[%s2927_s26 + $0x24] sm:$0xf]  ;;  %v2010_v48 = vld [vmem:[%s2927_s26 + $0x30] sm:$0xf0]  ;;  %v2016_v49 = vld [vmem:[%s2927_s26 + $0x28] sm:$0xf]  ;;  %v2009_v53 = vor.u32 %v2384_v46, %v2008_v45 }
  0x9a   : > { %1338 = vmatpush.bf16.msra.mxu2 %v2462_v15  ;;  %v2385_v50 = vld [vmem:[%s2927_s26 + $0x34] sm:$0xf0]  ;;  %v2383_v51 = vld [vmem:[%s2927_s26 + $0x2c] sm:$0xf]  ;;  %v2018_v52 = vld [vmem:[%s2927_s26 + $0x38] sm:$0xf0]  ;;  %v2013_v54 = vor.u32 %v2382_v47, %v2010_v48 }
  0x9b   : > { %1427 = vmatpush.bf16.msra.mxu3 %v2470_v16  ;;  %v2017_v55 = vor.u32 %v2385_v50, %v2016_v49  ;;  %v2021_v56 = vor.u32 %v2383_v51, %v2018_v52  ;;  %v2024_v57 = vld [vmem:[%s2927_s26 + $0x40] sm:$0xf]  ;;  %v2388_v58 = vld [vmem:[%s2927_s26 + $0x4c] sm:$0xf0]  ;;  %v2386_v59 = vld [vmem:[%s2927_s26 + $0x44] sm:$0xf] }
  0x9c   : > { %1161 = vmatpush.bf16.msra.mxu0 %v2445_v17  ;;  %v2026_v60 = vld [vmem:[%s2927_s26 + $0x50] sm:$0xf0]  ;;  %v2032_v61 = vld [vmem:[%s2927_s26 + $0x48] sm:$0xf]  ;;  %v2389_v62 = vld [vmem:[%s2927_s26 + $0x54] sm:$0xf0]  ;;  %v2025_v1 = vor.u32 %v2388_v58, %v2024_v57 }
  0x9d   : > { %1250 = vmatpush.bf16.msra.mxu1 %v2453_v18  ;;  %v2387_v63 = vld [vmem:[%s2927_s26 + $0x4c] sm:$0xf]  ;;  %v2034_v0 = vld [vmem:[%s2927_s26 + $0x58] sm:$0xf0]  ;;  %v2029_v2 = vor.u32 %v2386_v59, %v2026_v60  ;;  %v2033_v3 = vor.u32 %v2389_v62, %v2032_v61  ;;  %v2040_v5 = vld [vmem:[%s2927_s26 + $0x60] sm:$0xf] }
  0x9e   : > { %1339 = vmatpush.bf16.msra.mxu2 %v2461_v19  ;;  %v2037_v4 = vor.u32 %v2387_v63, %v2034_v0  ;;  %v2392_v6 = vld [vmem:[%s2927_s26 + $0x6c] sm:$0xf0]  ;;  %v2390_v7 = vld [vmem:[%s2927_s26 + $0x64] sm:$0xf]  ;;  %v2042_v8 = vld [vmem:[%s2927_s26 + $0x70] sm:$0xf0] }
  0x9f   : > { %1428 = vmatpush.bf16.msra.mxu3 %v2469_v20  ;;  %v2048_v9 = vld [vmem:[%s2927_s26 + $0x68] sm:$0xf]  ;;  %v2393_v10 = vld [vmem:[%s2927_s26 + $0x74] sm:$0xf0]  ;;  %v2391_v11 = vld [vmem:[%s2927_s26 + $0x6c] sm:$0xf]  ;;  %v2041_v13 = vor.u32 %v2392_v6, %v2040_v5  ;;  %v2045_v14 = vor.u32 %v2390_v7, %v2042_v8 }
  0xa0   : > { %1162 = vmatpush.bf16.msra.mxu0 %v2444_v21  ;;  %v2050_v12 = vld [vmem:[%s2927_s26 + $0x78] sm:$0xf0]  ;;  %v2049_v15 = vor.u32 %v2393_v10, %v2048_v9  ;;  %v2056_v17 = vld [vmem:[%s2927_s26 + $0x80] sm:$0xf]  ;;  %v2396_v18 = vld [vmem:[%s2927_s26 + $0x8c] sm:$0xf0] }
  0xa1   : > { %1251 = vmatpush.bf16.msra.mxu1 %v2452_v22  ;;  %v2053_v16 = vor.u32 %v2391_v11, %v2050_v12  ;;  %v2394_v19 = vld [vmem:[%s2927_s26 + $0x84] sm:$0xf]  ;;  %v2058_v20 = vld [vmem:[%s2927_s26 + $0x90] sm:$0xf0]  ;;  %v2064_v21 = vld [vmem:[%s2927_s26 + $0x88] sm:$0xf] }
  0xa2   : > { %1340 = vmatpush.bf16.msra.mxu2 %v2460_v23  ;;  %v2397_v22 = vld [vmem:[%s2927_s26 + $0x94] sm:$0xf0]  ;;  %v2395_v23 = vld [vmem:[%s2927_s26 + $0x8c] sm:$0xf]  ;;  %v2080_v33 = vld [vmem:[%s2927_s26 + $0xa8] sm:$0xf] }
  0xa3   : > { %1429 = vmatpush.bf16.msra.mxu3 %v2468_v24  ;;  %v2066_v24 = vld [vmem:[%s2927_s26 + $0x98] sm:$0xf0]  ;;  %v2401_v34 = vld [vmem:[%s2927_s26 + $0xb4] sm:$0xf0]  ;;  %v2399_v35 = vld [vmem:[%s2927_s26 + $0xac] sm:$0xf] }
  0xa4   : > { %1163 = vmatpush.bf16.msra.mxu0 %v2443_v25  ;;  %v2057_v25 = vor.u32 %v2396_v18, %v2056_v17  ;;  %v2082_v36 = vld [vmem:[%s2927_s26 + $0xb8] sm:$0xf0]  ;;  %v2081_v39 = vor.u32 %v2401_v34, %v2080_v33  ;;  %v2096_v45 = vld [vmem:[%s2927_s26 + $0xc8] sm:$0xf]  ;;  %v2405_v46 = vld [vmem:[%s2927_s26 + $0xd4] sm:$0xf0] }
  0xa5   : > { %1252 = vmatpush.bf16.msra.mxu1 %v2451_v26  ;;  %v2061_v26 = vor.u32 %v2394_v19, %v2058_v20  ;;  %v2085_v40 = vor.u32 %v2399_v35, %v2082_v36  ;;  %v2403_v47 = vld [vmem:[%s2927_s26 + $0xcc] sm:$0xf]  ;;  %v2098_v48 = vld [vmem:[%s2927_s26 + $0xd8] sm:$0xf0]  ;;  %v2097_v51 = vor.u32 %v2405_v46, %v2096_v45  ;;  %v2112_v57 = vld [vmem:[%s2927_s26 + $0xe8] sm:$0xf] }
  0xa6   : > { %1341 = vmatpush.bf16.msra.mxu2 %v2459_v27  ;;  %v2065_v27 = vor.u32 %v2397_v22, %v2064_v21  ;;  %v2101_v52 = vor.u32 %v2403_v47, %v2098_v48  ;;  %v2409_v58 = vld [vmem:[%s2927_s26 + $0xf4] sm:$0xf0]  ;;  %v2407_v59 = vld [vmem:[%s2927_s26 + $0xec] sm:$0xf]  ;;  %v2114_v60 = vld [vmem:[%s2927_s26 + $0xf8] sm:$0xf0] }
  0xa7   : > { %1430 = vmatpush.bf16.msra.mxu3 %v2467_v28  ;;  %v2069_v28 = vor.u32 %v2395_v23, %v2066_v24  ;;  %v2113_v63 = vor.u32 %v2409_v58, %v2112_v57  ;;  %v2117_v0 = vor.u32 %v2407_v59, %v2114_v60  ;;  %v2128_v5 = vld [vmem:[%s2927_s26 + $0x108] sm:$0xf]  ;;  %v2413_v6 = vld [vmem:[%s2927_s26 + $0x114] sm:$0xf0]  ;;  %v2411_v7 = vld [vmem:[%s2927_s26 + $0x10c] sm:$0xf] }
  0xa8   : > { %1164 = vmatpush.bf16.msra.mxu0 %v2442_v29  ;;  %v2072_v29 = vld [vmem:[%s2927_s26 + $0xa0] sm:$0xf]  ;;  %v2130_v8 = vld [vmem:[%s2927_s26 + $0x118] sm:$0xf0]  ;;  %v485_v21 = vld [vmem:[#allocation2 + $0xb0] sm:$0xff] }
  0xa9   : > { %1253 = vmatpush.bf16.msra.mxu1 %v2450_v30  ;;  %v2400_v30 = vld [vmem:[%s2927_s26 + $0xac] sm:$0xf0]  ;;  %v2136_v23 = vld [vmem:[%s2927_s26 + $0x120] sm:$0xf]  ;;  %v2154_v57 = vld [vmem:[%s2927_s26 + $0x150] sm:$0xf0] }
  0xaa   : > { %1342 = vmatpush.bf16.msra.mxu2 %v2458_v31  ;;  %v2398_v31 = vld [vmem:[%s2927_s26 + $0xa4] sm:$0xf]  ;;  %v2073_v37 = vor.u32 %v2400_v30, %v2072_v29  ;;  %v2416_v24 = vld [vmem:[%s2927_s26 + $0x12c] sm:$0xf0]  ;;  %v2417_v29 = vld [vmem:[%s2927_s26 + $0x134] sm:$0xf0] }
  0xab   : > { %1431 = vmatpush.bf16.msra.mxu3 %v2466_v32  ;;  %1165 = vmatmul.bf16.vlgmr.msra.gmra.mxu0 %v1993_v41  ;;  %v2074_v32 = vld [vmem:[%s2927_s26 + $0xb0] sm:$0xf0]  ;;  %v2088_v41 = vld [vmem:[%s2927_s26 + $0xc0] sm:$0xf]  ;;  %v2415_v30 = vld [vmem:[%s2927_s26 + $0x12c] sm:$0xf]  ;;  %v2137_v35 = vor.u32 %v2416_v24, %v2136_v23 }
  0xac   : > { %1254 = vmatmul.bf16.vlgmr.msra.gmra.mxu1 %v1997_v42  ;;  %v2077_v38 = vor.u32 %v2398_v31, %v2074_v32  ;;  %v2404_v42 = vld [vmem:[%s2927_s26 + $0xcc] sm:$0xf0]  ;;  %v2146_v31 = vld [vmem:[%s2927_s26 + $0x138] sm:$0xf0]  ;;  %v2160_v58 = vld [vmem:[%s2927_s26 + $0x148] sm:$0xf] }
  0xad   : > { %1343 = vmatmul.bf16.vlgmr.msra.gmra.mxu2 %v2001_v43  ;;  %v2402_v43 = vld [vmem:[%s2927_s26 + $0xc4] sm:$0xf]  ;;  %v2089_v49 = vor.u32 %v2404_v42, %v2088_v41  ;;  %v2149_v41 = vor.u32 %v2415_v30, %v2146_v31  ;;  %v2421_v59 = vld [vmem:[%s2927_s26 + $0x154] sm:$0xf0]  ;;  %v2419_v60 = vld [vmem:[%s2927_s26 + $0x14c] sm:$0xf] }
  0xae   : > { %1432 = vmatmul.bf16.vlgmr.msra.gmra.mxu3 %v2005_v44  ;;  %v2090_v44 = vld [vmem:[%s2927_s26 + $0xd0] sm:$0xf0]  ;;  %v486_v42 = vld [vmem:[#allocation2] sm:$0xff]  ;;  %v2176_v24 = vld [vmem:[%s2927_s26 + $0x168] sm:$0xf] }
  0xaf   : > { %v2093_v50 = vor.u32 %v2402_v43, %v2090_v44  ;;  %v2170_v23 = vld [vmem:[%s2927_s26 + $0x170] sm:$0xf0] }
  0xbb   : > { %1170 = vmatmul.bf16.gmra.mxu0 %v2009_v53  ;;  %v2104_v53 = vld [vmem:[%s2927_s26 + $0xe0] sm:$0xf] }
  0xbc   : > { %1259 = vmatmul.bf16.gmra.mxu1 %v2013_v54  ;;  %v2408_v54 = vld [vmem:[%s2927_s26 + $0xec] sm:$0xf0] }
  0xbd   : > { %1348 = vmatmul.bf16.gmra.mxu2 %v2017_v55  ;;  %v2406_v55 = vld [vmem:[%s2927_s26 + $0xe4] sm:$0xf]  ;;  %v2105_v61 = vor.u32 %v2408_v54, %v2104_v53  ;;  %v2152_v53 = vld [vmem:[%s2927_s26 + $0x140] sm:$0xf]  ;;  %v2420_v54 = vld [vmem:[%s2927_s26 + $0x14c] sm:$0xf0] }
  0xbe   : > { %1437 = vmatmul.bf16.gmra.mxu3 %v2021_v56  ;;  %v2106_v56 = vld [vmem:[%s2927_s26 + $0xf0] sm:$0xf0] }
  0xbf   : > { %v2109_v62 = vor.u32 %v2406_v55, %v2106_v56  ;;  %v2418_v56 = vld [vmem:[%s2927_s26 + $0x144] sm:$0xf] }
  0xcb   : > { %1175 = vmatmul.bf16.gmra.mxu0 %v2025_v1  ;;  %v2120_v1 = vld [vmem:[%s2927_s26 + $0x100] sm:$0xf] }
  0xcc   : > { %1264 = vmatmul.bf16.gmra.mxu1 %v2029_v2  ;;  %v2412_v2 = vld [vmem:[%s2927_s26 + $0x10c] sm:$0xf0] }
  0xcd   : > { %1353 = vmatmul.bf16.gmra.mxu2 %v2033_v3  ;;  %v2410_v3 = vld [vmem:[%s2927_s26 + $0x104] sm:$0xf]  ;;  %v2121_v9 = vor.u32 %v2412_v2, %v2120_v1  ;;  %v2153_v1 = vor.u32 %v2420_v54, %v2152_v53  ;;  %v2157_v2 = vor.u32 %v2418_v56, %v2154_v57  ;;  %v2186_v53 = vld [vmem:[%s2927_s26 + $0x190] sm:$0xf0]  ;;  %v2192_v54 = vld [vmem:[%s2927_s26 + $0x188] sm:$0xf] }
  0xce   : > { %1442 = vmatmul.bf16.gmra.mxu3 %v2037_v4  ;;  %v2122_v4 = vld [vmem:[%s2927_s26 + $0x110] sm:$0xf0]  ;;  %v2427_v56 = vld [vmem:[%s2927_s26 + $0x18c] sm:$0xf]  ;;  %v2194_v57 = vld [vmem:[%s2927_s26 + $0x198] sm:$0xf0] }
  0xcf   : > { %v2125_v10 = vor.u32 %v2410_v3, %v2122_v4 }
  0xdb   : > { %1180 = vmatmul.bf16.gmra.mxu0 %v2041_v13  ;;  %v2129_v13 = vor.u32 %v2413_v6, %v2128_v5  ;;  %v2161_v6 = vor.u32 %v2421_v59, %v2160_v58 }
  0xdc   : > { %1269 = vmatmul.bf16.gmra.mxu1 %v2045_v14  ;;  %v2133_v14 = vor.u32 %v2411_v7, %v2130_v8  ;;  %v488_v8 = vld [vmem:[#allocation2 + $0x18] sm:$0xff] }
  0xdd   : > { %1358 = vmatmul.bf16.gmra.mxu2 %v2049_v15 }
  0xde   : > { %1447 = vmatmul.bf16.gmra.mxu3 %v2053_v16 }
  0xeb   : > { %1185 = vmatmul.bf16.gmra.mxu0 %v2057_v25 }
  0xec   : > { %1274 = vmatmul.bf16.gmra.mxu1 %v2061_v26  ;;  %v2414_v26 = vld [vmem:[%s2927_s26 + $0x124] sm:$0xf] }
  0xed   : > { %1363 = vmatmul.bf16.gmra.mxu2 %v2065_v27  ;;  %v2138_v27 = vld [vmem:[%s2927_s26 + $0x130] sm:$0xf0] }
  0xee   : > { %1452 = vmatmul.bf16.gmra.mxu3 %v2069_v28  ;;  %v2144_v28 = vld [vmem:[%s2927_s26 + $0x128] sm:$0xf]  ;;  %v2141_v36 = vor.u32 %v2414_v26, %v2138_v27  ;;  %v2423_v26 = vld [vmem:[%s2927_s26 + $0x16c] sm:$0xf]  ;;  %v2178_v27 = vld [vmem:[%s2927_s26 + $0x178] sm:$0xf0] }
  0xfb   : > { %1190 = vmatmul.bf16.gmra.mxu0 %v2073_v37 }
  0xfc   : > { %1279 = vmatmul.bf16.gmra.mxu1 %v2077_v38 }
  0xfd   : > { %1368 = vmatmul.bf16.gmra.mxu2 %v2081_v39 }
  0xfe   : > { %1457 = vmatmul.bf16.gmra.mxu3 %v2085_v40  ;;  %v2145_v40 = vor.u32 %v2417_v29, %v2144_v28 }
 0x10b   : > { %1195 = vmatmul.bf16.gmra.mxu0 %v2089_v49 }
 0x10c   : > { %1284 = vmatmul.bf16.gmra.mxu1 %v2093_v50 }
 0x10d   : > { %1373 = vmatmul.bf16.gmra.mxu2 %v2097_v51  ;;  %v487_v51 = vld [vmem:[#allocation2 + $0xd8] sm:$0xff] }
 0x10e   : > { %1462 = vmatmul.bf16.gmra.mxu3 %v2101_v52 }
 0x11b   : > { %1200 = vmatmul.bf16.gmra.mxu0 %v2105_v61  ;;  %v2162_v61 = vld [vmem:[%s2927_s26 + $0x158] sm:$0xf0] }
 0x11c   : > { %1289 = vmatmul.bf16.gmra.mxu1 %v2109_v62  ;;  %v2165_v7 = vor.u32 %v2419_v60, %v2162_v61 }
 0x11d   : > { %1378 = vmatmul.bf16.gmra.mxu2 %v2113_v63 }
 0x11e   : > { %1467 = vmatmul.bf16.gmra.mxu3 %v2117_v0 }
 0x128   : > { %v1166_v11 = vpop.f32.mrf.mxu0 }
 0x129   : > { %v1255_v12 = vpop.f32.mrf.mxu1 }
 0x12a   : > { %v1256_v15 = vadd.f32 %v1255_v12, %v1166_v11 }
 0x12b   : > { %1205 = vmatmul.bf16.gmra.mxu0 %v2121_v9 }
 0x12c   : > { %1294 = vmatmul.bf16.gmra.mxu1 %v2125_v10 }
 0x12d   : > { %1383 = vmatmul.bf16.gmra.mxu2 %v2129_v13 }
 0x12e   : > { %1472 = vmatmul.bf16.gmra.mxu3 %v2133_v14 }
 0x130   : > { %v1344_v16 = vpop.f32.mrf.mxu2  ;;  %v1168_v19 = vpop.f32.mrf.mxu0 }
 0x131   : > { %v1433_v17 = vpop.f32.mrf.mxu3  ;;  %v1345_v18 = vadd.f32 %v1344_v16, %v1256_v15  ;;  %v1257_v20 = vpop.f32.mrf.mxu1 }
 0x132   : > { %v1258_v32 = vadd.f32 %v1257_v20, %v1168_v19  ;;  %v2168_v19 = vld [vmem:[%s2927_s26 + $0x160] sm:$0xf]  ;;  %v2424_v20 = vld [vmem:[%s2927_s26 + $0x16c] sm:$0xf0] }
 0x133   : > { %v1434_v22 = vadd.f32 %v1433_v17, %v1345_v18  ;;  %v489_v17 = vld [vmem:[#allocation2 + $0x50] sm:$0xff]  ;;  %v2169_v31 = vor.u32 %v2424_v20, %v2168_v19  ;;  %v2208_v20 = vld [vmem:[%s2927_s26 + $0x1a8] sm:$0xf] }
 0x134   : > { %v2202_v19 = vld [vmem:[%s2927_s26 + $0x1b0] sm:$0xf0] }
 0x135   : > { %v1513_v25 = vadd.f32 %v1434_v22, %v485_v21  ;;  %v2422_v22 = vld [vmem:[%s2927_s26 + $0x164] sm:$0xf] }
 0x137   : > { %1545 = vst [vmem:[#allocation2 + $0xb0] sm:$0xff] %v1513_v25  ;;  %v2425_v25 = vld [vmem:[%s2927_s26 + $0x174] sm:$0xf0] }
 0x138   : > { %v1346_v33 = vpop.f32.mrf.mxu2  ;;  %v1171_v38 = vpop.f32.mrf.mxu0 }
 0x139   : > { %v1435_v34 = vpop.f32.mrf.mxu3  ;;  %v1347_v37 = vadd.f32 %v1346_v33, %v1258_v32  ;;  %v1260_v39 = vpop.f32.mrf.mxu1  ;;  %v2173_v32 = vor.u32 %v2422_v22, %v2170_v23  ;;  %v2431_v22 = vld [vmem:[%s2927_s26 + $0x1ac] sm:$0xf]  ;;  %v2210_v23 = vld [vmem:[%s2927_s26 + $0x1b8] sm:$0xf0] }
 0x13a   : > { %v1261_v45 = vadd.f32 %v1260_v39, %v1171_v38  ;;  %v490_v38 = vld [vmem:[#allocation2 + $0x68] sm:$0xff] }
 0x13b   : > { %v1436_v43 = vadd.f32 %v1435_v34, %v1347_v37  ;;  %1210 = vmatmul.bf16.gmra.mxu0 %v2137_v35  ;;  %v2181_v37 = vor.u32 %v2423_v26, %v2178_v27 }
 0x13c   : > { %1299 = vmatmul.bf16.gmra.mxu1 %v2141_v36  ;;  %v2177_v36 = vor.u32 %v2425_v25, %v2176_v24 }
 0x13d   : > { %v1514_v44 = vadd.f32 %v1436_v43, %v486_v42  ;;  %1388 = vmatmul.bf16.gmra.mxu2 %v2145_v40 }
 0x13e   : > { %1477 = vmatmul.bf16.gmra.mxu3 %v2149_v41 }
 0x13f   : > { %1546 = vst [vmem:[#allocation2] sm:$0xff] %v1514_v44 }
 0x140   : > { %v1349_v46 = vpop.f32.mrf.mxu2  ;;  %v1173_v49 = vpop.f32.mrf.mxu0 }
 0x141   : > { %v1438_v47 = vpop.f32.mrf.mxu3  ;;  %v1350_v48 = vadd.f32 %v1349_v46, %v1261_v45  ;;  %v1262_v50 = vpop.f32.mrf.mxu1 }
 0x142   : > { %v1263_v62 = vadd.f32 %v1262_v50, %v1173_v49  ;;  %v2184_v49 = vld [vmem:[%s2927_s26 + $0x180] sm:$0xf]  ;;  %v2428_v50 = vld [vmem:[%s2927_s26 + $0x18c] sm:$0xf0] }
 0x143   : > { %v1439_v52 = vadd.f32 %v1438_v47, %v1350_v48  ;;  %v491_v47 = vld [vmem:[#allocation2 + $0x30] sm:$0xff]  ;;  %v2185_v61 = vor.u32 %v2428_v50, %v2184_v49  ;;  %v2224_v50 = vld [vmem:[%s2927_s26 + $0x1c8] sm:$0xf] }
 0x144   : > { %v2218_v49 = vld [vmem:[%s2927_s26 + $0x1d0] sm:$0xf0] }
 0x145   : > { %v1515_v55 = vadd.f32 %v1439_v52, %v487_v51  ;;  %v2426_v52 = vld [vmem:[%s2927_s26 + $0x184] sm:$0xf] }
 0x147   : > { %1547 = vst [vmem:[#allocation2 + $0xd8] sm:$0xff] %v1515_v55  ;;  %v2429_v55 = vld [vmem:[%s2927_s26 + $0x194] sm:$0xf0] }
 0x148   : > { %v1351_v63 = vpop.f32.mrf.mxu2  ;;  %v1176_v4 = vpop.f32.mrf.mxu0 }
 0x149   : > { %v1440_v0 = vpop.f32.mrf.mxu3  ;;  %v1352_v3 = vadd.f32 %v1351_v63, %v1263_v62  ;;  %v1265_v5 = vpop.f32.mrf.mxu1  ;;  %v2189_v62 = vor.u32 %v2426_v52, %v2186_v53  ;;  %v2435_v52 = vld [vmem:[%s2927_s26 + $0x1cc] sm:$0xf]  ;;  %v2226_v53 = vld [vmem:[%s2927_s26 + $0x1d8] sm:$0xf0] }
 0x14a   : > { %v1266_v11 = vadd.f32 %v1265_v5, %v1176_v4  ;;  %v492_v4 = vld [vmem:[#allocation2 + $0x48] sm:$0xff] }
 0x14b   : > { %v1441_v9 = vadd.f32 %v1440_v0, %v1352_v3  ;;  %1215 = vmatmul.bf16.gmra.mxu0 %v2153_v1  ;;  %v2197_v3 = vor.u32 %v2427_v56, %v2194_v57 }
 0x14c   : > { %1304 = vmatmul.bf16.gmra.mxu1 %v2157_v2  ;;  %v2193_v2 = vor.u32 %v2429_v55, %v2192_v54 }
 0x14d   : > { %v1516_v10 = vadd.f32 %v1441_v9, %v488_v8  ;;  %1393 = vmatmul.bf16.gmra.mxu2 %v2161_v6 }
 0x14e   : > { %1482 = vmatmul.bf16.gmra.mxu3 %v2165_v7 }
 0x14f   : > { %1548 = vst [vmem:[#allocation2 + $0x18] sm:$0xff] %v1516_v10 }
 0x150   : > { %v1354_v12 = vpop.f32.mrf.mxu2  ;;  %v1178_v15 = vpop.f32.mrf.mxu0 }
 0x151   : > { %v1443_v13 = vpop.f32.mrf.mxu3  ;;  %v1355_v14 = vadd.f32 %v1354_v12, %v1266_v11  ;;  %v1267_v16 = vpop.f32.mrf.mxu1 }
 0x152   : > { %v1268_v28 = vadd.f32 %v1267_v16, %v1178_v15  ;;  %v2200_v15 = vld [vmem:[%s2927_s26 + $0x1a0] sm:$0xf]  ;;  %v2432_v16 = vld [vmem:[%s2927_s26 + $0x1ac] sm:$0xf0] }
 0x153   : > { %v1444_v18 = vadd.f32 %v1443_v13, %v1355_v14  ;;  %v493_v13 = vld [vmem:[#allocation2 + $0x80] sm:$0xff]  ;;  %v2201_v27 = vor.u32 %v2432_v16, %v2200_v15  ;;  %v2234_v15 = vld [vmem:[%s2927_s26 + $0x1f0] sm:$0xf0]  ;;  %v2240_v16 = vld [vmem:[%s2927_s26 + $0x1e8] sm:$0xf] }
 0x155   : > { %v1517_v21 = vadd.f32 %v1444_v18, %v489_v17  ;;  %v2430_v18 = vld [vmem:[%s2927_s26 + $0x1a4] sm:$0xf] }
 0x157   : > { %1549 = vst [vmem:[#allocation2 + $0x50] sm:$0xff] %v1517_v21  ;;  %v2433_v21 = vld [vmem:[%s2927_s26 + $0x1b4] sm:$0xf0] }
 0x158   : > { %v1356_v29 = vpop.f32.mrf.mxu2  ;;  %v1181_v34 = vpop.f32.mrf.mxu0 }
 0x159   : > { %v1445_v30 = vpop.f32.mrf.mxu3  ;;  %v1357_v33 = vadd.f32 %v1356_v29, %v1268_v28  ;;  %v1270_v35 = vpop.f32.mrf.mxu1  ;;  %v2205_v28 = vor.u32 %v2430_v18, %v2202_v19  ;;  %v2439_v18 = vld [vmem:[%s2927_s26 + $0x1ec] sm:$0xf]  ;;  %v2242_v19 = vld [vmem:[%s2927_s26 + $0x1f8] sm:$0xf0] }
 0x15a   : > { %v1271_v41 = vadd.f32 %v1270_v35, %v1181_v34  ;;  %v494_v34 = vld [vmem:[#allocation2 + $0x88] sm:$0xff] }
 0x15b   : > { %v1446_v39 = vadd.f32 %v1445_v30, %v1357_v33  ;;  %1220 = vmatmul.bf16.gmra.mxu0 %v2169_v31  ;;  %v2213_v33 = vor.u32 %v2431_v22, %v2210_v23 }
 0x15c   : > { %1309 = vmatmul.bf16.gmra.mxu1 %v2173_v32  ;;  %v2209_v32 = vor.u32 %v2433_v21, %v2208_v20 }
 0x15d   : > { %v1518_v40 = vadd.f32 %v1446_v39, %v490_v38  ;;  %1398 = vmatmul.bf16.gmra.mxu2 %v2177_v36 }
 0x15e   : > { %1487 = vmatmul.bf16.gmra.mxu3 %v2181_v37 }
 0x15f   : > { %1550 = vst [vmem:[#allocation2 + $0x68] sm:$0xff] %v1518_v40 }
 0x160   : > { %v1359_v42 = vpop.f32.mrf.mxu2  ;;  %v1183_v45 = vpop.f32.mrf.mxu0 }
 0x161   : > { %v1448_v43 = vpop.f32.mrf.mxu3  ;;  %v1360_v44 = vadd.f32 %v1359_v42, %v1271_v41  ;;  %v1272_v46 = vpop.f32.mrf.mxu1 }
 0x162   : > { %v1273_v58 = vadd.f32 %v1272_v46, %v1183_v45  ;;  %v2216_v45 = vld [vmem:[%s2927_s26 + $0x1c0] sm:$0xf]  ;;  %v2436_v46 = vld [vmem:[%s2927_s26 + $0x1cc] sm:$0xf0] }
 0x163   : > { %v1449_v48 = vadd.f32 %v1448_v43, %v1360_v44  ;;  %v495_v43 = vld [vmem:[#allocation2 + $0xe8] sm:$0xff]  ;;  %v2217_v57 = vor.u32 %v2436_v46, %v2216_v45 }
 0x165   : > { %v1519_v51 = vadd.f32 %v1449_v48, %v491_v47  ;;  %v2434_v48 = vld [vmem:[%s2927_s26 + $0x1c4] sm:$0xf] }
 0x167   : > { %1551 = vst [vmem:[#allocation2 + $0x30] sm:$0xff] %v1519_v51  ;;  %v2437_v51 = vld [vmem:[%s2927_s26 + $0x1d4] sm:$0xf0] }
 0x168   : > { %v1361_v59 = vpop.f32.mrf.mxu2  ;;  %v1186_v0 = vpop.f32.mrf.mxu0 }
 0x169   : > { %v1450_v60 = vpop.f32.mrf.mxu3  ;;  %v1362_v63 = vadd.f32 %v1361_v59, %v1273_v58  ;;  %v1275_v1 = vpop.f32.mrf.mxu1  ;;  %v2221_v58 = vor.u32 %v2434_v48, %v2218_v49  ;;  %v500_v48 = vld [vmem:[#allocation2 + $0x78] sm:$0xff] }
 0x16a   : > { %v1276_v7 = vadd.f32 %v1275_v1, %v1186_v0  ;;  %v496_v0 = vld [vmem:[#allocation2 + $0xb8] sm:$0xff] }
 0x16b   : > { %v1451_v5 = vadd.f32 %v1450_v60, %v1362_v63  ;;  %1225 = vmatmul.bf16.gmra.mxu0 %v2185_v61  ;;  %v2229_v63 = vor.u32 %v2435_v52, %v2226_v53 }
 0x16c   : > { %1314 = vmatmul.bf16.gmra.mxu1 %v2189_v62  ;;  %v2225_v62 = vor.u32 %v2437_v51, %v2224_v50 }
 0x16d   : > { %v1520_v6 = vadd.f32 %v1451_v5, %v492_v4  ;;  %1403 = vmatmul.bf16.gmra.mxu2 %v2193_v2 }
 0x16e   : > { %1492 = vmatmul.bf16.gmra.mxu3 %v2197_v3 }
 0x16f   : > { %1552 = vst [vmem:[#allocation2 + $0x48] sm:$0xff] %v1520_v6 }
 0x170   : > { %v1364_v8 = vpop.f32.mrf.mxu2  ;;  %v1188_v11 = vpop.f32.mrf.mxu0 }
 0x171   : > { %v1453_v9 = vpop.f32.mrf.mxu3  ;;  %v1365_v10 = vadd.f32 %v1364_v8, %v1276_v7  ;;  %v1277_v12 = vpop.f32.mrf.mxu1 }
 0x172   : > { %v1278_v24 = vadd.f32 %v1277_v12, %v1188_v11  ;;  %v2232_v11 = vld [vmem:[%s2927_s26 + $0x1e0] sm:$0xf]  ;;  %v2440_v12 = vld [vmem:[%s2927_s26 + $0x1ec] sm:$0xf0] }
 0x173   : > { %v1454_v14 = vadd.f32 %v1453_v9, %v1365_v10  ;;  %v497_v9 = vld [vmem:[#allocation2 + $0x60] sm:$0xff]  ;;  %v2233_v23 = vor.u32 %v2440_v12, %v2232_v11 }
 0x174   : > { %v503_v11 = vld [vmem:[#allocation2 + $0x40] sm:$0xff] }
 0x175   : > { %v1521_v17 = vadd.f32 %v1454_v14, %v493_v13  ;;  %v2438_v14 = vld [vmem:[%s2927_s26 + $0x1e4] sm:$0xf] }
 0x177   : > { %1553 = vst [vmem:[#allocation2 + $0x80] sm:$0xff] %v1521_v17  ;;  %v2441_v17 = vld [vmem:[%s2927_s26 + $0x1f4] sm:$0xf0] }
 0x178   : > { %v1366_v25 = vpop.f32.mrf.mxu2  ;;  %v1191_v30 = vpop.f32.mrf.mxu0 }
 0x179   : > { %v1455_v26 = vpop.f32.mrf.mxu3  ;;  %v1367_v29 = vadd.f32 %v1366_v25, %v1278_v24  ;;  %v1280_v31 = vpop.f32.mrf.mxu1  ;;  %v2237_v24 = vor.u32 %v2438_v14, %v2234_v15 }
 0x17a   : > { %v1281_v37 = vadd.f32 %v1280_v31, %v1191_v30  ;;  %v498_v30 = vld [vmem:[#allocation2 + $0xf0] sm:$0xff] }
 0x17b   : > { %v1456_v35 = vadd.f32 %v1455_v26, %v1367_v29  ;;  %1230 = vmatmul.bf16.gmra.mxu0 %v2201_v27  ;;  %v2245_v29 = vor.u32 %v2439_v18, %v2242_v19 }
 0x17c   : > { %1319 = vmatmul.bf16.gmra.mxu1 %v2205_v28  ;;  %v2241_v28 = vor.u32 %v2441_v17, %v2240_v16 }
 0x17d   : > { %v1522_v36 = vadd.f32 %v1456_v35, %v494_v34  ;;  %1408 = vmatmul.bf16.gmra.mxu2 %v2209_v32 }
 0x17e   : > { %1497 = vmatmul.bf16.gmra.mxu3 %v2213_v33 }
 0x17f   : > { %1554 = vst [vmem:[#allocation2 + $0x88] sm:$0xff] %v1522_v36 }
 0x180   : > { %v1369_v38 = vpop.f32.mrf.mxu2  ;;  %v1193_v41 = vpop.f32.mrf.mxu0 }
 0x181   : > { %v1458_v39 = vpop.f32.mrf.mxu3  ;;  %v1370_v40 = vadd.f32 %v1369_v38, %v1281_v37  ;;  %v1282_v42 = vpop.f32.mrf.mxu1 }
 0x182   : > { %v1283_v54 = vadd.f32 %v1282_v42, %v1193_v41 }
 0x183   : > { %v1459_v44 = vadd.f32 %v1458_v39, %v1370_v40  ;;  %v499_v39 = vld [vmem:[#allocation2 + $0x8] sm:$0xff] }
 0x185   : > { %v1523_v47 = vadd.f32 %v1459_v44, %v495_v43 }
 0x187   : > { %1555 = vst [vmem:[#allocation2 + $0xe8] sm:$0xff] %v1523_v47 }
 0x188   : > { %v1371_v55 = vpop.f32.mrf.mxu2  ;;  %v1196_v60 = vpop.f32.mrf.mxu0 }
 0x189   : > { %v1460_v56 = vpop.f32.mrf.mxu3  ;;  %v1372_v59 = vadd.f32 %v1371_v55, %v1283_v54  ;;  %v1285_v61 = vpop.f32.mrf.mxu1 }
 0x18a   : > { %v1286_v3 = vadd.f32 %v1285_v61, %v1196_v60 }
 0x18b   : > { %v1461_v1 = vadd.f32 %v1460_v56, %v1372_v59  ;;  %1235 = vmatmul.bf16.gmra.mxu0 %v2217_v57  ;;  %v501_v57 = vld [vmem:[#allocation2 + $0x38] sm:$0xff] }
 0x18c   : > { %1324 = vmatmul.bf16.gmra.mxu1 %v2221_v58 }
 0x18d   : > { %v1524_v2 = vadd.f32 %v1461_v1, %v496_v0  ;;  %1413 = vmatmul.bf16.gmra.mxu2 %v2225_v62 }
 0x18e   : > { %1502 = vmatmul.bf16.gmra.mxu3 %v2229_v63 }
 0x18f   : > { %1556 = vst [vmem:[#allocation2 + $0xb8] sm:$0xff] %v1524_v2  ;;  %v502_v2 = vld [vmem:[#allocation2 + $0x58] sm:$0xff] }
 0x190   : > { %v1374_v4 = vpop.f32.mrf.mxu2  ;;  %v1198_v7 = vpop.f32.mrf.mxu0 }
 0x191   : > { %v1463_v5 = vpop.f32.mrf.mxu3  ;;  %v1375_v6 = vadd.f32 %v1374_v4, %v1286_v3  ;;  %v1287_v8 = vpop.f32.mrf.mxu1 }
 0x192   : > { %v1288_v20 = vadd.f32 %v1287_v8, %v1198_v7 }
 0x193   : > { %v1464_v10 = vadd.f32 %v1463_v5, %v1375_v6 }
 0x195   : > { %v1525_v13 = vadd.f32 %v1464_v10, %v497_v9 }
 0x197   : > { %1557 = vst [vmem:[#allocation2 + $0x60] sm:$0xff] %v1525_v13 }
 0x198   : > { %v1376_v21 = vpop.f32.mrf.mxu2  ;;  %v1201_v26 = vpop.f32.mrf.mxu0 }
 0x199   : > { %v1465_v22 = vpop.f32.mrf.mxu3  ;;  %v1377_v25 = vadd.f32 %v1376_v21, %v1288_v20  ;;  %v1290_v27 = vpop.f32.mrf.mxu1  ;;  %v504_v20 = vld [vmem:[#allocation2 + $0xc8] sm:$0xff] }
 0x19a   : > { %v1291_v33 = vadd.f32 %v1290_v27, %v1201_v26 }
 0x19b   : > { %v1466_v31 = vadd.f32 %v1465_v22, %v1377_v25  ;;  %1240 = vmatmul.bf16.gmra.mxu0 %v2233_v23 }
 0x19c   : > { %1329 = vmatmul.bf16.gmra.mxu1 %v2237_v24 }
 0x19d   : > { %v1526_v32 = vadd.f32 %v1466_v31, %v498_v30  ;;  %1418 = vmatmul.bf16.gmra.mxu2 %v2241_v28 }
 0x19e   : > { %1507 = vmatmul.bf16.gmra.mxu3 %v2245_v29  ;;  %v505_v29 = vld [vmem:[#allocation2 + $0xe0] sm:$0xff] }
 0x19f   : > { %1558 = vst [vmem:[#allocation2 + $0xf0] sm:$0xff] %v1526_v32 }
 0x1a0   : > { %v1379_v34 = vpop.f32.mrf.mxu2  ;;  %v1203_v37 = vpop.f32.mrf.mxu0 }
 0x1a1   : > { %v1468_v35 = vpop.f32.mrf.mxu3  ;;  %v1380_v36 = vadd.f32 %v1379_v34, %v1291_v33  ;;  %v1292_v38 = vpop.f32.mrf.mxu1 }
 0x1a2   : > { %v1293_v42 = vadd.f32 %v1292_v38, %v1203_v37  ;;  %v506_v38 = vld [vmem:[#allocation2 + $0x90] sm:$0xff] }
 0x1a3   : > { %v1469_v40 = vadd.f32 %v1468_v35, %v1380_v36 }
 0x1a5   : > { %v1527_v41 = vadd.f32 %v1469_v40, %v499_v39 }
 0x1a7   : > { %1559 = vst [vmem:[#allocation2 + $0x8] sm:$0xff] %v1527_v41 }
 0x1a8   : > { %v1381_v43 = vpop.f32.mrf.mxu2  ;;  %v1206_v46 = vpop.f32.mrf.mxu0 }
 0x1a9   : > { %v1470_v44 = vpop.f32.mrf.mxu3  ;;  %v1382_v45 = vadd.f32 %v1381_v43, %v1293_v42  ;;  %v1295_v47 = vpop.f32.mrf.mxu1 }
 0x1aa   : > { %v1296_v51 = vadd.f32 %v1295_v47, %v1206_v46  ;;  %v507_v47 = vld [vmem:[#allocation2 + $0x70] sm:$0xff] }
 0x1ab   : > { %v1471_v49 = vadd.f32 %v1470_v44, %v1382_v45 }
 0x1ad   : > { %v1528_v50 = vadd.f32 %v1471_v49, %v500_v48 }
 0x1af   : > { %1560 = vst [vmem:[#allocation2 + $0x78] sm:$0xff] %v1528_v50 }
 0x1b0   : > { %v1384_v52 = vpop.f32.mrf.mxu2  ;;  %v1208_v55 = vpop.f32.mrf.mxu0 }
 0x1b1   : > { %v1473_v53 = vpop.f32.mrf.mxu3  ;;  %v1385_v54 = vadd.f32 %v1384_v52, %v1296_v51  ;;  %v1297_v56 = vpop.f32.mrf.mxu1 }
 0x1b2   : > { %v1298_v60 = vadd.f32 %v1297_v56, %v1208_v55  ;;  %v508_v56 = vld [vmem:[#allocation2 + $0xc0] sm:$0xff] }
 0x1b3   : > { %v1474_v58 = vadd.f32 %v1473_v53, %v1385_v54 }
 0x1b5   : > { %v1529_v59 = vadd.f32 %v1474_v58, %v501_v57 }
 0x1b7   : > { %1561 = vst [vmem:[#allocation2 + $0x38] sm:$0xff] %v1529_v59 }
 0x1b8   : > { %v1386_v61 = vpop.f32.mrf.mxu2  ;;  %v1211_v0 = vpop.f32.mrf.mxu0 }
 0x1b9   : > { %v1475_v62 = vpop.f32.mrf.mxu3  ;;  %v1387_v63 = vadd.f32 %v1386_v61, %v1298_v60  ;;  %v1300_v1 = vpop.f32.mrf.mxu1 }
 0x1ba   : > { %v1301_v5 = vadd.f32 %v1300_v1, %v1211_v0  ;;  %v509_v1 = vld [vmem:[#allocation2 + $0xa8] sm:$0xff] }
 0x1bb   : > { %v1476_v3 = vadd.f32 %v1475_v62, %v1387_v63 }
 0x1bd   : > { %v1530_v4 = vadd.f32 %v1476_v3, %v502_v2 }
 0x1bf   : > { %1562 = vst [vmem:[#allocation2 + $0x58] sm:$0xff] %v1530_v4 }
 0x1c0   : > { %v1389_v6 = vpop.f32.mrf.mxu2  ;;  %v1213_v9 = vpop.f32.mrf.mxu0 }
 0x1c1   : > { %v1478_v7 = vpop.f32.mrf.mxu3  ;;  %v1390_v8 = vadd.f32 %v1389_v6, %v1301_v5  ;;  %v1302_v10 = vpop.f32.mrf.mxu1 }
 0x1c2   : > { %v1303_v14 = vadd.f32 %v1302_v10, %v1213_v9  ;;  %v510_v10 = vld [vmem:[#allocation2 + $0xd0] sm:$0xff] }
 0x1c3   : > { %v1479_v12 = vadd.f32 %v1478_v7, %v1390_v8 }
 0x1c5   : > { %v1531_v13 = vadd.f32 %v1479_v12, %v503_v11 }
 0x1c7   : > { %1563 = vst [vmem:[#allocation2 + $0x40] sm:$0xff] %v1531_v13 }
 0x1c8   : > { %v1391_v15 = vpop.f32.mrf.mxu2  ;;  %v1216_v18 = vpop.f32.mrf.mxu0 }
 0x1c9   : > { %v1480_v16 = vpop.f32.mrf.mxu3  ;;  %v1392_v17 = vadd.f32 %v1391_v15, %v1303_v14  ;;  %v1305_v19 = vpop.f32.mrf.mxu1 }
 0x1ca   : > { %v1306_v23 = vadd.f32 %v1305_v19, %v1216_v18  ;;  %v511_v19 = vld [vmem:[#allocation2 + $0x10] sm:$0xff] }
 0x1cb   : > { %v1481_v21 = vadd.f32 %v1480_v16, %v1392_v17 }
 0x1cd   : > { %v1532_v22 = vadd.f32 %v1481_v21, %v504_v20 }
 0x1cf   : > { %1564 = vst [vmem:[#allocation2 + $0xc8] sm:$0xff] %v1532_v22 }
 0x1d0   : > { %v1394_v24 = vpop.f32.mrf.mxu2  ;;  %v1218_v27 = vpop.f32.mrf.mxu0 }
 0x1d1   : > { %v1483_v25 = vpop.f32.mrf.mxu3  ;;  %v1395_v26 = vadd.f32 %v1394_v24, %v1306_v23  ;;  %v1307_v28 = vpop.f32.mrf.mxu1 }
 0x1d2   : > { %v1308_v32 = vadd.f32 %v1307_v28, %v1218_v27  ;;  %v512_v28 = vld [vmem:[#allocation2 + $0x28] sm:$0xff] }
 0x1d3   : > { %v1484_v30 = vadd.f32 %v1483_v25, %v1395_v26 }
 0x1d5   : > { %v1533_v31 = vadd.f32 %v1484_v30, %v505_v29 }
 0x1d7   : > { %1565 = vst [vmem:[#allocation2 + $0xe0] sm:$0xff] %v1533_v31 }
 0x1d8   : > { %v1396_v33 = vpop.f32.mrf.mxu2  ;;  %v1221_v36 = vpop.f32.mrf.mxu0 }
 0x1d9   : > { %v1485_v34 = vpop.f32.mrf.mxu3  ;;  %v1397_v35 = vadd.f32 %v1396_v33, %v1308_v32  ;;  %v1310_v37 = vpop.f32.mrf.mxu1 }
 0x1da   : > { %v1311_v41 = vadd.f32 %v1310_v37, %v1221_v36  ;;  %v513_v37 = vld [vmem:[#allocation2 + $0xa0] sm:$0xff] }
 0x1db   : > { %v1486_v39 = vadd.f32 %v1485_v34, %v1397_v35 }
 0x1dd   : > { %v1534_v40 = vadd.f32 %v1486_v39, %v506_v38 }
 0x1df   : > { %1566 = vst [vmem:[#allocation2 + $0x90] sm:$0xff] %v1534_v40 }
 0x1e0   : > { %v1399_v42 = vpop.f32.mrf.mxu2  ;;  %v1223_v45 = vpop.f32.mrf.mxu0 }
 0x1e1   : > { %v1488_v43 = vpop.f32.mrf.mxu3  ;;  %v1400_v44 = vadd.f32 %v1399_v42, %v1311_v41  ;;  %v1312_v46 = vpop.f32.mrf.mxu1 }
 0x1e2   : > { %v1313_v50 = vadd.f32 %v1312_v46, %v1223_v45 }
 0x1e3   : > { %v1489_v48 = vadd.f32 %v1488_v43, %v1400_v44  ;;  %v514_v44 = vld [vmem:[#allocation2 + $0xf8] sm:$0xff] }
 0x1e5   : > { %v1535_v49 = vadd.f32 %v1489_v48, %v507_v47 }
 0x1e7   : > { %1567 = vst [vmem:[#allocation2 + $0x70] sm:$0xff] %v1535_v49 }
 0x1e8   : > { %v1401_v51 = vpop.f32.mrf.mxu2  ;;  %v1226_v54 = vpop.f32.mrf.mxu0 }
 0x1e9   : > { %v1490_v52 = vpop.f32.mrf.mxu3  ;;  %v1402_v53 = vadd.f32 %v1401_v51, %v1313_v50  ;;  %v1315_v55 = vpop.f32.mrf.mxu1 }
 0x1ea   : > { %v1316_v59 = vadd.f32 %v1315_v55, %v1226_v54 }
 0x1eb   : > { %v1491_v57 = vadd.f32 %v1490_v52, %v1402_v53  ;;  %v515_v53 = vld [vmem:[#allocation2 + $0x20] sm:$0xff] }
 0x1ed   : > { %v1536_v58 = vadd.f32 %v1491_v57, %v508_v56 }
 0x1ef   : > { %1568 = vst [vmem:[#allocation2 + $0xc0] sm:$0xff] %v1536_v58 }
 0x1f0   : > { %v1404_v60 = vpop.f32.mrf.mxu2  ;;  %v1228_v63 = vpop.f32.mrf.mxu0 }
 0x1f1   : > { %v1493_v61 = vpop.f32.mrf.mxu3  ;;  %v1405_v62 = vadd.f32 %v1404_v60, %v1316_v59  ;;  %v1317_v0 = vpop.f32.mrf.mxu1 }
 0x1f2   : > { %v1318_v4 = vadd.f32 %v1317_v0, %v1228_v63 }
 0x1f3   : > { %v1494_v2 = vadd.f32 %v1493_v61, %v1405_v62  ;;  %v516_v61 = vld [vmem:[#allocation2 + $0x98] sm:$0xff] }
 0x1f5   : > { %v1537_v3 = vadd.f32 %v1494_v2, %v509_v1 }
 0x1f7   : > { %1569 = vst [vmem:[#allocation2 + $0xa8] sm:$0xff] %v1537_v3 }
 0x1f8   : > { %v1406_v5 = vpop.f32.mrf.mxu2  ;;  %v1231_v8 = vpop.f32.mrf.mxu0 }
 0x1f9   : > { %v1495_v6 = vpop.f32.mrf.mxu3  ;;  %v1407_v7 = vadd.f32 %v1406_v5, %v1318_v4  ;;  %v1320_v9 = vpop.f32.mrf.mxu1 }
 0x1fa   : > { %v1321_v13 = vadd.f32 %v1320_v9, %v1231_v8 }
 0x1fb   : > { %v1496_v11 = vadd.f32 %v1495_v6, %v1407_v7 }
 0x1fd   : > { %v1538_v12 = vadd.f32 %v1496_v11, %v510_v10 }
 0x1ff   : > { %1570 = vst [vmem:[#allocation2 + $0xd0] sm:$0xff] %v1538_v12 }
 0x200   : > { %v1409_v14 = vpop.f32.mrf.mxu2  ;;  %v1233_v17 = vpop.f32.mrf.mxu0 }
 0x201   : > { %v1498_v15 = vpop.f32.mrf.mxu3  ;;  %v1410_v16 = vadd.f32 %v1409_v14, %v1321_v13  ;;  %v1322_v18 = vpop.f32.mrf.mxu1 }
 0x202   : > { %v1323_v22 = vadd.f32 %v1322_v18, %v1233_v17 }
 0x203   : > { %v1499_v20 = vadd.f32 %v1498_v15, %v1410_v16 }
 0x205   : > { %v1539_v21 = vadd.f32 %v1499_v20, %v511_v19 }
 0x207   : > { %1571 = vst [vmem:[#allocation2 + $0x10] sm:$0xff] %v1539_v21 }
 0x208   : > { %v1411_v23 = vpop.f32.mrf.mxu2  ;;  %v1236_v26 = vpop.f32.mrf.mxu0 }
 0x209   : > { %v1500_v24 = vpop.f32.mrf.mxu3  ;;  %v1412_v25 = vadd.f32 %v1411_v23, %v1323_v22  ;;  %v1325_v27 = vpop.f32.mrf.mxu1 }
 0x20a   : > { %v1326_v31 = vadd.f32 %v1325_v27, %v1236_v26 }
 0x20b   : > { %v1501_v29 = vadd.f32 %v1500_v24, %v1412_v25 }
 0x20d   : > { %v1540_v30 = vadd.f32 %v1501_v29, %v512_v28 }
 0x20f   : > { %1572 = vst [vmem:[#allocation2 + $0x28] sm:$0xff] %v1540_v30 }
 0x210   : > { %v1414_v32 = vpop.f32.mrf.mxu2  ;;  %v1238_v35 = vpop.f32.mrf.mxu0 }
 0x211   : > { %v1503_v33 = vpop.f32.mrf.mxu3  ;;  %v1415_v34 = vadd.f32 %v1414_v32, %v1326_v31  ;;  %v1327_v36 = vpop.f32.mrf.mxu1 }
 0x212   : > { %v1328_v40 = vadd.f32 %v1327_v36, %v1238_v35 }
 0x213   : > { %v1504_v38 = vadd.f32 %v1503_v33, %v1415_v34 }
 0x215   : > { %v1541_v39 = vadd.f32 %v1504_v38, %v513_v37 }
 0x217   : > { %1573 = vst [vmem:[#allocation2 + $0xa0] sm:$0xff] %v1541_v39 }
 0x218   : > { %v1416_v41 = vpop.f32.mrf.mxu2  ;;  %v1241_v45 = vpop.f32.mrf.mxu0 }
 0x219   : > { %v1505_v42 = vpop.f32.mrf.mxu3  ;;  %v1417_v43 = vadd.f32 %v1416_v41, %v1328_v40  ;;  %v1330_v46 = vpop.f32.mrf.mxu1 }
 0x21a   : > { %v1331_v49 = vadd.f32 %v1330_v46, %v1241_v45 }
 0x21b   : > { %v1506_v47 = vadd.f32 %v1505_v42, %v1417_v43 }
 0x21d   : > { %v1542_v48 = vadd.f32 %v1506_v47, %v514_v44 }
 0x21f   : > { %1574 = vst [vmem:[#allocation2 + $0xf8] sm:$0xff] %v1542_v48 }
 0x220   : > { %v1419_v50 = vpop.f32.mrf.mxu2  ;;  %v1243_v55 = vpop.f32.mrf.mxu0 }
 0x221   : > { %v1508_v51 = vpop.f32.mrf.mxu3  ;;  %v1420_v52 = vadd.f32 %v1419_v50, %v1331_v49  ;;  %v1332_v56 = vpop.f32.mrf.mxu1 }
 0x222   : > { %v1333_v58 = vadd.f32 %v1332_v56, %v1243_v55 }
 0x223   : > { %v1509_v54 = vadd.f32 %v1508_v51, %v1420_v52 }
 0x225   : > { %v1543_v57 = vadd.f32 %v1509_v54, %v515_v53 }
 0x227   : > { %1575 = vst [vmem:[#allocation2 + $0x20] sm:$0xff] %v1543_v57 }
 0x228   : > { %v1421_v59 = vpop.f32.mrf.mxu2 }
 0x229   : > { %v1422_v60 = vadd.f32 %v1421_v59, %v1333_v58  ;;  %v1510_v62 = vpop.f32.mrf.mxu3 }
 0x22b   : > { %v1511_v63 = vadd.f32 %v1510_v62, %v1422_v60  ;;  %1580 = sbr.rel (%p2374_p0) target bundleno = 638 (0x27e), region = 59 }
 0x22d   : > { %v1544_v0 = vadd.f32 %v1511_v63, %v516_v61 }
 0x22f   : > { %1576 = vst [vmem:[#allocation2 + $0x98] sm:$0xff] %v1544_v0 }
 0x230   : > { %v1581_v1 = vld [vmem:[#allocation2 + $0xb0] sm:$0xff]  ;;  %v1582_v2 = vld [vmem:[#allocation2] sm:$0xff]  ;;  %v1583_v3 = vld [vmem:[#allocation2 + $0xd8] sm:$0xff] }
 0x231   : > { %v2477_v4 = vpack.c.bf16 %v1582_v2, %v1581_v1  ;;  %v1677_v5 = vadd.f32 %v1582_v2, %v1581_v1  ;;  %v1714_v6 = vmul.f32 %v1581_v1, %v1581_v1  ;;  %v1715_v7 = vmul.f32 %v1582_v2, %v1582_v2  ;;  %v1584_v8 = vld [vmem:[#allocation2 + $0x18] sm:$0xff]  ;;  %v1585_v9 = vld [vmem:[#allocation2 + $0x50] sm:$0xff]  ;;  %v1586_v10 = vld [vmem:[#allocation2 + $0x68] sm:$0xff] }
 0x232   : > { %v2482_v11 = vpack.c.bf16 %v1584_v8, %v1583_v3  ;;  %v1716_v12 = vmul.f32 %v1583_v3, %v1583_v3  ;;  %v2487_v13 = vpack.c.bf16 %v1586_v10, %v1585_v9  ;;  %v1587_v14 = vld [vmem:[#allocation2 + $0x30] sm:$0xff]  ;;  %v1717_v17 = vmul.f32 %v1584_v8, %v1584_v8  ;;  %v1588_v18 = vld [vmem:[#allocation2 + $0x48] sm:$0xff]  ;;  %v1589_v19 = vld [vmem:[#allocation2 + $0x80] sm:$0xff] }
 0x233   : > { %2478 = vst [vmem:[%s2915_s15] sm:$0xff] %v2477_v4   ;;  %v1746_v15 = vadd.f32 %v1715_v7, %v1714_v6  ;;  %v1678_v16 = vadd.f32 %v1677_v5, %v1583_v3  ;;  %v1590_v20 = vld [vmem:[#allocation2 + $0x88] sm:$0xff]  ;;  %v2492_v21 = vpack.c.bf16 %v1588_v18, %v1587_v14  ;;  %v1718_v26 = vmul.f32 %v1585_v9, %v1585_v9  ;;  %v1592_v27 = vld [vmem:[#allocation2 + $0xb8] sm:$0xff]  ;;  %v1593_v28 = vld [vmem:[#allocation2 + $0x60] sm:$0xff] }
 0x234   : > { %2554 = vst [vmem:[%s2915_s15 + $0x8] sm:$0xff] %v2482_v11   ;;  %v2497_v22 = vpack.c.bf16 %v1590_v20, %v1589_v19  ;;  %v1591_v23 = vld [vmem:[#allocation2 + $0xe8] sm:$0xff]  ;;  %v3094_v29 = vld [vmem:[#allocation2 + $0xf0] sm:$0xff]  ;;  %v1719_v35 = vmul.f32 %v1586_v10, %v1586_v10  ;;  %v3101_v36 = vld [vmem:[#allocation2 + $0x78] sm:$0xff]  ;;  %v1720_v44 = vmul.f32 %v1587_v14, %v1587_v14  ;;  %v1721_v52 = vmul.f32 %v1588_v18, %v1588_v18 }
 0x235   : > { %v1679_v24 = vadd.f32 %v1678_v16, %v1584_v8  ;;  %v1747_v25 = vadd.f32 %v1746_v15, %v1716_v12  ;;  %2555 = vst [vmem:[%s2915_s15 + $0x10] sm:$0xff] %v2487_v13   ;;  %v2502_v30 = vpack.c.bf16 %v1592_v27, %v1591_v23  ;;  %v2507_v31 = vpack.c.bf16 %v3094_v29, %v1593_v28  ;;  %v3098_v32 = vld [vmem:[#allocation2 + $0x8] sm:$0xff]  ;;  %v3103_v37 = vld [vmem:[#allocation2 + $0x38] sm:$0xff]  ;;  %v3112_v41 = vld [vmem:[#allocation2 + $0x40] sm:$0xff] }
 0x236   : > { %2556 = vst [vmem:[%s2915_s15 + $0x18] sm:$0xff] %v2492_v21   ;;  %v3105_v38 = vld [vmem:[#allocation2 + $0x58] sm:$0xff]  ;;  %v2512_v39 = vpack.c.bf16 %v3101_v36, %v3098_v32  ;;  %v3115_v45 = vld [vmem:[#allocation2 + $0xc8] sm:$0xff]  ;;  %v3117_v46 = vld [vmem:[#allocation2 + $0xe0] sm:$0xff]  ;;  %v1722_v58 = vmul.f32 %v1589_v19, %v1589_v19  ;;  %v1723_v61 = vmul.f32 %v1590_v20, %v1590_v20  ;;  %v1724_v3 = vmul.f32 %v1591_v23, %v1591_v23 }
 0x237   : > { %v1748_v33 = vadd.f32 %v1747_v25, %v1717_v17  ;;  %v1680_v34 = vadd.f32 %v1679_v24, %v1585_v9  ;;  %2557 = vst [vmem:[%s2915_s15 + $0x20] sm:$0xff] %v2497_v22   ;;  %v2517_v40 = vpack.c.bf16 %v3105_v38, %v3103_v37  ;;  %v3119_v47 = vld [vmem:[#allocation2 + $0x90] sm:$0xff]  ;;  %v2522_v48 = vpack.c.bf16 %v3115_v45, %v3112_v41  ;;  %v3129_v54 = vld [vmem:[#allocation2 + $0xc0] sm:$0xff]  ;;  %v1605_v62 = vld [vmem:[#allocation2 + $0xa8] sm:$0xff] }
 0x238   : > { %2558 = vst [vmem:[%s2915_s15 + $0x28] sm:$0xff] %v2502_v30   ;;  %v2527_v49 = vpack.c.bf16 %v3119_v47, %v3117_v46  ;;  %v3127_v53 = vld [vmem:[#allocation2 + $0x70] sm:$0xff]  ;;  %v1725_v6 = vmul.f32 %v1592_v27, %v1592_v27  ;;  %v1608_v8 = vld [vmem:[#allocation2 + $0x28] sm:$0xff]  ;;  %v1726_v12 = vmul.f32 %v1593_v28, %v1593_v28  ;;  %v1727_v15 = vmul.f32 %v3094_v29, %v3094_v29  ;;  %v1609_v16 = vld [vmem:[#allocation2 + $0xa0] sm:$0xff] }
 0x239   : > { %v1681_v42 = vadd.f32 %v1680_v34, %v1586_v10  ;;  %v1749_v43 = vadd.f32 %v1748_v33, %v1718_v26  ;;  %2559 = vst [vmem:[%s2915_s15 + $0x30] sm:$0xff] %v2507_v31   ;;  %v2532_v55 = vpack.c.bf16 %v3129_v54, %v3127_v53  ;;  %v3136_v63 = vld [vmem:[#allocation2 + $0xd0] sm:$0xff]  ;;  %v1610_v17 = vld [vmem:[#allocation2 + $0xf8] sm:$0xff]  ;;  %v1728_v21 = vmul.f32 %v3098_v32, %v3098_v32  ;;  %v1611_v25 = vld [vmem:[#allocation2 + $0x20] sm:$0xff] }
 0x23a   : > { %2560 = vst [vmem:[%s2915_s15 + $0x38] sm:$0xff] %v2512_v39   ;;  %v2537_v0 = vpack.c.bf16 %v3136_v63, %v1605_v62  ;;  %v1607_v7 = vld [vmem:[#allocation2 + $0x10] sm:$0xff]  ;;  %v1729_v24 = vmul.f32 %v3101_v36, %v3101_v36  ;;  %v1612_v26 = vld [vmem:[#allocation2 + $0x98] sm:$0xff]  ;;  %v1731_v34 = vmul.f32 %v3105_v38, %v3105_v38  ;;  %v1732_v39 = vmul.f32 %v3112_v41, %v3112_v41 }
 0x23b   : > { %v1750_v50 = vadd.f32 %v1749_v43, %v1719_v35  ;;  %v1682_v51 = vadd.f32 %v1681_v42, %v1587_v14  ;;  %2561 = vst [vmem:[%s2915_s15 + $0x40] sm:$0xff] %v2517_v40   ;;  %v2542_v9 = vpack.c.bf16 %v1608_v8, %v1607_v7  ;;  %v1733_v42 = vmul.f32 %v3115_v45, %v3115_v45 }
 0x23c   : > { %2562 = vst [vmem:[%s2915_s15 + $0x48] sm:$0xff] %v2522_v48  }
 0x23d   : > { %v1683_v56 = vadd.f32 %v1682_v51, %v1588_v18  ;;  %v1751_v57 = vadd.f32 %v1750_v50, %v1720_v44  ;;  %2563 = vst [vmem:[%s2915_s15 + $0x50] sm:$0xff] %v2527_v49   ;;  %v2547_v18 = vpack.c.bf16 %v1610_v17, %v1609_v16 }
 0x23e   : > { %2564 = vst [vmem:[%s2915_s15 + $0x58] sm:$0xff] %v2532_v55  }
 0x23f   : > { %v1752_v59 = vadd.f32 %v1751_v57, %v1721_v52  ;;  %v1684_v60 = vadd.f32 %v1683_v56, %v1589_v19  ;;  %2565 = vst [vmem:[%s2915_s15 + $0x60] sm:$0xff] %v2537_v0   ;;  %v1740_v0 = vmul.f32 %v1607_v7, %v1607_v7 }
 0x240   : > { %2566 = vst [vmem:[%s2915_s15 + $0x68] sm:$0xff] %v2542_v9  }
 0x241   : > { %v1685_v1 = vadd.f32 %v1684_v60, %v1590_v20  ;;  %v1753_v2 = vadd.f32 %v1752_v59, %v1722_v58  ;;  %2567 = vst [vmem:[%s2915_s15 + $0x70] sm:$0xff] %v2547_v18   ;;  %v1738_v58 = vmul.f32 %v1605_v62, %v1605_v62  ;;  %v1739_v60 = vmul.f32 %v3136_v63, %v3136_v63 }
 0x243   : > { %v1754_v4 = vadd.f32 %v1753_v2, %v1723_v61  ;;  %v1686_v5 = vadd.f32 %v1685_v1, %v1591_v23 }
 0x245   : > { %v1687_v10 = vadd.f32 %v1686_v5, %v1592_v27  ;;  %v1755_v11 = vadd.f32 %v1754_v4, %v1724_v3  ;;  %v2552_v27 = vpack.c.bf16 %v1612_v26, %v1611_v25  ;;  %v1741_v3 = vmul.f32 %v1608_v8, %v1608_v8 }
 0x246   : > { %v1742_v5 = vmul.f32 %v1609_v16, %v1609_v16 }
 0x247   : > { %v1756_v13 = vadd.f32 %v1755_v11, %v1725_v6  ;;  %v1688_v14 = vadd.f32 %v1687_v10, %v1593_v28  ;;  %2568 = vst [vmem:[%s2915_s15 + $0x78] sm:$0xff] %v2552_v27  }
 0x249   : > { %v1689_v19 = vadd.f32 %v1688_v14, %v3094_v29  ;;  %v1757_v20 = vadd.f32 %v1756_v13, %v1726_v12  ;;  %v1730_v29 = vmul.f32 %v3103_v37, %v3103_v37  ;;  %v1744_v12 = vmul.f32 %v1611_v25, %v1611_v25 }
 0x24a   : > { %v1745_v14 = vmul.f32 %v1612_v26, %v1612_v26 }
 0x24b   : > { %v1758_v22 = vadd.f32 %v1757_v20, %v1727_v15  ;;  %v1690_v23 = vadd.f32 %v1689_v19, %v3098_v32 }
 0x24d   : > { %v1691_v28 = vadd.f32 %v1690_v23, %v3101_v36  ;;  %v1759_v30 = vadd.f32 %v1758_v22, %v1728_v21 }
 0x24f   : > { %v1760_v31 = vadd.f32 %v1759_v30, %v1729_v24  ;;  %v1692_v33 = vadd.f32 %v1691_v28, %v3103_v37  ;;  %v1734_v37 = vmul.f32 %v3117_v46, %v3117_v46 }
 0x251   : > { %v1693_v32 = vadd.f32 %v1692_v33, %v3105_v38  ;;  %v1761_v35 = vadd.f32 %v1760_v31, %v1730_v29  ;;  %v1735_v38 = vmul.f32 %v3119_v47, %v3119_v47 }
 0x253   : > { %v1762_v40 = vadd.f32 %v1761_v35, %v1731_v34  ;;  %v1694_v36 = vadd.f32 %v1693_v32, %v3112_v41  ;;  %v1736_v41 = vmul.f32 %v3127_v53, %v3127_v53 }
 0x255   : > { %v1695_v43 = vadd.f32 %v1694_v36, %v3115_v45  ;;  %v1763_v44 = vadd.f32 %v1762_v40, %v1732_v39  ;;  %v1737_v45 = vmul.f32 %v3129_v54, %v3129_v54 }
 0x257   : > { %v1764_v48 = vadd.f32 %v1763_v44, %v1733_v42  ;;  %v1696_v49 = vadd.f32 %v1695_v43, %v3117_v46 }
 0x259   : > { %v1697_v50 = vadd.f32 %v1696_v49, %v3119_v47  ;;  %v1765_v51 = vadd.f32 %v1764_v48, %v1734_v37 }
 0x25b   : > { %v1766_v52 = vadd.f32 %v1765_v51, %v1735_v38  ;;  %v1698_v55 = vadd.f32 %v1697_v50, %v3127_v53 }
 0x25d   : > { %v1699_v56 = vadd.f32 %v1698_v55, %v3129_v54  ;;  %v1767_v57 = vadd.f32 %v1766_v52, %v1736_v41  ;;  %v1743_v54 = vmul.f32 %v1610_v17, %v1610_v17 }
 0x25f   : > { %v1768_v46 = vadd.f32 %v1767_v57, %v1737_v45  ;;  %v1700_v59 = vadd.f32 %v1699_v56, %v1605_v62 }
 0x261   : > { %v1701_v47 = vadd.f32 %v1700_v59, %v3136_v63  ;;  %v1769_v61 = vadd.f32 %v1768_v46, %v1738_v58 }
 0x263   : > { %v1770_v1 = vadd.f32 %v1769_v61, %v1739_v60  ;;  %v1702_v2 = vadd.f32 %v1701_v47, %v1607_v7 }
 0x265   : > { %v1703_v53 = vadd.f32 %v1702_v2, %v1608_v8  ;;  %v1771_v4 = vadd.f32 %v1770_v1, %v1740_v0 }
 0x267   : > { %v1772_v6 = vadd.f32 %v1771_v4, %v1741_v3  ;;  %v1704_v9 = vadd.f32 %v1703_v53, %v1609_v16 }
 0x269   : > { %v1705_v10 = vadd.f32 %v1704_v9, %v1610_v17  ;;  %v1773_v11 = vadd.f32 %v1772_v6, %v1742_v5 }
 0x26b   : > { %v1774_v62 = vadd.f32 %v1773_v11, %v1743_v54  ;;  %v1706_v13 = vadd.f32 %v1705_v10, %v1611_v25 }
 0x26d   : > { %v1707_v15 = vadd.f32 %v1706_v13, %v1612_v26  ;;  %v1775_v63 = vadd.f32 %v1774_v62, %v1744_v12 }
 0x26f   : > { %v1708_v18 = vrot.slane %v1707_v15, 4  ;;  %v1776_v19 = vadd.f32 %v1775_v63, %v1745_v14 }
 0x271   : > { %v1709_v7 = vadd.f32 %v1708_v18, %v1707_v15  ;;  %v1777_v20 = vrot.slane %v1776_v19, 4 }
 0x273   : > { %v1710_v8 = vrot.slane %v1709_v7, 2  ;;  %v1778_v21 = vadd.f32 %v1777_v20, %v1776_v19 }
 0x275   : > { %v1711_v22 = vadd.f32 %v1710_v8, %v1709_v7  ;;  %v1779_v23 = vrot.slane %v1778_v21, 2 }
 0x277   : > { %v1712_v16 = vrot.slane %v1711_v22, 1  ;;  %v1780_v24 = vadd.f32 %v1779_v23, %v1778_v21 }
 0x279   : > { %v1713_v17 = vadd.f32 %v1712_v16, %v1711_v22  ;;  %v1781_v27 = vrot.slane %v1780_v24, 1 }
 0x27b   : > { %1783 = vst [vmem:[%s2920_s11] sm:$0xff] %v1713_v17  ;;  %v1782_v28 = vadd.f32 %v1781_v27, %v1780_v24 }
 0x27d   : > { %1784 = vst [vmem:[%s2925_s14] sm:$0xff] %v1782_v28 }
 0x27e PF: > { %s15_s21 = sadd.s32 1, %s2680_s21   ;;  %s3207_s15 = smov %s2660_s16 }
 0x27f   : > { %p12_p1 = scmp.ge.s32.totalorder %s15_s21, 6   ;;  %s3208_s16 = smov %s2759_s28 }
 0x280   : > { %s3209_s17 = smov %s2672_s19  ;;  %s3210_s18 = smov %s2676_s20 }
 0x281   : > { %s3211_s19 = smov %s3214_s22  ;;  %s3212_s20 = smov %s3218_s23 }
 0x282   :  { %14 = sbr.rel (!%p12_p1) target bundleno = 4 (0x4), region = 121 }

// kernel: discriminator_forward.11
= control target key start
LH: loop header
LB: loop body
LE: loop exit
PB: predicated region body
PF: predicated region fallthrough
CT: control target
= control target key end

     0   :  { %s2887_s0 = inlined_call_operand.vmem [shape: bf16[128,2048], index: 0, kind: input, shape index: {}]   ;;  %s2888_s1 = inlined_call_operand.vmem [shape: bf16[2048,256], index: 1, kind: input, shape index: {}]   ;;  %s2889_s2 = inlined_call_operand.vmem [shape: bf16[128,256], index: 2, kind: output, shape index: {0}]   ;;  %s2890_s3 = inlined_call_operand.vmem [shape: f32[8,256], index: 3, kind: output, shape index: {1}]   ;;  %s2891_s4 = inlined_call_operand.vmem [shape: f32[8,256], index: 4, kind: output, shape index: {2}]  }
   0x1   :  { %2896 = sst [smem:[#allocation10_spill]] %s2887_s0 }
   0x2   :  { %2897 = sst [smem:[#allocation11_spill]] %s2888_s1 }
   0x3   :  { %s2387_s15 = smov 0   ;;  %s2389_s16 = smov 0  }
   0x4   :  { %s2391_s17 = smov 0   ;;  %s2393_s18 = smov 0  }
   0x5   :  { %s2395_s19 = smov 0   ;;  %s2397_s20 = smov 0  }
   0x6   :  { %s2399_s21 = smov 0   ;;  %s2401_s22 = smov 0  }
   0x7   :  { %s2403_s23 = smov 0   ;;  %s2405_s24 = smov 0  }
   0x8   :  { %s2407_s25 = smov 0  }
   0x9 LB: > { %2898 = sst [smem:[#allocation6_spill]] %s2351_s23  ;;  %s1792_s26 = sadd.s32 4294967295, %s2359_s25   ;;  %s2359_s25 = sphi %s2407_s25, %s15_s25   ;;  %s2355_s24 = sphi %s2405_s24, %s2910_s24   ;;  %s2351_s23 = sphi %s2403_s23, %s2909_s23   ;;  %s2347_s22 = sphi %s2401_s22, %s2908_s22   ;;  %s2343_s21 = sphi %s2399_s21, %s2907_s21   ;;  %s2339_s20 = sphi %s2397_s20, %s2916_s20   ;;  %s2335_s19 = sphi %s2395_s19, %s2915_s19   ;;  %s2331_s18 = sphi %s2393_s18, %s2914_s18   ;;  %s2327_s17 = sphi %s2391_s17, %s2913_s17   ;;  %s2323_s16 = sphi %s2389_s16, %s2912_s16   ;;  %s2319_s15 = sphi %s2387_s15, %s2911_s15  }
   0xa   : > { %2899 = sst [smem:[#allocation7_spill]] %s2355_s24  ;;  %s27_s27 = sadd.s32 1, %s2351_s23 }
   0xb   : > { %p28_p0 = scmp.ge.s32.totalorder %s27_s27, 4  ;;  %s30_s28 = sadd.s32 1, %s2355_s24 }
   0xc   : > { %s43_s29 = sadd.s32 1, %s2339_s20  ;;  %p50_p1 = scmp.ne.s32.totalorder %s2339_s20, %s2335_s19 }
   0xd   : > { %s2918_s27 = smov (%p28_p0, %s27_s27), 0  ;;  %s2920_s28 = smov (!%p28_p0, %s30_s28), %s2355_s24 }
   0xe   : > { %2900 = sst [smem:[#allocation8_spill]] %s2918_s27  ;;  %s39_s30 = ssub.s32 %s2351_s23, %s2918_s27 }
   0xf   : > { %p51_p2 = scmp.eq.s32.totalorder %s2359_s25, 0  ;;  %p32_p3 = scmp.ge.s32.totalorder %s2920_s28, 2 }
  0x10   : > { %p41_p4 = scmp.eq.s32.totalorder %s39_s30, 0  ;;  %s71_s6 = sadd.s32 1, %s2331_s18 }
  0x11   : > { %p2454_p5 = por %p51_p2, %p50_p1  ;;  %s2922_s28 = smov (%p32_p3, %s2920_s28), 0 }
  0x12   : > { %2902 = sst [smem:[#allocation9_spill]] %s2922_s28  ;;  %s67_s8 = ssub.s32 %s2355_s24, %s2922_s28 }
  0x13   : > { %s2462_s7 = scalar_select %p41_p4, %s2339_s20, %s43_s29  }
  0x14   : > { %p78_p6 = scmp.ne.s32.totalorder %s2331_s18, %s2327_s17  ;;  %s68_s9 = sor.u32 %s67_s8, %s39_s30 }
  0x15   : > { %p97_p7 = scmp.eq.s32.totalorder %s67_s8, 0  ;;  %p69_p8 = scmp.eq.s32.totalorder %s68_s9, 0 }
  0x16   : > { %p2468_p9 = por %p78_p6, %p51_p2  ;;  %s99_s11 = sadd.s32 1, %s2323_s16 }
  0x17   : > { %p109_p10 = scmp.ne.s32.totalorder %s2323_s16, %s2319_s15  ;;  %p110_p11 = scmp.eq.s32.totalorder %s1792_s26, 7 }
  0x18   : > { %s2476_s12 = scalar_select %p69_p8, %s2331_s18, %s71_s6  }
  0x19   : > { %s2479_s13 = scalar_select %p97_p7, %s2323_s16, %s99_s11  }
  0x1a   : > { %p2481_p12 = por %p110_p11, %p109_p10  ;;  %p1795_p13 = scmp.ge.s32.totalorder %s2359_s25, 8 }
  0x1c   : > { %188 = sbr.rel (%p1795_p13) target bundleno = 149 (0x95), region = 16 }
  0x21   : > { %191 = sbr.rel (!%p2454_p5) target bundleno = 75 (0x4b), region = 20  ;;  %s193_s29 = sand.u32 (%p2454_p5), 1, %s2339_s20  }
  0x22   : > { %s2071_s30 = sshll.u32 (%p2454_p5), %s2351_s23, 4  ;;  %s1796_s8 = sshll.u32 (%p2454_p5), %s193_s29, 8 }
  0x23   : > { %s2905_s0 = sld [smem:[#allocation10_spill]] (%p2454_p5)  ;;  %s2498_s26 = scalar_lea.vmem (%p2454_p5), [#allocation3], %s1796_s8 }
  0x29   : > { %s2493_s11 = scalar_lea.vmem %s2905_s0, %s2071_s30 }
  0x2a   : > { %v214_v0 = vld [vmem:[%s2493_s11] sm:$0xff]  ;;  %v216_v1 = vld [vmem:[%s2493_s11 + $0x8] sm:$0xff] }
  0x2b   : > { %v218_v2 = vld [vmem:[%s2493_s11 + $0x40] sm:$0xff]  ;;  %215 = vst [vmem:[%s2498_s26] sm:$0xff] %v214_v0  ;;  %v220_v3 = vld [vmem:[%s2493_s11 + $0x48] sm:$0xff] }
  0x2c   : > { %217 = vst [vmem:[%s2498_s26 + $0x8] sm:$0xff] %v216_v1  ;;  %v222_v4 = vld [vmem:[%s2493_s11 + $0x80] sm:$0xff]  ;;  %v224_v5 = vld [vmem:[%s2493_s11 + $0x88] sm:$0xff] }
  0x2d   : > { %219 = vst [vmem:[%s2498_s26 + $0x10] sm:$0xff] %v218_v2  ;;  %v226_v6 = vld [vmem:[%s2493_s11 + $0xc0] sm:$0xff]  ;;  %v228_v7 = vld [vmem:[%s2493_s11 + $0xc8] sm:$0xff] }
  0x2e   : > { %221 = vst [vmem:[%s2498_s26 + $0x18] sm:$0xff] %v220_v3  ;;  %v230_v8 = vld [vmem:[%s2493_s11 + $0x100] sm:$0xff]  ;;  %v232_v9 = vld [vmem:[%s2493_s11 + $0x108] sm:$0xff] }
  0x2f   : > { %223 = vst [vmem:[%s2498_s26 + $0x20] sm:$0xff] %v222_v4  ;;  %v234_v10 = vld [vmem:[%s2493_s11 + $0x140] sm:$0xff]  ;;  %v236_v11 = vld [vmem:[%s2493_s11 + $0x148] sm:$0xff] }
  0x30   : > { %225 = vst [vmem:[%s2498_s26 + $0x28] sm:$0xff] %v224_v5  ;;  %v238_v12 = vld [vmem:[%s2493_s11 + $0x180] sm:$0xff]  ;;  %v240_v13 = vld [vmem:[%s2493_s11 + $0x188] sm:$0xff] }
  0x31   : > { %227 = vst [vmem:[%s2498_s26 + $0x30] sm:$0xff] %v226_v6  ;;  %v242_v14 = vld [vmem:[%s2493_s11 + $0x1c0] sm:$0xff]  ;;  %v244_v15 = vld [vmem:[%s2493_s11 + $0x1c8] sm:$0xff] }
  0x32   : > { %229 = vst [vmem:[%s2498_s26 + $0x38] sm:$0xff] %v228_v7  ;;  %v246_v16 = vld [vmem:[%s2493_s11 + $0x200] sm:$0xff]  ;;  %v248_v17 = vld [vmem:[%s2493_s11 + $0x208] sm:$0xff] }
  0x33   : > { %231 = vst [vmem:[%s2498_s26 + $0x40] sm:$0xff] %v230_v8  ;;  %v250_v18 = vld [vmem:[%s2493_s11 + $0x240] sm:$0xff]  ;;  %v252_v19 = vld [vmem:[%s2493_s11 + $0x248] sm:$0xff] }
  0x34   : > { %233 = vst [vmem:[%s2498_s26 + $0x48] sm:$0xff] %v232_v9  ;;  %v254_v20 = vld [vmem:[%s2493_s11 + $0x280] sm:$0xff]  ;;  %v256_v21 = vld [vmem:[%s2493_s11 + $0x288] sm:$0xff] }
  0x35   : > { %235 = vst [vmem:[%s2498_s26 + $0x50] sm:$0xff] %v234_v10  ;;  %v258_v22 = vld [vmem:[%s2493_s11 + $0x2c0] sm:$0xff]  ;;  %v260_v23 = vld [vmem:[%s2493_s11 + $0x2c8] sm:$0xff] }
  0x36   : > { %237 = vst [vmem:[%s2498_s26 + $0x58] sm:$0xff] %v236_v11  ;;  %v262_v24 = vld [vmem:[%s2493_s11 + $0x300] sm:$0xff]  ;;  %v264_v25 = vld [vmem:[%s2493_s11 + $0x308] sm:$0xff] }
  0x37   : > { %239 = vst [vmem:[%s2498_s26 + $0x60] sm:$0xff] %v238_v12  ;;  %v266_v26 = vld [vmem:[%s2493_s11 + $0x340] sm:$0xff]  ;;  %v268_v27 = vld [vmem:[%s2493_s11 + $0x348] sm:$0xff] }
  0x38   : > { %241 = vst [vmem:[%s2498_s26 + $0x68] sm:$0xff] %v240_v13  ;;  %v270_v28 = vld [vmem:[%s2493_s11 + $0x380] sm:$0xff]  ;;  %v272_v29 = vld [vmem:[%s2493_s11 + $0x388] sm:$0xff] }
  0x39   : > { %243 = vst [vmem:[%s2498_s26 + $0x70] sm:$0xff] %v242_v14  ;;  %v274_v30 = vld [vmem:[%s2493_s11 + $0x3c0] sm:$0xff]  ;;  %v276_v31 = vld [vmem:[%s2493_s11 + $0x3c8] sm:$0xff] }
  0x3a   : > { %245 = vst [vmem:[%s2498_s26 + $0x78] sm:$0xff] %v244_v15 }
  0x3b   : > { %247 = vst [vmem:[%s2498_s26 + $0x80] sm:$0xff] %v246_v16 }
  0x3c   : > { %249 = vst [vmem:[%s2498_s26 + $0x88] sm:$0xff] %v248_v17 }
  0x3d   : > { %251 = vst [vmem:[%s2498_s26 + $0x90] sm:$0xff] %v250_v18 }
  0x3e   : > { %253 = vst [vmem:[%s2498_s26 + $0x98] sm:$0xff] %v252_v19 }
  0x3f   : > { %255 = vst [vmem:[%s2498_s26 + $0xa0] sm:$0xff] %v254_v20 }
  0x40   : > { %257 = vst [vmem:[%s2498_s26 + $0xa8] sm:$0xff] %v256_v21 }
  0x41   : > { %259 = vst [vmem:[%s2498_s26 + $0xb0] sm:$0xff] %v258_v22 }
  0x42   : > { %261 = vst [vmem:[%s2498_s26 + $0xb8] sm:$0xff] %v260_v23 }
  0x43   : > { %263 = vst [vmem:[%s2498_s26 + $0xc0] sm:$0xff] %v262_v24 }
  0x44   : > { %265 = vst [vmem:[%s2498_s26 + $0xc8] sm:$0xff] %v264_v25 }
  0x45   : > { %267 = vst [vmem:[%s2498_s26 + $0xd0] sm:$0xff] %v266_v26 }
  0x46   : > { %269 = vst [vmem:[%s2498_s26 + $0xd8] sm:$0xff] %v268_v27 }
  0x47   : > { %271 = vst [vmem:[%s2498_s26 + $0xe0] sm:$0xff] %v270_v28 }
  0x48   : > { %273 = vst [vmem:[%s2498_s26 + $0xe8] sm:$0xff] %v272_v29 }
  0x49   : > { %275 = vst [vmem:[%s2498_s26 + $0xf0] sm:$0xff] %v274_v30 }
  0x4a   : > { %277 = vst [vmem:[%s2498_s26 + $0xf8] sm:$0xff] %v276_v31 }
  0x4b PF: > { %283 = sbr.rel (!%p2468_p9) target bundleno = 149 (0x95), region = 43  ;;  %s285_s5 = sand.u32 (%p2468_p9), 1, %s2331_s18  }
  0x4c   : > { %s2072_s29 = sshll.u32 (%p2468_p9), %s2351_s23, 7  ;;  %s1799_s30 = sshll.u32 (%p2468_p9), %s285_s5, 8 }
  0x4d   : > { %s290_s8 = sadd.s32 (%p2468_p9), %s2355_s24, %s2072_s29  ;;  %s2906_s1 = sld [smem:[#allocation11_spill]] (%p2468_p9) }
  0x4e   : > { %s1802_s6 = sshll.u32 (%p2468_p9), %s290_s8, 2  ;;  %s2574_s10 = scalar_lea.vmem (%p2468_p9), [#allocation4], %s1799_s30 }
  0x53   : > { %s2569_s28 = scalar_lea.vmem %s2906_s1, %s1802_s6 }
  0x54   : > { %v309_v32 = vld [vmem:[%s2569_s28] sm:$0xf]  ;;  %v311_v33 = vld [vmem:[%s2569_s28 + $0x8] sm:$0xf]  ;;  %v313_v34 = vld [vmem:[%s2569_s28 + $0x10] sm:$0xf] }
  0x55   : > { %310 = vst [vmem:[%s2574_s10] sm:$0xf] %v309_v32  ;;  %v315_v35 = vld [vmem:[%s2569_s28 + $0x18] sm:$0xf]  ;;  %v317_v36 = vld [vmem:[%s2569_s28 + $0x20] sm:$0xf] }
  0x56   : > { %312 = vst [vmem:[%s2574_s10 + $0x4] sm:$0xf] %v311_v33  ;;  %v319_v37 = vld [vmem:[%s2569_s28 + $0x28] sm:$0xf]  ;;  %v321_v38 = vld [vmem:[%s2569_s28 + $0x30] sm:$0xf] }
  0x57   : > { %314 = vst [vmem:[%s2574_s10 + $0x8] sm:$0xf] %v313_v34  ;;  %v323_v39 = vld [vmem:[%s2569_s28 + $0x38] sm:$0xf]  ;;  %v325_v40 = vld [vmem:[%s2569_s28 + $0x40] sm:$0xf] }
  0x58   : > { %316 = vst [vmem:[%s2574_s10 + $0xc] sm:$0xf] %v315_v35  ;;  %v327_v41 = vld [vmem:[%s2569_s28 + $0x48] sm:$0xf]  ;;  %v329_v42 = vld [vmem:[%s2569_s28 + $0x50] sm:$0xf] }
  0x59   : > { %318 = vst [vmem:[%s2574_s10 + $0x10] sm:$0xf] %v317_v36  ;;  %v331_v43 = vld [vmem:[%s2569_s28 + $0x58] sm:$0xf]  ;;  %v333_v44 = vld [vmem:[%s2569_s28 + $0x60] sm:$0xf] }
  0x5a   : > { %320 = vst [vmem:[%s2574_s10 + $0x14] sm:$0xf] %v319_v37  ;;  %v335_v45 = vld [vmem:[%s2569_s28 + $0x68] sm:$0xf]  ;;  %v337_v46 = vld [vmem:[%s2569_s28 + $0x70] sm:$0xf] }
  0x5b   : > { %322 = vst [vmem:[%s2574_s10 + $0x18] sm:$0xf] %v321_v38  ;;  %v339_v47 = vld [vmem:[%s2569_s28 + $0x78] sm:$0xf]  ;;  %v341_v48 = vld [vmem:[%s2569_s28 + $0x80] sm:$0xf] }
  0x5c   : > { %324 = vst [vmem:[%s2574_s10 + $0x1c] sm:$0xf] %v323_v39  ;;  %v343_v49 = vld [vmem:[%s2569_s28 + $0x88] sm:$0xf]  ;;  %v345_v50 = vld [vmem:[%s2569_s28 + $0x90] sm:$0xf] }
  0x5d   : > { %326 = vst [vmem:[%s2574_s10 + $0x20] sm:$0xf] %v325_v40  ;;  %v347_v51 = vld [vmem:[%s2569_s28 + $0x98] sm:$0xf]  ;;  %v349_v52 = vld [vmem:[%s2569_s28 + $0xa0] sm:$0xf] }
  0x5e   : > { %328 = vst [vmem:[%s2574_s10 + $0x24] sm:$0xf] %v327_v41  ;;  %v351_v53 = vld [vmem:[%s2569_s28 + $0xa8] sm:$0xf]  ;;  %v353_v54 = vld [vmem:[%s2569_s28 + $0xb0] sm:$0xf] }
  0x5f   : > { %330 = vst [vmem:[%s2574_s10 + $0x28] sm:$0xf] %v329_v42  ;;  %v355_v55 = vld [vmem:[%s2569_s28 + $0xb8] sm:$0xf]  ;;  %v357_v56 = vld [vmem:[%s2569_s28 + $0xc0] sm:$0xf] }
  0x60   : > { %332 = vst [vmem:[%s2574_s10 + $0x2c] sm:$0xf] %v331_v43  ;;  %v359_v57 = vld [vmem:[%s2569_s28 + $0xc8] sm:$0xf]  ;;  %v361_v58 = vld [vmem:[%s2569_s28 + $0xd0] sm:$0xf] }
  0x61   : > { %334 = vst [vmem:[%s2574_s10 + $0x30] sm:$0xf] %v333_v44  ;;  %v363_v59 = vld [vmem:[%s2569_s28 + $0xd8] sm:$0xf]  ;;  %v365_v60 = vld [vmem:[%s2569_s28 + $0xe0] sm:$0xf] }
  0x62   : > { %336 = vst [vmem:[%s2574_s10 + $0x34] sm:$0xf] %v335_v45  ;;  %v367_v61 = vld [vmem:[%s2569_s28 + $0xe8] sm:$0xf]  ;;  %v369_v62 = vld [vmem:[%s2569_s28 + $0xf0] sm:$0xf] }
  0x63   : > { %338 = vst [vmem:[%s2574_s10 + $0x38] sm:$0xf] %v337_v46  ;;  %v371_v63 = vld [vmem:[%s2569_s28 + $0xf8] sm:$0xf]  ;;  %v373_v0 = vld [vmem:[%s2569_s28 + $0x100] sm:$0xf] }
  0x64   : > { %340 = vst [vmem:[%s2574_s10 + $0x3c] sm:$0xf] %v339_v47  ;;  %v375_v1 = vld [vmem:[%s2569_s28 + $0x108] sm:$0xf]  ;;  %v377_v2 = vld [vmem:[%s2569_s28 + $0x110] sm:$0xf] }
  0x65   : > { %342 = vst [vmem:[%s2574_s10 + $0x40] sm:$0xf] %v341_v48  ;;  %v379_v3 = vld [vmem:[%s2569_s28 + $0x118] sm:$0xf]  ;;  %v381_v4 = vld [vmem:[%s2569_s28 + $0x120] sm:$0xf] }
  0x66   : > { %344 = vst [vmem:[%s2574_s10 + $0x44] sm:$0xf] %v343_v49  ;;  %v383_v5 = vld [vmem:[%s2569_s28 + $0x128] sm:$0xf]  ;;  %v385_v6 = vld [vmem:[%s2569_s28 + $0x130] sm:$0xf] }
  0x67   : > { %346 = vst [vmem:[%s2574_s10 + $0x48] sm:$0xf] %v345_v50  ;;  %v387_v7 = vld [vmem:[%s2569_s28 + $0x138] sm:$0xf]  ;;  %v389_v8 = vld [vmem:[%s2569_s28 + $0x140] sm:$0xf] }
  0x68   : > { %348 = vst [vmem:[%s2574_s10 + $0x4c] sm:$0xf] %v347_v51  ;;  %v391_v9 = vld [vmem:[%s2569_s28 + $0x148] sm:$0xf]  ;;  %v393_v10 = vld [vmem:[%s2569_s28 + $0x150] sm:$0xf] }
  0x69   : > { %350 = vst [vmem:[%s2574_s10 + $0x50] sm:$0xf] %v349_v52  ;;  %v395_v11 = vld [vmem:[%s2569_s28 + $0x158] sm:$0xf]  ;;  %v397_v12 = vld [vmem:[%s2569_s28 + $0x160] sm:$0xf] }
  0x6a   : > { %352 = vst [vmem:[%s2574_s10 + $0x54] sm:$0xf] %v351_v53  ;;  %v399_v13 = vld [vmem:[%s2569_s28 + $0x168] sm:$0xf]  ;;  %v401_v14 = vld [vmem:[%s2569_s28 + $0x170] sm:$0xf] }
  0x6b   : > { %354 = vst [vmem:[%s2574_s10 + $0x58] sm:$0xf] %v353_v54  ;;  %v403_v15 = vld [vmem:[%s2569_s28 + $0x178] sm:$0xf]  ;;  %v405_v16 = vld [vmem:[%s2569_s28 + $0x180] sm:$0xf] }
  0x6c   : > { %356 = vst [vmem:[%s2574_s10 + $0x5c] sm:$0xf] %v355_v55  ;;  %v407_v17 = vld [vmem:[%s2569_s28 + $0x188] sm:$0xf]  ;;  %v409_v18 = vld [vmem:[%s2569_s28 + $0x190] sm:$0xf] }
  0x6d   : > { %358 = vst [vmem:[%s2574_s10 + $0x60] sm:$0xf] %v357_v56  ;;  %v411_v19 = vld [vmem:[%s2569_s28 + $0x198] sm:$0xf]  ;;  %v413_v20 = vld [vmem:[%s2569_s28 + $0x1a0] sm:$0xf] }
  0x6e   : > { %360 = vst [vmem:[%s2574_s10 + $0x64] sm:$0xf] %v359_v57  ;;  %v415_v21 = vld [vmem:[%s2569_s28 + $0x1a8] sm:$0xf]  ;;  %v417_v22 = vld [vmem:[%s2569_s28 + $0x1b0] sm:$0xf] }
  0x6f   : > { %362 = vst [vmem:[%s2574_s10 + $0x68] sm:$0xf] %v361_v58  ;;  %v419_v23 = vld [vmem:[%s2569_s28 + $0x1b8] sm:$0xf]  ;;  %v421_v24 = vld [vmem:[%s2569_s28 + $0x1c0] sm:$0xf] }
  0x70   : > { %364 = vst [vmem:[%s2574_s10 + $0x6c] sm:$0xf] %v363_v59  ;;  %v423_v25 = vld [vmem:[%s2569_s28 + $0x1c8] sm:$0xf]  ;;  %v425_v26 = vld [vmem:[%s2569_s28 + $0x1d0] sm:$0xf] }
  0x71   : > { %366 = vst [vmem:[%s2574_s10 + $0x70] sm:$0xf] %v365_v60  ;;  %v427_v27 = vld [vmem:[%s2569_s28 + $0x1d8] sm:$0xf]  ;;  %v429_v28 = vld [vmem:[%s2569_s28 + $0x1e0] sm:$0xf] }
  0x72   : > { %368 = vst [vmem:[%s2574_s10 + $0x74] sm:$0xf] %v367_v61  ;;  %v431_v29 = vld [vmem:[%s2569_s28 + $0x1e8] sm:$0xf]  ;;  %v433_v30 = vld [vmem:[%s2569_s28 + $0x1f0] sm:$0xf] }
  0x73   : > { %370 = vst [vmem:[%s2574_s10 + $0x78] sm:$0xf] %v369_v62  ;;  %v435_v31 = vld [vmem:[%s2569_s28 + $0x1f8] sm:$0xf] }
  0x74   : > { %372 = vst [vmem:[%s2574_s10 + $0x7c] sm:$0xf] %v371_v63 }
  0x75   : > { %374 = vst [vmem:[%s2574_s10 + $0x80] sm:$0xf] %v373_v0 }
  0x76   : > { %376 = vst [vmem:[%s2574_s10 + $0x84] sm:$0xf] %v375_v1 }
  0x77   : > { %378 = vst [vmem:[%s2574_s10 + $0x88] sm:$0xf] %v377_v2 }
  0x78   : > { %380 = vst [vmem:[%s2574_s10 + $0x8c] sm:$0xf] %v379_v3 }
  0x79   : > { %382 = vst [vmem:[%s2574_s10 + $0x90] sm:$0xf] %v381_v4 }
  0x7a   : > { %384 = vst [vmem:[%s2574_s10 + $0x94] sm:$0xf] %v383_v5 }
  0x7b   : > { %386 = vst [vmem:[%s2574_s10 + $0x98] sm:$0xf] %v385_v6 }
  0x7c   : > { %388 = vst [vmem:[%s2574_s10 + $0x9c] sm:$0xf] %v387_v7 }
  0x7d   : > { %390 = vst [vmem:[%s2574_s10 + $0xa0] sm:$0xf] %v389_v8 }
  0x7e   : > { %392 = vst [vmem:[%s2574_s10 + $0xa4] sm:$0xf] %v391_v9 }
  0x7f   : > { %394 = vst [vmem:[%s2574_s10 + $0xa8] sm:$0xf] %v393_v10 }
  0x80   : > { %396 = vst [vmem:[%s2574_s10 + $0xac] sm:$0xf] %v395_v11 }
  0x81   : > { %398 = vst [vmem:[%s2574_s10 + $0xb0] sm:$0xf] %v397_v12 }
  0x82   : > { %400 = vst [vmem:[%s2574_s10 + $0xb4] sm:$0xf] %v399_v13 }
  0x83   : > { %402 = vst [vmem:[%s2574_s10 + $0xb8] sm:$0xf] %v401_v14 }
  0x84   : > { %404 = vst [vmem:[%s2574_s10 + $0xbc] sm:$0xf] %v403_v15 }
  0x85   : > { %406 = vst [vmem:[%s2574_s10 + $0xc0] sm:$0xf] %v405_v16 }
  0x86   : > { %408 = vst [vmem:[%s2574_s10 + $0xc4] sm:$0xf] %v407_v17 }
  0x87   : > { %410 = vst [vmem:[%s2574_s10 + $0xc8] sm:$0xf] %v409_v18 }
  0x88   : > { %412 = vst [vmem:[%s2574_s10 + $0xcc] sm:$0xf] %v411_v19 }
  0x89   : > { %414 = vst [vmem:[%s2574_s10 + $0xd0] sm:$0xf] %v413_v20 }
  0x8a   : > { %416 = vst [vmem:[%s2574_s10 + $0xd4] sm:$0xf] %v415_v21 }
  0x8b   : > { %418 = vst [vmem:[%s2574_s10 + $0xd8] sm:$0xf] %v417_v22 }
  0x8c   : > { %420 = vst [vmem:[%s2574_s10 + $0xdc] sm:$0xf] %v419_v23 }
  0x8d   : > { %422 = vst [vmem:[%s2574_s10 + $0xe0] sm:$0xf] %v421_v24 }
  0x8e   : > { %424 = vst [vmem:[%s2574_s10 + $0xe4] sm:$0xf] %v423_v25 }
  0x8f   : > { %426 = vst [vmem:[%s2574_s10 + $0xe8] sm:$0xf] %v425_v26 }
  0x90   : > { %428 = vst [vmem:[%s2574_s10 + $0xec] sm:$0xf] %v427_v27 }
  0x91   : > { %430 = vst [vmem:[%s2574_s10 + $0xf0] sm:$0xf] %v429_v28 }
  0x92   : > { %432 = vst [vmem:[%s2574_s10 + $0xf4] sm:$0xf] %v431_v29 }
  0x93   : > { %434 = vst [vmem:[%s2574_s10 + $0xf8] sm:$0xf] %v433_v30 }
  0x94   : > { %436 = vst [vmem:[%s2574_s10 + $0xfc] sm:$0xf] %v435_v31 }
  0x95 PF: > { %p1803_p0 = scmp.ge.s32.totalorder %s2359_s25, 1  ;;  %p587_p1 = scmp.lt.s32.totalorder %s2359_s25, 9 }
  0x97   : > { %p588_p2 = pnand %p1803_p0, %p587_p1 }
  0x98   : > { %s594_s0 = sand.u32 (!%p588_p2), 1, %s2335_s19   ;;  %s601_s11 = sand.u32 (!%p588_p2), 1, %s2327_s17  }
  0x99   : > { %591 = sbr.rel (%p588_p2) target bundleno = 538 (0x21a), region = 84  ;;  %s1804_s26 = sshll.u32 (!%p588_p2), %s594_s0, 8 }
  0x9a   : > { %s1805_s28 = sshll.u32 (!%p588_p2), %s601_s11, 8  ;;  %s622_s5 = sand.u32 (!%p588_p2), 1, %s2319_s15  }
  0x9b   : > { %p651_p3 = scmp.lt.s32.totalorder (!%p588_p2), %s2347_s22, 1  ;;  %s1806_s29 = sshll.u32 (!%p588_p2), %s622_s5, 6 }
  0x9c   : > { %s2718_s23 = scalar_lea.vmem (!%p588_p2), [#allocation3], %s1804_s26  ;;  %s2720_s17 = scalar_lea.vmem (!%p588_p2), [#allocation4], %s1805_s28 }
  0x9d   : > { %s2722_s19 = scalar_lea.vmem (!%p588_p2), [#allocation5], %s1806_s29  ;;  %p1809_p4 = scmp.ne.s32.totalorder (!%p588_p2), %s2343_s21, 0 }
  0x9e   : > { %s652_s30 = scalar_select %p651_p3, %s2347_s22, 1 }
  0x9f   : > { %668 = sbr.rel (%p1809_p4) target bundleno = 181 (0xb5), region = 96 }
  0xa0   : > { %s1807_s8 = sshll.u32 %s652_s30, 3 }
  0xa1   : > { %s2711_s10 = scalar_lea.vmem %s2890_s3, %s1807_s8  ;;  %s2716_s24 = scalar_lea.vmem %s2891_s4, %s1807_s8 }
  0xa4   : > { %v2361_v32 = vmov 0.0  }
  0xa5   : > { %669 = vst [vmem:[#allocation2 + $0x30] sm:$0xff] %v2361_v32 }
  0xa6   : > { %670 = vst [vmem:[#allocation2] sm:$0xff] %v2361_v32 }
  0xa7   : > { %671 = vst [vmem:[#allocation2 + $0x58] sm:$0xff] %v2361_v32 }
  0xa8   : > { %672 = vst [vmem:[#allocation2 + $0x18] sm:$0xff] %v2361_v32 }
  0xa9   : > { %673 = vst [vmem:[#allocation2 + $0x50] sm:$0xff] %v2361_v32 }
  0xaa   : > { %674 = vst [vmem:[#allocation2 + $0x68] sm:$0xff] %v2361_v32 }
  0xab   : > { %675 = vst [vmem:[#allocation2 + $0x8] sm:$0xff] %v2361_v32 }
  0xac   : > { %676 = vst [vmem:[#allocation2 + $0x48] sm:$0xff] %v2361_v32 }
  0xad   : > { %677 = vst [vmem:[#allocation2 + $0x40] sm:$0xff] %v2361_v32 }
  0xae   : > { %678 = vst [vmem:[#allocation2 + $0x20] sm:$0xff] %v2361_v32 }
  0xaf   : > { %679 = vst [vmem:[#allocation2 + $0x10] sm:$0xff] %v2361_v32 }
  0xb0   : > { %680 = vst [vmem:[#allocation2 + $0x38] sm:$0xff] %v2361_v32 }
  0xb1   : > { %681 = vst [vmem:[#allocation2 + $0x60] sm:$0xff] %v2361_v32 }
  0xb2   : > { %682 = vst [vmem:[#allocation2 + $0x70] sm:$0xff] %v2361_v32 }
  0xb3   : > { %683 = vst [vmem:[#allocation2 + $0x78] sm:$0xff] %v2361_v32 }
  0xb4   : > { %684 = vst [vmem:[#allocation2 + $0x28] sm:$0xff] %v2361_v32 }
  0xb5 PF: > { %v2112_v33 = vld [vmem:[%s2720_s17 + $0x38] sm:$0xff]  ;;  %v2111_v37 = vld [vmem:[%s2720_s17 + $0x30] sm:$0xff]  ;;  %v2110_v41 = vld [vmem:[%s2720_s17 + $0x28] sm:$0xff]  ;;  %p2066_p5 = scmp.ne.s32.totalorder %s2343_s21, 3 }
  0xb6   : > { %v2120_v34 = vld [vmem:[%s2720_s17 + $0x78] sm:$0xff]  ;;  %1149 = vmatpush.bf16.msra.mxu0 %v2112_v33  ;;  %v2119_v38 = vld [vmem:[%s2720_s17 + $0x70] sm:$0xff]  ;;  %v2118_v42 = vld [vmem:[%s2720_s17 + $0x68] sm:$0xff] }
  0xb7   : > { %v2128_v35 = vld [vmem:[%s2720_s17 + $0xb8] sm:$0xff]  ;;  %1198 = vmatpush.bf16.msra.mxu1 %v2120_v34  ;;  %v2127_v39 = vld [vmem:[%s2720_s17 + $0xb0] sm:$0xff]  ;;  %v2126_v43 = vld [vmem:[%s2720_s17 + $0xa8] sm:$0xff] }
  0xb8   : > { %v2136_v36 = vld [vmem:[%s2720_s17 + $0xf8] sm:$0xff]  ;;  %1247 = vmatpush.bf16.msra.mxu2 %v2128_v35  ;;  %v2135_v40 = vld [vmem:[%s2720_s17 + $0xf0] sm:$0xff]  ;;  %v2134_v44 = vld [vmem:[%s2720_s17 + $0xe8] sm:$0xff] }
  0xb9   : > { %1296 = vmatpush.bf16.msra.mxu3 %v2136_v36  ;;  %v2109_v45 = vld [vmem:[%s2720_s17 + $0x20] sm:$0xff]  ;;  %v2108_v49 = vld [vmem:[%s2720_s17 + $0x18] sm:$0xff]  ;;  %v2107_v53 = vld [vmem:[%s2720_s17 + $0x10] sm:$0xff] }
  0xba   : > { %1150 = vmatpush.bf16.msra.mxu0 %v2111_v37  ;;  %v2117_v46 = vld [vmem:[%s2720_s17 + $0x60] sm:$0xff]  ;;  %v2116_v50 = vld [vmem:[%s2720_s17 + $0x58] sm:$0xff]  ;;  %v2115_v54 = vld [vmem:[%s2720_s17 + $0x50] sm:$0xff] }
  0xbb   : > { %1199 = vmatpush.bf16.msra.mxu1 %v2119_v38  ;;  %v2125_v47 = vld [vmem:[%s2720_s17 + $0xa0] sm:$0xff]  ;;  %v2124_v51 = vld [vmem:[%s2720_s17 + $0x98] sm:$0xff]  ;;  %v2123_v55 = vld [vmem:[%s2720_s17 + $0x90] sm:$0xff] }
  0xbc   : > { %1248 = vmatpush.bf16.msra.mxu2 %v2127_v39  ;;  %v2133_v48 = vld [vmem:[%s2720_s17 + $0xe0] sm:$0xff]  ;;  %v2132_v52 = vld [vmem:[%s2720_s17 + $0xd8] sm:$0xff]  ;;  %v2131_v56 = vld [vmem:[%s2720_s17 + $0xd0] sm:$0xff] }
  0xbd   : > { %1297 = vmatpush.bf16.msra.mxu3 %v2135_v40  ;;  %v2106_v57 = vld [vmem:[%s2720_s17 + $0x8] sm:$0xff]  ;;  %v2105_v61 = vld [vmem:[%s2720_s17] sm:$0xff]  ;;  %v2075_v2 = vld [vmem:[%s2718_s23 + $0xc] sm:$0xf0] }
  0xbe   : > { %1151 = vmatpush.bf16.msra.mxu0 %v2110_v41  ;;  %v2114_v58 = vld [vmem:[%s2720_s17 + $0x48] sm:$0xff]  ;;  %v2113_v62 = vld [vmem:[%s2720_s17 + $0x40] sm:$0xff]  ;;  %v1814_v4 = vld [vmem:[%s2718_s23 + $0x10] sm:$0xf0] }
  0xbf   : > { %1200 = vmatpush.bf16.msra.mxu1 %v2118_v42  ;;  %v2122_v59 = vld [vmem:[%s2720_s17 + $0x88] sm:$0xff]  ;;  %v2121_v63 = vld [vmem:[%s2720_s17 + $0x80] sm:$0xff]  ;;  %v2076_v6 = vld [vmem:[%s2718_s23 + $0x14] sm:$0xf0] }
  0xc0   : > { %1249 = vmatpush.bf16.msra.mxu2 %v2126_v43  ;;  %v2130_v60 = vld [vmem:[%s2720_s17 + $0xc8] sm:$0xff]  ;;  %v2129_v0 = vld [vmem:[%s2720_s17 + $0xc0] sm:$0xff]  ;;  %v1822_v8 = vld [vmem:[%s2718_s23 + $0x18] sm:$0xf0] }
  0xc1   : > { %1298 = vmatpush.bf16.msra.mxu3 %v2134_v44  ;;  %v1812_v1 = vld [vmem:[%s2718_s23] sm:$0xf]  ;;  %v2073_v3 = vld [vmem:[%s2718_s23 + $0x4] sm:$0xf]  ;;  %v1820_v5 = vld [vmem:[%s2718_s23 + $0x8] sm:$0xf] }
  0xc2   : > { %1152 = vmatpush.bf16.msra.mxu0 %v2109_v45  ;;  %v2074_v7 = vld [vmem:[%s2718_s23 + $0xc] sm:$0xf]  ;;  %v1813_v9 = vor.u32 %v2075_v2, %v1812_v1  ;;  %v1817_v10 = vor.u32 %v2073_v3, %v1814_v4  ;;  %v1821_v11 = vor.u32 %v2076_v6, %v1820_v5  ;;  %v1828_v13 = vld [vmem:[%s2718_s23 + $0x20] sm:$0xf]  ;;  %v2079_v14 = vld [vmem:[%s2718_s23 + $0x2c] sm:$0xf0] }
  0xc3   : > { %1201 = vmatpush.bf16.msra.mxu1 %v2117_v46  ;;  %v1825_v12 = vor.u32 %v2074_v7, %v1822_v8  ;;  %v2077_v15 = vld [vmem:[%s2718_s23 + $0x24] sm:$0xf]  ;;  %v1830_v16 = vld [vmem:[%s2718_s23 + $0x30] sm:$0xf0]  ;;  %v1836_v17 = vld [vmem:[%s2718_s23 + $0x28] sm:$0xf]  ;;  %v1829_v21 = vor.u32 %v2079_v14, %v1828_v13 }
  0xc4   : > { %1250 = vmatpush.bf16.msra.mxu2 %v2125_v47  ;;  %v2080_v18 = vld [vmem:[%s2718_s23 + $0x34] sm:$0xf0]  ;;  %v2078_v19 = vld [vmem:[%s2718_s23 + $0x2c] sm:$0xf]  ;;  %v1838_v20 = vld [vmem:[%s2718_s23 + $0x38] sm:$0xf0]  ;;  %v1833_v22 = vor.u32 %v2077_v15, %v1830_v16 }
  0xc5   : > { %1299 = vmatpush.bf16.msra.mxu3 %v2133_v48  ;;  %v1837_v23 = vor.u32 %v2080_v18, %v1836_v17  ;;  %v1841_v24 = vor.u32 %v2078_v19, %v1838_v20  ;;  %v1844_v25 = vld [vmem:[%s2718_s23 + $0x40] sm:$0xf]  ;;  %v2083_v26 = vld [vmem:[%s2718_s23 + $0x4c] sm:$0xf0]  ;;  %v2081_v27 = vld [vmem:[%s2718_s23 + $0x44] sm:$0xf] }
  0xc6   : > { %1153 = vmatpush.bf16.msra.mxu0 %v2108_v49  ;;  %v1846_v28 = vld [vmem:[%s2718_s23 + $0x50] sm:$0xf0]  ;;  %v1852_v29 = vld [vmem:[%s2718_s23 + $0x48] sm:$0xf]  ;;  %v2084_v30 = vld [vmem:[%s2718_s23 + $0x54] sm:$0xf0]  ;;  %v1845_v33 = vor.u32 %v2083_v26, %v1844_v25 }
  0xc7   : > { %1202 = vmatpush.bf16.msra.mxu1 %v2116_v50  ;;  %v2082_v31 = vld [vmem:[%s2718_s23 + $0x4c] sm:$0xf]  ;;  %v1854_v32 = vld [vmem:[%s2718_s23 + $0x58] sm:$0xf0]  ;;  %v1849_v34 = vor.u32 %v2081_v27, %v1846_v28  ;;  %v1853_v35 = vor.u32 %v2084_v30, %v1852_v29  ;;  %v1860_v37 = vld [vmem:[%s2718_s23 + $0x60] sm:$0xf] }
  0xc8   : > { %1251 = vmatpush.bf16.msra.mxu2 %v2124_v51  ;;  %v1857_v36 = vor.u32 %v2082_v31, %v1854_v32  ;;  %v2087_v38 = vld [vmem:[%s2718_s23 + $0x6c] sm:$0xf0]  ;;  %v2085_v39 = vld [vmem:[%s2718_s23 + $0x64] sm:$0xf]  ;;  %v1862_v40 = vld [vmem:[%s2718_s23 + $0x70] sm:$0xf0] }
  0xc9   : > { %1300 = vmatpush.bf16.msra.mxu3 %v2132_v52  ;;  %v1868_v41 = vld [vmem:[%s2718_s23 + $0x68] sm:$0xf]  ;;  %v2088_v42 = vld [vmem:[%s2718_s23 + $0x74] sm:$0xf0]  ;;  %v2086_v43 = vld [vmem:[%s2718_s23 + $0x6c] sm:$0xf]  ;;  %v1861_v45 = vor.u32 %v2087_v38, %v1860_v37  ;;  %v1865_v46 = vor.u32 %v2085_v39, %v1862_v40 }
  0xca   : > { %1154 = vmatpush.bf16.msra.mxu0 %v2107_v53  ;;  %v1870_v44 = vld [vmem:[%s2718_s23 + $0x78] sm:$0xf0]  ;;  %v1869_v47 = vor.u32 %v2088_v42, %v1868_v41  ;;  %v1876_v49 = vld [vmem:[%s2718_s23 + $0x80] sm:$0xf]  ;;  %v2091_v50 = vld [vmem:[%s2718_s23 + $0x8c] sm:$0xf0] }
  0xcb   : > { %1203 = vmatpush.bf16.msra.mxu1 %v2115_v54  ;;  %v1873_v48 = vor.u32 %v2086_v43, %v1870_v44  ;;  %v2089_v51 = vld [vmem:[%s2718_s23 + $0x84] sm:$0xf]  ;;  %v1878_v52 = vld [vmem:[%s2718_s23 + $0x90] sm:$0xf0]  ;;  %v1884_v53 = vld [vmem:[%s2718_s23 + $0x88] sm:$0xf] }
  0xcc   : > { %1252 = vmatpush.bf16.msra.mxu2 %v2123_v55  ;;  %v2092_v54 = vld [vmem:[%s2718_s23 + $0x94] sm:$0xf0]  ;;  %v2090_v55 = vld [vmem:[%s2718_s23 + $0x8c] sm:$0xf]  ;;  %v1900_v1 = vld [vmem:[%s2718_s23 + $0xa8] sm:$0xf] }
  0xcd   : > { %1301 = vmatpush.bf16.msra.mxu3 %v2131_v56  ;;  %v1886_v56 = vld [vmem:[%s2718_s23 + $0x98] sm:$0xf0]  ;;  %v2096_v2 = vld [vmem:[%s2718_s23 + $0xb4] sm:$0xf0]  ;;  %v2094_v3 = vld [vmem:[%s2718_s23 + $0xac] sm:$0xf] }
  0xce   : > { %1155 = vmatpush.bf16.msra.mxu0 %v2106_v57  ;;  %v1877_v57 = vor.u32 %v2091_v50, %v1876_v49  ;;  %v1902_v4 = vld [vmem:[%s2718_s23 + $0xb8] sm:$0xf0]  ;;  %v1901_v7 = vor.u32 %v2096_v2, %v1900_v1  ;;  %v1916_v13 = vld [vmem:[%s2718_s23 + $0xc8] sm:$0xf]  ;;  %v2100_v14 = vld [vmem:[%s2718_s23 + $0xd4] sm:$0xf0] }
  0xcf   : > { %1204 = vmatpush.bf16.msra.mxu1 %v2114_v58  ;;  %v1881_v58 = vor.u32 %v2089_v51, %v1878_v52  ;;  %v1905_v8 = vor.u32 %v2094_v3, %v1902_v4  ;;  %v2098_v15 = vld [vmem:[%s2718_s23 + $0xcc] sm:$0xf]  ;;  %v1918_v16 = vld [vmem:[%s2718_s23 + $0xd8] sm:$0xf0]  ;;  %v1917_v19 = vor.u32 %v2100_v14, %v1916_v13  ;;  %v1932_v25 = vld [vmem:[%s2718_s23 + $0xe8] sm:$0xf] }
  0xd0   : > { %1253 = vmatpush.bf16.msra.mxu2 %v2122_v59  ;;  %v1885_v59 = vor.u32 %v2092_v54, %v1884_v53  ;;  %v1921_v20 = vor.u32 %v2098_v15, %v1918_v16  ;;  %v2104_v26 = vld [vmem:[%s2718_s23 + $0xf4] sm:$0xf0]  ;;  %v2102_v27 = vld [vmem:[%s2718_s23 + $0xec] sm:$0xf]  ;;  %v1934_v28 = vld [vmem:[%s2718_s23 + $0xf8] sm:$0xf0] }
  0xd1   : > { %1302 = vmatpush.bf16.msra.mxu3 %v2130_v60  ;;  %v1889_v60 = vor.u32 %v2090_v55, %v1886_v56  ;;  %v1933_v31 = vor.u32 %v2104_v26, %v1932_v25  ;;  %v1937_v32 = vor.u32 %v2102_v27, %v1934_v28  ;;  %v685_v41 = vld [vmem:[#allocation2 + $0x30] sm:$0xff]  ;;  %v686_v50 = vld [vmem:[#allocation2] sm:$0xff]  ;;  %v688_v4 = vld [vmem:[#allocation2 + $0x18] sm:$0xff] }
  0xd2   : > { %1156 = vmatpush.bf16.msra.mxu0 %v2105_v61  ;;  %v1892_v61 = vld [vmem:[%s2718_s23 + $0xa0] sm:$0xf]  ;;  %v689_v13 = vld [vmem:[#allocation2 + $0x50] sm:$0xff] }
  0xd3   : > { %1205 = vmatpush.bf16.msra.mxu1 %v2113_v62  ;;  %v2095_v62 = vld [vmem:[%s2718_s23 + $0xac] sm:$0xf0] }
  0xd4   : > { %1254 = vmatpush.bf16.msra.mxu2 %v2121_v63  ;;  %v2093_v63 = vld [vmem:[%s2718_s23 + $0xa4] sm:$0xf]  ;;  %v1893_v5 = vor.u32 %v2095_v62, %v1892_v61 }
  0xd5   : > { %1303 = vmatpush.bf16.msra.mxu3 %v2129_v0  ;;  %1157 = vmatmul.bf16.vlgmr.msra.gmra.mxu0 %v1813_v9  ;;  %v1894_v0 = vld [vmem:[%s2718_s23 + $0xb0] sm:$0xf0]  ;;  %v1908_v9 = vld [vmem:[%s2718_s23 + $0xc0] sm:$0xf] }
  0xd6   : > { %1206 = vmatmul.bf16.vlgmr.msra.gmra.mxu1 %v1817_v10  ;;  %v1897_v6 = vor.u32 %v2093_v63, %v1894_v0  ;;  %v2099_v10 = vld [vmem:[%s2718_s23 + $0xcc] sm:$0xf0] }
  0xd7   : > { %1255 = vmatmul.bf16.vlgmr.msra.gmra.mxu2 %v1821_v11  ;;  %v2097_v11 = vld [vmem:[%s2718_s23 + $0xc4] sm:$0xf]  ;;  %v1909_v17 = vor.u32 %v2099_v10, %v1908_v9 }
  0xd8   : > { %1304 = vmatmul.bf16.vlgmr.msra.gmra.mxu3 %v1825_v12  ;;  %v1910_v12 = vld [vmem:[%s2718_s23 + $0xd0] sm:$0xf0] }
  0xd9   : > { %v1913_v18 = vor.u32 %v2097_v11, %v1910_v12 }
  0xe5   : > { %1162 = vmatmul.bf16.gmra.mxu0 %v1829_v21  ;;  %v1924_v21 = vld [vmem:[%s2718_s23 + $0xe0] sm:$0xf] }
  0xe6   : > { %1211 = vmatmul.bf16.gmra.mxu1 %v1833_v22  ;;  %v2103_v22 = vld [vmem:[%s2718_s23 + $0xec] sm:$0xf0] }
  0xe7   : > { %1260 = vmatmul.bf16.gmra.mxu2 %v1837_v23  ;;  %v2101_v23 = vld [vmem:[%s2718_s23 + $0xe4] sm:$0xf]  ;;  %v1925_v29 = vor.u32 %v2103_v22, %v1924_v21  ;;  %v690_v22 = vld [vmem:[#allocation2 + $0x68] sm:$0xff] }
  0xe8   : > { %1309 = vmatmul.bf16.gmra.mxu3 %v1841_v24  ;;  %v1926_v24 = vld [vmem:[%s2718_s23 + $0xf0] sm:$0xf0] }
  0xe9   : > { %v1929_v30 = vor.u32 %v2101_v23, %v1926_v24 }
  0xf5   : > { %1167 = vmatmul.bf16.gmra.mxu0 %v1845_v33 }
  0xf6   : > { %1216 = vmatmul.bf16.gmra.mxu1 %v1849_v34 }
  0xf7   : > { %1265 = vmatmul.bf16.gmra.mxu2 %v1853_v35 }
  0xf8   : > { %1314 = vmatmul.bf16.gmra.mxu3 %v1857_v36 }
 0x105   : > { %1172 = vmatmul.bf16.gmra.mxu0 %v1861_v45 }
 0x106   : > { %1221 = vmatmul.bf16.gmra.mxu1 %v1865_v46 }
 0x107   : > { %1270 = vmatmul.bf16.gmra.mxu2 %v1869_v47 }
 0x108   : > { %1319 = vmatmul.bf16.gmra.mxu3 %v1873_v48 }
 0x115   : > { %1177 = vmatmul.bf16.gmra.mxu0 %v1877_v57 }
 0x116   : > { %1226 = vmatmul.bf16.gmra.mxu1 %v1881_v58 }
 0x117   : > { %1275 = vmatmul.bf16.gmra.mxu2 %v1885_v59  ;;  %v687_v59 = vld [vmem:[#allocation2 + $0x58] sm:$0xff] }
 0x118   : > { %1324 = vmatmul.bf16.gmra.mxu3 %v1889_v60 }
 0x125   : > { %1182 = vmatmul.bf16.gmra.mxu0 %v1893_v5 }
 0x126   : > { %1231 = vmatmul.bf16.gmra.mxu1 %v1897_v6 }
 0x127   : > { %1280 = vmatmul.bf16.gmra.mxu2 %v1901_v7 }
 0x128   : > { %1329 = vmatmul.bf16.gmra.mxu3 %v1905_v8 }
 0x135   : > { %1187 = vmatmul.bf16.gmra.mxu0 %v1909_v17 }
 0x136   : > { %1236 = vmatmul.bf16.gmra.mxu1 %v1913_v18 }
 0x137   : > { %1285 = vmatmul.bf16.gmra.mxu2 %v1917_v19 }
 0x138   : > { %1334 = vmatmul.bf16.gmra.mxu3 %v1921_v20 }
 0x145   : > { %1192 = vmatmul.bf16.gmra.mxu0 %v1925_v29 }
 0x146   : > { %1241 = vmatmul.bf16.gmra.mxu1 %v1929_v30 }
 0x147   : > { %1290 = vmatmul.bf16.gmra.mxu2 %v1933_v31  ;;  %v691_v31 = vld [vmem:[#allocation2 + $0x8] sm:$0xff] }
 0x148   : > { %1339 = vmatmul.bf16.gmra.mxu3 %v1937_v32 }
 0x152   : > { %v1158_v33 = vpop.f32.mrf.mxu0 }
 0x153   : > { %v1207_v34 = vpop.f32.mrf.mxu1 }
 0x154   : > { %v1208_v35 = vadd.f32 %v1207_v34, %v1158_v33 }
 0x15a   : > { %v1256_v36 = vpop.f32.mrf.mxu2  ;;  %v1160_v39 = vpop.f32.mrf.mxu0 }
 0x15b   : > { %v1305_v37 = vpop.f32.mrf.mxu3  ;;  %v1257_v38 = vadd.f32 %v1256_v36, %v1208_v35  ;;  %v1209_v40 = vpop.f32.mrf.mxu1 }
 0x15c   : > { %v1210_v44 = vadd.f32 %v1209_v40, %v1160_v39  ;;  %v692_v40 = vld [vmem:[#allocation2 + $0x48] sm:$0xff] }
 0x15d   : > { %v1306_v42 = vadd.f32 %v1305_v37, %v1257_v38 }
 0x15f   : > { %v1345_v43 = vadd.f32 %v1306_v42, %v685_v41 }
 0x161   : > { %1361 = vst [vmem:[#allocation2 + $0x30] sm:$0xff] %v1345_v43 }
 0x162   : > { %v1258_v45 = vpop.f32.mrf.mxu2  ;;  %v1163_v48 = vpop.f32.mrf.mxu0 }
 0x163   : > { %v1307_v46 = vpop.f32.mrf.mxu3  ;;  %v1259_v47 = vadd.f32 %v1258_v45, %v1210_v44  ;;  %v1212_v49 = vpop.f32.mrf.mxu1 }
 0x164   : > { %v1213_v53 = vadd.f32 %v1212_v49, %v1163_v48  ;;  %v693_v49 = vld [vmem:[#allocation2 + $0x40] sm:$0xff] }
 0x165   : > { %v1308_v51 = vadd.f32 %v1307_v46, %v1259_v47 }
 0x167   : > { %v1346_v52 = vadd.f32 %v1308_v51, %v686_v50 }
 0x169   : > { %1362 = vst [vmem:[#allocation2] sm:$0xff] %v1346_v52 }
 0x16a   : > { %v1261_v54 = vpop.f32.mrf.mxu2  ;;  %v1165_v57 = vpop.f32.mrf.mxu0 }
 0x16b   : > { %v1310_v55 = vpop.f32.mrf.mxu3  ;;  %v1262_v56 = vadd.f32 %v1261_v54, %v1213_v53  ;;  %v1214_v58 = vpop.f32.mrf.mxu1 }
 0x16c   : > { %v1215_v62 = vadd.f32 %v1214_v58, %v1165_v57  ;;  %v694_v58 = vld [vmem:[#allocation2 + $0x20] sm:$0xff] }
 0x16d   : > { %v1311_v60 = vadd.f32 %v1310_v55, %v1262_v56 }
 0x16f   : > { %v1347_v61 = vadd.f32 %v1311_v60, %v687_v59 }
 0x171   : > { %1363 = vst [vmem:[#allocation2 + $0x58] sm:$0xff] %v1347_v61 }
 0x172   : > { %v1263_v63 = vpop.f32.mrf.mxu2  ;;  %v1168_v2 = vpop.f32.mrf.mxu0 }
 0x173   : > { %v1312_v0 = vpop.f32.mrf.mxu3  ;;  %v1264_v1 = vadd.f32 %v1263_v63, %v1215_v62  ;;  %v1217_v3 = vpop.f32.mrf.mxu1 }
 0x174   : > { %v1218_v7 = vadd.f32 %v1217_v3, %v1168_v2  ;;  %v695_v3 = vld [vmem:[#allocation2 + $0x10] sm:$0xff] }
 0x175   : > { %v1313_v5 = vadd.f32 %v1312_v0, %v1264_v1 }
 0x177   : > { %v1348_v6 = vadd.f32 %v1313_v5, %v688_v4 }
 0x179   : > { %1364 = vst [vmem:[#allocation2 + $0x18] sm:$0xff] %v1348_v6 }
 0x17a   : > { %v1266_v8 = vpop.f32.mrf.mxu2  ;;  %v1170_v11 = vpop.f32.mrf.mxu0 }
 0x17b   : > { %v1315_v9 = vpop.f32.mrf.mxu3  ;;  %v1267_v10 = vadd.f32 %v1266_v8, %v1218_v7  ;;  %v1219_v12 = vpop.f32.mrf.mxu1 }
 0x17c   : > { %v1220_v16 = vadd.f32 %v1219_v12, %v1170_v11  ;;  %v696_v12 = vld [vmem:[#allocation2 + $0x38] sm:$0xff] }
 0x17d   : > { %v1316_v14 = vadd.f32 %v1315_v9, %v1267_v10 }
 0x17f   : > { %v1349_v15 = vadd.f32 %v1316_v14, %v689_v13 }
 0x181   : > { %1365 = vst [vmem:[#allocation2 + $0x50] sm:$0xff] %v1349_v15 }
 0x182   : > { %v1268_v17 = vpop.f32.mrf.mxu2  ;;  %v1173_v20 = vpop.f32.mrf.mxu0 }
 0x183   : > { %v1317_v18 = vpop.f32.mrf.mxu3  ;;  %v1269_v19 = vadd.f32 %v1268_v17, %v1220_v16  ;;  %v1222_v21 = vpop.f32.mrf.mxu1 }
 0x184   : > { %v1223_v25 = vadd.f32 %v1222_v21, %v1173_v20  ;;  %v697_v21 = vld [vmem:[#allocation2 + $0x60] sm:$0xff] }
 0x185   : > { %v1318_v23 = vadd.f32 %v1317_v18, %v1269_v19 }
 0x187   : > { %v1350_v24 = vadd.f32 %v1318_v23, %v690_v22 }
 0x189   : > { %1366 = vst [vmem:[#allocation2 + $0x68] sm:$0xff] %v1350_v24 }
 0x18a   : > { %v1271_v26 = vpop.f32.mrf.mxu2  ;;  %v1175_v29 = vpop.f32.mrf.mxu0 }
 0x18b   : > { %v1320_v27 = vpop.f32.mrf.mxu3  ;;  %v1272_v28 = vadd.f32 %v1271_v26, %v1223_v25  ;;  %v1224_v30 = vpop.f32.mrf.mxu1 }
 0x18c   : > { %v1225_v34 = vadd.f32 %v1224_v30, %v1175_v29 }
 0x18d   : > { %v1321_v32 = vadd.f32 %v1320_v27, %v1272_v28  ;;  %v698_v28 = vld [vmem:[#allocation2 + $0x70] sm:$0xff] }
 0x18f   : > { %v1351_v33 = vadd.f32 %v1321_v32, %v691_v31 }
 0x191   : > { %1367 = vst [vmem:[#allocation2 + $0x8] sm:$0xff] %v1351_v33 }
 0x192   : > { %v1273_v35 = vpop.f32.mrf.mxu2  ;;  %v1178_v38 = vpop.f32.mrf.mxu0 }
 0x193   : > { %v1322_v36 = vpop.f32.mrf.mxu3  ;;  %v1274_v37 = vadd.f32 %v1273_v35, %v1225_v34  ;;  %v1227_v39 = vpop.f32.mrf.mxu1 }
 0x194   : > { %v1228_v43 = vadd.f32 %v1227_v39, %v1178_v38 }
 0x195   : > { %v1323_v41 = vadd.f32 %v1322_v36, %v1274_v37  ;;  %v699_v37 = vld [vmem:[#allocation2 + $0x78] sm:$0xff] }
 0x197   : > { %v1352_v42 = vadd.f32 %v1323_v41, %v692_v40 }
 0x199   : > { %1368 = vst [vmem:[#allocation2 + $0x48] sm:$0xff] %v1352_v42 }
 0x19a   : > { %v1276_v44 = vpop.f32.mrf.mxu2  ;;  %v1180_v47 = vpop.f32.mrf.mxu0 }
 0x19b   : > { %v1325_v45 = vpop.f32.mrf.mxu3  ;;  %v1277_v46 = vadd.f32 %v1276_v44, %v1228_v43  ;;  %v1229_v48 = vpop.f32.mrf.mxu1 }
 0x19c   : > { %v1230_v52 = vadd.f32 %v1229_v48, %v1180_v47 }
 0x19d   : > { %v1326_v50 = vadd.f32 %v1325_v45, %v1277_v46  ;;  %v700_v45 = vld [vmem:[#allocation2 + $0x28] sm:$0xff] }
 0x19f   : > { %v1353_v51 = vadd.f32 %v1326_v50, %v693_v49 }
 0x1a1   : > { %1369 = vst [vmem:[#allocation2 + $0x40] sm:$0xff] %v1353_v51 }
 0x1a2   : > { %v1278_v53 = vpop.f32.mrf.mxu2  ;;  %v1183_v56 = vpop.f32.mrf.mxu0 }
 0x1a3   : > { %v1327_v54 = vpop.f32.mrf.mxu3  ;;  %v1279_v55 = vadd.f32 %v1278_v53, %v1230_v52  ;;  %v1232_v57 = vpop.f32.mrf.mxu1 }
 0x1a4   : > { %v1233_v61 = vadd.f32 %v1232_v57, %v1183_v56 }
 0x1a5   : > { %v1328_v59 = vadd.f32 %v1327_v54, %v1279_v55 }
 0x1a7   : > { %v1354_v60 = vadd.f32 %v1328_v59, %v694_v58 }
 0x1a9   : > { %1370 = vst [vmem:[#allocation2 + $0x20] sm:$0xff] %v1354_v60 }
 0x1aa   : > { %v1281_v62 = vpop.f32.mrf.mxu2  ;;  %v1185_v1 = vpop.f32.mrf.mxu0 }
 0x1ab   : > { %v1330_v63 = vpop.f32.mrf.mxu3  ;;  %v1282_v0 = vadd.f32 %v1281_v62, %v1233_v61  ;;  %v1234_v2 = vpop.f32.mrf.mxu1 }
 0x1ac   : > { %v1235_v6 = vadd.f32 %v1234_v2, %v1185_v1 }
 0x1ad   : > { %v1331_v4 = vadd.f32 %v1330_v63, %v1282_v0 }
 0x1af   : > { %v1355_v5 = vadd.f32 %v1331_v4, %v695_v3 }
 0x1b1   : > { %1371 = vst [vmem:[#allocation2 + $0x10] sm:$0xff] %v1355_v5 }
 0x1b2   : > { %v1283_v7 = vpop.f32.mrf.mxu2  ;;  %v1188_v10 = vpop.f32.mrf.mxu0 }
 0x1b3   : > { %v1332_v8 = vpop.f32.mrf.mxu3  ;;  %v1284_v9 = vadd.f32 %v1283_v7, %v1235_v6  ;;  %v1237_v11 = vpop.f32.mrf.mxu1 }
 0x1b4   : > { %v1238_v15 = vadd.f32 %v1237_v11, %v1188_v10 }
 0x1b5   : > { %v1333_v13 = vadd.f32 %v1332_v8, %v1284_v9 }
 0x1b7   : > { %v1356_v14 = vadd.f32 %v1333_v13, %v696_v12 }
 0x1b9   : > { %1372 = vst [vmem:[#allocation2 + $0x38] sm:$0xff] %v1356_v14 }
 0x1ba   : > { %v1286_v16 = vpop.f32.mrf.mxu2  ;;  %v1190_v19 = vpop.f32.mrf.mxu0 }
 0x1bb   : > { %v1335_v17 = vpop.f32.mrf.mxu3  ;;  %v1287_v18 = vadd.f32 %v1286_v16, %v1238_v15  ;;  %v1239_v20 = vpop.f32.mrf.mxu1 }
 0x1bc   : > { %v1240_v24 = vadd.f32 %v1239_v20, %v1190_v19 }
 0x1bd   : > { %v1336_v22 = vadd.f32 %v1335_v17, %v1287_v18 }
 0x1bf   : > { %v1357_v23 = vadd.f32 %v1336_v22, %v697_v21 }
 0x1c1   : > { %1373 = vst [vmem:[#allocation2 + $0x60] sm:$0xff] %v1357_v23 }
 0x1c2   : > { %v1288_v25 = vpop.f32.mrf.mxu2  ;;  %v1193_v29 = vpop.f32.mrf.mxu0 }
 0x1c3   : > { %v1337_v26 = vpop.f32.mrf.mxu3  ;;  %v1289_v27 = vadd.f32 %v1288_v25, %v1240_v24  ;;  %v1242_v30 = vpop.f32.mrf.mxu1 }
 0x1c4   : > { %v1243_v33 = vadd.f32 %v1242_v30, %v1193_v29 }
 0x1c5   : > { %v1338_v31 = vadd.f32 %v1337_v26, %v1289_v27 }
 0x1c7   : > { %v1358_v32 = vadd.f32 %v1338_v31, %v698_v28 }
 0x1c9   : > { %1374 = vst [vmem:[#allocation2 + $0x70] sm:$0xff] %v1358_v32 }
 0x1ca   : > { %v1291_v34 = vpop.f32.mrf.mxu2  ;;  %v1195_v39 = vpop.f32.mrf.mxu0 }
 0x1cb   : > { %v1340_v35 = vpop.f32.mrf.mxu3  ;;  %v1292_v36 = vadd.f32 %v1291_v34, %v1243_v33  ;;  %v1244_v40 = vpop.f32.mrf.mxu1 }
 0x1cc   : > { %v1245_v42 = vadd.f32 %v1244_v40, %v1195_v39 }
 0x1cd   : > { %v1341_v38 = vadd.f32 %v1340_v35, %v1292_v36 }
 0x1cf   : > { %v1359_v41 = vadd.f32 %v1341_v38, %v699_v37 }
 0x1d1   : > { %1375 = vst [vmem:[#allocation2 + $0x78] sm:$0xff] %v1359_v41 }
 0x1d2   : > { %v1293_v43 = vpop.f32.mrf.mxu2 }
 0x1d3   : > { %v1294_v44 = vadd.f32 %v1293_v43, %v1245_v42  ;;  %v1342_v46 = vpop.f32.mrf.mxu3 }
 0x1d5   : > { %v1343_v47 = vadd.f32 %v1342_v46, %v1294_v44  ;;  %1380 = sbr.rel (%p2066_p5) target bundleno = 520 (0x208), region = 100 }
 0x1d7   : > { %v1360_v48 = vadd.f32 %v1343_v47, %v700_v45 }
 0x1d9   : > { %1376 = vst [vmem:[#allocation2 + $0x28] sm:$0xff] %v1360_v48 }
 0x1da   : > { %v1381_v49 = vld [vmem:[#allocation2 + $0x30] sm:$0xff]  ;;  %v1382_v50 = vld [vmem:[#allocation2] sm:$0xff]  ;;  %v1383_v51 = vld [vmem:[#allocation2 + $0x58] sm:$0xff] }
 0x1db   : > { %v2140_v52 = vpack.c.bf16 %v1382_v50, %v1381_v49  ;;  %v1429_v53 = vadd.f32 %v1382_v50, %v1381_v49  ;;  %v1450_v54 = vmul.f32 %v1381_v49, %v1381_v49  ;;  %v1451_v55 = vmul.f32 %v1382_v50, %v1382_v50  ;;  %v1384_v56 = vld [vmem:[#allocation2 + $0x18] sm:$0xff]  ;;  %v1385_v57 = vld [vmem:[#allocation2 + $0x50] sm:$0xff]  ;;  %v1386_v58 = vld [vmem:[#allocation2 + $0x68] sm:$0xff] }
 0x1dc   : > { %v2145_v59 = vpack.c.bf16 %v1384_v56, %v1383_v51  ;;  %v1452_v60 = vmul.f32 %v1383_v51, %v1383_v51  ;;  %v2150_v61 = vpack.c.bf16 %v1386_v58, %v1385_v57  ;;  %v1387_v62 = vld [vmem:[#allocation2 + $0x8] sm:$0xff]  ;;  %v1453_v1 = vmul.f32 %v1384_v56, %v1384_v56  ;;  %v1389_v3 = vld [vmem:[#allocation2 + $0x40] sm:$0xff]  ;;  %v1391_v7 = vld [vmem:[#allocation2 + $0x10] sm:$0xff] }
 0x1dd   : > { %2141 = vst [vmem:[%s2722_s19] sm:$0xff] %v2140_v52   ;;  %v1466_v63 = vadd.f32 %v1451_v55, %v1450_v54  ;;  %v1430_v0 = vadd.f32 %v1429_v53, %v1383_v51  ;;  %v1388_v2 = vld [vmem:[#allocation2 + $0x48] sm:$0xff]  ;;  %v1390_v4 = vld [vmem:[#allocation2 + $0x20] sm:$0xff]  ;;  %v1454_v10 = vmul.f32 %v1385_v57, %v1385_v57  ;;  %v1392_v11 = vld [vmem:[#allocation2 + $0x38] sm:$0xff]  ;;  %v1455_v18 = vmul.f32 %v1386_v58, %v1386_v58 }
 0x1de   : > { %2177 = vst [vmem:[%s2722_s19 + $0x8] sm:$0xff] %v2145_v59   ;;  %v2155_v5 = vpack.c.bf16 %v1388_v2, %v1387_v62  ;;  %v2160_v6 = vpack.c.bf16 %v1390_v4, %v1389_v3  ;;  %v1393_v12 = vld [vmem:[#allocation2 + $0x60] sm:$0xff]  ;;  %v1394_v13 = vld [vmem:[#allocation2 + $0x70] sm:$0xff]  ;;  %v2165_v14 = vpack.c.bf16 %v1392_v11, %v1391_v7  ;;  %v1395_v19 = vld [vmem:[#allocation2 + $0x78] sm:$0xff]  ;;  %v1456_v24 = vmul.f32 %v1387_v62, %v1387_v62 }
 0x1df   : > { %v1431_v8 = vadd.f32 %v1430_v0, %v1384_v56  ;;  %v1467_v9 = vadd.f32 %v1466_v63, %v1452_v60  ;;  %2178 = vst [vmem:[%s2722_s19 + $0x10] sm:$0xff] %v2150_v61   ;;  %v2170_v15 = vpack.c.bf16 %v1394_v13, %v1393_v12  ;;  %v1457_v27 = vmul.f32 %v1388_v2, %v1388_v2 }
 0x1e0   : > { %2179 = vst [vmem:[%s2722_s19 + $0x18] sm:$0xff] %v2155_v5   ;;  %v1396_v20 = vld [vmem:[#allocation2 + $0x28] sm:$0xff]  ;;  %v1458_v30 = vmul.f32 %v1389_v3, %v1389_v3  ;;  %v1459_v33 = vmul.f32 %v1390_v4, %v1390_v4  ;;  %v1460_v36 = vmul.f32 %v1391_v7, %v1391_v7  ;;  %v1461_v39 = vmul.f32 %v1392_v11, %v1392_v11 }
 0x1e1   : > { %v1468_v16 = vadd.f32 %v1467_v9, %v1453_v1  ;;  %v1432_v17 = vadd.f32 %v1431_v8, %v1385_v57  ;;  %2180 = vst [vmem:[%s2722_s19 + $0x20] sm:$0xff] %v2160_v6   ;;  %v2175_v21 = vpack.c.bf16 %v1396_v20, %v1395_v19  ;;  %v1462_v42 = vmul.f32 %v1393_v12, %v1393_v12 }
 0x1e2   : > { %2181 = vst [vmem:[%s2722_s19 + $0x28] sm:$0xff] %v2165_v14   ;;  %v1463_v45 = vmul.f32 %v1394_v13, %v1394_v13  ;;  %v1464_v48 = vmul.f32 %v1395_v19, %v1395_v19  ;;  %v1465_v51 = vmul.f32 %v1396_v20, %v1396_v20 }
 0x1e3   : > { %v1433_v22 = vadd.f32 %v1432_v17, %v1386_v58  ;;  %v1469_v23 = vadd.f32 %v1468_v16, %v1454_v10  ;;  %2182 = vst [vmem:[%s2722_s19 + $0x30] sm:$0xff] %v2170_v15  }
 0x1e4   : > { %2183 = vst [vmem:[%s2722_s19 + $0x38] sm:$0xff] %v2175_v21  }
 0x1e5   : > { %v1470_v25 = vadd.f32 %v1469_v23, %v1455_v18  ;;  %v1434_v26 = vadd.f32 %v1433_v22, %v1387_v62 }
 0x1e7   : > { %v1435_v28 = vadd.f32 %v1434_v26, %v1388_v2  ;;  %v1471_v29 = vadd.f32 %v1470_v25, %v1456_v24 }
 0x1e9   : > { %v1472_v31 = vadd.f32 %v1471_v29, %v1457_v27  ;;  %v1436_v32 = vadd.f32 %v1435_v28, %v1389_v3 }
 0x1eb   : > { %v1437_v34 = vadd.f32 %v1436_v32, %v1390_v4  ;;  %v1473_v35 = vadd.f32 %v1472_v31, %v1458_v30 }
 0x1ed   : > { %v1474_v37 = vadd.f32 %v1473_v35, %v1459_v33  ;;  %v1438_v38 = vadd.f32 %v1437_v34, %v1391_v7 }
 0x1ef   : > { %v1439_v40 = vadd.f32 %v1438_v38, %v1392_v11  ;;  %v1475_v41 = vadd.f32 %v1474_v37, %v1460_v36 }
 0x1f1   : > { %v1476_v43 = vadd.f32 %v1475_v41, %v1461_v39  ;;  %v1440_v44 = vadd.f32 %v1439_v40, %v1393_v12 }
 0x1f3   : > { %v1441_v46 = vadd.f32 %v1440_v44, %v1394_v13  ;;  %v1477_v47 = vadd.f32 %v1476_v43, %v1462_v42 }
 0x1f5   : > { %v1478_v49 = vadd.f32 %v1477_v47, %v1463_v45  ;;  %v1442_v50 = vadd.f32 %v1441_v46, %v1395_v19 }
 0x1f7   : > { %v1443_v52 = vadd.f32 %v1442_v50, %v1396_v20  ;;  %v1479_v53 = vadd.f32 %v1478_v49, %v1464_v48 }
 0x1f9   : > { %v1444_v54 = vrot.slane %v1443_v52, 4  ;;  %v1480_v55 = vadd.f32 %v1479_v53, %v1465_v51 }
 0x1fb   : > { %v1445_v56 = vadd.f32 %v1444_v54, %v1443_v52  ;;  %v1481_v57 = vrot.slane %v1480_v55, 4 }
 0x1fd   : > { %v1446_v58 = vrot.slane %v1445_v56, 2  ;;  %v1482_v59 = vadd.f32 %v1481_v57, %v1480_v55 }
 0x1ff   : > { %v1447_v60 = vadd.f32 %v1446_v58, %v1445_v56  ;;  %v1483_v61 = vrot.slane %v1482_v59, 2 }
 0x201   : > { %v1448_v62 = vrot.slane %v1447_v60, 1  ;;  %v1484_v63 = vadd.f32 %v1483_v61, %v1482_v59 }
 0x203   : > { %v1449_v0 = vadd.f32 %v1448_v62, %v1447_v60  ;;  %v1485_v1 = vrot.slane %v1484_v63, 1 }
 0x205   : > { %1487 = vst [vmem:[%s2711_s10] sm:$0xff] %v1449_v0  ;;  %v1486_v2 = vadd.f32 %v1485_v1, %v1484_v63 }
 0x207   : > { %1488 = vst [vmem:[%s2716_s24] sm:$0xff] %v1486_v2 }
 0x208 PF: > { %1511 = sbr.rel (!%p2481_p12) target bundleno = 538 (0x21a), region = 104  ;;  %s2068_s1 = sshll.u32 (%p2481_p12), %s2347_s22, 2  ;;  %v1533_v3 = vld [vmem:[%s2722_s19] sm:$0xf] (%p2481_p12)  ;;  %v1535_v4 = vld [vmem:[%s2722_s19 + $0x4] sm:$0xf] (%p2481_p12) }
 0x209   : > { %s1516_s23 = scalar_lea.vmem (%p2481_p12), %s2889_s2, %s2068_s1  ;;  %v1537_v5 = vld [vmem:[%s2722_s19 + $0x8] sm:$0xf] (%p2481_p12)  ;;  %v1539_v6 = vld [vmem:[%s2722_s19 + $0xc] sm:$0xf] (%p2481_p12)  ;;  %v1541_v7 = vld [vmem:[%s2722_s19 + $0x10] sm:$0xf] (%p2481_p12) }
 0x20a   : > { %1534 = vst [vmem:[%s1516_s23] sm:$0xf] (%p2481_p12), %v1533_v3  ;;  %v1543_v8 = vld [vmem:[%s2722_s19 + $0x14] sm:$0xf] (%p2481_p12)  ;;  %v1545_v9 = vld [vmem:[%s2722_s19 + $0x18] sm:$0xf] (%p2481_p12) }
 0x20b   : > { %1536 = vst [vmem:[%s1516_s23 + $0x8] sm:$0xf] (%p2481_p12), %v1535_v4  ;;  %v1547_v10 = vld [vmem:[%s2722_s19 + $0x1c] sm:$0xf] (%p2481_p12)  ;;  %v1549_v11 = vld [vmem:[%s2722_s19 + $0x20] sm:$0xf] (%p2481_p12) }
 0x20c   : > { %1538 = vst [vmem:[%s1516_s23 + $0x10] sm:$0xf] (%p2481_p12), %v1537_v5  ;;  %v1551_v12 = vld [vmem:[%s2722_s19 + $0x24] sm:$0xf] (%p2481_p12)  ;;  %v1553_v13 = vld [vmem:[%s2722_s19 + $0x28] sm:$0xf] (%p2481_p12) }
 0x20d   : > { %1540 = vst [vmem:[%s1516_s23 + $0x18] sm:$0xf] %v1539_v6  ;;  %v1555_v14 = vld [vmem:[%s2722_s19 + $0x2c] sm:$0xf]  ;;  %v1557_v15 = vld [vmem:[%s2722_s19 + $0x30] sm:$0xf] }
 0x20e   : > { %1542 = vst [vmem:[%s1516_s23 + $0x20] sm:$0xf] %v1541_v7  ;;  %v1559_v16 = vld [vmem:[%s2722_s19 + $0x34] sm:$0xf]  ;;  %v1561_v17 = vld [vmem:[%s2722_s19 + $0x38] sm:$0xf] }
 0x20f   : > { %1544 = vst [vmem:[%s1516_s23 + $0x28] sm:$0xf] %v1543_v8  ;;  %v1563_v18 = vld [vmem:[%s2722_s19 + $0x3c] sm:$0xf] }
 0x210   : > { %1546 = vst [vmem:[%s1516_s23 + $0x30] sm:$0xf] %v1545_v9 }
 0x211   : > { %1548 = vst [vmem:[%s1516_s23 + $0x38] sm:$0xf] %v1547_v10 }
 0x212   : > { %1550 = vst [vmem:[%s1516_s23 + $0x40] sm:$0xf] %v1549_v11 }
 0x213   : > { %1552 = vst [vmem:[%s1516_s23 + $0x48] sm:$0xf] %v1551_v12 }
 0x214   : > { %1554 = vst [vmem:[%s1516_s23 + $0x50] sm:$0xf] %v1553_v13 }
 0x215   : > { %1556 = vst [vmem:[%s1516_s23 + $0x58] sm:$0xf] %v1555_v14 }
 0x216   : > { %1558 = vst [vmem:[%s1516_s23 + $0x60] sm:$0xf] %v1557_v15 }
 0x217   : > { %1560 = vst [vmem:[%s1516_s23 + $0x68] sm:$0xf] %v1559_v16 }
 0x218   : > { %1562 = vst [vmem:[%s1516_s23 + $0x70] sm:$0xf] %v1561_v17 }
 0x219   : > { %1564 = vst [vmem:[%s1516_s23 + $0x78] sm:$0xf] %v1563_v18 }
 0x21a PF: > { %s15_s25 = sadd.s32 1, %s2359_s25   ;;  %s2907_s21 = sld [smem:[#allocation6_spill]] }
 0x21b   : > { %p12_p6 = scmp.ge.s32.totalorder %s15_s25, 10   ;;  %s2908_s22 = sld [smem:[#allocation7_spill]] }
 0x21c   : > { %s2909_s23 = sld [smem:[#allocation8_spill]]  ;;  %s2911_s15 = smov %s2323_s16 }
 0x21d   : > { %s2910_s24 = sld [smem:[#allocation9_spill]]  ;;  %s2912_s16 = smov %s2479_s13 }
 0x21e   : > { %s2913_s17 = smov %s2331_s18  ;;  %s2914_s18 = smov %s2476_s12 }
 0x21f   : > { %s2915_s19 = smov %s2339_s20  ;;  %s2916_s20 = smov %s2462_s7 }
 0x220   :  { %14 = sbr.rel (!%p12_p6) target bundleno = 9 (0x9), region = 208 }

// kernel: discriminator_forward.12
= control target key start
LH: loop header
LB: loop body
LE: loop exit
PB: predicated region body
PF: predicated region fallthrough
CT: control target
= control target key end

     0   :  { %s464_s0 = inlined_call_operand.vmem [shape: bf16[128,256], index: 0, kind: input, shape index: {}]   ;;  %s465_s1 = inlined_call_operand.vmem [shape: f32[1,256], index: 1, kind: input, shape index: {}]   ;;  %s466_s2 = inlined_call_operand.vmem [shape: f32[1,256], index: 2, kind: input, shape index: {}]   ;;  %s467_s3 = inlined_call_operand.vmem [shape: bf16[128,256], index: 3, kind: output, shape index: {}]  }
   0x1   :  { %v14_v0 = vld [vmem:[%s464_s0] sm:$0xff]  ;;  %v15_v7 = vld [vmem:[%s464_s0 + $0x8] sm:$0xff]  ;;  %v16_v8 = vld [vmem:[%s464_s0 + $0x10] sm:$0xff] }
   0x2   :  { %v62_v1 = vld [vmem:[%s465_s1] sm:$0x3]  ;;  %v30_v3 = vunpack.c.l.bf16 %v14_v0  ;;  %v31_v4 = vunpack.c.h.bf16 %v14_v0  ;;  %v17_v9 = vld [vmem:[%s464_s0 + $0x18] sm:$0xff]  ;;  %v32_v12 = vunpack.c.l.bf16 %v15_v7  ;;  %v33_v13 = vunpack.c.h.bf16 %v15_v7  ;;  %v19_v43 = vld [vmem:[%s464_s0 + $0x28] sm:$0xff] }
   0x3   :  { %v100_v2 = vld [vmem:[%s466_s2] sm:$0x3]  ;;  %v299_v5 = vperm.slane %v62_v1, 0  ;;  %v301_v6 = vperm.slane %v62_v1, 1  ;;  %v34_v16 = vunpack.c.l.bf16 %v16_v8  ;;  %v35_v17 = vunpack.c.h.bf16 %v16_v8  ;;  %v20_v53 = vld [vmem:[%s464_s0 + $0x30] sm:$0xff]  ;;  %v21_v61 = vld [vmem:[%s464_s0 + $0x38] sm:$0xff] }
   0x4   :  { %v312_v10 = vperm.slane %v100_v2, 0  ;;  %v314_v11 = vperm.slane %v100_v2, 1  ;;  %v36_v20 = vunpack.c.l.bf16 %v17_v9  ;;  %v37_v21 = vunpack.c.h.bf16 %v17_v9  ;;  %v18_v42 = vld [vmem:[%s464_s0 + $0x20] sm:$0xff] }
   0x5   :  { %v68_v14 = vmul.f32 %v299_v5, %v30_v3  ;;  %v69_v15 = vmul.f32 %v301_v6, %v31_v4  ;;  %v70_v18 = vmul.f32 %v299_v5, %v32_v12  ;;  %v71_v19 = vmul.f32 %v301_v6, %v33_v13 }
   0x6   :  { %v72_v24 = vmul.f32 %v299_v5, %v34_v16  ;;  %v73_v25 = vmul.f32 %v301_v6, %v35_v17  ;;  %v74_v28 = vmul.f32 %v299_v5, %v36_v20  ;;  %v75_v29 = vmul.f32 %v301_v6, %v37_v21 }
   0x7   :  { %v106_v22 = vadd.f32 %v312_v10, %v68_v14  ;;  %v107_v23 = vadd.f32 %v314_v11, %v69_v15  ;;  %v108_v26 = vadd.f32 %v312_v10, %v70_v18  ;;  %v109_v27 = vadd.f32 %v314_v11, %v71_v19 }
   0x8   :  { %v110_v36 = vadd.f32 %v312_v10, %v72_v24  ;;  %v111_v37 = vadd.f32 %v314_v11, %v73_v25  ;;  %v112_v41 = vadd.f32 %v312_v10, %v74_v28  ;;  %v113_v47 = vadd.f32 %v314_v11, %v75_v29  ;;  %v22_v25 = vld [vmem:[%s464_s0 + $0x40] sm:$0xff] }
   0x9   :  { %vm138_vm0 = vcmp.ge.f32.partialorder %v106_v22, 0.0  ;;  %vm139_vm1 = vcmp.ge.f32.partialorder %v107_v23, 0.0  ;;  %v170_v30 = vmul.f32 0.2, %v106_v22  ;;  %v171_v31 = vmul.f32 0.2, %v107_v23 }
   0xa   :  { %vm140_vm2 = vcmp.ge.f32.partialorder %v108_v26, 0.0  ;;  %vm141_vm3 = vcmp.ge.f32.partialorder %v109_v27, 0.0  ;;  %v172_v32 = vmul.f32 0.2, %v108_v26  ;;  %v173_v33 = vmul.f32 0.2, %v109_v27 }
   0xb   :  { %v202_v34 = vsel %vm138_vm0, %v106_v22, %v170_v30  ;;  %v203_v35 = vsel %vm139_vm1, %v107_v23, %v171_v31  ;;  %vm142_vm4 = vcmp.ge.f32.partialorder %v110_v36, 0.0  ;;  %vm143_vm5 = vcmp.ge.f32.partialorder %v111_v37, 0.0 }
   0xc   :  { %v234_v38 = vpack.c.bf16 %v203_v35, %v202_v34  ;;  %v204_v39 = vsel %vm140_vm2, %v108_v26, %v172_v32  ;;  %v205_v40 = vsel %vm141_vm3, %v109_v27, %v173_v33  ;;  %v174_v45 = vmul.f32 0.2, %v110_v36  ;;  %v23_v26 = vld [vmem:[%s464_s0 + $0x48] sm:$0xff]  ;;  %v24_v34 = vld [vmem:[%s464_s0 + $0x50] sm:$0xff] }
   0xd   :  { %v235_v44 = vpack.c.bf16 %v205_v40, %v204_v39  ;;  %v175_v46 = vmul.f32 0.2, %v111_v37  ;;  %vm144_vm6 = vcmp.ge.f32.partialorder %v112_v41, 0.0  ;;  %v176_v48 = vmul.f32 0.2, %v112_v41 }
   0xe   :  { %250 = vst [vmem:[%s467_s3] sm:$0xff] %v234_v38  ;;  %v206_v49 = vsel %vm142_vm4, %v110_v36, %v174_v45  ;;  %v38_v50 = vunpack.c.l.bf16 %v18_v42  ;;  %v39_v51 = vunpack.c.h.bf16 %v18_v42  ;;  %v40_v52 = vunpack.c.l.bf16 %v19_v43 }
   0xf   :  { %251 = vst [vmem:[%s467_s3 + $0x8] sm:$0xff] %v235_v44  ;;  %v207_v54 = vsel %vm143_vm5, %v111_v37, %v175_v46  ;;  %vm145_vm7 = vcmp.ge.f32.partialorder %v113_v47, 0.0  ;;  %v177_v55 = vmul.f32 0.2, %v113_v47  ;;  %v208_v56 = vsel %vm144_vm6, %v112_v41, %v176_v48 }
  0x10   :  { %v236_v57 = vpack.c.bf16 %v207_v54, %v206_v49  ;;  %v76_v58 = vmul.f32 %v299_v5, %v38_v50  ;;  %v77_v59 = vmul.f32 %v301_v6, %v39_v51  ;;  %v41_v60 = vunpack.c.h.bf16 %v19_v43 }
  0x11   :  { %v209_v62 = vsel %vm145_vm7, %v113_v47, %v177_v55  ;;  %v78_v63 = vmul.f32 %v299_v5, %v40_v52  ;;  %v42_v0 = vunpack.c.l.bf16 %v20_v53  ;;  %v43_v1 = vunpack.c.h.bf16 %v20_v53 }
  0x12   :  { %252 = vst [vmem:[%s467_s3 + $0x10] sm:$0xff] %v236_v57  ;;  %v237_v2 = vpack.c.bf16 %v209_v62, %v208_v56  ;;  %v114_v3 = vadd.f32 %v312_v10, %v76_v58  ;;  %v115_v4 = vadd.f32 %v314_v11, %v77_v59  ;;  %v79_v7 = vmul.f32 %v301_v6, %v41_v60  ;;  %v26_v62 = vld [vmem:[%s464_s0 + $0x60] sm:$0xff] }
  0x13   :  { %v116_v8 = vadd.f32 %v312_v10, %v78_v63  ;;  %v80_v9 = vmul.f32 %v299_v5, %v42_v0  ;;  %v81_v12 = vmul.f32 %v301_v6, %v43_v1  ;;  %v44_v13 = vunpack.c.l.bf16 %v21_v61 }
  0x14   :  { %253 = vst [vmem:[%s467_s3 + $0x18] sm:$0xff] %v237_v2  ;;  %vm146_vm8 = vcmp.ge.f32.partialorder %v114_v3, 0.0  ;;  %vm147_vm9 = vcmp.ge.f32.partialorder %v115_v4, 0.0  ;;  %v178_v14 = vmul.f32 0.2, %v114_v3  ;;  %v117_v15 = vadd.f32 %v314_v11, %v79_v7 }
  0x15   :  { %v179_v16 = vmul.f32 0.2, %v115_v4  ;;  %vm148_vm10 = vcmp.ge.f32.partialorder %v116_v8, 0.0  ;;  %v180_v17 = vmul.f32 0.2, %v116_v8  ;;  %v118_v18 = vadd.f32 %v312_v10, %v80_v9  ;;  %v27_v9 = vld [vmem:[%s464_s0 + $0x68] sm:$0xff] }
  0x16   :  { %v210_v19 = vsel %vm146_vm8, %v114_v3, %v178_v14  ;;  %vm149_vm11 = vcmp.ge.f32.partialorder %v117_v15, 0.0  ;;  %v181_v20 = vmul.f32 0.2, %v117_v15  ;;  %v119_v21 = vadd.f32 %v314_v11, %v81_v12 }
  0x17   :  { %v211_v22 = vsel %vm147_vm9, %v115_v4, %v179_v16  ;;  %v212_v23 = vsel %vm148_vm10, %v116_v8, %v180_v17  ;;  %vm150_vm12 = vcmp.ge.f32.partialorder %v118_v18, 0.0  ;;  %v182_v24 = vmul.f32 0.2, %v118_v18 }
  0x18   :  { %v238_v27 = vpack.c.bf16 %v211_v22, %v210_v19  ;;  %v213_v28 = vsel %vm149_vm11, %v117_v15, %v181_v20  ;;  %vm151_vm13 = vcmp.ge.f32.partialorder %v119_v21, 0.0  ;;  %v183_v29 = vmul.f32 0.2, %v119_v21 }
  0x19   :  { %v239_v30 = vpack.c.bf16 %v213_v28, %v212_v23  ;;  %v214_v31 = vsel %vm150_vm12, %v118_v18, %v182_v24  ;;  %v45_v32 = vunpack.c.h.bf16 %v21_v61  ;;  %v82_v33 = vmul.f32 %v299_v5, %v44_v13  ;;  %v25_v61 = vld [vmem:[%s464_s0 + $0x58] sm:$0xff] }
  0x1a   :  { %254 = vst [vmem:[%s467_s3 + $0x20] sm:$0xff] %v238_v27  ;;  %v215_v35 = vsel %vm151_vm13, %v119_v21, %v183_v29  ;;  %v46_v36 = vunpack.c.l.bf16 %v22_v25  ;;  %v47_v37 = vunpack.c.h.bf16 %v22_v25  ;;  %v48_v38 = vunpack.c.l.bf16 %v23_v26 }
  0x1b   :  { %255 = vst [vmem:[%s467_s3 + $0x28] sm:$0xff] %v239_v30  ;;  %v240_v39 = vpack.c.bf16 %v215_v35, %v214_v31  ;;  %v83_v40 = vmul.f32 %v301_v6, %v45_v32  ;;  %v120_v41 = vadd.f32 %v312_v10, %v82_v33  ;;  %v49_v42 = vunpack.c.h.bf16 %v23_v26 }
  0x1c   :  { %v84_v43 = vmul.f32 %v299_v5, %v46_v36  ;;  %v85_v44 = vmul.f32 %v301_v6, %v47_v37  ;;  %v86_v45 = vmul.f32 %v299_v5, %v48_v38  ;;  %v50_v46 = vunpack.c.l.bf16 %v24_v34  ;;  %v28_v36 = vld [vmem:[%s464_s0 + $0x70] sm:$0xff] }
  0x1d   :  { %256 = vst [vmem:[%s467_s3 + $0x30] sm:$0xff] %v240_v39  ;;  %v121_v47 = vadd.f32 %v314_v11, %v83_v40  ;;  %vm152_vm14 = vcmp.ge.f32.partialorder %v120_v41, 0.0  ;;  %v184_v48 = vmul.f32 0.2, %v120_v41  ;;  %v87_v49 = vmul.f32 %v301_v6, %v49_v42 }
  0x1e   :  { %v122_v50 = vadd.f32 %v312_v10, %v84_v43  ;;  %v123_v51 = vadd.f32 %v314_v11, %v85_v44  ;;  %v124_v52 = vadd.f32 %v312_v10, %v86_v45  ;;  %v51_v53 = vunpack.c.h.bf16 %v24_v34 }
  0x1f   :  { %vm153_vm15 = vcmp.ge.f32.partialorder %v121_v47, 0.0  ;;  %v185_v54 = vmul.f32 0.2, %v121_v47  ;;  %v216_v55 = vsel %vm152_vm14, %v120_v41, %v184_v48  ;;  %v125_v56 = vadd.f32 %v314_v11, %v87_v49 }
  0x20   :  { %vm154_vm0 = vcmp.ge.f32.partialorder %v122_v50, 0.0  ;;  %vm155_vm1 = vcmp.ge.f32.partialorder %v123_v51, 0.0  ;;  %v186_v57 = vmul.f32 0.2, %v122_v50  ;;  %v187_v58 = vmul.f32 0.2, %v123_v51 }
  0x21   :  { %v217_v59 = vsel %vm153_vm15, %v121_v47, %v185_v54  ;;  %vm156_vm2 = vcmp.ge.f32.partialorder %v124_v52, 0.0  ;;  %vm157_vm3 = vcmp.ge.f32.partialorder %v125_v56, 0.0  ;;  %v188_v60 = vmul.f32 0.2, %v124_v52  ;;  %v29_v47 = vld [vmem:[%s464_s0 + $0x78] sm:$0xff] }
  0x22   :  { %v241_v63 = vpack.c.bf16 %v217_v59, %v216_v55  ;;  %v218_v0 = vsel %vm154_vm0, %v122_v50, %v186_v57  ;;  %v219_v1 = vsel %vm155_vm1, %v123_v51, %v187_v58  ;;  %v189_v2 = vmul.f32 0.2, %v125_v56 }
  0x23   :  { %v242_v3 = vpack.c.bf16 %v219_v1, %v218_v0  ;;  %v220_v4 = vsel %vm156_vm2, %v124_v52, %v188_v60  ;;  %v88_v7 = vmul.f32 %v299_v5, %v50_v46  ;;  %v89_v8 = vmul.f32 %v301_v6, %v51_v53 }
  0x24   :  { %257 = vst [vmem:[%s467_s3 + $0x38] sm:$0xff] %v241_v63  ;;  %v221_v12 = vsel %vm157_vm3, %v125_v56, %v189_v2  ;;  %v52_v13 = vunpack.c.l.bf16 %v25_v61  ;;  %v53_v14 = vunpack.c.h.bf16 %v25_v61  ;;  %v54_v15 = vunpack.c.l.bf16 %v26_v62 }
  0x25   :  { %258 = vst [vmem:[%s467_s3 + $0x40] sm:$0xff] %v242_v3  ;;  %v243_v16 = vpack.c.bf16 %v221_v12, %v220_v4  ;;  %v126_v17 = vadd.f32 %v312_v10, %v88_v7  ;;  %v127_v18 = vadd.f32 %v314_v11, %v89_v8  ;;  %v55_v19 = vunpack.c.h.bf16 %v26_v62 }
  0x26   :  { %v90_v20 = vmul.f32 %v299_v5, %v52_v13  ;;  %v91_v21 = vmul.f32 %v301_v6, %v53_v14  ;;  %v92_v22 = vmul.f32 %v299_v5, %v54_v15  ;;  %v56_v23 = vunpack.c.l.bf16 %v27_v9 }
  0x27   :  { %259 = vst [vmem:[%s467_s3 + $0x48] sm:$0xff] %v243_v16  ;;  %vm158_vm4 = vcmp.ge.f32.partialorder %v126_v17, 0.0  ;;  %vm159_vm5 = vcmp.ge.f32.partialorder %v127_v18, 0.0  ;;  %v190_v24 = vmul.f32 0.2, %v126_v17  ;;  %v93_v25 = vmul.f32 %v301_v6, %v55_v19 }
  0x28   :  { %v191_v26 = vmul.f32 0.2, %v127_v18  ;;  %v128_v27 = vadd.f32 %v312_v10, %v90_v20  ;;  %v129_v28 = vadd.f32 %v314_v11, %v91_v21  ;;  %v130_v29 = vadd.f32 %v312_v10, %v92_v22 }
  0x29   :  { %v222_v30 = vsel %vm158_vm4, %v126_v17, %v190_v24  ;;  %v131_v31 = vadd.f32 %v314_v11, %v93_v25  ;;  %v57_v32 = vunpack.c.h.bf16 %v27_v9  ;;  %v94_v33 = vmul.f32 %v299_v5, %v56_v23 }
  0x2a   :  { %v223_v34 = vsel %vm159_vm5, %v127_v18, %v191_v26  ;;  %vm160_vm6 = vcmp.ge.f32.partialorder %v128_v27, 0.0  ;;  %vm161_vm7 = vcmp.ge.f32.partialorder %v129_v28, 0.0  ;;  %v192_v35 = vmul.f32 0.2, %v128_v27 }
  0x2b   :  { %v244_v37 = vpack.c.bf16 %v223_v34, %v222_v30  ;;  %v193_v38 = vmul.f32 0.2, %v129_v28  ;;  %vm162_vm8 = vcmp.ge.f32.partialorder %v130_v29, 0.0  ;;  %vm163_vm9 = vcmp.ge.f32.partialorder %v131_v31, 0.0 }
  0x2c   :  { %v224_v39 = vsel %vm160_vm6, %v128_v27, %v192_v35  ;;  %v194_v40 = vmul.f32 0.2, %v130_v29  ;;  %v195_v41 = vmul.f32 0.2, %v131_v31  ;;  %v95_v42 = vmul.f32 %v301_v6, %v57_v32 }
  0x2d   :  { %260 = vst [vmem:[%s467_s3 + $0x50] sm:$0xff] %v244_v37  ;;  %v225_v43 = vsel %vm161_vm7, %v129_v28, %v193_v38  ;;  %v132_v44 = vadd.f32 %v312_v10, %v94_v33  ;;  %v58_v45 = vunpack.c.l.bf16 %v28_v36  ;;  %v59_v46 = vunpack.c.h.bf16 %v28_v36 }
  0x2e   :  { %v245_v48 = vpack.c.bf16 %v225_v43, %v224_v39  ;;  %v226_v49 = vsel %vm162_vm8, %v130_v29, %v194_v40  ;;  %v227_v50 = vsel %vm163_vm9, %v131_v31, %v195_v41  ;;  %v133_v51 = vadd.f32 %v314_v11, %v95_v42 }
  0x2f   :  { %v246_v52 = vpack.c.bf16 %v227_v50, %v226_v49  ;;  %vm164_vm10 = vcmp.ge.f32.partialorder %v132_v44, 0.0  ;;  %v196_v53 = vmul.f32 0.2, %v132_v44  ;;  %v96_v54 = vmul.f32 %v299_v5, %v58_v45 }
  0x30   :  { %261 = vst [vmem:[%s467_s3 + $0x58] sm:$0xff] %v245_v48  ;;  %vm165_vm11 = vcmp.ge.f32.partialorder %v133_v51, 0.0  ;;  %v197_v55 = vmul.f32 0.2, %v133_v51  ;;  %v97_v56 = vmul.f32 %v301_v6, %v59_v46  ;;  %v60_v57 = vunpack.c.l.bf16 %v29_v47 }
  0x31   :  { %262 = vst [vmem:[%s467_s3 + $0x60] sm:$0xff] %v246_v52  ;;  %v228_v58 = vsel %vm164_vm10, %v132_v44, %v196_v53  ;;  %v134_v59 = vadd.f32 %v312_v10, %v96_v54  ;;  %v61_v60 = vunpack.c.h.bf16 %v29_v47 }
  0x32   :  { %v229_v61 = vsel %vm165_vm11, %v133_v51, %v197_v55  ;;  %v135_v62 = vadd.f32 %v314_v11, %v97_v56  ;;  %v98_v63 = vmul.f32 %v299_v5, %v60_v57 }
  0x33   :  { %v247_v0 = vpack.c.bf16 %v229_v61, %v228_v58  ;;  %vm166_vm12 = vcmp.ge.f32.partialorder %v134_v59, 0.0  ;;  %v198_v1 = vmul.f32 0.2, %v134_v59  ;;  %v99_v2 = vmul.f32 %v301_v6, %v61_v60 }
  0x34   :  { %vm167_vm13 = vcmp.ge.f32.partialorder %v135_v62, 0.0  ;;  %v199_v3 = vmul.f32 0.2, %v135_v62  ;;  %v136_v4 = vadd.f32 %v312_v10, %v98_v63 }
  0x35   :  { %263 = vst [vmem:[%s467_s3 + $0x68] sm:$0xff] %v247_v0  ;;  %v230_v7 = vsel %vm166_vm12, %v134_v59, %v198_v1  ;;  %v137_v8 = vadd.f32 %v314_v11, %v99_v2 }
  0x36   :  { %v231_v9 = vsel %vm167_vm13, %v135_v62, %v199_v3  ;;  %vm168_vm14 = vcmp.ge.f32.partialorder %v136_v4, 0.0  ;;  %v200_v12 = vmul.f32 0.2, %v136_v4 }
  0x37   :  { %v248_v5 = vpack.c.bf16 %v231_v9, %v230_v7  ;;  %vm169_vm15 = vcmp.ge.f32.partialorder %v137_v8, 0.0  ;;  %v201_v13 = vmul.f32 0.2, %v137_v8 }
  0x38   :  { %v232_v14 = vsel %vm168_vm14, %v136_v4, %v200_v12 }
  0x39   :  { %264 = vst [vmem:[%s467_s3 + $0x70] sm:$0xff] %v248_v5  ;;  %v233_v6 = vsel %vm169_vm15, %v137_v8, %v201_v13 }
  0x3a   :  { %v249_v10 = vpack.c.bf16 %v233_v6, %v232_v14 }
  0x3c   :  { %265 = vst [vmem:[%s467_s3 + $0x78] sm:$0xff] %v249_v10 }

// kernel: discriminator_forward.14
= control target key start
LH: loop header
LB: loop body
LE: loop exit
PB: predicated region body
PF: predicated region fallthrough
CT: control target
= control target key end

     0   :  { %s280_s0 = inlined_call_operand.vmem [shape: bf16[32,512], index: 0, kind: input, shape index: {}]   ;;  %s281_s1 = inlined_call_operand.vmem [shape: f32[1,512], index: 1, kind: input, shape index: {}]   ;;  %s282_s2 = inlined_call_operand.vmem [shape: f32[1,512], index: 2, kind: input, shape index: {}]   ;;  %s283_s3 = inlined_call_operand.vmem [shape: bf16[32,512], index: 3, kind: output, shape index: {}]  }
   0x1   :  { %v14_v0 = vld [vmem:[%s280_s0] sm:$0xff]  ;;  %v15_v7 = vld [vmem:[%s280_s0 + $0x8] sm:$0xff]  ;;  %v16_v8 = vld [vmem:[%s280_s0 + $0x10] sm:$0xff] }
   0x2   :  { %v38_v1 = vld [vmem:[%s281_s1] sm:$0xf]  ;;  %v22_v3 = vunpack.c.l.bf16 %v14_v0  ;;  %v23_v4 = vunpack.c.h.bf16 %v14_v0  ;;  %v24_v11 = vunpack.c.l.bf16 %v15_v7  ;;  %v25_v12 = vunpack.c.h.bf16 %v15_v7  ;;  %v17_v17 = vld [vmem:[%s280_s0 + $0x18] sm:$0xff]  ;;  %v19_v53 = vld [vmem:[%s280_s0 + $0x28] sm:$0xff] }
   0x3   :  { %v64_v2 = vld [vmem:[%s282_s2] sm:$0xf]  ;;  %v187_v5 = vperm.slane %v38_v1, 0  ;;  %v189_v6 = vperm.slane %v38_v1, 1  ;;  %v203_v15 = vperm.slane %v38_v1, 2  ;;  %v205_v16 = vperm.slane %v38_v1, 3 }
   0x4   :  { %v197_v9 = vperm.slane %v64_v2, 0  ;;  %v199_v10 = vperm.slane %v64_v2, 1  ;;  %v210_v18 = vperm.slane %v64_v2, 2  ;;  %v212_v19 = vperm.slane %v64_v2, 3  ;;  %v18_v42 = vld [vmem:[%s280_s0 + $0x20] sm:$0xff]  ;;  %v20_v54 = vld [vmem:[%s280_s0 + $0x30] sm:$0xff] }
   0x5   :  { %v48_v13 = vmul.f32 %v187_v5, %v22_v3  ;;  %v49_v14 = vmul.f32 %v189_v6, %v23_v4  ;;  %v26_v20 = vunpack.c.l.bf16 %v16_v8  ;;  %v27_v21 = vunpack.c.h.bf16 %v16_v8 }
   0x6   :  { %v50_v24 = vmul.f32 %v203_v15, %v24_v11  ;;  %v51_v25 = vmul.f32 %v205_v16, %v25_v12  ;;  %v28_v28 = vunpack.c.l.bf16 %v17_v17  ;;  %v29_v29 = vunpack.c.h.bf16 %v17_v17 }
   0x7   :  { %v74_v22 = vadd.f32 %v197_v9, %v48_v13  ;;  %v75_v23 = vadd.f32 %v199_v10, %v49_v14  ;;  %v52_v26 = vmul.f32 %v187_v5, %v26_v20  ;;  %v53_v27 = vmul.f32 %v189_v6, %v27_v21  ;;  %v21_v13 = vld [vmem:[%s280_s0 + $0x38] sm:$0xff] }
   0x8   :  { %v76_v32 = vadd.f32 %v210_v18, %v50_v24  ;;  %v77_v33 = vadd.f32 %v212_v19, %v51_v25  ;;  %v54_v38 = vmul.f32 %v203_v15, %v28_v28  ;;  %v55_v39 = vmul.f32 %v205_v16, %v29_v29 }
   0x9   :  { %vm90_vm0 = vcmp.ge.f32.partialorder %v74_v22, 0.0  ;;  %vm91_vm1 = vcmp.ge.f32.partialorder %v75_v23, 0.0  ;;  %v106_v30 = vmul.f32 0.2, %v74_v22  ;;  %v107_v31 = vmul.f32 0.2, %v75_v23 }
   0xa   :  { %v78_v34 = vadd.f32 %v197_v9, %v52_v26  ;;  %v79_v35 = vadd.f32 %v199_v10, %v53_v27  ;;  %vm92_vm2 = vcmp.ge.f32.partialorder %v76_v32, 0.0  ;;  %vm93_vm3 = vcmp.ge.f32.partialorder %v77_v33, 0.0 }
   0xb   :  { %v122_v36 = vsel %vm90_vm0, %v74_v22, %v106_v30  ;;  %v123_v37 = vsel %vm91_vm1, %v75_v23, %v107_v31  ;;  %v108_v41 = vmul.f32 0.2, %v76_v32  ;;  %v109_v43 = vmul.f32 0.2, %v77_v33 }
   0xc   :  { %v138_v40 = vpack.c.bf16 %v123_v37, %v122_v36  ;;  %vm94_vm4 = vcmp.ge.f32.partialorder %v78_v34, 0.0  ;;  %vm95_vm5 = vcmp.ge.f32.partialorder %v79_v35, 0.0  ;;  %v110_v44 = vmul.f32 0.2, %v78_v34 }
   0xd   :  { %v124_v45 = vsel %vm92_vm2, %v76_v32, %v108_v41  ;;  %v111_v46 = vmul.f32 0.2, %v79_v35  ;;  %v80_v47 = vadd.f32 %v210_v18, %v54_v38  ;;  %v81_v48 = vadd.f32 %v212_v19, %v55_v39 }
   0xe   :  { %146 = vst [vmem:[%s283_s3] sm:$0xff] %v138_v40  ;;  %v125_v49 = vsel %vm93_vm3, %v77_v33, %v109_v43  ;;  %v126_v50 = vsel %vm94_vm4, %v78_v34, %v110_v44  ;;  %v30_v51 = vunpack.c.l.bf16 %v18_v42  ;;  %v31_v52 = vunpack.c.h.bf16 %v18_v42 }
   0xf   :  { %v139_v55 = vpack.c.bf16 %v125_v49, %v124_v45  ;;  %v127_v56 = vsel %vm95_vm5, %v79_v35, %v111_v46  ;;  %vm96_vm6 = vcmp.ge.f32.partialorder %v80_v47, 0.0  ;;  %vm97_vm7 = vcmp.ge.f32.partialorder %v81_v48, 0.0 }
  0x10   :  { %v140_v57 = vpack.c.bf16 %v127_v56, %v126_v50  ;;  %v112_v58 = vmul.f32 0.2, %v80_v47  ;;  %v113_v59 = vmul.f32 0.2, %v81_v48  ;;  %v56_v60 = vmul.f32 %v187_v5, %v30_v51 }
  0x11   :  { %147 = vst [vmem:[%s283_s3 + $0x8] sm:$0xff] %v139_v55  ;;  %v57_v61 = vmul.f32 %v189_v6, %v31_v52  ;;  %v32_v62 = vunpack.c.l.bf16 %v19_v53  ;;  %v33_v63 = vunpack.c.h.bf16 %v19_v53  ;;  %v34_v0 = vunpack.c.l.bf16 %v20_v54 }
  0x12   :  { %148 = vst [vmem:[%s283_s3 + $0x10] sm:$0xff] %v140_v57  ;;  %v128_v1 = vsel %vm96_vm6, %v80_v47, %v112_v58  ;;  %v129_v2 = vsel %vm97_vm7, %v81_v48, %v113_v59  ;;  %v82_v3 = vadd.f32 %v197_v9, %v56_v60  ;;  %v35_v4 = vunpack.c.h.bf16 %v20_v54 }
  0x13   :  { %v141_v7 = vpack.c.bf16 %v129_v2, %v128_v1  ;;  %v83_v8 = vadd.f32 %v199_v10, %v57_v61  ;;  %v58_v11 = vmul.f32 %v203_v15, %v32_v62  ;;  %v59_v12 = vmul.f32 %v205_v16, %v33_v63 }
  0x14   :  { %vm98_vm8 = vcmp.ge.f32.partialorder %v82_v3, 0.0  ;;  %v114_v14 = vmul.f32 0.2, %v82_v3  ;;  %v60_v17 = vmul.f32 %v187_v5, %v34_v0  ;;  %v61_v20 = vmul.f32 %v189_v6, %v35_v4 }
  0x15   :  { %149 = vst [vmem:[%s283_s3 + $0x18] sm:$0xff] %v141_v7  ;;  %vm99_vm9 = vcmp.ge.f32.partialorder %v83_v8, 0.0  ;;  %v115_v21 = vmul.f32 0.2, %v83_v8  ;;  %v84_v22 = vadd.f32 %v210_v18, %v58_v11  ;;  %v85_v23 = vadd.f32 %v212_v19, %v59_v12 }
  0x16   :  { %v130_v24 = vsel %vm98_vm8, %v82_v3, %v114_v14  ;;  %v86_v25 = vadd.f32 %v197_v9, %v60_v17  ;;  %v87_v26 = vadd.f32 %v199_v10, %v61_v20  ;;  %v36_v27 = vunpack.c.l.bf16 %v21_v13 }
  0x17   :  { %v131_v28 = vsel %vm99_vm9, %v83_v8, %v115_v21  ;;  %vm100_vm10 = vcmp.ge.f32.partialorder %v84_v22, 0.0  ;;  %vm101_vm11 = vcmp.ge.f32.partialorder %v85_v23, 0.0  ;;  %v116_v5 = vmul.f32 0.2, %v84_v22 }
  0x18   :  { %v142_v6 = vpack.c.bf16 %v131_v28, %v130_v24  ;;  %v117_v29 = vmul.f32 0.2, %v85_v23  ;;  %vm102_vm12 = vcmp.ge.f32.partialorder %v86_v25, 0.0  ;;  %vm103_vm13 = vcmp.ge.f32.partialorder %v87_v26, 0.0 }
  0x19   :  { %v132_v30 = vsel %vm100_vm10, %v84_v22, %v116_v5  ;;  %v118_v31 = vmul.f32 0.2, %v86_v25  ;;  %v119_v32 = vmul.f32 0.2, %v87_v26  ;;  %v37_v33 = vunpack.c.h.bf16 %v21_v13 }
  0x1a   :  { %150 = vst [vmem:[%s283_s3 + $0x20] sm:$0xff] %v142_v6  ;;  %v133_v9 = vsel %vm101_vm11, %v85_v23, %v117_v29  ;;  %v62_v10 = vmul.f32 %v203_v15, %v36_v27 }
  0x1b   :  { %v143_v34 = vpack.c.bf16 %v133_v9, %v132_v30  ;;  %v134_v35 = vsel %vm102_vm12, %v86_v25, %v118_v31  ;;  %v135_v36 = vsel %vm103_vm13, %v87_v26, %v119_v32  ;;  %v63_v37 = vmul.f32 %v205_v16, %v37_v33 }
  0x1c   :  { %v144_v38 = vpack.c.bf16 %v135_v36, %v134_v35  ;;  %v88_v39 = vadd.f32 %v210_v18, %v62_v10 }
  0x1d   :  { %151 = vst [vmem:[%s283_s3 + $0x28] sm:$0xff] %v143_v34  ;;  %v89_v40 = vadd.f32 %v212_v19, %v63_v37 }
  0x1e   :  { %152 = vst [vmem:[%s283_s3 + $0x30] sm:$0xff] %v144_v38  ;;  %vm104_vm14 = vcmp.ge.f32.partialorder %v88_v39, 0.0  ;;  %v120_v15 = vmul.f32 0.2, %v88_v39 }
  0x1f   :  { %vm105_vm15 = vcmp.ge.f32.partialorder %v89_v40, 0.0  ;;  %v121_v41 = vmul.f32 0.2, %v89_v40 }
  0x20   :  { %v136_v42 = vsel %vm104_vm14, %v88_v39, %v120_v15 }
  0x21   :  { %v137_v43 = vsel %vm105_vm15, %v89_v40, %v121_v41 }
  0x22   :  { %v145_v16 = vpack.c.bf16 %v137_v43, %v136_v42 }
  0x24   :  { %153 = vst [vmem:[%s283_s3 + $0x38] sm:$0xff] %v145_v16 }

// kernel: discriminator_forward.13
= control target key start
LH: loop header
LB: loop body
LE: loop exit
PB: predicated region body
PF: predicated region fallthrough
CT: control target
= control target key end

     0   :  { %s2648_s0 = inlined_call_operand.vmem [shape: bf16[32,4096], index: 0, kind: input, shape index: {}]   ;;  %s2649_s1 = inlined_call_operand.vmem [shape: bf16[4096,512], index: 1, kind: input, shape index: {}]   ;;  %s2650_s2 = inlined_call_operand.vmem [shape: bf16[32,512], index: 2, kind: output, shape index: {0}]   ;;  %s2651_s3 = inlined_call_operand.vmem [shape: f32[8,512], index: 3, kind: output, shape index: {1}]   ;;  %s2652_s4 = inlined_call_operand.vmem [shape: f32[8,512], index: 4, kind: output, shape index: {2}]  }
   0x1   :  { %2656 = sst [smem:[#allocation9_spill]] %s2648_s0 }
   0x2   :  { %2657 = sst [smem:[#allocation10_spill]] %s2649_s1 }
   0x3   :  { %s2155_s15 = smov 0   ;;  %s2157_s16 = smov 0  }
   0x4   :  { %s2159_s17 = smov 0   ;;  %s2161_s18 = smov 0  }
   0x5   :  { %s2163_s19 = smov 0   ;;  %s2165_s20 = smov 0  }
   0x6   :  { %s2167_s21 = smov 0   ;;  %s2169_s22 = smov 0  }
   0x7   :  { %s2171_s23 = smov 0   ;;  %s2173_s24 = smov 0  }
   0x8   :  { %s2175_s25 = smov 0  }
   0x9 LB: > { %2658 = sst [smem:[#allocation6_spill]] %s2123_s24  ;;  %s1562_s26 = sadd.s32 4294967295, %s2127_s25   ;;  %s2127_s25 = sphi %s2175_s25, %s15_s25   ;;  %s2123_s24 = sphi %s2173_s24, %s2677_s24   ;;  %s2119_s23 = sphi %s2171_s23, %s2676_s23   ;;  %s2115_s22 = sphi %s2169_s22, %s2666_s22   ;;  %s2111_s21 = sphi %s2167_s21, %s2675_s21   ;;  %s2107_s20 = sphi %s2165_s20, %s2674_s20   ;;  %s2103_s19 = sphi %s2163_s19, %s2673_s19   ;;  %s2099_s18 = sphi %s2161_s18, %s2672_s18   ;;  %s2095_s17 = sphi %s2159_s17, %s2671_s17   ;;  %s2091_s16 = sphi %s2157_s16, %s2670_s16   ;;  %s2087_s15 = sphi %s2155_s15, %s2669_s15  }
   0xa   : > { %s27_s27 = sadd.s32 1, %s2119_s23  ;;  %s30_s28 = sadd.s32 1, %s2123_s24 }
   0xb   : > { %p28_p0 = scmp.ge.s32.totalorder %s27_s27, 8  ;;  %s43_s29 = sadd.s32 1, %s2107_s20 }
   0xc   : > { %p50_p1 = scmp.ne.s32.totalorder %s2107_s20, %s2103_s19  ;;  %p51_p2 = scmp.eq.s32.totalorder %s2127_s25, 0 }
   0xd   : > { %s2679_s27 = smov (%p28_p0, %s27_s27), 0  ;;  %s2681_s28 = smov (!%p28_p0, %s30_s28), %s2123_s24 }
   0xe   : > { %2659 = sst [smem:[#allocation7_spill]] %s2679_s27  ;;  %s39_s30 = ssub.s32 %s2119_s23, %s2679_s27 }
   0xf   : > { %p32_p3 = scmp.ge.s32.totalorder %s2681_s28, 2  ;;  %p41_p4 = scmp.eq.s32.totalorder %s39_s30, 0 }
  0x10   : > { %p2222_p5 = por %p51_p2, %p50_p1  ;;  %s71_s6 = sadd.s32 1, %s2099_s18 }
  0x11   : > { %s2683_s28 = smov (%p32_p3, %s2681_s28), 0  ;;  %p78_p6 = scmp.ne.s32.totalorder %s2099_s18, %s2095_s17 }
  0x12   : > { %2661 = sst [smem:[#allocation8_spill]] %s2683_s28  ;;  %s67_s8 = ssub.s32 %s2123_s24, %s2683_s28 }
  0x13   : > { %s2230_s7 = scalar_select %p41_p4, %s2107_s20, %s43_s29  }
  0x14   : > { %s68_s9 = sor.u32 %s67_s8, %s39_s30  ;;  %p97_p7 = scmp.eq.s32.totalorder %s67_s8, 0 }
  0x15   : > { %p69_p8 = scmp.eq.s32.totalorder %s68_s9, 0  ;;  %p2236_p9 = por %p78_p6, %p51_p2 }
  0x16   : > { %s99_s11 = sadd.s32 1, %s2091_s16  ;;  %p109_p10 = scmp.ne.s32.totalorder %s2091_s16, %s2087_s15 }
  0x17   : > { %s2244_s12 = scalar_select %p69_p8, %s2099_s18, %s71_s6  }
  0x18   : > { %s2247_s13 = scalar_select %p97_p7, %s2091_s16, %s99_s11  }
  0x19   : > { %p110_p11 = scmp.eq.s32.totalorder %s1562_s26, 15  ;;  %p1565_p13 = scmp.ge.s32.totalorder %s2127_s25, 16 }
  0x1b   : > { %p2249_p12 = por %p110_p11, %p109_p10  ;;  %188 = sbr.rel (%p1565_p13) target bundleno = 124 (0x7c), region = 16 }
  0x20   : > { %191 = sbr.rel (!%p2222_p5) target bundleno = 50 (0x32), region = 20  ;;  %s193_s29 = sand.u32 (%p2222_p5), 1, %s2107_s20  }
  0x21   : > { %s1877_s30 = sshll.u32 (%p2222_p5), %s2119_s23, 4  ;;  %s1566_s8 = sshll.u32 (%p2222_p5), %s193_s29, 6 }
  0x22   : > { %s2664_s0 = sld [smem:[#allocation9_spill]] (%p2222_p5)  ;;  %s195_s26 = scalar_lea.vmem (%p2222_p5), [#allocation3], %s1566_s8 }
  0x28   : > { %s201_s11 = scalar_lea.vmem %s2664_s0, %s1877_s30 }
  0x29   : > { %v214_v0 = vld [vmem:[%s201_s11] sm:$0xff]  ;;  %v216_v1 = vld [vmem:[%s201_s11 + $0x8] sm:$0xff] }
  0x2a   : > { %v218_v2 = vld [vmem:[%s201_s11 + $0x80] sm:$0xff]  ;;  %215 = vst [vmem:[%s195_s26] sm:$0xff] %v214_v0  ;;  %v220_v3 = vld [vmem:[%s201_s11 + $0x88] sm:$0xff] }
  0x2b   : > { %217 = vst [vmem:[%s195_s26 + $0x8] sm:$0xff] %v216_v1  ;;  %v222_v4 = vld [vmem:[%s201_s11 + $0x100] sm:$0xff]  ;;  %v224_v5 = vld [vmem:[%s201_s11 + $0x108] sm:$0xff] }
  0x2c   : > { %219 = vst [vmem:[%s195_s26 + $0x10] sm:$0xff] %v218_v2  ;;  %v226_v6 = vld [vmem:[%s201_s11 + $0x180] sm:$0xff]  ;;  %v228_v7 = vld [vmem:[%s201_s11 + $0x188] sm:$0xff] }
  0x2d   : > { %221 = vst [vmem:[%s195_s26 + $0x18] sm:$0xff] %v220_v3 }
  0x2e   : > { %223 = vst [vmem:[%s195_s26 + $0x20] sm:$0xff] %v222_v4 }
  0x2f   : > { %225 = vst [vmem:[%s195_s26 + $0x28] sm:$0xff] %v224_v5 }
  0x30   : > { %227 = vst [vmem:[%s195_s26 + $0x30] sm:$0xff] %v226_v6 }
  0x31   : > { %229 = vst [vmem:[%s195_s26 + $0x38] sm:$0xff] %v228_v7 }
  0x32 PF: > { %235 = sbr.rel (!%p2236_p9) target bundleno = 124 (0x7c), region = 43  ;;  %s237_s5 = sand.u32 (%p2236_p9), 1, %s2099_s18  }
  0x33   : > { %s1571_s29 = sshll.u32 (%p2236_p9), %s2123_s24, 1  ;;  %s1569_s30 = sshll.u32 (%p2236_p9), %s237_s5, 9 }
  0x34   : > { %s1878_s8 = sshll.u32 (%p2236_p9), %s2119_s23, 8  ;;  %s2665_s1 = sld [smem:[#allocation10_spill]] (%p2236_p9) }
  0x35   : > { %s243_s6 = sadd.s32 (%p2236_p9), %s1878_s8, %s1571_s29  ;;  %s2274_s10 = scalar_lea.vmem (%p2236_p9), [#allocation4], %s1569_s30 }
  0x36   : > { %s1573_s9 = sshll.u32 (%p2236_p9), %s243_s6, 2 }
  0x3a   : > { %s2269_s11 = scalar_lea.vmem %s2665_s1, %s1573_s9 }
  0x3b   : > { %v400_v8 = vld [vmem:[%s2269_s11] sm:$0xff]  ;;  %v402_v9 = vld [vmem:[%s2269_s11 + $0x10] sm:$0xff] }
  0x3c   : > { %v404_v10 = vld [vmem:[%s2269_s11 + $0x20] sm:$0xff]  ;;  %401 = vst [vmem:[%s2274_s10] sm:$0xff] %v400_v8  ;;  %v406_v11 = vld [vmem:[%s2269_s11 + $0x30] sm:$0xff] }
  0x3d   : > { %403 = vst [vmem:[%s2274_s10 + $0x8] sm:$0xff] %v402_v9  ;;  %v408_v12 = vld [vmem:[%s2269_s11 + $0x40] sm:$0xff]  ;;  %v410_v13 = vld [vmem:[%s2269_s11 + $0x50] sm:$0xff] }
  0x3e   : > { %405 = vst [vmem:[%s2274_s10 + $0x10] sm:$0xff] %v404_v10  ;;  %v412_v14 = vld [vmem:[%s2269_s11 + $0x60] sm:$0xff]  ;;  %v414_v15 = vld [vmem:[%s2269_s11 + $0x70] sm:$0xff] }
  0x3f   : > { %407 = vst [vmem:[%s2274_s10 + $0x18] sm:$0xff] %v406_v11  ;;  %v416_v16 = vld [vmem:[%s2269_s11 + $0x80] sm:$0xff]  ;;  %v418_v17 = vld [vmem:[%s2269_s11 + $0x90] sm:$0xff] }
  0x40   : > { %409 = vst [vmem:[%s2274_s10 + $0x20] sm:$0xff] %v408_v12  ;;  %v420_v18 = vld [vmem:[%s2269_s11 + $0xa0] sm:$0xff]  ;;  %v422_v19 = vld [vmem:[%s2269_s11 + $0xb0] sm:$0xff] }
  0x41   : > { %411 = vst [vmem:[%s2274_s10 + $0x28] sm:$0xff] %v410_v13  ;;  %v424_v20 = vld [vmem:[%s2269_s11 + $0xc0] sm:$0xff]  ;;  %v426_v21 = vld [vmem:[%s2269_s11 + $0xd0] sm:$0xff] }
  0x42   : > { %413 = vst [vmem:[%s2274_s10 + $0x30] sm:$0xff] %v412_v14  ;;  %v428_v22 = vld [vmem:[%s2269_s11 + $0xe0] sm:$0xff]  ;;  %v430_v23 = vld [vmem:[%s2269_s11 + $0xf0] sm:$0xff] }
  0x43   : > { %415 = vst [vmem:[%s2274_s10 + $0x38] sm:$0xff] %v414_v15  ;;  %v432_v24 = vld [vmem:[%s2269_s11 + $0x100] sm:$0xff]  ;;  %v434_v25 = vld [vmem:[%s2269_s11 + $0x110] sm:$0xff] }
  0x44   : > { %417 = vst [vmem:[%s2274_s10 + $0x40] sm:$0xff] %v416_v16  ;;  %v436_v26 = vld [vmem:[%s2269_s11 + $0x120] sm:$0xff]  ;;  %v438_v27 = vld [vmem:[%s2269_s11 + $0x130] sm:$0xff] }
  0x45   : > { %419 = vst [vmem:[%s2274_s10 + $0x48] sm:$0xff] %v418_v17  ;;  %v440_v28 = vld [vmem:[%s2269_s11 + $0x140] sm:$0xff]  ;;  %v442_v29 = vld [vmem:[%s2269_s11 + $0x150] sm:$0xff] }
  0x46   : > { %421 = vst [vmem:[%s2274_s10 + $0x50] sm:$0xff] %v420_v18  ;;  %v444_v30 = vld [vmem:[%s2269_s11 + $0x160] sm:$0xff]  ;;  %v446_v31 = vld [vmem:[%s2269_s11 + $0x170] sm:$0xff] }
  0x47   : > { %423 = vst [vmem:[%s2274_s10 + $0x58] sm:$0xff] %v422_v19  ;;  %v448_v32 = vld [vmem:[%s2269_s11 + $0x180] sm:$0xff]  ;;  %v450_v33 = vld [vmem:[%s2269_s11 + $0x190] sm:$0xff] }
  0x48   : > { %425 = vst [vmem:[%s2274_s10 + $0x60] sm:$0xff] %v424_v20  ;;  %v452_v34 = vld [vmem:[%s2269_s11 + $0x1a0] sm:$0xff]  ;;  %v454_v35 = vld [vmem:[%s2269_s11 + $0x1b0] sm:$0xff] }
  0x49   : > { %427 = vst [vmem:[%s2274_s10 + $0x68] sm:$0xff] %v426_v21  ;;  %v456_v36 = vld [vmem:[%s2269_s11 + $0x1c0] sm:$0xff]  ;;  %v458_v37 = vld [vmem:[%s2269_s11 + $0x1d0] sm:$0xff] }
  0x4a   : > { %429 = vst [vmem:[%s2274_s10 + $0x70] sm:$0xff] %v428_v22  ;;  %v460_v38 = vld [vmem:[%s2269_s11 + $0x1e0] sm:$0xff]  ;;  %v462_v39 = vld [vmem:[%s2269_s11 + $0x1f0] sm:$0xff] }
  0x4b   : > { %431 = vst [vmem:[%s2274_s10 + $0x78] sm:$0xff] %v430_v23  ;;  %v464_v40 = vld [vmem:[%s2269_s11 + $0x200] sm:$0xff]  ;;  %v466_v41 = vld [vmem:[%s2269_s11 + $0x210] sm:$0xff] }
  0x4c   : > { %433 = vst [vmem:[%s2274_s10 + $0x80] sm:$0xff] %v432_v24  ;;  %v468_v42 = vld [vmem:[%s2269_s11 + $0x220] sm:$0xff]  ;;  %v470_v43 = vld [vmem:[%s2269_s11 + $0x230] sm:$0xff] }
  0x4d   : > { %435 = vst [vmem:[%s2274_s10 + $0x88] sm:$0xff] %v434_v25  ;;  %v472_v44 = vld [vmem:[%s2269_s11 + $0x240] sm:$0xff]  ;;  %v474_v45 = vld [vmem:[%s2269_s11 + $0x250] sm:$0xff] }
  0x4e   : > { %437 = vst [vmem:[%s2274_s10 + $0x90] sm:$0xff] %v436_v26  ;;  %v476_v46 = vld [vmem:[%s2269_s11 + $0x260] sm:$0xff]  ;;  %v478_v47 = vld [vmem:[%s2269_s11 + $0x270] sm:$0xff] }
  0x4f   : > { %439 = vst [vmem:[%s2274_s10 + $0x98] sm:$0xff] %v438_v27  ;;  %v480_v48 = vld [vmem:[%s2269_s11 + $0x280] sm:$0xff]  ;;  %v482_v49 = vld [vmem:[%s2269_s11 + $0x290] sm:$0xff] }
  0x50   : > { %441 = vst [vmem:[%s2274_s10 + $0xa0] sm:$0xff] %v440_v28  ;;  %v484_v50 = vld [vmem:[%s2269_s11 + $0x2a0] sm:$0xff]  ;;  %v486_v51 = vld [vmem:[%s2269_s11 + $0x2b0] sm:$0xff] }
  0x51   : > { %443 = vst [vmem:[%s2274_s10 + $0xa8] sm:$0xff] %v442_v29  ;;  %v488_v52 = vld [vmem:[%s2269_s11 + $0x2c0] sm:$0xff]  ;;  %v490_v53 = vld [vmem:[%s2269_s11 + $0x2d0] sm:$0xff] }
  0x52   : > { %445 = vst [vmem:[%s2274_s10 + $0xb0] sm:$0xff] %v444_v30  ;;  %v492_v54 = vld [vmem:[%s2269_s11 + $0x2e0] sm:$0xff]  ;;  %v494_v55 = vld [vmem:[%s2269_s11 + $0x2f0] sm:$0xff] }
  0x53   : > { %447 = vst [vmem:[%s2274_s10 + $0xb8] sm:$0xff] %v446_v31  ;;  %v496_v56 = vld [vmem:[%s2269_s11 + $0x300] sm:$0xff]  ;;  %v498_v57 = vld [vmem:[%s2269_s11 + $0x310] sm:$0xff] }
  0x54   : > { %449 = vst [vmem:[%s2274_s10 + $0xc0] sm:$0xff] %v448_v32  ;;  %v500_v58 = vld [vmem:[%s2269_s11 + $0x320] sm:$0xff]  ;;  %v502_v59 = vld [vmem:[%s2269_s11 + $0x330] sm:$0xff] }
  0x55   : > { %451 = vst [vmem:[%s2274_s10 + $0xc8] sm:$0xff] %v450_v33  ;;  %v504_v60 = vld [vmem:[%s2269_s11 + $0x340] sm:$0xff]  ;;  %v506_v61 = vld [vmem:[%s2269_s11 + $0x350] sm:$0xff] }
  0x56   : > { %453 = vst [vmem:[%s2274_s10 + $0xd0] sm:$0xff] %v452_v34  ;;  %v508_v62 = vld [vmem:[%s2269_s11 + $0x360] sm:$0xff]  ;;  %v510_v63 = vld [vmem:[%s2269_s11 + $0x370] sm:$0xff] }
  0x57   : > { %455 = vst [vmem:[%s2274_s10 + $0xd8] sm:$0xff] %v454_v35  ;;  %v512_v0 = vld [vmem:[%s2269_s11 + $0x380] sm:$0xff]  ;;  %v514_v1 = vld [vmem:[%s2269_s11 + $0x390] sm:$0xff] }
  0x58   : > { %457 = vst [vmem:[%s2274_s10 + $0xe0] sm:$0xff] %v456_v36  ;;  %v516_v2 = vld [vmem:[%s2269_s11 + $0x3a0] sm:$0xff]  ;;  %v518_v3 = vld [vmem:[%s2269_s11 + $0x3b0] sm:$0xff] }
  0x59   : > { %459 = vst [vmem:[%s2274_s10 + $0xe8] sm:$0xff] %v458_v37  ;;  %v520_v4 = vld [vmem:[%s2269_s11 + $0x3c0] sm:$0xff]  ;;  %v522_v5 = vld [vmem:[%s2269_s11 + $0x3d0] sm:$0xff] }
  0x5a   : > { %461 = vst [vmem:[%s2274_s10 + $0xf0] sm:$0xff] %v460_v38  ;;  %v524_v6 = vld [vmem:[%s2269_s11 + $0x3e0] sm:$0xff]  ;;  %v526_v7 = vld [vmem:[%s2269_s11 + $0x3f0] sm:$0xff] }
  0x5b   : > { %463 = vst [vmem:[%s2274_s10 + $0xf8] sm:$0xff] %v462_v39 }
  0x5c   : > { %465 = vst [vmem:[%s2274_s10 + $0x100] sm:$0xff] %v464_v40 }
  0x5d   : > { %467 = vst [vmem:[%s2274_s10 + $0x108] sm:$0xff] %v466_v41 }
  0x5e   : > { %469 = vst [vmem:[%s2274_s10 + $0x110] sm:$0xff] %v468_v42 }
  0x5f   : > { %471 = vst [vmem:[%s2274_s10 + $0x118] sm:$0xff] %v470_v43 }
  0x60   : > { %473 = vst [vmem:[%s2274_s10 + $0x120] sm:$0xff] %v472_v44 }
  0x61   : > { %475 = vst [vmem:[%s2274_s10 + $0x128] sm:$0xff] %v474_v45 }
  0x62   : > { %477 = vst [vmem:[%s2274_s10 + $0x130] sm:$0xff] %v476_v46 }
  0x63   : > { %479 = vst [vmem:[%s2274_s10 + $0x138] sm:$0xff] %v478_v47 }
  0x64   : > { %481 = vst [vmem:[%s2274_s10 + $0x140] sm:$0xff] %v480_v48 }
  0x65   : > { %483 = vst [vmem:[%s2274_s10 + $0x148] sm:$0xff] %v482_v49 }
  0x66   : > { %485 = vst [vmem:[%s2274_s10 + $0x150] sm:$0xff] %v484_v50 }
  0x67   : > { %487 = vst [vmem:[%s2274_s10 + $0x158] sm:$0xff] %v486_v51 }
  0x68   : > { %489 = vst [vmem:[%s2274_s10 + $0x160] sm:$0xff] %v488_v52 }
  0x69   : > { %491 = vst [vmem:[%s2274_s10 + $0x168] sm:$0xff] %v490_v53 }
  0x6a   : > { %493 = vst [vmem:[%s2274_s10 + $0x170] sm:$0xff] %v492_v54 }
  0x6b   : > { %495 = vst [vmem:[%s2274_s10 + $0x178] sm:$0xff] %v494_v55 }
  0x6c   : > { %497 = vst [vmem:[%s2274_s10 + $0x180] sm:$0xff] %v496_v56 }
  0x6d   : > { %499 = vst [vmem:[%s2274_s10 + $0x188] sm:$0xff] %v498_v57 }
  0x6e   : > { %501 = vst [vmem:[%s2274_s10 + $0x190] sm:$0xff] %v500_v58 }
  0x6f   : > { %503 = vst [vmem:[%s2274_s10 + $0x198] sm:$0xff] %v502_v59 }
  0x70   : > { %505 = vst [vmem:[%s2274_s10 + $0x1a0] sm:$0xff] %v504_v60 }
  0x71   : > { %507 = vst [vmem:[%s2274_s10 + $0x1a8] sm:$0xff] %v506_v61 }
  0x72   : > { %509 = vst [vmem:[%s2274_s10 + $0x1b0] sm:$0xff] %v508_v62 }
  0x73   : > { %511 = vst [vmem:[%s2274_s10 + $0x1b8] sm:$0xff] %v510_v63 }
  0x74   : > { %513 = vst [vmem:[%s2274_s10 + $0x1c0] sm:$0xff] %v512_v0 }
  0x75   : > { %515 = vst [vmem:[%s2274_s10 + $0x1c8] sm:$0xff] %v514_v1 }
  0x76   : > { %517 = vst [vmem:[%s2274_s10 + $0x1d0] sm:$0xff] %v516_v2 }
  0x77   : > { %519 = vst [vmem:[%s2274_s10 + $0x1d8] sm:$0xff] %v518_v3 }
  0x78   : > { %521 = vst [vmem:[%s2274_s10 + $0x1e0] sm:$0xff] %v520_v4 }
  0x79   : > { %523 = vst [vmem:[%s2274_s10 + $0x1e8] sm:$0xff] %v522_v5 }
  0x7a   : > { %525 = vst [vmem:[%s2274_s10 + $0x1f0] sm:$0xff] %v524_v6 }
  0x7b   : > { %527 = vst [vmem:[%s2274_s10 + $0x1f8] sm:$0xff] %v526_v7 }
  0x7c PF: > { %p1574_p0 = scmp.ge.s32.totalorder %s2127_s25, 1  ;;  %p532_p1 = scmp.lt.s32.totalorder %s2127_s25, 17 }
  0x7e   : > { %p533_p2 = pnand %p1574_p0, %p532_p1 }
  0x7f   : > { %s539_s0 = sand.u32 (!%p533_p2), 1, %s2103_s19   ;;  %s546_s28 = sand.u32 (!%p533_p2), 1, %s2095_s17  }
  0x80   : > { %536 = sbr.rel (%p533_p2) target bundleno = 412 (0x19c), region = 81  ;;  %s1575_s26 = sshll.u32 (!%p533_p2), %s539_s0, 6 }
  0x81   : > { %s1576_s5 = sshll.u32 (!%p533_p2), %s546_s28, 9  ;;  %s567_s29 = sand.u32 (!%p533_p2), 1, %s2087_s15  }
  0x82   : > { %s1578_s30 = sshll.u32 (!%p533_p2), %s2115_s22, 1  ;;  %s1577_s8 = sshll.u32 (!%p533_p2), %s567_s29, 5 }
  0x83   : > { %p601_p3 = scmp.lt.s32.totalorder (!%p533_p2), %s1578_s30, 3  ;;  %s2417_s19 = scalar_lea.vmem (!%p533_p2), [#allocation3], %s1575_s26 }
  0x84   : > { %s2419_s17 = scalar_lea.vmem (!%p533_p2), [#allocation4], %s1576_s5  ;;  %s2421_s15 = scalar_lea.vmem (!%p533_p2), [#allocation5], %s1577_s8 }
  0x85   : > { %s2685_s30 = smov (!%p601_p3, %s1578_s30), 3  ;;  %p1582_p4 = scmp.ne.s32.totalorder %s2111_s21, 0 }
  0x86   : > { %s1579_s6 = sshll.u32 %s2685_s30, 3 }
  0x87   : > { %s2410_s10 = scalar_lea.vmem %s2651_s3, %s1579_s6  ;;  %s2415_s24 = scalar_lea.vmem %s2652_s4, %s1579_s6 }
  0x88   : > { %621 = sbr.rel (%p1582_p4) target bundleno = 150 (0x96), region = 93 }
  0x8d   : > { %v2129_v8 = vmov 0.0  }
  0x8e   : > { %622 = vst [vmem:[#allocation2 + $0x30] sm:$0xff] %v2129_v8 }
  0x8f   : > { %623 = vst [vmem:[#allocation2] sm:$0xff] %v2129_v8 }
  0x90   : > { %624 = vst [vmem:[#allocation2 + $0x18] sm:$0xff] %v2129_v8 }
  0x91   : > { %625 = vst [vmem:[#allocation2 + $0x10] sm:$0xff] %v2129_v8 }
  0x92   : > { %626 = vst [vmem:[#allocation2 + $0x8] sm:$0xff] %v2129_v8 }
  0x93   : > { %627 = vst [vmem:[#allocation2 + $0x20] sm:$0xff] %v2129_v8 }
  0x94   : > { %628 = vst [vmem:[#allocation2 + $0x28] sm:$0xff] %v2129_v8 }
  0x95   : > { %629 = vst [vmem:[#allocation2 + $0x38] sm:$0xff] %v2129_v8 }
  0x96 PF: > { %v1673_v9 = vld [vmem:[%s2419_s17 + $0x70] sm:$0xf]  ;;  %v1902_v10 = vld [vmem:[%s2419_s17 + $0x74] sm:$0xf0]  ;;  %v1665_v20 = vld [vmem:[%s2419_s17 + $0x60] sm:$0xf] }
  0x97   : > { %v1737_v11 = vld [vmem:[%s2419_s17 + $0xf0] sm:$0xf]  ;;  %v1674_v12 = vor.u32 %v1902_v10, %v1673_v9  ;;  %v1918_v13 = vld [vmem:[%s2419_s17 + $0xf4] sm:$0xf0]  ;;  %v1900_v22 = vld [vmem:[%s2419_s17 + $0x64] sm:$0xf0] }
  0x98   : > { %v1801_v14 = vld [vmem:[%s2419_s17 + $0x170] sm:$0xf]  ;;  %v1934_v15 = vld [vmem:[%s2419_s17 + $0x174] sm:$0xf0]  ;;  %v1738_v16 = vor.u32 %v1918_v13, %v1737_v11  ;;  %v1729_v23 = vld [vmem:[%s2419_s17 + $0xe0] sm:$0xf]  ;;  %v1666_v25 = vor.u32 %v1900_v22, %v1665_v20 }
  0x99   : > { %v1802_v17 = vor.u32 %v1934_v15, %v1801_v14  ;;  %v1865_v18 = vld [vmem:[%s2419_s17 + $0x1f0] sm:$0xf]  ;;  %v1950_v19 = vld [vmem:[%s2419_s17 + $0x1f4] sm:$0xf0]  ;;  %1070 = vmatpush.bf16.msra.mxu0 %v1674_v12  ;;  %v1916_v24 = vld [vmem:[%s2419_s17 + $0xe4] sm:$0xf0] }
  0x9a   : > { %v1866_v21 = vor.u32 %v1950_v19, %v1865_v18  ;;  %1089 = vmatpush.bf16.msra.mxu1 %v1738_v16  ;;  %v1730_v26 = vor.u32 %v1916_v24, %v1729_v23  ;;  %v1793_v27 = vld [vmem:[%s2419_s17 + $0x160] sm:$0xf]  ;;  %v1932_v28 = vld [vmem:[%s2419_s17 + $0x164] sm:$0xf0]  ;;  %v1657_v32 = vld [vmem:[%s2419_s17 + $0x50] sm:$0xf] }
  0x9b   : > { %1108 = vmatpush.bf16.msra.mxu2 %v1802_v17  ;;  %v1857_v29 = vld [vmem:[%s2419_s17 + $0x1e0] sm:$0xf]  ;;  %v1794_v30 = vor.u32 %v1932_v28, %v1793_v27  ;;  %v1948_v31 = vld [vmem:[%s2419_s17 + $0x1e4] sm:$0xf0]  ;;  %v1898_v33 = vld [vmem:[%s2419_s17 + $0x54] sm:$0xf0] }
  0x9c   : > { %1127 = vmatpush.bf16.msra.mxu3 %v1866_v21  ;;  %v1858_v34 = vor.u32 %v1948_v31, %v1857_v29  ;;  %v1721_v35 = vld [vmem:[%s2419_s17 + $0xd0] sm:$0xf]  ;;  %v1914_v36 = vld [vmem:[%s2419_s17 + $0xd4] sm:$0xf0]  ;;  %v1658_v38 = vor.u32 %v1898_v33, %v1657_v32  ;;  %v1649_v44 = vld [vmem:[%s2419_s17 + $0x40] sm:$0xf] }
  0x9d   : > { %v1785_v37 = vld [vmem:[%s2419_s17 + $0x150] sm:$0xf]  ;;  %1071 = vmatpush.bf16.msra.mxu0 %v1666_v25  ;;  %v1930_v39 = vld [vmem:[%s2419_s17 + $0x154] sm:$0xf0]  ;;  %v1722_v42 = vor.u32 %v1914_v36, %v1721_v35  ;;  %v1896_v45 = vld [vmem:[%s2419_s17 + $0x44] sm:$0xf0] }
  0x9e   : > { %v1849_v40 = vld [vmem:[%s2419_s17 + $0x1d0] sm:$0xf]  ;;  %v1946_v41 = vld [vmem:[%s2419_s17 + $0x1d4] sm:$0xf0]  ;;  %1090 = vmatpush.bf16.msra.mxu1 %v1730_v26  ;;  %v1786_v43 = vor.u32 %v1930_v39, %v1785_v37  ;;  %v1713_v46 = vld [vmem:[%s2419_s17 + $0xc0] sm:$0xf]  ;;  %v1650_v53 = vor.u32 %v1896_v45, %v1649_v44 }
  0x9f   : > { %1109 = vmatpush.bf16.msra.mxu2 %v1794_v30  ;;  %v1850_v47 = vor.u32 %v1946_v41, %v1849_v40  ;;  %v1912_v48 = vld [vmem:[%s2419_s17 + $0xc4] sm:$0xf0]  ;;  %v1777_v49 = vld [vmem:[%s2419_s17 + $0x140] sm:$0xf]  ;;  %v1641_v56 = vld [vmem:[%s2419_s17 + $0x30] sm:$0xf] }
  0xa0   : > { %1128 = vmatpush.bf16.msra.mxu3 %v1858_v34  ;;  %v1928_v50 = vld [vmem:[%s2419_s17 + $0x144] sm:$0xf0]  ;;  %v1841_v51 = vld [vmem:[%s2419_s17 + $0x1c0] sm:$0xf]  ;;  %v1714_v54 = vor.u32 %v1912_v48, %v1713_v46  ;;  %v1894_v57 = vld [vmem:[%s2419_s17 + $0x34] sm:$0xf0] }
  0xa1   : > { %v1944_v52 = vld [vmem:[%s2419_s17 + $0x1c4] sm:$0xf0]  ;;  %1072 = vmatpush.bf16.msra.mxu0 %v1658_v38  ;;  %v1778_v55 = vor.u32 %v1928_v50, %v1777_v49  ;;  %v1705_v58 = vld [vmem:[%s2419_s17 + $0xb0] sm:$0xf]  ;;  %v1910_v60 = vld [vmem:[%s2419_s17 + $0xb4] sm:$0xf0]  ;;  %v1642_v1 = vor.u32 %v1894_v57, %v1641_v56 }
  0xa2   : > { %1091 = vmatpush.bf16.msra.mxu1 %v1722_v42  ;;  %v1842_v59 = vor.u32 %v1944_v52, %v1841_v51  ;;  %v1769_v61 = vld [vmem:[%s2419_s17 + $0x130] sm:$0xf]  ;;  %v1926_v62 = vld [vmem:[%s2419_s17 + $0x134] sm:$0xf0]  ;;  %v1706_v2 = vor.u32 %v1910_v60, %v1705_v58  ;;  %v1633_v4 = vld [vmem:[%s2419_s17 + $0x20] sm:$0xf] }
  0xa3   : > { %1110 = vmatpush.bf16.msra.mxu2 %v1786_v43  ;;  %v1833_v63 = vld [vmem:[%s2419_s17 + $0x1b0] sm:$0xf]  ;;  %v1942_v0 = vld [vmem:[%s2419_s17 + $0x1b4] sm:$0xf0]  ;;  %v1770_v3 = vor.u32 %v1926_v62, %v1769_v61  ;;  %v1892_v5 = vld [vmem:[%s2419_s17 + $0x24] sm:$0xf0] }
  0xa4   : > { %1129 = vmatpush.bf16.msra.mxu3 %v1850_v47  ;;  %v1697_v6 = vld [vmem:[%s2419_s17 + $0xa0] sm:$0xf]  ;;  %v1834_v7 = vor.u32 %v1942_v0, %v1833_v63  ;;  %v1908_v8 = vld [vmem:[%s2419_s17 + $0xa4] sm:$0xf0]  ;;  %v1634_v13 = vor.u32 %v1892_v5, %v1633_v4  ;;  %v1625_v16 = vld [vmem:[%s2419_s17 + $0x10] sm:$0xf] }
  0xa5   : > { %1073 = vmatpush.bf16.msra.mxu0 %v1650_v53  ;;  %v1761_v9 = vld [vmem:[%s2419_s17 + $0x120] sm:$0xf]  ;;  %v1924_v10 = vld [vmem:[%s2419_s17 + $0x124] sm:$0xf0]  ;;  %v1698_v14 = vor.u32 %v1908_v8, %v1697_v6  ;;  %v1890_v17 = vld [vmem:[%s2419_s17 + $0x14] sm:$0xf0] }
  0xa6   : > { %1092 = vmatpush.bf16.msra.mxu1 %v1714_v54  ;;  %v1825_v11 = vld [vmem:[%s2419_s17 + $0x1a0] sm:$0xf]  ;;  %v1940_v12 = vld [vmem:[%s2419_s17 + $0x1a4] sm:$0xf0]  ;;  %v1762_v15 = vor.u32 %v1924_v10, %v1761_v9  ;;  %v1689_v18 = vld [vmem:[%s2419_s17 + $0x90] sm:$0xf]  ;;  %v1626_v26 = vor.u32 %v1890_v17, %v1625_v16 }
  0xa7   : > { %1111 = vmatpush.bf16.msra.mxu2 %v1778_v55  ;;  %v1826_v19 = vor.u32 %v1940_v12, %v1825_v11  ;;  %v1906_v20 = vld [vmem:[%s2419_s17 + $0x94] sm:$0xf0]  ;;  %v1753_v21 = vld [vmem:[%s2419_s17 + $0x110] sm:$0xf]  ;;  %v1617_v25 = vld [vmem:[%s2419_s17] sm:$0xf] }
  0xa8   : > { %1130 = vmatpush.bf16.msra.mxu3 %v1842_v59  ;;  %v1922_v22 = vld [vmem:[%s2419_s17 + $0x114] sm:$0xf0]  ;;  %v1817_v23 = vld [vmem:[%s2419_s17 + $0x190] sm:$0xf]  ;;  %v1888_v27 = vld [vmem:[%s2419_s17 + $0x4] sm:$0xf0]  ;;  %v1690_v30 = vor.u32 %v1906_v20, %v1689_v18 }
  0xa9   : > { %1074 = vmatpush.bf16.msra.mxu0 %v1642_v1  ;;  %v1938_v24 = vld [vmem:[%s2419_s17 + $0x194] sm:$0xf0]  ;;  %v1681_v28 = vld [vmem:[%s2419_s17 + $0x80] sm:$0xf]  ;;  %v1904_v29 = vld [vmem:[%s2419_s17 + $0x84] sm:$0xf0]  ;;  %v1754_v31 = vor.u32 %v1922_v22, %v1753_v21  ;;  %v1618_v43 = vor.u32 %v1888_v27, %v1617_v25 }
  0xaa   : > { %1093 = vmatpush.bf16.msra.mxu1 %v1706_v2  ;;  %v1745_v32 = vld [vmem:[%s2419_s17 + $0x100] sm:$0xf]  ;;  %v1920_v33 = vld [vmem:[%s2419_s17 + $0x104] sm:$0xf0]  ;;  %v1818_v35 = vor.u32 %v1938_v24, %v1817_v23  ;;  %v1881_v38 = vld [vmem:[%s2417_s19 + $0xc] sm:$0xf0]  ;;  %v1682_v47 = vor.u32 %v1904_v29, %v1681_v28 }
  0xab   : > { %1112 = vmatpush.bf16.msra.mxu2 %v1770_v3  ;;  %v1809_v34 = vld [vmem:[%s2419_s17 + $0x180] sm:$0xf]  ;;  %v1936_v36 = vld [vmem:[%s2419_s17 + $0x184] sm:$0xf0]  ;;  %v1879_v39 = vld [vmem:[%s2417_s19 + $0x4] sm:$0xf]  ;;  %v1746_v48 = vor.u32 %v1920_v33, %v1745_v32 }
  0xac   : > { %1131 = vmatpush.bf16.msra.mxu3 %v1834_v7  ;;  %v1585_v37 = vld [vmem:[%s2417_s19] sm:$0xf]  ;;  %v1587_v40 = vld [vmem:[%s2417_s19 + $0x10] sm:$0xf0]  ;;  %v1803_v42 = vld [vmem:[%s2419_s17 + $0x178] sm:$0xf0]  ;;  %v1810_v52 = vor.u32 %v1936_v36, %v1809_v34 }
  0xad   : > { %1075 = vmatpush.bf16.msra.mxu0 %v1634_v13  ;;  %v1933_v41 = vld [vmem:[%s2419_s17 + $0x174] sm:$0xf]  ;;  %v1593_v44 = vld [vmem:[%s2417_s19 + $0x8] sm:$0xf]  ;;  %v1739_v46 = vld [vmem:[%s2419_s17 + $0xf8] sm:$0xf0]  ;;  %v2503_v57 = vor.u32 %v1881_v38, %v1585_v37  ;;  %v2508_v62 = vor.u32 %v1879_v39, %v1587_v40 }
  0xae   : > { %1094 = vmatpush.bf16.msra.mxu1 %v1698_v14  ;;  %v1917_v45 = vld [vmem:[%s2419_s17 + $0xf4] sm:$0xf]  ;;  %v1882_v49 = vld [vmem:[%s2417_s19 + $0x14] sm:$0xf0]  ;;  %v1880_v50 = vld [vmem:[%s2417_s19 + $0xc] sm:$0xf]  ;;  %v1806_v53 = vor.u32 %v1933_v41, %v1803_v42 }
  0xaf   : > { %1113 = vmatpush.bf16.msra.mxu2 %v1762_v15  ;;  %v1595_v51 = vld [vmem:[%s2417_s19 + $0x18] sm:$0xf0]  ;;  %v1901_v54 = vld [vmem:[%s2419_s17 + $0x74] sm:$0xf]  ;;  %v1742_v58 = vor.u32 %v1917_v45, %v1739_v46  ;;  %v1931_v60 = vld [vmem:[%s2419_s17 + $0x164] sm:$0xf]  ;;  %v2510_v63 = vor.u32 %v1882_v49, %v1593_v44 }
  0xb0   : > { %1132 = vmatpush.bf16.msra.mxu3 %v1826_v19  ;;  %v1675_v55 = vld [vmem:[%s2419_s17 + $0x78] sm:$0xf0]  ;;  %v1949_v56 = vld [vmem:[%s2419_s17 + $0x1f4] sm:$0xf]  ;;  %v1795_v61 = vld [vmem:[%s2419_s17 + $0x168] sm:$0xf0]  ;;  %v2514_v2 = vor.u32 %v1880_v50, %v1595_v51 }
  0xb1   : > { %1076 = vmatpush.bf16.msra.mxu0 %v1626_v26  ;;  %v1867_v59 = vld [vmem:[%s2419_s17 + $0x1f8] sm:$0xf0]  ;;  %v1915_v0 = vld [vmem:[%s2419_s17 + $0xe4] sm:$0xf]  ;;  %v1731_v1 = vld [vmem:[%s2419_s17 + $0xe8] sm:$0xf0]  ;;  %v1678_v3 = vor.u32 %v1901_v54, %v1675_v55  ;;  %v1798_v5 = vor.u32 %v1931_v60, %v1795_v61 }
  0xb2   : > { %1095 = vmatpush.bf16.msra.mxu1 %v1690_v30  ;;  %v1870_v4 = vor.u32 %v1949_v56, %v1867_v59  ;;  %v1899_v6 = vld [vmem:[%s2419_s17 + $0x64] sm:$0xf]  ;;  %v1667_v7 = vld [vmem:[%s2419_s17 + $0x68] sm:$0xf0]  ;;  %v1734_v9 = vor.u32 %v1915_v0, %v1731_v1  ;;  %v1929_v11 = vld [vmem:[%s2419_s17 + $0x154] sm:$0xf] }
  0xb3   : > { %1114 = vmatpush.bf16.msra.mxu2 %v1754_v31  ;;  %v1947_v8 = vld [vmem:[%s2419_s17 + $0x1e4] sm:$0xf]  ;;  %v1859_v10 = vld [vmem:[%s2419_s17 + $0x1e8] sm:$0xf0]  ;;  %v1787_v12 = vld [vmem:[%s2419_s17 + $0x158] sm:$0xf0]  ;;  %v1670_v15 = vor.u32 %v1899_v6, %v1667_v7 }
  0xb4   : > { %1133 = vmatpush.bf16.msra.mxu3 %v1818_v35  ;;  %v1913_v13 = vld [vmem:[%s2419_s17 + $0xd4] sm:$0xf]  ;;  %v1723_v14 = vld [vmem:[%s2419_s17 + $0xd8] sm:$0xf0]  ;;  %v1862_v16 = vor.u32 %v1947_v8, %v1859_v10  ;;  %v1790_v17 = vor.u32 %v1929_v11, %v1787_v12  ;;  %v1927_v23 = vld [vmem:[%s2419_s17 + $0x144] sm:$0xf] }
  0xb5   : > { %1077 = vmatpush.bf16.msra.mxu0 %v1618_v43  ;;  %v1897_v18 = vld [vmem:[%s2419_s17 + $0x54] sm:$0xf]  ;;  %v1659_v19 = vld [vmem:[%s2419_s17 + $0x58] sm:$0xf0]  ;;  %v1726_v21 = vor.u32 %v1913_v13, %v1723_v14  ;;  %v1779_v24 = vld [vmem:[%s2419_s17 + $0x148] sm:$0xf0] }
  0xb6   : > { %1096 = vmatpush.bf16.msra.mxu1 %v1682_v47  ;;  %v1945_v20 = vld [vmem:[%s2419_s17 + $0x1d4] sm:$0xf]  ;;  %v1851_v22 = vld [vmem:[%s2419_s17 + $0x1d8] sm:$0xf0]  ;;  %v1911_v25 = vld [vmem:[%s2419_s17 + $0xc4] sm:$0xf]  ;;  %v1662_v27 = vor.u32 %v1897_v18, %v1659_v19  ;;  %v1782_v32 = vor.u32 %v1927_v23, %v1779_v24 }
  0xb7   : > { %1115 = vmatpush.bf16.msra.mxu2 %v1746_v48  ;;  %v1715_v26 = vld [vmem:[%s2419_s17 + $0xc8] sm:$0xf0]  ;;  %v1895_v28 = vld [vmem:[%s2419_s17 + $0x44] sm:$0xf]  ;;  %v1854_v31 = vor.u32 %v1945_v20, %v1851_v22  ;;  %v1601_v34 = vld [vmem:[%s2417_s19 + $0x20] sm:$0xf] }
  0xb8   : > { %1134 = vmatpush.bf16.msra.mxu3 %v1810_v52  ;;  %1078 = vmatmul.bf16.vlgmr.msra.gmra.mxu0 %v2503_v57  ;;  %v1651_v29 = vld [vmem:[%s2419_s17 + $0x48] sm:$0xf0]  ;;  %v1943_v30 = vld [vmem:[%s2419_s17 + $0x1c4] sm:$0xf]  ;;  %v1885_v35 = vld [vmem:[%s2417_s19 + $0x2c] sm:$0xf0]  ;;  %v1718_v36 = vor.u32 %v1911_v25, %v1715_v26 }
  0xb9   : > { %1097 = vmatmul.bf16.vlgmr.msra.gmra.mxu1 %v2508_v62  ;;  %1146 = vmatpush.bf16.msrb.mxu0 %v1678_v3  ;;  %v1843_v33 = vld [vmem:[%s2419_s17 + $0x1c8] sm:$0xf0]  ;;  %v1883_v37 = vld [vmem:[%s2417_s19 + $0x24] sm:$0xf]  ;;  %v1603_v38 = vld [vmem:[%s2417_s19 + $0x30] sm:$0xf0]  ;;  %v1654_v44 = vor.u32 %v1895_v28, %v1651_v29 }
  0xba   : > { %1165 = vmatpush.bf16.msrb.mxu1 %v1742_v58  ;;  %1116 = vmatmul.bf16.vlgmr.msra.gmra.mxu2 %v2510_v63  ;;  %v1925_v39 = vld [vmem:[%s2419_s17 + $0x134] sm:$0xf]  ;;  %v1771_v40 = vld [vmem:[%s2419_s17 + $0x138] sm:$0xf0]  ;;  %v1609_v41 = vld [vmem:[%s2417_s19 + $0x28] sm:$0xf]  ;;  %v1846_v48 = vor.u32 %v1943_v30, %v1843_v33  ;;  %v2560_v59 = vor.u32 %v1883_v37, %v1603_v38 }
  0xbb   : > { %1184 = vmatpush.bf16.msrb.mxu2 %v1806_v53  ;;  %1135 = vmatmul.bf16.vlgmr.msra.gmra.mxu3 %v2514_v2  ;;  %v1909_v42 = vld [vmem:[%s2419_s17 + $0xb4] sm:$0xf]  ;;  %v1707_v43 = vld [vmem:[%s2419_s17 + $0xb8] sm:$0xf0]  ;;  %v1886_v45 = vld [vmem:[%s2417_s19 + $0x34] sm:$0xf0]  ;;  %v1774_v49 = vor.u32 %v1925_v39, %v1771_v40  ;;  %v2555_v53 = vor.u32 %v1885_v35, %v1601_v34 }
  0xbc   : > { %1203 = vmatpush.bf16.msrb.mxu3 %v1870_v4  ;;  %v1884_v46 = vld [vmem:[%s2417_s19 + $0x2c] sm:$0xf]  ;;  %v1611_v47 = vld [vmem:[%s2417_s19 + $0x38] sm:$0xf0]  ;;  %v1893_v50 = vld [vmem:[%s2419_s17 + $0x34] sm:$0xf]  ;;  %v1710_v54 = vor.u32 %v1909_v42, %v1707_v43  ;;  %v2562_v60 = vor.u32 %v1886_v45, %v1609_v41 }
  0xbd   : > { %1147 = vmatpush.bf16.msrb.mxu0 %v1670_v15  ;;  %v1643_v51 = vld [vmem:[%s2419_s17 + $0x38] sm:$0xf0]  ;;  %v1941_v52 = vld [vmem:[%s2419_s17 + $0x1b4] sm:$0xf]  ;;  %v1923_v56 = vld [vmem:[%s2419_s17 + $0x124] sm:$0xf]  ;;  %v1614_v1 = vor.u32 %v1884_v46, %v1611_v47 }
  0xbe   : > { %1166 = vmatpush.bf16.msrb.mxu1 %v1734_v9  ;;  %v1835_v55 = vld [vmem:[%s2419_s17 + $0x1b8] sm:$0xf0]  ;;  %v1763_v58 = vld [vmem:[%s2419_s17 + $0x128] sm:$0xf0]  ;;  %v1907_v61 = vld [vmem:[%s2419_s17 + $0xa4] sm:$0xf]  ;;  %v1646_v3 = vor.u32 %v1893_v50, %v1643_v51 }
  0xbf   : > { %1185 = vmatpush.bf16.msrb.mxu2 %v1798_v5  ;;  %v1699_v0 = vld [vmem:[%s2419_s17 + $0xa8] sm:$0xf0]  ;;  %v1838_v4 = vor.u32 %v1941_v52, %v1835_v55  ;;  %v1766_v5 = vor.u32 %v1923_v56, %v1763_v58  ;;  %v1891_v6 = vld [vmem:[%s2419_s17 + $0x24] sm:$0xf]  ;;  %v1921_v11 = vld [vmem:[%s2419_s17 + $0x114] sm:$0xf] }
  0xc0   : > { %1204 = vmatpush.bf16.msrb.mxu3 %v1862_v16  ;;  %v1635_v7 = vld [vmem:[%s2419_s17 + $0x28] sm:$0xf0]  ;;  %v1939_v8 = vld [vmem:[%s2419_s17 + $0x1a4] sm:$0xf]  ;;  %v1702_v9 = vor.u32 %v1907_v61, %v1699_v0  ;;  %v1755_v12 = vld [vmem:[%s2419_s17 + $0x118] sm:$0xf0] }
  0xc1   : > { %1148 = vmatpush.bf16.msrb.mxu0 %v1662_v27  ;;  %v1827_v10 = vld [vmem:[%s2419_s17 + $0x1a8] sm:$0xf0]  ;;  %v1905_v13 = vld [vmem:[%s2419_s17 + $0x94] sm:$0xf]  ;;  %v1691_v14 = vld [vmem:[%s2419_s17 + $0x98] sm:$0xf0]  ;;  %v1638_v15 = vor.u32 %v1891_v6, %v1635_v7 }
  0xc2   : > { %1167 = vmatpush.bf16.msrb.mxu1 %v1726_v21  ;;  %v1830_v16 = vor.u32 %v1939_v8, %v1827_v10  ;;  %v1889_v18 = vld [vmem:[%s2419_s17 + $0x14] sm:$0xf]  ;;  %v1627_v19 = vld [vmem:[%s2419_s17 + $0x18] sm:$0xf0]  ;;  %v1694_v21 = vor.u32 %v1905_v13, %v1691_v14  ;;  %v1919_v23 = vld [vmem:[%s2419_s17 + $0x104] sm:$0xf] }
  0xc3   : > { %1186 = vmatpush.bf16.msrb.mxu2 %v1790_v17  ;;  %v1758_v17 = vor.u32 %v1921_v11, %v1755_v12  ;;  %v1937_v20 = vld [vmem:[%s2419_s17 + $0x194] sm:$0xf]  ;;  %v1819_v22 = vld [vmem:[%s2419_s17 + $0x198] sm:$0xf0]  ;;  %v1747_v24 = vld [vmem:[%s2419_s17 + $0x108] sm:$0xf0]  ;;  %v1630_v27 = vor.u32 %v1889_v18, %v1627_v19 }
  0xc4   : > { %1205 = vmatpush.bf16.msrb.mxu3 %v1854_v31  ;;  %v1903_v25 = vld [vmem:[%s2419_s17 + $0x84] sm:$0xf]  ;;  %v1683_v26 = vld [vmem:[%s2419_s17 + $0x88] sm:$0xf0]  ;;  %v1822_v28 = vor.u32 %v1937_v20, %v1819_v22  ;;  %v1750_v29 = vor.u32 %v1919_v23, %v1747_v24  ;;  %v630_v43 = vld [vmem:[#allocation2 + $0x30] sm:$0xff]  ;;  %p1871_p5 = scmp.ne.s32.totalorder %s2111_s21, 7 }
  0xc5   : > { %1149 = vmatpush.bf16.msrb.mxu0 %v1654_v44  ;;  %v1887_v30 = vld [vmem:[%s2419_s17 + $0x4] sm:$0xf]  ;;  %v1619_v31 = vld [vmem:[%s2419_s17 + $0x8] sm:$0xf0]  ;;  %v633_v24 = vld [vmem:[#allocation2 + $0x10] sm:$0xff] }
  0xc6   : > { %1168 = vmatpush.bf16.msrb.mxu1 %v1718_v36  ;;  %v1935_v33 = vld [vmem:[%s2419_s17 + $0x184] sm:$0xf]  ;;  %v1811_v34 = vld [vmem:[%s2419_s17 + $0x188] sm:$0xf0]  ;;  %v1622_v35 = vor.u32 %v1887_v30, %v1619_v31 }
  0xc7   : > { %1187 = vmatpush.bf16.msrb.mxu2 %v1782_v32  ;;  %v1686_v32 = vor.u32 %v1903_v25, %v1683_v26  ;;  %v1814_v36 = vor.u32 %v1935_v33, %v1811_v34  ;;  %v636_v6 = vld [vmem:[#allocation2 + $0x28] sm:$0xff]  ;;  %v635_v33 = vld [vmem:[#allocation2 + $0x20] sm:$0xff] }
  0xc8   : > { %1206 = vmatpush.bf16.msrb.mxu3 %v1846_v48  ;;  %1083 = vmatmul.bf16.gmra.mxu0 %v2555_v53 }
  0xc9   : > { %1102 = vmatmul.bf16.gmra.mxu1 %v2560_v59  ;;  %1150 = vmatpush.bf16.msrb.mxu0 %v1646_v3 }
  0xca   : > { %1169 = vmatpush.bf16.msrb.mxu1 %v1710_v54  ;;  %1121 = vmatmul.bf16.gmra.mxu2 %v2562_v60 }
  0xcb   : > { %1188 = vmatpush.bf16.msrb.mxu2 %v1774_v49  ;;  %1140 = vmatmul.bf16.gmra.mxu3 %v1614_v1  ;;  %v632_v49 = vld [vmem:[#allocation2 + $0x18] sm:$0xff] }
  0xcc   : > { %1207 = vmatpush.bf16.msrb.mxu3 %v1838_v4 }
  0xcd   : > { %1151 = vmatpush.bf16.msrb.mxu0 %v1638_v15 }
  0xce   : > { %1170 = vmatpush.bf16.msrb.mxu1 %v1702_v9 }
  0xcf   : > { %1189 = vmatpush.bf16.msrb.mxu2 %v1766_v5 }
  0xd0   : > { %1208 = vmatpush.bf16.msrb.mxu3 %v1830_v16 }
  0xd1   : > { %1152 = vmatpush.bf16.msrb.mxu0 %v1630_v27 }
  0xd2   : > { %1171 = vmatpush.bf16.msrb.mxu1 %v1694_v21 }
  0xd3   : > { %1190 = vmatpush.bf16.msrb.mxu2 %v1758_v17  ;;  %v631_v17 = vld [vmem:[#allocation2] sm:$0xff] }
  0xd4   : > { %1209 = vmatpush.bf16.msrb.mxu3 %v1822_v28 }
  0xd5   : > { %1153 = vmatpush.bf16.msrb.mxu0 %v1622_v35 }
  0xd6   : > { %1172 = vmatpush.bf16.msrb.mxu1 %v1686_v32 }
  0xd7   : > { %1191 = vmatpush.bf16.msrb.mxu2 %v1750_v29 }
  0xd8   : > { %1210 = vmatpush.bf16.msrb.mxu3 %v1814_v36  ;;  %1154 = vmatmul.bf16.vlgmr.msrb.gmra.mxu0 %v2503_v57 }
  0xd9   : > { %1173 = vmatmul.bf16.vlgmr.msrb.gmra.mxu1 %v2508_v62 }
  0xda   : > { %1192 = vmatmul.bf16.vlgmr.msrb.gmra.mxu2 %v2510_v63 }
  0xdb   : > { %1211 = vmatmul.bf16.vlgmr.msrb.gmra.mxu3 %v2514_v2 }
  0xe8   : > { %1159 = vmatmul.bf16.gmra.mxu0 %v2555_v53 }
  0xe9   : > { %1178 = vmatmul.bf16.gmra.mxu1 %v2560_v59  ;;  %v634_v59 = vld [vmem:[#allocation2 + $0x8] sm:$0xff] }
  0xea   : > { %1197 = vmatmul.bf16.gmra.mxu2 %v2562_v60 }
  0xeb   : > { %1216 = vmatmul.bf16.gmra.mxu3 %v1614_v1 }
 0x135   : > { %v1079_v37 = vpop.f32.mrf.mxu0 }
 0x136   : > { %v1098_v38 = vpop.f32.mrf.mxu1 }
 0x137   : > { %v1099_v39 = vadd.f32 %v1098_v38, %v1079_v37 }
 0x13d   : > { %v1117_v40 = vpop.f32.mrf.mxu2  ;;  %v1081_v57 = vpop.f32.mrf.mxu0 }
 0x13e   : > { %v1118_v41 = vadd.f32 %v1117_v40, %v1099_v39  ;;  %v1136_v42 = vpop.f32.mrf.mxu3  ;;  %v1100_v62 = vpop.f32.mrf.mxu1 }
 0x13f   : > { %v1101_v2 = vadd.f32 %v1100_v62, %v1081_v57 }
 0x140   : > { %v1137_v44 = vadd.f32 %v1136_v42, %v1118_v41  ;;  %v637_v41 = vld [vmem:[#allocation2 + $0x38] sm:$0xff] }
 0x142   : > { %v1222_v63 = vadd.f32 %v1137_v44, %v630_v43 }
 0x144   : > { %1230 = vst [vmem:[#allocation2 + $0x30] sm:$0xff] %v1222_v63 }
 0x145   : > { %v1119_v45 = vpop.f32.mrf.mxu2  ;;  %v1084_v48 = vpop.f32.mrf.mxu0 }
 0x146   : > { %v1120_v46 = vadd.f32 %v1119_v45, %v1101_v2  ;;  %v1138_v47 = vpop.f32.mrf.mxu3  ;;  %v1103_v50 = vpop.f32.mrf.mxu1 }
 0x147   : > { %v1104_v53 = vadd.f32 %v1103_v50, %v1084_v48 }
 0x148   : > { %v1139_v51 = vadd.f32 %v1138_v47, %v1120_v46 }
 0x14a   : > { %v1224_v52 = vadd.f32 %v1139_v51, %v632_v49 }
 0x14c   : > { %1232 = vst [vmem:[#allocation2 + $0x18] sm:$0xff] %v1224_v52 }
 0x14d   : > { %v1122_v54 = vpop.f32.mrf.mxu2  ;;  %v1086_v58 = vpop.f32.mrf.mxu0 }
 0x14e   : > { %v1123_v55 = vadd.f32 %v1122_v54, %v1104_v53  ;;  %v1141_v56 = vpop.f32.mrf.mxu3  ;;  %v1105_v60 = vpop.f32.mrf.mxu1 }
 0x14f   : > { %v1106_v1 = vadd.f32 %v1105_v60, %v1086_v58 }
 0x150   : > { %v1142_v61 = vadd.f32 %v1141_v56, %v1123_v55 }
 0x152   : > { %v1226_v0 = vadd.f32 %v1142_v61, %v634_v59 }
 0x154   : > { %1234 = vst [vmem:[#allocation2 + $0x8] sm:$0xff] %v1226_v0 }
 0x155   : > { %v1124_v3 = vpop.f32.mrf.mxu2  ;;  %v1155_v7 = vpop.f32.mrf.mxu0 }
 0x156   : > { %v1125_v4 = vadd.f32 %v1124_v3, %v1106_v1  ;;  %v1143_v5 = vpop.f32.mrf.mxu3  ;;  %v1174_v8 = vpop.f32.mrf.mxu1 }
 0x157   : > { %v1175_v11 = vadd.f32 %v1174_v8, %v1155_v7 }
 0x158   : > { %v1144_v9 = vadd.f32 %v1143_v5, %v1125_v4 }
 0x15a   : > { %v1228_v10 = vadd.f32 %v1144_v9, %v636_v6 }
 0x15c   : > { %1236 = vst [vmem:[#allocation2 + $0x28] sm:$0xff] %v1228_v10 }
 0x15d   : > { %v1193_v12 = vpop.f32.mrf.mxu2  ;;  %v1157_v15 = vpop.f32.mrf.mxu0 }
 0x15e   : > { %v1212_v13 = vpop.f32.mrf.mxu3  ;;  %v1194_v14 = vadd.f32 %v1193_v12, %v1175_v11  ;;  %v1176_v16 = vpop.f32.mrf.mxu1 }
 0x15f   : > { %v1177_v20 = vadd.f32 %v1176_v16, %v1157_v15 }
 0x160   : > { %v1213_v18 = vadd.f32 %v1212_v13, %v1194_v14 }
 0x162   : > { %v1223_v19 = vadd.f32 %v1213_v18, %v631_v17 }
 0x164   : > { %1231 = vst [vmem:[#allocation2] sm:$0xff] %v1223_v19 }
 0x165   : > { %v1195_v21 = vpop.f32.mrf.mxu2  ;;  %v1160_v25 = vpop.f32.mrf.mxu0 }
 0x166   : > { %v1214_v22 = vpop.f32.mrf.mxu3  ;;  %v1196_v23 = vadd.f32 %v1195_v21, %v1177_v20  ;;  %v1179_v26 = vpop.f32.mrf.mxu1 }
 0x167   : > { %v1180_v29 = vadd.f32 %v1179_v26, %v1160_v25 }
 0x168   : > { %v1215_v27 = vadd.f32 %v1214_v22, %v1196_v23 }
 0x16a   : > { %v1225_v28 = vadd.f32 %v1215_v27, %v633_v24 }
 0x16c   : > { %1233 = vst [vmem:[#allocation2 + $0x10] sm:$0xff] %v1225_v28 }
 0x16d   : > { %v1198_v30 = vpop.f32.mrf.mxu2  ;;  %v1162_v35 = vpop.f32.mrf.mxu0 }
 0x16e   : > { %v1217_v31 = vpop.f32.mrf.mxu3  ;;  %v1199_v32 = vadd.f32 %v1198_v30, %v1180_v29  ;;  %v1181_v36 = vpop.f32.mrf.mxu1 }
 0x16f   : > { %v1182_v38 = vadd.f32 %v1181_v36, %v1162_v35 }
 0x170   : > { %v1218_v34 = vadd.f32 %v1217_v31, %v1199_v32 }
 0x172   : > { %v1227_v37 = vadd.f32 %v1218_v34, %v635_v33 }
 0x174   : > { %1235 = vst [vmem:[#allocation2 + $0x20] sm:$0xff] %v1227_v37 }
 0x175   : > { %v1200_v39 = vpop.f32.mrf.mxu2 }
 0x176   : > { %v1201_v40 = vadd.f32 %v1200_v39, %v1182_v38  ;;  %v1219_v42 = vpop.f32.mrf.mxu3 }
 0x178   : > { %v1220_v57 = vadd.f32 %v1219_v42, %v1201_v40  ;;  %1241 = sbr.rel (%p1871_p5) target bundleno = 406 (0x196), region = 97 }
 0x17a   : > { %v1229_v43 = vadd.f32 %v1220_v57, %v637_v41 }
 0x17c   : > { %1237 = vst [vmem:[#allocation2 + $0x38] sm:$0xff] %v1229_v43 }
 0x17d   : > { %v1242_v62 = vld [vmem:[#allocation2 + $0x30] sm:$0xff]  ;;  %v1244_v44 = vld [vmem:[#allocation2 + $0x18] sm:$0xff]  ;;  %v1246_v63 = vld [vmem:[#allocation2 + $0x8] sm:$0xff] }
 0x17e   : > { %v1248_v2 = vld [vmem:[#allocation2 + $0x28] sm:$0xff]  ;;  %v1258_v45 = vadd.f32 %v1244_v44, %v1242_v62  ;;  %v1276_v46 = vmul.f32 %v1242_v62, %v1242_v62  ;;  %v1278_v47 = vmul.f32 %v1244_v44, %v1244_v44  ;;  %v1280_v48 = vmul.f32 %v1246_v63, %v1246_v63  ;;  %v1243_v49 = vld [vmem:[#allocation2] sm:$0xff]  ;;  %v1245_v50 = vld [vmem:[#allocation2 + $0x10] sm:$0xff] }
 0x17f   : > { %v1282_v51 = vmul.f32 %v1248_v2, %v1248_v2  ;;  %v1250_v52 = vpack.c.bf16 %v1243_v49, %v1242_v62  ;;  %v1277_v53 = vmul.f32 %v1243_v49, %v1243_v49  ;;  %v1251_v54 = vpack.c.bf16 %v1245_v50, %v1244_v44  ;;  %v1247_v55 = vld [vmem:[#allocation2 + $0x20] sm:$0xff] }
 0x180   : > { %v1259_v58 = vadd.f32 %v1258_v45, %v1246_v63  ;;  %v1284_v59 = vadd.f32 %v1278_v47, %v1276_v46  ;;  %v1267_v60 = vadd.f32 %v1245_v50, %v1243_v49  ;;  %v1279_v61 = vmul.f32 %v1245_v50, %v1245_v50 }
 0x181   : > { %1254 = vst [vmem:[%s2421_s15] sm:$0xff] %v1250_v52  ;;  %v1252_v0 = vpack.c.bf16 %v1247_v55, %v1246_v63  ;;  %v1281_v1 = vmul.f32 %v1247_v55, %v1247_v55 }
 0x182   : > { %v1260_v5 = vadd.f32 %v1259_v58, %v1248_v2  ;;  %v1285_v6 = vadd.f32 %v1284_v59, %v1280_v48  ;;  %1255 = vst [vmem:[%s2421_s15 + $0x8] sm:$0xff] %v1251_v54  ;;  %v1293_v7 = vadd.f32 %v1279_v61, %v1277_v53  ;;  %v1268_v8 = vadd.f32 %v1267_v60, %v1247_v55 }
 0x183   : > { %v1249_v56 = vld [vmem:[#allocation2 + $0x38] sm:$0xff]  ;;  %1256 = vst [vmem:[%s2421_s15 + $0x10] sm:$0xff] %v1252_v0 }
 0x184   : > { %v1253_v3 = vpack.c.bf16 %v1249_v56, %v1248_v2  ;;  %v1283_v4 = vmul.f32 %v1249_v56, %v1249_v56  ;;  %v1261_v9 = vrot.slane %v1260_v5, 4  ;;  %v1286_v10 = vadd.f32 %v1285_v6, %v1282_v51 }
 0x185   : > { %v1294_v11 = vadd.f32 %v1293_v7, %v1281_v1  ;;  %v1269_v12 = vadd.f32 %v1268_v8, %v1249_v56 }
 0x186   : > { %1257 = vst [vmem:[%s2421_s15 + $0x18] sm:$0xff] %v1253_v3  ;;  %v1262_v13 = vadd.f32 %v1261_v9, %v1260_v5  ;;  %v1287_v14 = vrot.slane %v1286_v10, 4 }
 0x187   : > { %v1270_v15 = vrot.slane %v1269_v12, 4  ;;  %v1295_v16 = vadd.f32 %v1294_v11, %v1283_v4 }
 0x188   : > { %v1263_v17 = vrot.slane %v1262_v13, 2  ;;  %v1288_v18 = vadd.f32 %v1287_v14, %v1286_v10 }
 0x189   : > { %v1271_v19 = vadd.f32 %v1270_v15, %v1269_v12  ;;  %v1296_v20 = vrot.slane %v1295_v16, 4 }
 0x18a   : > { %v1264_v21 = vadd.f32 %v1263_v17, %v1262_v13  ;;  %v1289_v22 = vrot.slane %v1288_v18, 2 }
 0x18b   : > { %v1272_v23 = vrot.slane %v1271_v19, 2  ;;  %v1297_v24 = vadd.f32 %v1296_v20, %v1295_v16 }
 0x18c   : > { %v1265_v25 = vrot.slane %v1264_v21, 1  ;;  %v1290_v26 = vadd.f32 %v1289_v22, %v1288_v18 }
 0x18d   : > { %v1273_v27 = vadd.f32 %v1272_v23, %v1271_v19  ;;  %v1298_v28 = vrot.slane %v1297_v24, 2 }
 0x18e   : > { %v1266_v29 = vadd.f32 %v1265_v25, %v1264_v21  ;;  %v1291_v30 = vrot.slane %v1290_v26, 1 }
 0x18f   : > { %v1274_v31 = vrot.slane %v1273_v27, 1  ;;  %v1299_v32 = vadd.f32 %v1298_v28, %v1297_v24 }
 0x190   : > { %1302 = vst [vmem:[%s2410_s10] sm:$0xff] %v1266_v29  ;;  %v1292_v33 = vadd.f32 %v1291_v30, %v1290_v26 }
 0x191   : > { %v1275_v34 = vadd.f32 %v1274_v31, %v1273_v27  ;;  %v1300_v35 = vrot.slane %v1299_v32, 1 }
 0x192   : > { %1304 = vst [vmem:[%s2415_s24] sm:$0xff] %v1292_v33 }
 0x193   : > { %v1301_v36 = vadd.f32 %v1300_v35, %v1299_v32  ;;  %1303 = vst [vmem:[%s2410_s10 + $0x8] sm:$0xff] %v1275_v34 }
 0x195   : > { %1305 = vst [vmem:[%s2415_s24 + $0x8] sm:$0xff] %v1301_v36 }
 0x196 PF: > { %1330 = sbr.rel (!%p2249_p12) target bundleno = 412 (0x19c), region = 101  ;;  %s1951_s1 = sshll.u32 (%p2249_p12), %s2115_s22, 3  ;;  %v1371_v37 = vld [vmem:[%s2421_s15] sm:$0xff] (%p2249_p12)  ;;  %v1373_v38 = vld [vmem:[%s2421_s15 + $0x8] sm:$0xff] (%p2249_p12)  ;;  %v1375_v39 = vld [vmem:[%s2421_s15 + $0x10] sm:$0xff] (%p2249_p12) }
 0x197   : > { %s1336_s0 = scalar_lea.vmem (%p2249_p12), %s2650_s2, %s1951_s1  ;;  %v1377_v40 = vld [vmem:[%s2421_s15 + $0x18] sm:$0xff] (%p2249_p12) }
 0x198   : > { %1372 = vst [vmem:[%s1336_s0] sm:$0xff] (%p2249_p12), %v1371_v37 }
 0x199   : > { %1374 = vst [vmem:[%s1336_s0 + $0x10] sm:$0xff] (%p2249_p12), %v1373_v38 }
 0x19a   : > { %1376 = vst [vmem:[%s1336_s0 + $0x20] sm:$0xff] (%p2249_p12), %v1375_v39 }
 0x19b   : > { %1378 = vst [vmem:[%s1336_s0 + $0x30] sm:$0xff] %v1377_v40 }
 0x19c PF: > { %s15_s25 = sadd.s32 1, %s2127_s25   ;;  %s2666_s22 = sld [smem:[#allocation6_spill]] }
 0x19d   : > { %p12_p6 = scmp.ge.s32.totalorder %s15_s25, 18   ;;  %s2667_s24 = sld [smem:[#allocation7_spill]] }
 0x19e   : > { %s2668_s14 = sld [smem:[#allocation8_spill]]  ;;  %s2669_s15 = smov %s2091_s16 }
 0x19f   : > { %s2670_s16 = smov %s2247_s13  ;;  %s2671_s17 = smov %s2099_s18 }
 0x1a0   : > { %s2672_s18 = smov %s2244_s12  ;;  %s2673_s19 = smov %s2107_s20 }
 0x1a1   : > { %s2674_s20 = smov %s2230_s7  ;;  %s2675_s21 = smov %s2119_s23 }
 0x1a2   :  { %14 = sbr.rel (!%p12_p6) target bundleno = 9 (0x9), region = 202 }
 0x1a3   : > { %s2676_s23 = smov %s2667_s24 }
 0x1a4   : > { %s2677_s24 = smov %s2668_s14 }

// kernel: discriminator_forward.15
= control target key start
LH: loop header
LB: loop body
LE: loop exit
PB: predicated region body
PF: predicated region fallthrough
CT: control target
= control target key end

     0   :  { %vm163_vm0 = vcmask 1041408   ;;  %vm165_vm1 = vcmask 1045508   ;;  %vm167_vm2 = vcmask 1043456   ;;  %vm555_vm6 = vcmask 1024   ;;  %s875_s0 = inlined_call_operand.vmem [shape: bf16[2,8192], index: 0, kind: input, shape index: {}]   ;;  %s876_s1 = inlined_call_operand.vmem [shape: f32[1,8192], index: 1, kind: input, shape index: {}]   ;;  %s877_s2 = inlined_call_operand.vmem [shape: f32[2,1], index: 2, kind: output, shape index: {}]  }
   0x1   :  { %v583_v0 = vld [vmem:[%s875_s0] sm:$0xff]  ;;  %v588_v1 = vld [vmem:[%s875_s0 + $0x30] sm:$0xff]  ;;  %v593_v2 = vld [vmem:[%s875_s0 + $0x38] sm:$0xff] }
   0x2   :  { %v598_v3 = vld [vmem:[%s876_s1] sm:$0xff]  ;;  %v19_v4 = vunpack.c.l.bf16 %v583_v0  ;;  %v20_v5 = vunpack.c.h.bf16 %v583_v0  ;;  %v31_v6 = vunpack.c.l.bf16 %v588_v1  ;;  %v32_v7 = vunpack.c.h.bf16 %v588_v1  ;;  %v609_v10 = vld [vmem:[%s876_s1 + $0x8] sm:$0xff]  ;;  %v619_v16 = vld [vmem:[%s876_s1 + $0x30] sm:$0xff] }
   0x3   :  { %v33_v8 = vunpack.c.l.bf16 %v593_v2  ;;  %v34_v9 = vunpack.c.h.bf16 %v593_v2  ;;  %v51_v11 = vperm.slane %v598_v3, 0  ;;  %v52_v12 = vperm.slane %v598_v3, 1  ;;  %v632_v25 = vld [vmem:[%s876_s1 + $0x38] sm:$0xff] }
   0x4   :  { %v53_v13 = vperm.slane %v598_v3, 2  ;;  %v54_v14 = vperm.slane %v598_v3, 3  ;;  %v55_v15 = vperm.slane %v598_v3, 4  ;;  %v56_v17 = vperm.slane %v598_v3, 5  ;;  %v694_v0 = vld [vmem:[%s876_s1 + $0x18] sm:$0xff] }
   0x5   :  { %v57_v18 = vperm.slane %v598_v3, 6  ;;  %v58_v19 = vperm.slane %v598_v3, 7  ;;  %v59_v20 = vperm.slane %v609_v10, 0  ;;  %v60_v21 = vperm.slane %v609_v10, 1 }
   0x6   :  { %v61_v22 = vperm.slane %v609_v10, 2  ;;  %v62_v23 = vperm.slane %v609_v10, 3  ;;  %v63_v24 = vperm.slane %v609_v10, 4  ;;  %v64_v26 = vperm.slane %v609_v10, 5 }
   0x7   :  { %v65_v27 = vperm.slane %v609_v10, 6  ;;  %v66_v28 = vperm.slane %v609_v10, 7  ;;  %v99_v29 = vperm.slane %v619_v16, 0  ;;  %v100_v30 = vperm.slane %v619_v16, 1 }
   0x8   :  { %v101_v31 = vperm.slane %v619_v16, 2  ;;  %v102_v32 = vperm.slane %v619_v16, 3  ;;  %v103_v33 = vperm.slane %v619_v16, 4  ;;  %v104_v34 = vperm.slane %v619_v16, 5 }
   0x9   :  { %v105_v35 = vperm.slane %v619_v16, 6  ;;  %v106_v36 = vperm.slane %v619_v16, 7  ;;  %v107_v37 = vperm.slane %v632_v25, 0  ;;  %v108_v38 = vperm.slane %v632_v25, 1 }
   0xa   :  { %v109_v39 = vperm.slane %v632_v25, 2  ;;  %v110_v40 = vperm.slane %v632_v25, 3  ;;  %v111_v41 = vperm.slane %v632_v25, 4  ;;  %v112_v42 = vperm.slane %v632_v25, 5 }
   0xb   :  { %v115_v43 = vrot.slane %v52_v12, 6  ;;  %v116_v44 = vrot.slane %v53_v13, 4  ;;  %v117_v45 = vrot.slane %v54_v14, 2  ;;  %v113_v46 = vperm.slane %v632_v25, 6 }
   0xc   :  { %v118_v47 = vrot.slane %v56_v17, 6  ;;  %v119_v48 = vrot.slane %v57_v18, 4  ;;  %v120_v49 = vrot.slane %v58_v19, 2  ;;  %v114_v50 = vperm.slane %v632_v25, 7 }
   0xd   :  { %v121_v51 = vrot.slane %v60_v21, 6  ;;  %v151_v52 = vrot.slane %v100_v30, 6  ;;  %v152_v53 = vrot.slane %v101_v31, 4  ;;  %v153_v54 = vrot.slane %v102_v32, 2 }
   0xe   :  { %v154_v55 = vrot.slane %v104_v34, 6  ;;  %v155_v56 = vrot.slane %v105_v35, 4  ;;  %v156_v57 = vrot.slane %v106_v36, 2  ;;  %v157_v58 = vrot.slane %v108_v38, 6 }
   0xf   :  { %v164_v59 = vsel %vm163_vm0, %v51_v11, %v115_v43  ;;  %v166_v60 = vsel %vm165_vm1, %v116_v44, %v117_v45  ;;  %v158_v61 = vrot.slane %v109_v39, 4  ;;  %v159_v62 = vrot.slane %v110_v40, 2 }
  0x10   :  { %v169_v63 = vsel %vm163_vm0, %v55_v15, %v118_v47  ;;  %v170_v3 = vsel %vm165_vm1, %v119_v48, %v120_v49  ;;  %v122_v12 = vrot.slane %v61_v22, 4  ;;  %v160_v13 = vrot.slane %v112_v42, 6  ;;  %v12_v15 = vld [vmem:[%s875_s0 + $0x8] sm:$0xff]  ;;  %v668_v22 = vld [vmem:[%s876_s1 + $0x10] sm:$0xff] }
  0x11   :  { %v161_v14 = vrot.slane %v113_v46, 4  ;;  %v162_v16 = vrot.slane %v114_v50, 2  ;;  %v123_v17 = vrot.slane %v62_v23, 2  ;;  %v124_v18 = vrot.slane %v64_v26, 6 }
  0x12   :  { %v125_v19 = vrot.slane %v65_v27, 4  ;;  %v168_v21 = vsel %vm167_vm2, %v164_v59, %v166_v60  ;;  %v171_v11 = vsel %vm167_vm2, %v169_v63, %v170_v3  ;;  %v202_v25 = vsel %vm163_vm0, %v99_v29, %v151_v52 }
  0x13   :  { %v203_v30 = vsel %vm165_vm1, %v152_v53, %v153_v54  ;;  %v205_v31 = vsel %vm163_vm0, %v103_v33, %v154_v55  ;;  %v206_v26 = vsel %vm165_vm1, %v155_v56, %v156_v57  ;;  %v208_v27 = vsel %vm163_vm0, %v107_v37, %v157_v58  ;;  %v13_v55 = vld [vmem:[%s875_s0 + $0x10] sm:$0xff] }
  0x14   :  { %v204_v23 = vsel %vm167_vm2, %v202_v25, %v203_v30  ;;  %v209_v29 = vsel %vm165_vm1, %v158_v61, %v159_v62  ;;  %v207_v32 = vsel %vm167_vm2, %v205_v31, %v206_v26  ;;  %v211_v34 = vsel %vm163_vm0, %v111_v41, %v160_v13  ;;  %v733_v13 = vld [vmem:[%s876_s1 + $0x20] sm:$0xff] }
  0x15   :  { %v210_v33 = vsel %vm167_vm2, %v208_v27, %v209_v29  ;;  %v212_v35 = vsel %vm165_vm1, %v161_v14, %v162_v16  ;;  %v126_v36 = vrot.slane %v66_v28, 2  ;;  %v230_v39 = vmul.f32 %v168_v21, %v19_v4 }
  0x16   :  { %v213_v38 = vsel %vm167_vm2, %v211_v34, %v212_v35  ;;  %v231_v40 = vmul.f32 %v171_v11, %v20_v5  ;;  %v21_v37 = vunpack.c.l.bf16 %v12_v15  ;;  %v68_v42 = vperm.slane %v668_v22, 1 }
  0x17   :  { %v69_v43 = vperm.slane %v668_v22, 2  ;;  %v70_v44 = vperm.slane %v668_v22, 3  ;;  %v72_v41 = vperm.slane %v668_v22, 5  ;;  %v73_v45 = vperm.slane %v668_v22, 6  ;;  %262 = vst [vmem:[#allocation1] ss:$4 sm:$0xff] %v230_v39 }
  0x18   :  { %v172_v28 = vsel %vm163_vm0, %v59_v20, %v121_v51  ;;  %v173_v4 = vsel %vm165_vm1, %v122_v12, %v123_v17  ;;  %v699_v5 = vmul.f32 %v204_v23, %v31_v6  ;;  %v703_v46 = vmul.f32 %v207_v32, %v32_v7  ;;  %264 = vst [vmem:[#allocation1 + $0x20] ss:$4 sm:$0xff] %v231_v40 }
  0x19   :  { %v707_v47 = vmul.f32 %v210_v33, %v33_v8  ;;  %v74_v20 = vperm.slane %v668_v22, 7  ;;  %v175_v48 = vsel %vm163_vm0, %v63_v24, %v124_v18  ;;  %v176_v49 = vsel %vm165_vm1, %v125_v19, %v126_v36 }
  0x1a   :  { %v716_v6 = vmul.f32 %v213_v38, %v34_v9  ;;  %v22_v1 = vunpack.c.h.bf16 %v12_v15  ;;  %v67_v7 = vperm.slane %v668_v22, 0  ;;  %v71_v50 = vperm.slane %v668_v22, 4 }
  0x1b   :  { %v75_v8 = vperm.slane %v694_v0, 0  ;;  %v76_v51 = vperm.slane %v694_v0, 1  ;;  %v77_v52 = vperm.slane %v694_v0, 2  ;;  %v78_v10 = vperm.slane %v694_v0, 3 }
  0x1c   :  { %v174_v24 = vsel %vm167_vm2, %v172_v28, %v173_v4  ;;  %v79_v53 = vperm.slane %v694_v0, 4  ;;  %v127_v2 = vrot.slane %v68_v42, 6  ;;  %v128_v9 = vrot.slane %v69_v43, 4 }
  0x1d   :  { %v177_v54 = vsel %vm167_vm2, %v175_v48, %v176_v49  ;;  %v129_v56 = vrot.slane %v70_v44, 2  ;;  %v130_v57 = vrot.slane %v72_v41, 6  ;;  %v131_v58 = vrot.slane %v73_v45, 4  ;;  %v14_v49 = vld [vmem:[%s875_s0 + $0x18] sm:$0xff] }
  0x1e   :  { %v132_v59 = vrot.slane %v74_v20, 2  ;;  %v232_v60 = vmul.f32 %v174_v24, %v21_v37  ;;  %v265_v61 = vld.sshfl [vmem:[#allocation1] sm:$0xff pattern:$0x73625140]  ;;  %v233_v63 = vmul.f32 %v177_v54, %v22_v1  ;;  %v23_v17 = vunpack.c.l.bf16 %v13_v55 }
  0x1f   :  { %v266_v62 = vld.sshfl [vmem:[#allocation1 + $0x8] sm:$0xff pattern:$0x73625140]  ;;  %v267_v3 = vld.sshfl [vmem:[#allocation1 + $0x10] sm:$0xff pattern:$0x73625140]  ;;  %v24_v18 = vunpack.c.h.bf16 %v13_v55  ;;  %v178_v22 = vsel %vm163_vm0, %v67_v7, %v127_v2  ;;  %v179_v23 = vsel %vm165_vm1, %v128_v9, %v129_v56  ;;  %v181_v29 = vsel %vm163_vm0, %v71_v50, %v130_v57 }
  0x20   :  { %v268_v12 = vld.sshfl [vmem:[#allocation1 + $0x18] sm:$0xff pattern:$0x73625140]  ;;  %v269_v14 = vld.sshfl [vmem:[#allocation1 + $0x20] sm:$0xff pattern:$0x73625140]  ;;  %v182_v32 = vsel %vm165_vm1, %v131_v58, %v132_v59  ;;  %v180_v37 = vsel %vm167_vm2, %v178_v22, %v179_v23  ;;  %v25_v59 = vunpack.c.l.bf16 %v14_v49 }
  0x21   :  { %v270_v16 = vld.sshfl [vmem:[#allocation1 + $0x28] sm:$0xff pattern:$0x73625140]  ;;  %v271_v19 = vld.sshfl [vmem:[#allocation1 + $0x30] sm:$0xff pattern:$0x73625140]  ;;  %v183_v41 = vsel %vm167_vm2, %v181_v29, %v182_v32  ;;  %v234_v1 = vmul.f32 %v180_v37, %v23_v17 }
  0x22   :  { %v272_v21 = vld.sshfl [vmem:[#allocation1 + $0x38] sm:$0xff pattern:$0x73625140]  ;;  %v80_v11 = vperm.slane %v694_v0, 5  ;;  %273 = vst [vmem:[#allocation1] ss:$4 sm:$0xff] %v232_v60  ;;  %v26_v60 = vunpack.c.h.bf16 %v14_v49 }
  0x23   :  { %v407_v25 = vsel %vm163_vm0, %v265_v61, 0.0  ;;  %v408_v30 = vsel %vm163_vm0, %v266_v62, 0.0  ;;  %v410_v31 = vsel %vm163_vm0, %v267_v3, 0.0  ;;  %v81_v15 = vperm.slane %v694_v0, 6  ;;  %274 = vst [vmem:[#allocation1 + $0x20] ss:$4 sm:$0xff] %v233_v63 }
  0x24   :  { %v409_v26 = vadd.f32 %v408_v30, %v407_v25  ;;  %v82_v27 = vperm.slane %v694_v0, 7  ;;  %v412_v33 = vsel %vm163_vm0, %v268_v12, 0.0  ;;  %v83_v34 = vperm.slane %v733_v13, 0  ;;  %v762_v9 = vld [vmem:[%s876_s1 + $0x28] sm:$0xff] }
  0x25   :  { %v84_v35 = vperm.slane %v733_v13, 1  ;;  %v85_v36 = vperm.slane %v733_v13, 2  ;;  %v86_v39 = vperm.slane %v733_v13, 3  ;;  %v133_v40 = vrot.slane %v76_v51, 6 }
  0x26   :  { %v411_v38 = vadd.f32 %v410_v31, %v409_v26  ;;  %v414_v42 = vsel %vm163_vm0, %v269_v14, 0.0  ;;  %v134_v43 = vrot.slane %v77_v52, 4  ;;  %v135_v44 = vrot.slane %v78_v10, 2 }
  0x27   :  { %v136_v28 = vrot.slane %v80_v11, 6  ;;  %v137_v4 = vrot.slane %v81_v15, 4  ;;  %v138_v20 = vrot.slane %v82_v27, 2  ;;  %v416_v48 = vsel %vm163_vm0, %v270_v16, 0.0 }
  0x28   :  { %v413_v45 = vadd.f32 %v412_v33, %v411_v38  ;;  %v418_v51 = vsel %vm163_vm0, %v271_v19, 0.0  ;;  %v420_v52 = vsel %vm163_vm0, %v272_v21, 0.0  ;;  %v235_v10 = vmul.f32 %v183_v41, %v24_v18 }
  0x29   :  { %v275_v7 = vld.sshfl [vmem:[#allocation1] sm:$0xff pattern:$0x73625140]  ;;  %v276_v24 = vld.sshfl [vmem:[#allocation1 + $0x8] sm:$0xff pattern:$0x73625140]  ;;  %v184_v12 = vsel %vm163_vm0, %v75_v8, %v133_v40  ;;  %v185_v14 = vsel %vm165_vm1, %v134_v43, %v135_v44  ;;  %v187_v18 = vsel %vm163_vm0, %v79_v53, %v136_v28  ;;  %v188_v19 = vsel %vm165_vm1, %v137_v4, %v138_v20 }
  0x2a   :  { %v415_v50 = vadd.f32 %v414_v42, %v413_v45  ;;  %v277_v2 = vld.sshfl [vmem:[#allocation1 + $0x10] sm:$0xff pattern:$0x73625140]  ;;  %v278_v54 = vld.sshfl [vmem:[#allocation1 + $0x18] sm:$0xff pattern:$0x73625140]  ;;  %v186_v22 = vsel %vm167_vm2, %v184_v12, %v185_v14  ;;  %v189_v26 = vsel %vm167_vm2, %v187_v18, %v188_v19 }
  0x2b   :  { %v279_v55 = vld.sshfl [vmem:[#allocation1 + $0x20] sm:$0xff pattern:$0x73625140]  ;;  %v280_v57 = vld.sshfl [vmem:[#allocation1 + $0x28] sm:$0xff pattern:$0x73625140]  ;;  %v236_v37 = vmul.f32 %v186_v22, %v25_v59  ;;  %v237_v44 = vmul.f32 %v189_v26, %v26_v60 }
  0x2c   :  { %v417_v56 = vadd.f32 %v416_v48, %v415_v50  ;;  %v281_v58 = vld.sshfl [vmem:[#allocation1 + $0x30] sm:$0xff pattern:$0x73625140]  ;;  %v87_v61 = vperm.slane %v733_v13, 4  ;;  %283 = vst [vmem:[#allocation1] ss:$4 sm:$0xff] %v234_v1 }
  0x2d   :  { %v765_v62 = vld.sshfl [vmem:[#allocation1 + $0x38] sm:$0xff pattern:$0x73625140]  ;;  %v88_v3 = vperm.slane %v733_v13, 5  ;;  %v422_v16 = vsel %vm163_vm0, %v275_v7, 0.0  ;;  %v89_v17 = vperm.slane %v733_v13, 6 }
  0x2e   :  { %v419_v63 = vadd.f32 %v418_v51, %v417_v56  ;;  %284 = vst [vmem:[#allocation1 + $0x20] ss:$4 sm:$0xff] %v235_v10  ;;  %v90_v11 = vperm.slane %v733_v13, 7  ;;  %v92_v25 = vperm.slane %v762_v9, 1  ;;  %v93_v8 = vperm.slane %v762_v9, 2 }
  0x2f   :  { %v424_v30 = vsel %vm163_vm0, %v276_v24, 0.0  ;;  %v94_v31 = vperm.slane %v762_v9, 3  ;;  %v96_v15 = vperm.slane %v762_v9, 5  ;;  %v139_v23 = vrot.slane %v84_v35, 6 }
  0x30   :  { %v421_v21 = vadd.f32 %v420_v52, %v419_v63  ;;  %v140_v53 = vrot.slane %v85_v36, 4  ;;  %v426_v27 = vsel %vm163_vm0, %v277_v2, 0.0  ;;  %v141_v29 = vrot.slane %v86_v39, 2  ;;  %v15_v36 = vld [vmem:[%s875_s0 + $0x20] sm:$0xff] }
  0x31   :  { %v142_v32 = vrot.slane %v88_v3, 6  ;;  %v143_v33 = vrot.slane %v89_v17, 4  ;;  %v144_v40 = vrot.slane %v90_v11, 2  ;;  %v428_v42 = vsel %vm163_vm0, %v278_v54, 0.0 }
  0x32   :  { %v423_v0 = vadd.f32 %v422_v16, %v421_v21  ;;  %v430_v43 = vsel %vm163_vm0, %v279_v55, 0.0  ;;  %v432_v7 = vsel %vm163_vm0, %v280_v57, 0.0  ;;  %v97_v50 = vperm.slane %v762_v9, 6 }
  0x33   :  { %v285_v41 = vld.sshfl [vmem:[#allocation1] sm:$0xff pattern:$0x73625140]  ;;  %v286_v45 = vld.sshfl [vmem:[#allocation1 + $0x8] sm:$0xff pattern:$0x73625140]  ;;  %v190_v51 = vsel %vm163_vm0, %v83_v34, %v139_v23  ;;  %v191_v52 = vsel %vm165_vm1, %v140_v53, %v141_v29  ;;  %v193_v2 = vsel %vm163_vm0, %v87_v61, %v142_v32  ;;  %v194_v54 = vsel %vm165_vm1, %v143_v33, %v144_v40 }
  0x34   :  { %v425_v38 = vadd.f32 %v424_v30, %v423_v0  ;;  %v287_v28 = vld.sshfl [vmem:[#allocation1 + $0x10] sm:$0xff pattern:$0x73625140]  ;;  %v288_v4 = vld.sshfl [vmem:[#allocation1 + $0x18] sm:$0xff pattern:$0x73625140]  ;;  %v27_v56 = vunpack.c.l.bf16 %v15_v36  ;;  %v28_v57 = vunpack.c.h.bf16 %v15_v36  ;;  %v192_v63 = vsel %vm167_vm2, %v190_v51, %v191_v52 }
  0x35   :  { %v289_v39 = vld.sshfl [vmem:[#allocation1 + $0x20] sm:$0xff pattern:$0x73625140]  ;;  %v290_v20 = vld.sshfl [vmem:[#allocation1 + $0x28] sm:$0xff pattern:$0x73625140]  ;;  %v195_v61 = vsel %vm167_vm2, %v193_v2, %v194_v54 }
  0x36   :  { %v427_v35 = vadd.f32 %v426_v27, %v425_v38  ;;  %v792_v48 = vld.sshfl [vmem:[#allocation1 + $0x30] sm:$0xff pattern:$0x73625140]  ;;  %v292_v1 = vld.sshfl [vmem:[#allocation1 + $0x38] sm:$0xff pattern:$0x73625140]  ;;  %v238_v21 = vmul.f32 %v192_v63, %v27_v56  ;;  %v239_v30 = vmul.f32 %v195_v61, %v28_v57 }
  0x37   :  { %293 = vst [vmem:[#allocation1] ss:$4 sm:$0xff] %v236_v37  ;;  %v98_v24 = vperm.slane %v762_v9, 7  ;;  %v434_v55 = vsel %vm163_vm0, %v281_v58, 0.0  ;;  %v91_v59 = vperm.slane %v762_v9, 0  ;;  %v95_v13 = vperm.slane %v762_v9, 4 }
  0x38   :  { %v429_v49 = vadd.f32 %v428_v42, %v427_v35  ;;  %294 = vst [vmem:[#allocation1 + $0x20] ss:$4 sm:$0xff] %v237_v44  ;;  %v145_v34 = vrot.slane %v92_v25, 6  ;;  %v436_v3 = vsel %vm163_vm0, %v765_v62, 0.0  ;;  %v146_v12 = vrot.slane %v93_v8, 4 }
  0x39   :  { %v147_v14 = vrot.slane %v94_v31, 2  ;;  %v148_v17 = vrot.slane %v96_v15, 6  ;;  %v149_v58 = vrot.slane %v97_v50, 4  ;;  %v150_v18 = vrot.slane %v98_v24, 2  ;;  %v16_v15 = vld [vmem:[%s875_s0 + $0x28] sm:$0xff] }
  0x3a   :  { %v431_v10 = vadd.f32 %v430_v43, %v429_v49  ;;  %v438_v19 = vsel %vm163_vm0, %v285_v41, 0.0  ;;  %v440_v9 = vsel %vm163_vm0, %v286_v45, 0.0  ;;  %v442_v25 = vsel %vm163_vm0, %v287_v28, 0.0 }
  0x3b   :  { %v196_v32 = vsel %vm163_vm0, %v91_v59, %v145_v34  ;;  %v197_v33 = vsel %vm165_vm1, %v146_v12, %v147_v14  ;;  %v444_v38 = vsel %vm163_vm0, %v288_v4, 0.0  ;;  %v199_v40 = vsel %vm163_vm0, %v95_v13, %v148_v17 }
  0x3c   :  { %v433_v60 = vadd.f32 %v432_v7, %v431_v10  ;;  %v200_v37 = vsel %vm165_vm1, %v149_v58, %v150_v18  ;;  %v29_v43 = vunpack.c.l.bf16 %v16_v15  ;;  %v446_v44 = vsel %vm163_vm0, %v289_v39, 0.0 }
  0x3d   :  { %v30_v41 = vunpack.c.h.bf16 %v16_v15  ;;  %v198_v45 = vsel %vm167_vm2, %v196_v32, %v197_v33  ;;  %v201_v35 = vsel %vm167_vm2, %v199_v40, %v200_v37  ;;  %v448_v36 = vsel %vm163_vm0, %v290_v20, 0.0 }
  0x3e   :  { %v435_v16 = vadd.f32 %v434_v55, %v433_v60  ;;  %v295_v22 = vld.sshfl [vmem:[#allocation1] sm:$0xff pattern:$0x73625140]  ;;  %v296_v0 = vld.sshfl [vmem:[#allocation1 + $0x8] sm:$0xff pattern:$0x73625140]  ;;  %v240_v7 = vmul.f32 %v198_v45, %v29_v43 }
  0x3f   :  { %v297_v62 = vld.sshfl [vmem:[#allocation1 + $0x10] sm:$0xff pattern:$0x73625140]  ;;  %v298_v8 = vld.sshfl [vmem:[#allocation1 + $0x18] sm:$0xff pattern:$0x73625140]  ;;  %v241_v51 = vmul.f32 %v201_v35, %v30_v41 }
  0x40   :  { %v437_v11 = vadd.f32 %v436_v3, %v435_v16  ;;  %v299_v31 = vld.sshfl [vmem:[#allocation1 + $0x20] sm:$0xff pattern:$0x73625140]  ;;  %v300_v53 = vld.sshfl [vmem:[#allocation1 + $0x28] sm:$0xff pattern:$0x73625140] }
  0x41   :  { %v301_v26 = vld.sshfl [vmem:[#allocation1 + $0x30] sm:$0xff pattern:$0x73625140]  ;;  %v302_v27 = vld.sshfl [vmem:[#allocation1 + $0x38] sm:$0xff pattern:$0x73625140] }
  0x42   :  { %v439_v23 = vadd.f32 %v438_v19, %v437_v11  ;;  %303 = vst [vmem:[#allocation1] ss:$4 sm:$0xff] %v238_v21  ;;  %v450_v4 = vsel %vm163_vm0, %v792_v48, 0.0  ;;  %v452_v50 = vsel %vm163_vm0, %v292_v1, 0.0  ;;  %v454_v20 = vsel %vm163_vm0, %v295_v22, 0.0 }
  0x43   :  { %304 = vst [vmem:[#allocation1 + $0x20] ss:$4 sm:$0xff] %v239_v30  ;;  %v456_v48 = vsel %vm163_vm0, %v296_v0, 0.0  ;;  %v458_v1 = vsel %vm163_vm0, %v297_v62, 0.0  ;;  %v460_v63 = vsel %vm163_vm0, %v298_v8, 0.0  ;;  %v462_v12 = vsel %vm163_vm0, %v299_v31, 0.0 }
  0x44   :  { %v441_v29 = vadd.f32 %v440_v9, %v439_v23  ;;  %v464_v14 = vsel %vm163_vm0, %v300_v53, 0.0  ;;  %v466_v30 = vsel %vm163_vm0, %v301_v26, 0.0  ;;  %v468_v0 = vsel %vm163_vm0, %v302_v27, 0.0 }
  0x46   :  { %v443_v42 = vadd.f32 %v442_v25, %v441_v29 }
  0x48   :  { %v445_v28 = vadd.f32 %v444_v38, %v443_v42 }
  0x49   :  { %v305_v52 = vld.sshfl [vmem:[#allocation1] sm:$0xff pattern:$0x73625140]  ;;  %v306_v10 = vld.sshfl [vmem:[#allocation1 + $0x8] sm:$0xff pattern:$0x73625140] }
  0x4a   :  { %v447_v49 = vadd.f32 %v446_v44, %v445_v28  ;;  %v307_v24 = vld.sshfl [vmem:[#allocation1 + $0x10] sm:$0xff pattern:$0x73625140]  ;;  %v308_v2 = vld.sshfl [vmem:[#allocation1 + $0x18] sm:$0xff pattern:$0x73625140] }
  0x4b   :  { %v309_v54 = vld.sshfl [vmem:[#allocation1 + $0x20] sm:$0xff pattern:$0x73625140]  ;;  %v310_v55 = vld.sshfl [vmem:[#allocation1 + $0x28] sm:$0xff pattern:$0x73625140] }
  0x4c   :  { %v449_v39 = vadd.f32 %v448_v36, %v447_v49  ;;  %v311_v56 = vld.sshfl [vmem:[#allocation1 + $0x30] sm:$0xff pattern:$0x73625140]  ;;  %v312_v59 = vld.sshfl [vmem:[#allocation1 + $0x38] sm:$0xff pattern:$0x73625140] }
  0x4d   :  { %313 = vst [vmem:[#allocation1] ss:$4 sm:$0xff] %v240_v7  ;;  %v470_v8 = vsel %vm163_vm0, %v305_v52, 0.0  ;;  %v472_v23 = vsel %vm163_vm0, %v306_v10, 0.0  ;;  %v474_v53 = vsel %vm163_vm0, %v307_v24, 0.0  ;;  %v476_v27 = vsel %vm163_vm0, %v308_v2, 0.0 }
  0x4e   :  { %v451_v57 = vadd.f32 %v450_v4, %v449_v39  ;;  %314 = vst [vmem:[#allocation1 + $0x20] ss:$4 sm:$0xff] %v241_v51  ;;  %v478_v43 = vsel %vm163_vm0, %v309_v54, 0.0  ;;  %v480_v41 = vsel %vm163_vm0, %v310_v55, 0.0  ;;  %v482_v28 = vsel %vm163_vm0, %v311_v56, 0.0 }
  0x4f   :  { %v484_v36 = vsel %vm163_vm0, %v312_v59, 0.0 }
  0x50   :  { %v453_v60 = vadd.f32 %v452_v50, %v451_v57 }
  0x52   :  { %v455_v13 = vadd.f32 %v454_v20, %v453_v60 }
  0x54   :  { %v457_v34 = vadd.f32 %v456_v48, %v455_v13  ;;  %v315_v61 = vld.sshfl [vmem:[#allocation1] sm:$0xff pattern:$0x73625140]  ;;  %v316_v16 = vld.sshfl [vmem:[#allocation1 + $0x8] sm:$0xff pattern:$0x73625140] }
  0x55   :  { %v317_v17 = vld.sshfl [vmem:[#allocation1 + $0x10] sm:$0xff pattern:$0x73625140]  ;;  %v318_v58 = vld.sshfl [vmem:[#allocation1 + $0x18] sm:$0xff pattern:$0x73625140] }
  0x56   :  { %v459_v3 = vadd.f32 %v458_v1, %v457_v34  ;;  %v319_v18 = vld.sshfl [vmem:[#allocation1 + $0x20] sm:$0xff pattern:$0x73625140]  ;;  %v320_v21 = vld.sshfl [vmem:[#allocation1 + $0x28] sm:$0xff pattern:$0x73625140] }
  0x57   :  { %v321_v11 = vld.sshfl [vmem:[#allocation1 + $0x30] sm:$0xff pattern:$0x73625140]  ;;  %v322_v9 = vld.sshfl [vmem:[#allocation1 + $0x38] sm:$0xff pattern:$0x73625140] }
  0x58   :  { %v461_v19 = vadd.f32 %v460_v63, %v459_v3  ;;  %323 = vst [vmem:[#allocation1] ss:$4 sm:$0xff] %v699_v5  ;;  %v486_v7 = vsel %vm163_vm0, %v315_v61, 0.0  ;;  %v488_v4 = vsel %vm163_vm0, %v316_v16, 0.0  ;;  %v492_v52 = vsel %vm163_vm0, %v318_v58, 0.0 }
  0x59   :  { %324 = vst [vmem:[#allocation1 + $0x20] ss:$4 sm:$0xff] %v703_v46  ;;  %v494_v24 = vsel %vm163_vm0, %v319_v18, 0.0  ;;  %v496_v2 = vsel %vm163_vm0, %v320_v21, 0.0  ;;  %v498_v55 = vsel %vm163_vm0, %v321_v11, 0.0  ;;  %v500_v57 = vsel %vm163_vm0, %v322_v9, 0.0 }
  0x5a   :  { %v463_v25 = vadd.f32 %v462_v12, %v461_v19 }
  0x5c   :  { %v465_v22 = vadd.f32 %v464_v14, %v463_v25 }
  0x5e   :  { %v467_v62 = vadd.f32 %v466_v30, %v465_v22 }
  0x5f   :  { %v325_v15 = vld.sshfl [vmem:[#allocation1] sm:$0xff pattern:$0x73625140]  ;;  %v326_v29 = vld.sshfl [vmem:[#allocation1 + $0x8] sm:$0xff pattern:$0x73625140] }
  0x60   :  { %v469_v31 = vadd.f32 %v468_v0, %v467_v62  ;;  %v327_v32 = vld.sshfl [vmem:[#allocation1 + $0x10] sm:$0xff pattern:$0x73625140]  ;;  %v328_v33 = vld.sshfl [vmem:[#allocation1 + $0x18] sm:$0xff pattern:$0x73625140] }
  0x61   :  { %v329_v38 = vld.sshfl [vmem:[#allocation1 + $0x20] sm:$0xff pattern:$0x73625140]  ;;  %v330_v46 = vld.sshfl [vmem:[#allocation1 + $0x28] sm:$0xff pattern:$0x73625140] }
  0x62   :  { %v471_v5 = vadd.f32 %v470_v8, %v469_v31  ;;  %v331_v40 = vld.sshfl [vmem:[#allocation1 + $0x30] sm:$0xff pattern:$0x73625140]  ;;  %v332_v37 = vld.sshfl [vmem:[#allocation1 + $0x38] sm:$0xff pattern:$0x73625140] }
  0x63   :  { %333 = vst [vmem:[#allocation1] ss:$4 sm:$0xff] %v707_v47  ;;  %v502_v20 = vsel %vm163_vm0, %v325_v15, 0.0  ;;  %v504_v48 = vsel %vm163_vm0, %v326_v29, 0.0  ;;  %v506_v1 = vsel %vm163_vm0, %v327_v32, 0.0  ;;  %v508_v63 = vsel %vm163_vm0, %v328_v33, 0.0 }
  0x64   :  { %v473_v26 = vadd.f32 %v472_v23, %v471_v5  ;;  %334 = vst [vmem:[#allocation1 + $0x20] ss:$4 sm:$0xff] %v716_v6  ;;  %v490_v6 = vsel %vm163_vm0, %v317_v17, 0.0  ;;  %v510_v12 = vsel %vm163_vm0, %v329_v38, 0.0  ;;  %v512_v61 = vsel %vm163_vm0, %v330_v46, 0.0 }
  0x65   :  { %v514_v17 = vsel %vm163_vm0, %v331_v40, 0.0  ;;  %v516_v19 = vsel %vm163_vm0, %v332_v37, 0.0 }
  0x66   :  { %v475_v42 = vadd.f32 %v474_v53, %v473_v26 }
  0x68   :  { %v477_v44 = vadd.f32 %v476_v27, %v475_v42 }
  0x6a   :  { %v479_v45 = vadd.f32 %v478_v43, %v477_v44  ;;  %v335_v58 = vld.sshfl [vmem:[#allocation1] sm:$0xff pattern:$0x73625140]  ;;  %v336_v21 = vld.sshfl [vmem:[#allocation1 + $0x8] sm:$0xff pattern:$0x73625140] }
  0x6b   :  { %v518_v9 = vsel %vm163_vm0, %v335_v58, 0.0  ;;  %v337_v25 = vld.sshfl [vmem:[#allocation1 + $0x10] sm:$0xff pattern:$0x73625140]  ;;  %v520_v22 = vsel %vm163_vm0, %v336_v21, 0.0 }
  0x6c   :  { %v481_v35 = vadd.f32 %v480_v41, %v479_v45  ;;  %v338_v0 = vld.sshfl [vmem:[#allocation1 + $0x18] sm:$0xff pattern:$0x73625140]  ;;  %v522_v8 = vsel %vm163_vm0, %v337_v25, 0.0 }
  0x6d   :  { %v339_v31 = vld.sshfl [vmem:[#allocation1 + $0x20] sm:$0xff pattern:$0x73625140]  ;;  %v524_v53 = vsel %vm163_vm0, %v338_v0, 0.0 }
  0x6e   :  { %v483_v49 = vadd.f32 %v482_v28, %v481_v35  ;;  %v340_v15 = vld.sshfl [vmem:[#allocation1 + $0x28] sm:$0xff pattern:$0x73625140]  ;;  %v526_v32 = vsel %vm163_vm0, %v339_v31, 0.0 }
  0x6f   :  { %v341_v5 = vld.sshfl [vmem:[#allocation1 + $0x30] sm:$0xff pattern:$0x73625140]  ;;  %v528_v38 = vsel %vm163_vm0, %v340_v15, 0.0 }
  0x70   :  { %v485_v47 = vadd.f32 %v484_v36, %v483_v49  ;;  %v342_v46 = vld.sshfl [vmem:[#allocation1 + $0x38] sm:$0xff pattern:$0x73625140]  ;;  %v530_v26 = vsel %vm163_vm0, %v341_v5, 0.0 }
  0x71   :  { %v532_v27 = vsel %vm163_vm0, %v342_v46, 0.0 }
  0x72   :  { %v487_v50 = vadd.f32 %v486_v7, %v485_v47 }
  0x74   :  { %v489_v51 = vadd.f32 %v488_v4, %v487_v50 }
  0x76   :  { %v491_v10 = vadd.f32 %v490_v6, %v489_v51 }
  0x78   :  { %v493_v39 = vadd.f32 %v492_v52, %v491_v10 }
  0x7a   :  { %v495_v54 = vadd.f32 %v494_v24, %v493_v39 }
  0x7c   :  { %v497_v56 = vadd.f32 %v496_v2, %v495_v54 }
  0x7e   :  { %v499_v59 = vadd.f32 %v498_v55, %v497_v56 }
  0x80   :  { %v501_v60 = vadd.f32 %v500_v57, %v499_v59 }
  0x82   :  { %v503_v13 = vadd.f32 %v502_v20, %v501_v60 }
  0x84   :  { %v505_v34 = vadd.f32 %v504_v48, %v503_v13 }
  0x86   :  { %v507_v3 = vadd.f32 %v506_v1, %v505_v34 }
  0x88   :  { %v509_v14 = vadd.f32 %v508_v63, %v507_v3 }
  0x8a   :  { %v511_v16 = vadd.f32 %v510_v12, %v509_v14 }
  0x8c   :  { %v513_v18 = vadd.f32 %v512_v61, %v511_v16 }
  0x8e   :  { %v515_v11 = vadd.f32 %v514_v17, %v513_v18 }
  0x90   :  { %v517_v30 = vadd.f32 %v516_v19, %v515_v11 }
  0x92   :  { %v519_v62 = vadd.f32 %v518_v9, %v517_v30 }
  0x94   :  { %v521_v23 = vadd.f32 %v520_v22, %v519_v62 }
  0x96   :  { %v523_v29 = vadd.f32 %v522_v8, %v521_v23 }
  0x98   :  { %v525_v33 = vadd.f32 %v524_v53, %v523_v29 }
  0x9a   :  { %v527_v40 = vadd.f32 %v526_v32, %v525_v33 }
  0x9c   :  { %v529_v37 = vadd.f32 %v528_v38, %v527_v40 }
  0x9e   :  { %v531_v42 = vadd.f32 %v530_v26, %v529_v37 }
  0xa0   :  { %v533_v43 = vadd.f32 %v532_v27, %v531_v42 }
  0xa2   :  { %534 = vadd.xlane.f32.xlu0 %v533_v43 }
 0x115   :  { %v535_v44 = vpop.xlane.xlu0 %534 }
 0x116   :  { %v536_v41 = vsub.f32 0.0, %v535_v44 }
 0x118   :  { %v537_v45 = vmul.f32 1.442695, %v536_v41 }
 0x11a   :  { %561 = vpow2.f32 %v537_v45 }
 0x120   :  { %v562_v28 = vpop.eup %561 }
 0x121   :  { %v539_v35 = vadd.f32 1.0, %v562_v28 }
 0x123   :  { %563 = vrcp.f32 %v539_v35  ;;  %v551_v47 = vand.u32 2147483648, %v539_v35  ;;  %v549_v50 = vand.u32 2147483647, %v539_v35  ;;  %vm545_vm4 = vweird.f32 %v539_v35 }
 0x125   :  { %v552_v51 = vor.u32 1.1754944e-38, %v551_v47  ;;  %vm550_vm7 = vcmp.eq.f32.partialorder %v549_v50, 8.507059e+37 }
 0x129   :  { %v564_v36 = vpop.eup %563 }
 0x12a   :  { %v541_v49 = vmul.f32 %v564_v36, %v539_v35  ;;  %vm546_vm3 = vweird.f32 %v564_v36 }
 0x12b   :  { %vm547_vm5 = vmor %vm545_vm4, %vm546_vm3 }
 0x12c   :  { %v542_v7 = vsub.f32 1.0, %v541_v49 }
 0x12e   :  { %v543_v4 = vmul.f32 %v564_v36, %v542_v7 }
 0x130   :  { %v544_v6 = vadd.f32 %v564_v36, %v543_v4 }
 0x132   :  { %v548_v52 = vsel %vm547_vm5, %v564_v36, %v544_v6 }
 0x133   :  { %v553_v10 = vsel %vm550_vm7, %v552_v51, %v548_v52 }
 0x134   :  { %556 = vst.msk [vmem:[%s877_s2] sm:$0x3] %vm555_vm6, %v553_v10 }

</bundles_post_ra>
